<compile_context>
chip_gen: v7x
topology: tpu7x:2x2x1
jax: 0.10.0
libtpu: 0.0.40
codegen_flags: <defaults>
</compile_context>

<pallas_src>
import functools

import jax
import jax.numpy as jnp
from jax.experimental import pallas as pl
from jax.experimental.pallas import tpu as pltpu


def _pyramid_kernel(x_ref,
                    p3_ref, w3_ref, b3_ref,
                    p5_ref, w5_ref, b5_ref,
                    p7_ref, w7_ref, b7_ref,
                    out_ref, *, W: int):
    """Fused 3-stage pyramid over a (C, L = Nb*H*W) slab.

    x_ref   : (1, Cin, L)         input slab, batch+spatial merged on lanes
    pK_ref  : (K*K, C, L)         per-tap  mask * depthwise-weight  planes
    wK_ref  : (Cout, C)           1x1 conv weights
    bK_ref  : (Cout, 1)           fused bias  (pw_w @ dw_b + pw_b)
    out_ref : (1, 2*(c3+c5+c7), L)  [branch1 ; branch2(=branch1)]
    """
    x = x_ref[0]                      # (Cin, L)
    L = x.shape[1]
    cdt = x.dtype

    def tree_sum(vals):
        while len(vals) > 1:
            nxt = [vals[i] + vals[i + 1] for i in range(0, len(vals) - 1, 2)]
            if len(vals) % 2:
                nxt.append(vals[-1])
            vals = nxt
        return vals[0]

    def stage(z, planes_ref, wpw_ref, bpw_ref, K):
        C = z.shape[0]
        p = (K - 1) // 2
        # Independent accumulator chains: keeps VALU slots busy without
        # blowing the 64-vreg budget on the widest (largest C) stage.
        n_acc = 2 if (C * L) >= 8 * 1024 else 4
        accs = [jnp.zeros((C, L), jnp.float32) for _ in range(n_acc)]
        t = 0
        for dy in range(K):
            for dx in range(K):
                off = (dy - p) * W + (dx - p)
                # shifted[:, q] = z[:, q + off]; positions that wrap are
                # exactly the zero-padding / cross-image ones and the plane
                # carries a 0 there -> implements the padding in-kernel.
                if off == 0:
                    shifted = z
                else:
                    shifted = pltpu.roll(z, shift=(-off) % L, axis=1)
                accs[t % n_acc] = accs[t % n_acc] + shifted * planes_ref[t]
                t += 1
        acc = tree_sum(accs)                                   # (C, L) f32
        y = jnp.dot(wpw_ref[...], acc.astype(wpw_ref.dtype),   # 1x1 conv, MXU
                    preferred_element_type=jnp.float32)
        return jnp.maximum(y + bpw_ref[...], 0.0)              # fused bias+ReLU

    # cat([y, x], 1)[:, :y.size(1)] == y, so each stage feeds the next.
    y3 = stage(x,              p3_ref, w3_ref, b3_ref, K=3)
    y5 = stage(y3.astype(cdt), p5_ref, w5_ref, b5_ref, K=5)
    y7 = stage(y5.astype(cdt), p7_ref, w7_ref, b7_ref, K=7)

    c3, c5, c7 = y3.shape[0], y5.shape[0], y7.shape[0]
    ctot = c3 + c5 + c7
    odt = out_ref.dtype
    # branch1
    out_ref[0, 0:c3, :] = y3.astype(odt)
    out_ref[0, c3:c3 + c5, :] = y5.astype(odt)
    out_ref[0, c3 + c5:ctot, :] = y7.astype(odt)
    # branch2 uses the same conv layer objects in the reference module
    # (tied weights) -> bit-identical to branch1; just write it again.
    out_ref[0, ctot:ctot + c3, :] = y3.astype(odt)
    out_ref[0, ctot + c3:ctot + c3 + c5, :] = y5.astype(odt)
    out_ref[0, ctot + c3 + c5:2 * ctot, :] = y7.astype(odt)


def init_params(key, input_channels, k):
    """Deterministic synthetic parameters with the module's logical shapes
    (depthwise taps flattened dy-major)."""
    oc = int(input_channels * k)
    c3, c5, c7 = oc // 4, oc // 2, oc

    def _w(key, shape, fan_in):
        return (jax.random.normal(key, shape, jnp.float32)
                / jnp.sqrt(jnp.float32(fan_in)))

    keys = jax.random.split(key, 12)
    return {
        # conv3x3: depthwise 3x3 on Cin, then 1x1 Cin -> oc//4
        "dw3_w": _w(keys[0], (input_channels, 9), 9),
        "dw3_b": _w(keys[1], (input_channels, 1), 9),
        "pw3_w": _w(keys[2], (c3, input_channels), input_channels),
        "pw3_b": _w(keys[3], (c3, 1), input_channels),
        # conv5x5: depthwise 5x5 on oc//4, then 1x1 oc//4 -> oc//2
        "dw5_w": _w(keys[4], (c3, 25), 25),
        "dw5_b": _w(keys[5], (c3, 1), 25),
        "pw5_w": _w(keys[6], (c5, c3), c3),
        "pw5_b": _w(keys[7], (c5, 1), c3),
        # conv7x7: depthwise 7x7 on oc//2, then 1x1 oc//2 -> oc
        "dw7_w": _w(keys[8], (c5, 49), 49),
        "dw7_b": _w(keys[9], (c5, 1), 49),
        "pw7_w": _w(keys[10], (c7, c5), c5),
        "pw7_b": _w(keys[11], (c7, 1), c5),
    }


def pyramid_multiscale_cnn(x_nchw, params, *, grid_steps=None, use_bf16=False):
    """Forward pass matching PyramidMultiScaleCNN.forward. Input/output NCHW."""
    N, Cin, H, W = x_nchw.shape
    HW = H * W
    if grid_steps is None:
        # One step merges the whole batch onto the lane axis (best on 1-TC
        # chips); on v7x pass grid_steps=2 to keep both TensorCores busy.
        grid_steps = 2 if (N % 2 == 0 and N >= 4) else 1
    assert N % grid_steps == 0, (N, grid_steps)
    G = grid_steps
    Nb = N // G
    L = Nb * HW
    cdt = jnp.bfloat16 if use_bf16 else jnp.float32

    # (N, Cin, H, W) -> (G, Cin, Nb*HW): batch folded onto the lane axis.
    x = (x_nchw.astype(jnp.float32)
         .reshape(G, Nb, Cin, HW).transpose(0, 2, 1, 3).reshape(G, Cin, L)
         .astype(cdt))

    # Per-tap zero-padding masks over the merged lane axis (channel-free).
    pos = jnp.arange(L, dtype=jnp.int32)
    hh = (pos % HW) // W
    ww = pos % W

    def tap_masks(K):
        p = (K - 1) // 2
        ms = []
        for dy in range(K):
            for dx in range(K):
                dyp, dxp = dy - p, dx - p
                ms.append((hh + dyp >= 0) & (hh + dyp < H)
                          & (ww + dxp >= 0) & (ww + dxp < W))
        return jnp.stack(ms).astype(jnp.float32)                 # (K*K, L)

    def planes(dw_w, K):                                          # (K*K, C, L)
        return (dw_w.T[:, :, None] * tap_masks(K)[:, None, :]).astype(cdt)

    def fused_bias(pw_w, pw_b, dw_b):                             # (Cout, 1)
        # pw(acc + b_dw) + b_pw == pw@acc + (pw_w @ b_dw + b_pw)
        return pw_w @ dw_b + pw_b

    p3 = planes(params["dw3_w"], 3)
    p5 = planes(params["dw5_w"], 5)
    p7 = planes(params["dw7_w"], 7)
    w3 = params["pw3_w"].astype(cdt)
    w5 = params["pw5_w"].astype(cdt)
    w7 = params["pw7_w"].astype(cdt)
    b3 = fused_bias(params["pw3_w"], params["pw3_b"], params["dw3_b"])
    b5 = fused_bias(params["pw5_w"], params["pw5_b"], params["dw5_b"])
    b7 = fused_bias(params["pw7_w"], params["pw7_b"], params["dw7_b"])

    c3, c5, c7 = w3.shape[0], w5.shape[0], w7.shape[0]
    ctot = c3 + c5 + c7

    weight_args = (p3, w3, b3, p5, w5, b5, p7, w7, b7)

    def resident_spec(a):      # whole array, same block every grid step
        nd = a.ndim
        return pl.BlockSpec(a.shape, lambda g, _nd=nd: (0,) * _nd)

    out = pl.pallas_call(
        functools.partial(_pyramid_kernel, W=W),
        out_shape=jax.ShapeDtypeStruct((G, 2 * ctot, L), jnp.float32),
        grid=(G,),
        in_specs=[pl.BlockSpec((1, Cin, L), lambda g: (g, 0, 0))]
                 + [resident_spec(a) for a in weight_args],
        out_specs=pl.BlockSpec((1, 2 * ctot, L), lambda g: (g, 0, 0)),
        compiler_params=pltpu.CompilerParams(
            dimension_semantics=("parallel",)),
    )(x, *weight_args)

    # (G, 2*ctot, Nb*HW) -> (N, 2*ctot, H, W): layout plumbing outside kernel.
    return (out.reshape(G, 2 * ctot, Nb, HW)
               .transpose(0, 2, 1, 3)
               .reshape(N, 2 * ctot, H, W))


def pyramid_multiscale_cnn_reference(x, params):
    """Pure-JAX reference mirroring PyramidMultiScaleCNN.forward (NCHW)."""
    def dwconv(z, w, b, K):
        C = z.shape[1]
        wk = w.reshape(C, 1, K, K)
        p = K // 2
        y = jax.lax.conv_general_dilated(
            z, wk, (1, 1), ((p, p), (p, p)),
            dimension_numbers=("NCHW", "OIHW", "NCHW"),
            feature_group_count=C, precision=jax.lax.Precision.HIGHEST)
        return y + b.reshape(1, C, 1, 1)

    def pwconv(z, w, b):
        y = jax.lax.conv_general_dilated(
            z, w[:, :, None, None], (1, 1), "VALID",
            dimension_numbers=("NCHW", "OIHW", "NCHW"),
            precision=jax.lax.Precision.HIGHEST)
        return y + b.reshape(1, -1, 1, 1)

    def stage(z, dw_w, dw_b, pw_w, pw_b, K):
        return jax.nn.relu(pwconv(dwconv(z, dw_w, dw_b, K), pw_w, pw_b))

    y3 = stage(x, params["dw3_w"], params["dw3_b"],
               params["pw3_w"], params["pw3_b"], 3)
    # torch.cat([y, x], 1)[:, :y.size(1)] == y, so stages chain directly.
    y5 = stage(y3, params["dw5_w"], params["dw5_b"],
               params["pw5_w"], params["pw5_b"], 5)
    y7 = stage(y5, params["dw7_w"], params["dw7_b"],
               params["pw7_w"], params["pw7_b"], 7)
    branch = jnp.concatenate([y3, y5, y7], axis=1)
    # branch2 reuses the same layer objects -> identical to branch1.
    return jnp.concatenate([branch, branch], axis=1)


if __name__ == "__main__":
    input_channels = 4
    k = 8            # output_channels = 32 -> stage widths: 8, 16, 32
    N, H, W = 2, 16, 16

    key = jax.random.PRNGKey(0)
    key_x, key_p = jax.random.split(key)
    x = jax.random.normal(key_x, (N, input_channels, H, W), jnp.float32)
    params = init_params(key_p, input_channels, k)

    fwd = jax.jit(pyramid_multiscale_cnn)
    out = jax.block_until_ready(fwd(x, params))

    oc = int(input_channels * k)
    expected_channels = 2 * (oc // 4 + oc // 2 + oc)
    assert out.shape == (N, expected_channels, H, W), out.shape
    assert out.dtype == jnp.float32

    ref = pyramid_multiscale_cnn_reference(x, params)
    max_err = float(jnp.max(jnp.abs(out - ref)))
    assert jnp.allclose(out, ref, rtol=1e-3, atol=1e-3), max_err

    print("KERNEL_OK")
</pallas_src>

<mosaic_0001>
module attributes {stable_mosaic.version = 11 : i64} {
  func.func @_pyramid_kernel(%arg0: i32, %arg1: memref<1x4x512xf32, #tpu.memory_space<vmem>>, %arg2: memref<9x4x512xf32, #tpu.memory_space<vmem>>, %arg3: memref<8x4xf32, #tpu.memory_space<vmem>>, %arg4: memref<8x1xf32, #tpu.memory_space<vmem>>, %arg5: memref<25x8x512xf32, #tpu.memory_space<vmem>>, %arg6: memref<16x8xf32, #tpu.memory_space<vmem>>, %arg7: memref<16x1xf32, #tpu.memory_space<vmem>>, %arg8: memref<49x16x512xf32, #tpu.memory_space<vmem>>, %arg9: memref<32x16xf32, #tpu.memory_space<vmem>>, %arg10: memref<32x1xf32, #tpu.memory_space<vmem>>, %arg11: memref<1x112x512xf32, #tpu.memory_space<vmem>>) attributes {dimension_semantics = [#tpu.dimension_semantics<parallel>], iteration_bounds = array<i64: 1>, scalar_prefetch = 0 : i64, scratch_operands = 0 : i64, tpu.core_type = #tpu.core_type<tc>, window_params = [{transform_indices = @transform_0, window_bounds = array<i64: 1, 4, 512>}, {pipeline_mode = #tpu.pipeline_mode<synchronous>, transform_indices = @transform_1, window_bounds = array<i64: 9, 4, 512>}, {pipeline_mode = #tpu.pipeline_mode<synchronous>, transform_indices = @transform_2, window_bounds = array<i64: 8, 4>}, {pipeline_mode = #tpu.pipeline_mode<synchronous>, transform_indices = @transform_3, window_bounds = array<i64: 8, 1>}, {pipeline_mode = #tpu.pipeline_mode<synchronous>, transform_indices = @transform_4, window_bounds = array<i64: 25, 8, 512>}, {pipeline_mode = #tpu.pipeline_mode<synchronous>, transform_indices = @transform_5, window_bounds = array<i64: 16, 8>}, {pipeline_mode = #tpu.pipeline_mode<synchronous>, transform_indices = @transform_6, window_bounds = array<i64: 16, 1>}, {pipeline_mode = #tpu.pipeline_mode<synchronous>, transform_indices = @transform_7, window_bounds = array<i64: 49, 16, 512>}, {pipeline_mode = #tpu.pipeline_mode<synchronous>, transform_indices = @transform_8, window_bounds = array<i64: 32, 16>}, {pipeline_mode = #tpu.pipeline_mode<synchronous>, transform_indices = @transform_9, window_bounds = array<i64: 32, 1>}, {transform_indices = @transform_10, window_bounds = array<i64: 1, 112, 512>}]} {
    %c0 = arith.constant 0 : index
    %c0_0 = arith.constant 0 : index
    %c0_1 = arith.constant 0 : index
    %0 = vector.load %arg1[%c0, %c0_0, %c0_1] : memref<1x4x512xf32, #tpu.memory_space<vmem>>, vector<1x4x512xf32>
    %1 = vector.shape_cast %0 : vector<1x4x512xf32> to vector<4x512xf32>
    %cst = arith.constant 0.000000e+00 : f32
    %2 = vector.broadcast %cst : f32 to vector<4x512xf32>
    %cst_2 = arith.constant 0.000000e+00 : f32
    %3 = vector.broadcast %cst_2 : f32 to vector<4x512xf32>
    %cst_3 = arith.constant 0.000000e+00 : f32
    %4 = vector.broadcast %cst_3 : f32 to vector<4x512xf32>
    %cst_4 = arith.constant 0.000000e+00 : f32
    %5 = vector.broadcast %cst_4 : f32 to vector<4x512xf32>
    %c17_i32 = arith.constant 17 : i32
    %6 = tpu.dynamic_rotate %1 by %c17_i32 dim 1 : vector<4x512xf32>, i32 -> vector<4x512xf32>
    %c0_5 = arith.constant 0 : index
    %c0_6 = arith.constant 0 : index
    %c0_7 = arith.constant 0 : index
    %7 = vector.load %arg2[%c0_5, %c0_6, %c0_7] : memref<9x4x512xf32, #tpu.memory_space<vmem>>, vector<1x4x512xf32>
    %8 = vector.shape_cast %7 : vector<1x4x512xf32> to vector<4x512xf32>
    %9 = arith.mulf %6, %8 : vector<4x512xf32>
    %10 = arith.addf %2, %9 : vector<4x512xf32>
    %c16_i32 = arith.constant 16 : i32
    %11 = tpu.dynamic_rotate %1 by %c16_i32 dim 1 : vector<4x512xf32>, i32 -> vector<4x512xf32>
    %c1 = arith.constant 1 : index
    %c0_8 = arith.constant 0 : index
    %c0_9 = arith.constant 0 : index
    %12 = vector.load %arg2[%c1, %c0_8, %c0_9] : memref<9x4x512xf32, #tpu.memory_space<vmem>>, vector<1x4x512xf32>
    %13 = vector.shape_cast %12 : vector<1x4x512xf32> to vector<4x512xf32>
    %14 = arith.mulf %11, %13 : vector<4x512xf32>
    %15 = arith.addf %3, %14 : vector<4x512xf32>
    %c15_i32 = arith.constant 15 : i32
    %16 = tpu.dynamic_rotate %1 by %c15_i32 dim 1 : vector<4x512xf32>, i32 -> vector<4x512xf32>
    %c2 = arith.constant 2 : index
    %c0_10 = arith.constant 0 : index
    %c0_11 = arith.constant 0 : index
    %17 = vector.load %arg2[%c2, %c0_10, %c0_11] : memref<9x4x512xf32, #tpu.memory_space<vmem>>, vector<1x4x512xf32>
    %18 = vector.shape_cast %17 : vector<1x4x512xf32> to vector<4x512xf32>
    %19 = arith.mulf %16, %18 : vector<4x512xf32>
    %20 = arith.addf %4, %19 : vector<4x512xf32>
    %c1_i32 = arith.constant 1 : i32
    %21 = tpu.dynamic_rotate %1 by %c1_i32 dim 1 : vector<4x512xf32>, i32 -> vector<4x512xf32>
    %c3 = arith.constant 3 : index
    %c0_12 = arith.constant 0 : index
    %c0_13 = arith.constant 0 : index
    %22 = vector.load %arg2[%c3, %c0_12, %c0_13] : memref<9x4x512xf32, #tpu.memory_space<vmem>>, vector<1x4x512xf32>
    %23 = vector.shape_cast %22 : vector<1x4x512xf32> to vector<4x512xf32>
    %24 = arith.mulf %21, %23 : vector<4x512xf32>
    %25 = arith.addf %5, %24 : vector<4x512xf32>
    %c4 = arith.constant 4 : index
    %c0_14 = arith.constant 0 : index
    %c0_15 = arith.constant 0 : index
    %26 = vector.load %arg2[%c4, %c0_14, %c0_15] : memref<9x4x512xf32, #tpu.memory_space<vmem>>, vector<1x4x512xf32>
    %27 = vector.shape_cast %26 : vector<1x4x512xf32> to vector<4x512xf32>
    %28 = arith.mulf %1, %27 : vector<4x512xf32>
    %29 = arith.addf %10, %28 : vector<4x512xf32>
    %c511_i32 = arith.constant 511 : i32
    %30 = tpu.dynamic_rotate %1 by %c511_i32 dim 1 : vector<4x512xf32>, i32 -> vector<4x512xf32>
    %c5 = arith.constant 5 : index
    %c0_16 = arith.constant 0 : index
    %c0_17 = arith.constant 0 : index
    %31 = vector.load %arg2[%c5, %c0_16, %c0_17] : memref<9x4x512xf32, #tpu.memory_space<vmem>>, vector<1x4x512xf32>
    %32 = vector.shape_cast %31 : vector<1x4x512xf32> to vector<4x512xf32>
    %33 = arith.mulf %30, %32 : vector<4x512xf32>
    %34 = arith.addf %15, %33 : vector<4x512xf32>
    %c497_i32 = arith.constant 497 : i32
    %35 = tpu.dynamic_rotate %1 by %c497_i32 dim 1 : vector<4x512xf32>, i32 -> vector<4x512xf32>
    %c6 = arith.constant 6 : index
    %c0_18 = arith.constant 0 : index
    %c0_19 = arith.constant 0 : index
    %36 = vector.load %arg2[%c6, %c0_18, %c0_19] : memref<9x4x512xf32, #tpu.memory_space<vmem>>, vector<1x4x512xf32>
    %37 = vector.shape_cast %36 : vector<1x4x512xf32> to vector<4x512xf32>
    %38 = arith.mulf %35, %37 : vector<4x512xf32>
    %39 = arith.addf %20, %38 : vector<4x512xf32>
    %c496_i32 = arith.constant 496 : i32
    %40 = tpu.dynamic_rotate %1 by %c496_i32 dim 1 : vector<4x512xf32>, i32 -> vector<4x512xf32>
    %c7 = arith.constant 7 : index
    %c0_20 = arith.constant 0 : index
    %c0_21 = arith.constant 0 : index
    %41 = vector.load %arg2[%c7, %c0_20, %c0_21] : memref<9x4x512xf32, #tpu.memory_space<vmem>>, vector<1x4x512xf32>
    %42 = vector.shape_cast %41 : vector<1x4x512xf32> to vector<4x512xf32>
    %43 = arith.mulf %40, %42 : vector<4x512xf32>
    %44 = arith.addf %25, %43 : vector<4x512xf32>
    %c495_i32 = arith.constant 495 : i32
    %45 = tpu.dynamic_rotate %1 by %c495_i32 dim 1 : vector<4x512xf32>, i32 -> vector<4x512xf32>
    %c8 = arith.constant 8 : index
    %c0_22 = arith.constant 0 : index
    %c0_23 = arith.constant 0 : index
    %46 = vector.load %arg2[%c8, %c0_22, %c0_23] : memref<9x4x512xf32, #tpu.memory_space<vmem>>, vector<1x4x512xf32>
    %47 = vector.shape_cast %46 : vector<1x4x512xf32> to vector<4x512xf32>
    %48 = arith.mulf %45, %47 : vector<4x512xf32>
    %49 = arith.addf %29, %48 : vector<4x512xf32>
    %50 = arith.addf %49, %34 : vector<4x512xf32>
    %51 = arith.addf %39, %44 : vector<4x512xf32>
    %52 = arith.addf %50, %51 : vector<4x512xf32>
    %c0_24 = arith.constant 0 : index
    %c0_25 = arith.constant 0 : index
    %53 = vector.load %arg3[%c0_24, %c0_25] : memref<8x4xf32, #tpu.memory_space<vmem>>, vector<8x4xf32>
    %cst_26 = arith.constant dense<0.000000e+00> : vector<8x512xf32>
    %54 = tpu.matmul %53, %52, %cst_26 {dimension_numbers = #tpu.dot_dimension_numbers<[1], [0], [0], [1], [0, 0, 1, 1], [], []>} : vector<8x4xf32>, vector<4x512xf32>, vector<8x512xf32> -> vector<8x512xf32>
    %c0_27 = arith.constant 0 : index
    %c0_28 = arith.constant 0 : index
    %55 = vector.load %arg4[%c0_27, %c0_28] : memref<8x1xf32, #tpu.memory_space<vmem>>, vector<8x1xf32>
    %56 = vector.broadcast %55 : vector<8x1xf32> to vector<8x512xf32>
    %57 = arith.addf %54, %56 : vector<8x512xf32>
    %cst_29 = arith.constant 0.000000e+00 : f32
    %58 = vector.broadcast %cst_29 : f32 to vector<8x512xf32>
    %59 = arith.maximumf %57, %58 : vector<8x512xf32>
    %cst_30 = arith.constant 0.000000e+00 : f32
    %60 = vector.broadcast %cst_30 : f32 to vector<8x512xf32>
    %cst_31 = arith.constant 0.000000e+00 : f32
    %61 = vector.broadcast %cst_31 : f32 to vector<8x512xf32>
    %cst_32 = arith.constant 0.000000e+00 : f32
    %62 = vector.broadcast %cst_32 : f32 to vector<8x512xf32>
    %cst_33 = arith.constant 0.000000e+00 : f32
    %63 = vector.broadcast %cst_33 : f32 to vector<8x512xf32>
    %c34_i32 = arith.constant 34 : i32
    %64 = tpu.dynamic_rotate %59 by %c34_i32 dim 1 : vector<8x512xf32>, i32 -> vector<8x512xf32>
    %c0_34 = arith.constant 0 : index
    %c0_35 = arith.constant 0 : index
    %c0_36 = arith.constant 0 : index
    %65 = vector.load %arg5[%c0_34, %c0_35, %c0_36] : memref<25x8x512xf32, #tpu.memory_space<vmem>>, vector<1x8x512xf32>
    %66 = vector.shape_cast %65 : vector<1x8x512xf32> to vector<8x512xf32>
    %67 = arith.mulf %64, %66 : vector<8x512xf32>
    %68 = arith.addf %60, %67 : vector<8x512xf32>
    %c33_i32 = arith.constant 33 : i32
    %69 = tpu.dynamic_rotate %59 by %c33_i32 dim 1 : vector<8x512xf32>, i32 -> vector<8x512xf32>
    %c1_37 = arith.constant 1 : index
    %c0_38 = arith.constant 0 : index
    %c0_39 = arith.constant 0 : index
    %70 = vector.load %arg5[%c1_37, %c0_38, %c0_39] : memref<25x8x512xf32, #tpu.memory_space<vmem>>, vector<1x8x512xf32>
    %71 = vector.shape_cast %70 : vector<1x8x512xf32> to vector<8x512xf32>
    %72 = arith.mulf %69, %71 : vector<8x512xf32>
    %73 = arith.addf %61, %72 : vector<8x512xf32>
    %c32_i32 = arith.constant 32 : i32
    %74 = tpu.dynamic_rotate %59 by %c32_i32 dim 1 : vector<8x512xf32>, i32 -> vector<8x512xf32>
    %c2_40 = arith.constant 2 : index
    %c0_41 = arith.constant 0 : index
    %c0_42 = arith.constant 0 : index
    %75 = vector.load %arg5[%c2_40, %c0_41, %c0_42] : memref<25x8x512xf32, #tpu.memory_space<vmem>>, vector<1x8x512xf32>
    %76 = vector.shape_cast %75 : vector<1x8x512xf32> to vector<8x512xf32>
    %77 = arith.mulf %74, %76 : vector<8x512xf32>
    %78 = arith.addf %62, %77 : vector<8x512xf32>
    %c31_i32 = arith.constant 31 : i32
    %79 = tpu.dynamic_rotate %59 by %c31_i32 dim 1 : vector<8x512xf32>, i32 -> vector<8x512xf32>
    %c3_43 = arith.constant 3 : index
    %c0_44 = arith.constant 0 : index
    %c0_45 = arith.constant 0 : index
    %80 = vector.load %arg5[%c3_43, %c0_44, %c0_45] : memref<25x8x512xf32, #tpu.memory_space<vmem>>, vector<1x8x512xf32>
    %81 = vector.shape_cast %80 : vector<1x8x512xf32> to vector<8x512xf32>
    %82 = arith.mulf %79, %81 : vector<8x512xf32>
    %83 = arith.addf %63, %82 : vector<8x512xf32>
    %c30_i32 = arith.constant 30 : i32
    %84 = tpu.dynamic_rotate %59 by %c30_i32 dim 1 : vector<8x512xf32>, i32 -> vector<8x512xf32>
    %c4_46 = arith.constant 4 : index
    %c0_47 = arith.constant 0 : index
    %c0_48 = arith.constant 0 : index
    %85 = vector.load %arg5[%c4_46, %c0_47, %c0_48] : memref<25x8x512xf32, #tpu.memory_space<vmem>>, vector<1x8x512xf32>
    %86 = vector.shape_cast %85 : vector<1x8x512xf32> to vector<8x512xf32>
    %87 = arith.mulf %84, %86 : vector<8x512xf32>
    %88 = arith.addf %68, %87 : vector<8x512xf32>
    %c18_i32 = arith.constant 18 : i32
    %89 = tpu.dynamic_rotate %59 by %c18_i32 dim 1 : vector<8x512xf32>, i32 -> vector<8x512xf32>
    %c5_49 = arith.constant 5 : index
    %c0_50 = arith.constant 0 : index
    %c0_51 = arith.constant 0 : index
    %90 = vector.load %arg5[%c5_49, %c0_50, %c0_51] : memref<25x8x512xf32, #tpu.memory_space<vmem>>, vector<1x8x512xf32>
    %91 = vector.shape_cast %90 : vector<1x8x512xf32> to vector<8x512xf32>
    %92 = arith.mulf %89, %91 : vector<8x512xf32>
    %93 = arith.addf %73, %92 : vector<8x512xf32>
    %c17_i32_52 = arith.constant 17 : i32
    %94 = tpu.dynamic_rotate %59 by %c17_i32_52 dim 1 : vector<8x512xf32>, i32 -> vector<8x512xf32>
    %c6_53 = arith.constant 6 : index
    %c0_54 = arith.constant 0 : index
    %c0_55 = arith.constant 0 : index
    %95 = vector.load %arg5[%c6_53, %c0_54, %c0_55] : memref<25x8x512xf32, #tpu.memory_space<vmem>>, vector<1x8x512xf32>
    %96 = vector.shape_cast %95 : vector<1x8x512xf32> to vector<8x512xf32>
    %97 = arith.mulf %94, %96 : vector<8x512xf32>
    %98 = arith.addf %78, %97 : vector<8x512xf32>
    %c16_i32_56 = arith.constant 16 : i32
    %99 = tpu.dynamic_rotate %59 by %c16_i32_56 dim 1 : vector<8x512xf32>, i32 -> vector<8x512xf32>
    %c7_57 = arith.constant 7 : index
    %c0_58 = arith.constant 0 : index
    %c0_59 = arith.constant 0 : index
    %100 = vector.load %arg5[%c7_57, %c0_58, %c0_59] : memref<25x8x512xf32, #tpu.memory_space<vmem>>, vector<1x8x512xf32>
    %101 = vector.shape_cast %100 : vector<1x8x512xf32> to vector<8x512xf32>
    %102 = arith.mulf %99, %101 : vector<8x512xf32>
    %103 = arith.addf %83, %102 : vector<8x512xf32>
    %c15_i32_60 = arith.constant 15 : i32
    %104 = tpu.dynamic_rotate %59 by %c15_i32_60 dim 1 : vector<8x512xf32>, i32 -> vector<8x512xf32>
    %c8_61 = arith.constant 8 : index
    %c0_62 = arith.constant 0 : index
    %c0_63 = arith.constant 0 : index
    %105 = vector.load %arg5[%c8_61, %c0_62, %c0_63] : memref<25x8x512xf32, #tpu.memory_space<vmem>>, vector<1x8x512xf32>
    %106 = vector.shape_cast %105 : vector<1x8x512xf32> to vector<8x512xf32>
    %107 = arith.mulf %104, %106 : vector<8x512xf32>
    %108 = arith.addf %88, %107 : vector<8x512xf32>
    %c14_i32 = arith.constant 14 : i32
    %109 = tpu.dynamic_rotate %59 by %c14_i32 dim 1 : vector<8x512xf32>, i32 -> vector<8x512xf32>
    %c9 = arith.constant 9 : index
    %c0_64 = arith.constant 0 : index
    %c0_65 = arith.constant 0 : index
    %110 = vector.load %arg5[%c9, %c0_64, %c0_65] : memref<25x8x512xf32, #tpu.memory_space<vmem>>, vector<1x8x512xf32>
    %111 = vector.shape_cast %110 : vector<1x8x512xf32> to vector<8x512xf32>
    %112 = arith.mulf %109, %111 : vector<8x512xf32>
    %113 = arith.addf %93, %112 : vector<8x512xf32>
    %c2_i32 = arith.constant 2 : i32
    %114 = tpu.dynamic_rotate %59 by %c2_i32 dim 1 : vector<8x512xf32>, i32 -> vector<8x512xf32>
    %c10 = arith.constant 10 : index
    %c0_66 = arith.constant 0 : index
    %c0_67 = arith.constant 0 : index
    %115 = vector.load %arg5[%c10, %c0_66, %c0_67] : memref<25x8x512xf32, #tpu.memory_space<vmem>>, vector<1x8x512xf32>
    %116 = vector.shape_cast %115 : vector<1x8x512xf32> to vector<8x512xf32>
    %117 = arith.mulf %114, %116 : vector<8x512xf32>
    %118 = arith.addf %98, %117 : vector<8x512xf32>
    %c1_i32_68 = arith.constant 1 : i32
    %119 = tpu.dynamic_rotate %59 by %c1_i32_68 dim 1 : vector<8x512xf32>, i32 -> vector<8x512xf32>
    %c11 = arith.constant 11 : index
    %c0_69 = arith.constant 0 : index
    %c0_70 = arith.constant 0 : index
    %120 = vector.load %arg5[%c11, %c0_69, %c0_70] : memref<25x8x512xf32, #tpu.memory_space<vmem>>, vector<1x8x512xf32>
    %121 = vector.shape_cast %120 : vector<1x8x512xf32> to vector<8x512xf32>
    %122 = arith.mulf %119, %121 : vector<8x512xf32>
    %123 = arith.addf %103, %122 : vector<8x512xf32>
    %c12 = arith.constant 12 : index
    %c0_71 = arith.constant 0 : index
    %c0_72 = arith.constant 0 : index
    %124 = vector.load %arg5[%c12, %c0_71, %c0_72] : memref<25x8x512xf32, #tpu.memory_space<vmem>>, vector<1x8x512xf32>
    %125 = vector.shape_cast %124 : vector<1x8x512xf32> to vector<8x512xf32>
    %126 = arith.mulf %59, %125 : vector<8x512xf32>
    %127 = arith.addf %108, %126 : vector<8x512xf32>
    %c511_i32_73 = arith.constant 511 : i32
    %128 = tpu.dynamic_rotate %59 by %c511_i32_73 dim 1 : vector<8x512xf32>, i32 -> vector<8x512xf32>
    %c13 = arith.constant 13 : index
    %c0_74 = arith.constant 0 : index
    %c0_75 = arith.constant 0 : index
    %129 = vector.load %arg5[%c13, %c0_74, %c0_75] : memref<25x8x512xf32, #tpu.memory_space<vmem>>, vector<1x8x512xf32>
    %130 = vector.shape_cast %129 : vector<1x8x512xf32> to vector<8x512xf32>
    %131 = arith.mulf %128, %130 : vector<8x512xf32>
    %132 = arith.addf %113, %131 : vector<8x512xf32>
    %c510_i32 = arith.constant 510 : i32
    %133 = tpu.dynamic_rotate %59 by %c510_i32 dim 1 : vector<8x512xf32>, i32 -> vector<8x512xf32>
    %c14 = arith.constant 14 : index
    %c0_76 = arith.constant 0 : index
    %c0_77 = arith.constant 0 : index
    %134 = vector.load %arg5[%c14, %c0_76, %c0_77] : memref<25x8x512xf32, #tpu.memory_space<vmem>>, vector<1x8x512xf32>
    %135 = vector.shape_cast %134 : vector<1x8x512xf32> to vector<8x512xf32>
    %136 = arith.mulf %133, %135 : vector<8x512xf32>
    %137 = arith.addf %118, %136 : vector<8x512xf32>
    %c498_i32 = arith.constant 498 : i32
    %138 = tpu.dynamic_rotate %59 by %c498_i32 dim 1 : vector<8x512xf32>, i32 -> vector<8x512xf32>
    %c15 = arith.constant 15 : index
    %c0_78 = arith.constant 0 : index
    %c0_79 = arith.constant 0 : index
    %139 = vector.load %arg5[%c15, %c0_78, %c0_79] : memref<25x8x512xf32, #tpu.memory_space<vmem>>, vector<1x8x512xf32>
    %140 = vector.shape_cast %139 : vector<1x8x512xf32> to vector<8x512xf32>
    %141 = arith.mulf %138, %140 : vector<8x512xf32>
    %142 = arith.addf %123, %141 : vector<8x512xf32>
    %c497_i32_80 = arith.constant 497 : i32
    %143 = tpu.dynamic_rotate %59 by %c497_i32_80 dim 1 : vector<8x512xf32>, i32 -> vector<8x512xf32>
    %c16 = arith.constant 16 : index
    %c0_81 = arith.constant 0 : index
    %c0_82 = arith.constant 0 : index
    %144 = vector.load %arg5[%c16, %c0_81, %c0_82] : memref<25x8x512xf32, #tpu.memory_space<vmem>>, vector<1x8x512xf32>
    %145 = vector.shape_cast %144 : vector<1x8x512xf32> to vector<8x512xf32>
    %146 = arith.mulf %143, %145 : vector<8x512xf32>
    %147 = arith.addf %127, %146 : vector<8x512xf32>
    %c496_i32_83 = arith.constant 496 : i32
    %148 = tpu.dynamic_rotate %59 by %c496_i32_83 dim 1 : vector<8x512xf32>, i32 -> vector<8x512xf32>
    %c17 = arith.constant 17 : index
    %c0_84 = arith.constant 0 : index
    %c0_85 = arith.constant 0 : index
    %149 = vector.load %arg5[%c17, %c0_84, %c0_85] : memref<25x8x512xf32, #tpu.memory_space<vmem>>, vector<1x8x512xf32>
    %150 = vector.shape_cast %149 : vector<1x8x512xf32> to vector<8x512xf32>
    %151 = arith.mulf %148, %150 : vector<8x512xf32>
    %152 = arith.addf %132, %151 : vector<8x512xf32>
    %c495_i32_86 = arith.constant 495 : i32
    %153 = tpu.dynamic_rotate %59 by %c495_i32_86 dim 1 : vector<8x512xf32>, i32 -> vector<8x512xf32>
    %c18 = arith.constant 18 : index
    %c0_87 = arith.constant 0 : index
    %c0_88 = arith.constant 0 : index
    %154 = vector.load %arg5[%c18, %c0_87, %c0_88] : memref<25x8x512xf32, #tpu.memory_space<vmem>>, vector<1x8x512xf32>
    %155 = vector.shape_cast %154 : vector<1x8x512xf32> to vector<8x512xf32>
    %156 = arith.mulf %153, %155 : vector<8x512xf32>
    %157 = arith.addf %137, %156 : vector<8x512xf32>
    %c494_i32 = arith.constant 494 : i32
    %158 = tpu.dynamic_rotate %59 by %c494_i32 dim 1 : vector<8x512xf32>, i32 -> vector<8x512xf32>
    %c19 = arith.constant 19 : index
    %c0_89 = arith.constant 0 : index
    %c0_90 = arith.constant 0 : index
    %159 = vector.load %arg5[%c19, %c0_89, %c0_90] : memref<25x8x512xf32, #tpu.memory_space<vmem>>, vector<1x8x512xf32>
    %160 = vector.shape_cast %159 : vector<1x8x512xf32> to vector<8x512xf32>
    %161 = arith.mulf %158, %160 : vector<8x512xf32>
    %162 = arith.addf %142, %161 : vector<8x512xf32>
    %c482_i32 = arith.constant 482 : i32
    %163 = tpu.dynamic_rotate %59 by %c482_i32 dim 1 : vector<8x512xf32>, i32 -> vector<8x512xf32>
    %c20 = arith.constant 20 : index
    %c0_91 = arith.constant 0 : index
    %c0_92 = arith.constant 0 : index
    %164 = vector.load %arg5[%c20, %c0_91, %c0_92] : memref<25x8x512xf32, #tpu.memory_space<vmem>>, vector<1x8x512xf32>
    %165 = vector.shape_cast %164 : vector<1x8x512xf32> to vector<8x512xf32>
    %166 = arith.mulf %163, %165 : vector<8x512xf32>
    %167 = arith.addf %147, %166 : vector<8x512xf32>
    %c481_i32 = arith.constant 481 : i32
    %168 = tpu.dynamic_rotate %59 by %c481_i32 dim 1 : vector<8x512xf32>, i32 -> vector<8x512xf32>
    %c21 = arith.constant 21 : index
    %c0_93 = arith.constant 0 : index
    %c0_94 = arith.constant 0 : index
    %169 = vector.load %arg5[%c21, %c0_93, %c0_94] : memref<25x8x512xf32, #tpu.memory_space<vmem>>, vector<1x8x512xf32>
    %170 = vector.shape_cast %169 : vector<1x8x512xf32> to vector<8x512xf32>
    %171 = arith.mulf %168, %170 : vector<8x512xf32>
    %172 = arith.addf %152, %171 : vector<8x512xf32>
    %c480_i32 = arith.constant 480 : i32
    %173 = tpu.dynamic_rotate %59 by %c480_i32 dim 1 : vector<8x512xf32>, i32 -> vector<8x512xf32>
    %c22 = arith.constant 22 : index
    %c0_95 = arith.constant 0 : index
    %c0_96 = arith.constant 0 : index
    %174 = vector.load %arg5[%c22, %c0_95, %c0_96] : memref<25x8x512xf32, #tpu.memory_space<vmem>>, vector<1x8x512xf32>
    %175 = vector.shape_cast %174 : vector<1x8x512xf32> to vector<8x512xf32>
    %176 = arith.mulf %173, %175 : vector<8x512xf32>
    %177 = arith.addf %157, %176 : vector<8x512xf32>
    %c479_i32 = arith.constant 479 : i32
    %178 = tpu.dynamic_rotate %59 by %c479_i32 dim 1 : vector<8x512xf32>, i32 -> vector<8x512xf32>
    %c23 = arith.constant 23 : index
    %c0_97 = arith.constant 0 : index
    %c0_98 = arith.constant 0 : index
    %179 = vector.load %arg5[%c23, %c0_97, %c0_98] : memref<25x8x512xf32, #tpu.memory_space<vmem>>, vector<1x8x512xf32>
    %180 = vector.shape_cast %179 : vector<1x8x512xf32> to vector<8x512xf32>
    %181 = arith.mulf %178, %180 : vector<8x512xf32>
    %182 = arith.addf %162, %181 : vector<8x512xf32>
    %c478_i32 = arith.constant 478 : i32
    %183 = tpu.dynamic_rotate %59 by %c478_i32 dim 1 : vector<8x512xf32>, i32 -> vector<8x512xf32>
    %c24 = arith.constant 24 : index
    %c0_99 = arith.constant 0 : index
    %c0_100 = arith.constant 0 : index
    %184 = vector.load %arg5[%c24, %c0_99, %c0_100] : memref<25x8x512xf32, #tpu.memory_space<vmem>>, vector<1x8x512xf32>
    %185 = vector.shape_cast %184 : vector<1x8x512xf32> to vector<8x512xf32>
    %186 = arith.mulf %183, %185 : vector<8x512xf32>
    %187 = arith.addf %167, %186 : vector<8x512xf32>
    %188 = arith.addf %187, %172 : vector<8x512xf32>
    %189 = arith.addf %177, %182 : vector<8x512xf32>
    %190 = arith.addf %188, %189 : vector<8x512xf32>
    %c0_101 = arith.constant 0 : index
    %c0_102 = arith.constant 0 : index
    %191 = vector.load %arg6[%c0_101, %c0_102] : memref<16x8xf32, #tpu.memory_space<vmem>>, vector<16x8xf32>
    %cst_103 = arith.constant dense<0.000000e+00> : vector<16x512xf32>
    %192 = tpu.matmul %191, %190, %cst_103 {dimension_numbers = #tpu.dot_dimension_numbers<[1], [0], [0], [1], [0, 0, 1, 1], [], []>} : vector<16x8xf32>, vector<8x512xf32>, vector<16x512xf32> -> vector<16x512xf32>
    %c0_104 = arith.constant 0 : index
    %c0_105 = arith.constant 0 : index
    %193 = vector.load %arg7[%c0_104, %c0_105] : memref<16x1xf32, #tpu.memory_space<vmem>>, vector<16x1xf32>
    %194 = vector.broadcast %193 : vector<16x1xf32> to vector<16x512xf32>
    %195 = arith.addf %192, %194 : vector<16x512xf32>
    %cst_106 = arith.constant 0.000000e+00 : f32
    %196 = vector.broadcast %cst_106 : f32 to vector<16x512xf32>
    %197 = arith.maximumf %195, %196 : vector<16x512xf32>
    %cst_107 = arith.constant 0.000000e+00 : f32
    %198 = vector.broadcast %cst_107 : f32 to vector<16x512xf32>
    %cst_108 = arith.constant 0.000000e+00 : f32
    %199 = vector.broadcast %cst_108 : f32 to vector<16x512xf32>
    %c51_i32 = arith.constant 51 : i32
    %200 = tpu.dynamic_rotate %197 by %c51_i32 dim 1 : vector<16x512xf32>, i32 -> vector<16x512xf32>
    %c0_109 = arith.constant 0 : index
    %c0_110 = arith.constant 0 : index
    %c0_111 = arith.constant 0 : index
    %201 = vector.load %arg8[%c0_109, %c0_110, %c0_111] : memref<49x16x512xf32, #tpu.memory_space<vmem>>, vector<1x16x512xf32>
    %202 = vector.shape_cast %201 : vector<1x16x512xf32> to vector<16x512xf32>
    %203 = arith.mulf %200, %202 : vector<16x512xf32>
    %204 = arith.addf %198, %203 : vector<16x512xf32>
    %c50_i32 = arith.constant 50 : i32
    %205 = tpu.dynamic_rotate %197 by %c50_i32 dim 1 : vector<16x512xf32>, i32 -> vector<16x512xf32>
    %c1_112 = arith.constant 1 : index
    %c0_113 = arith.constant 0 : index
    %c0_114 = arith.constant 0 : index
    %206 = vector.load %arg8[%c1_112, %c0_113, %c0_114] : memref<49x16x512xf32, #tpu.memory_space<vmem>>, vector<1x16x512xf32>
    %207 = vector.shape_cast %206 : vector<1x16x512xf32> to vector<16x512xf32>
    %208 = arith.mulf %205, %207 : vector<16x512xf32>
    %209 = arith.addf %199, %208 : vector<16x512xf32>
    %c49_i32 = arith.constant 49 : i32
    %210 = tpu.dynamic_rotate %197 by %c49_i32 dim 1 : vector<16x512xf32>, i32 -> vector<16x512xf32>
    %c2_115 = arith.constant 2 : index
    %c0_116 = arith.constant 0 : index
    %c0_117 = arith.constant 0 : index
    %211 = vector.load %arg8[%c2_115, %c0_116, %c0_117] : memref<49x16x512xf32, #tpu.memory_space<vmem>>, vector<1x16x512xf32>
    %212 = vector.shape_cast %211 : vector<1x16x512xf32> to vector<16x512xf32>
    %213 = arith.mulf %210, %212 : vector<16x512xf32>
    %214 = arith.addf %204, %213 : vector<16x512xf32>
    %c48_i32 = arith.constant 48 : i32
    %215 = tpu.dynamic_rotate %197 by %c48_i32 dim 1 : vector<16x512xf32>, i32 -> vector<16x512xf32>
    %c3_118 = arith.constant 3 : index
    %c0_119 = arith.constant 0 : index
    %c0_120 = arith.constant 0 : index
    %216 = vector.load %arg8[%c3_118, %c0_119, %c0_120] : memref<49x16x512xf32, #tpu.memory_space<vmem>>, vector<1x16x512xf32>
    %217 = vector.shape_cast %216 : vector<1x16x512xf32> to vector<16x512xf32>
    %218 = arith.mulf %215, %217 : vector<16x512xf32>
    %219 = arith.addf %209, %218 : vector<16x512xf32>
    %c47_i32 = arith.constant 47 : i32
    %220 = tpu.dynamic_rotate %197 by %c47_i32 dim 1 : vector<16x512xf32>, i32 -> vector<16x512xf32>
    %c4_121 = arith.constant 4 : index
    %c0_122 = arith.constant 0 : index
    %c0_123 = arith.constant 0 : index
    %221 = vector.load %arg8[%c4_121, %c0_122, %c0_123] : memref<49x16x512xf32, #tpu.memory_space<vmem>>, vector<1x16x512xf32>
    %222 = vector.shape_cast %221 : vector<1x16x512xf32> to vector<16x512xf32>
    %223 = arith.mulf %220, %222 : vector<16x512xf32>
    %224 = arith.addf %214, %223 : vector<16x512xf32>
    %c46_i32 = arith.constant 46 : i32
    %225 = tpu.dynamic_rotate %197 by %c46_i32 dim 1 : vector<16x512xf32>, i32 -> vector<16x512xf32>
    %c5_124 = arith.constant 5 : index
    %c0_125 = arith.constant 0 : index
    %c0_126 = arith.constant 0 : index
    %226 = vector.load %arg8[%c5_124, %c0_125, %c0_126] : memref<49x16x512xf32, #tpu.memory_space<vmem>>, vector<1x16x512xf32>
    %227 = vector.shape_cast %226 : vector<1x16x512xf32> to vector<16x512xf32>
    %228 = arith.mulf %225, %227 : vector<16x512xf32>
    %229 = arith.addf %219, %228 : vector<16x512xf32>
    %c45_i32 = arith.constant 45 : i32
    %230 = tpu.dynamic_rotate %197 by %c45_i32 dim 1 : vector<16x512xf32>, i32 -> vector<16x512xf32>
    %c6_127 = arith.constant 6 : index
    %c0_128 = arith.constant 0 : index
    %c0_129 = arith.constant 0 : index
    %231 = vector.load %arg8[%c6_127, %c0_128, %c0_129] : memref<49x16x512xf32, #tpu.memory_space<vmem>>, vector<1x16x512xf32>
    %232 = vector.shape_cast %231 : vector<1x16x512xf32> to vector<16x512xf32>
    %233 = arith.mulf %230, %232 : vector<16x512xf32>
    %234 = arith.addf %224, %233 : vector<16x512xf32>
    %c35_i32 = arith.constant 35 : i32
    %235 = tpu.dynamic_rotate %197 by %c35_i32 dim 1 : vector<16x512xf32>, i32 -> vector<16x512xf32>
    %c7_130 = arith.constant 7 : index
    %c0_131 = arith.constant 0 : index
    %c0_132 = arith.constant 0 : index
    %236 = vector.load %arg8[%c7_130, %c0_131, %c0_132] : memref<49x16x512xf32, #tpu.memory_space<vmem>>, vector<1x16x512xf32>
    %237 = vector.shape_cast %236 : vector<1x16x512xf32> to vector<16x512xf32>
    %238 = arith.mulf %235, %237 : vector<16x512xf32>
    %239 = arith.addf %229, %238 : vector<16x512xf32>
    %c34_i32_133 = arith.constant 34 : i32
    %240 = tpu.dynamic_rotate %197 by %c34_i32_133 dim 1 : vector<16x512xf32>, i32 -> vector<16x512xf32>
    %c8_134 = arith.constant 8 : index
    %c0_135 = arith.constant 0 : index
    %c0_136 = arith.constant 0 : index
    %241 = vector.load %arg8[%c8_134, %c0_135, %c0_136] : memref<49x16x512xf32, #tpu.memory_space<vmem>>, vector<1x16x512xf32>
    %242 = vector.shape_cast %241 : vector<1x16x512xf32> to vector<16x512xf32>
    %243 = arith.mulf %240, %242 : vector<16x512xf32>
    %244 = arith.addf %234, %243 : vector<16x512xf32>
    %c33_i32_137 = arith.constant 33 : i32
    %245 = tpu.dynamic_rotate %197 by %c33_i32_137 dim 1 : vector<16x512xf32>, i32 -> vector<16x512xf32>
    %c9_138 = arith.constant 9 : index
    %c0_139 = arith.constant 0 : index
    %c0_140 = arith.constant 0 : index
    %246 = vector.load %arg8[%c9_138, %c0_139, %c0_140] : memref<49x16x512xf32, #tpu.memory_space<vmem>>, vector<1x16x512xf32>
    %247 = vector.shape_cast %246 : vector<1x16x512xf32> to vector<16x512xf32>
    %248 = arith.mulf %245, %247 : vector<16x512xf32>
    %249 = arith.addf %239, %248 : vector<16x512xf32>
    %c32_i32_141 = arith.constant 32 : i32
    %250 = tpu.dynamic_rotate %197 by %c32_i32_141 dim 1 : vector<16x512xf32>, i32 -> vector<16x512xf32>
    %c10_142 = arith.constant 10 : index
    %c0_143 = arith.constant 0 : index
    %c0_144 = arith.constant 0 : index
    %251 = vector.load %arg8[%c10_142, %c0_143, %c0_144] : memref<49x16x512xf32, #tpu.memory_space<vmem>>, vector<1x16x512xf32>
    %252 = vector.shape_cast %251 : vector<1x16x512xf32> to vector<16x512xf32>
    %253 = arith.mulf %250, %252 : vector<16x512xf32>
    %254 = arith.addf %244, %253 : vector<16x512xf32>
    %c31_i32_145 = arith.constant 31 : i32
    %255 = tpu.dynamic_rotate %197 by %c31_i32_145 dim 1 : vector<16x512xf32>, i32 -> vector<16x512xf32>
    %c11_146 = arith.constant 11 : index
    %c0_147 = arith.constant 0 : index
    %c0_148 = arith.constant 0 : index
    %256 = vector.load %arg8[%c11_146, %c0_147, %c0_148] : memref<49x16x512xf32, #tpu.memory_space<vmem>>, vector<1x16x512xf32>
    %257 = vector.shape_cast %256 : vector<1x16x512xf32> to vector<16x512xf32>
    %258 = arith.mulf %255, %257 : vector<16x512xf32>
    %259 = arith.addf %249, %258 : vector<16x512xf32>
    %c30_i32_149 = arith.constant 30 : i32
    %260 = tpu.dynamic_rotate %197 by %c30_i32_149 dim 1 : vector<16x512xf32>, i32 -> vector<16x512xf32>
    %c12_150 = arith.constant 12 : index
    %c0_151 = arith.constant 0 : index
    %c0_152 = arith.constant 0 : index
    %261 = vector.load %arg8[%c12_150, %c0_151, %c0_152] : memref<49x16x512xf32, #tpu.memory_space<vmem>>, vector<1x16x512xf32>
    %262 = vector.shape_cast %261 : vector<1x16x512xf32> to vector<16x512xf32>
    %263 = arith.mulf %260, %262 : vector<16x512xf32>
    %264 = arith.addf %254, %263 : vector<16x512xf32>
    %c29_i32 = arith.constant 29 : i32
    %265 = tpu.dynamic_rotate %197 by %c29_i32 dim 1 : vector<16x512xf32>, i32 -> vector<16x512xf32>
    %c13_153 = arith.constant 13 : index
    %c0_154 = arith.constant 0 : index
    %c0_155 = arith.constant 0 : index
    %266 = vector.load %arg8[%c13_153, %c0_154, %c0_155] : memref<49x16x512xf32, #tpu.memory_space<vmem>>, vector<1x16x512xf32>
    %267 = vector.shape_cast %266 : vector<1x16x512xf32> to vector<16x512xf32>
    %268 = arith.mulf %265, %267 : vector<16x512xf32>
    %269 = arith.addf %259, %268 : vector<16x512xf32>
    %c19_i32 = arith.constant 19 : i32
    %270 = tpu.dynamic_rotate %197 by %c19_i32 dim 1 : vector<16x512xf32>, i32 -> vector<16x512xf32>
    %c14_156 = arith.constant 14 : index
    %c0_157 = arith.constant 0 : index
    %c0_158 = arith.constant 0 : index
    %271 = vector.load %arg8[%c14_156, %c0_157, %c0_158] : memref<49x16x512xf32, #tpu.memory_space<vmem>>, vector<1x16x512xf32>
    %272 = vector.shape_cast %271 : vector<1x16x512xf32> to vector<16x512xf32>
    %273 = arith.mulf %270, %272 : vector<16x512xf32>
    %274 = arith.addf %264, %273 : vector<16x512xf32>
    %c18_i32_159 = arith.constant 18 : i32
    %275 = tpu.dynamic_rotate %197 by %c18_i32_159 dim 1 : vector<16x512xf32>, i32 -> vector<16x512xf32>
    %c15_160 = arith.constant 15 : index
    %c0_161 = arith.constant 0 : index
    %c0_162 = arith.constant 0 : index
    %276 = vector.load %arg8[%c15_160, %c0_161, %c0_162] : memref<49x16x512xf32, #tpu.memory_space<vmem>>, vector<1x16x512xf32>
    %277 = vector.shape_cast %276 : vector<1x16x512xf32> to vector<16x512xf32>
    %278 = arith.mulf %275, %277 : vector<16x512xf32>
    %279 = arith.addf %269, %278 : vector<16x512xf32>
    %c17_i32_163 = arith.constant 17 : i32
    %280 = tpu.dynamic_rotate %197 by %c17_i32_163 dim 1 : vector<16x512xf32>, i32 -> vector<16x512xf32>
    %c16_164 = arith.constant 16 : index
    %c0_165 = arith.constant 0 : index
    %c0_166 = arith.constant 0 : index
    %281 = vector.load %arg8[%c16_164, %c0_165, %c0_166] : memref<49x16x512xf32, #tpu.memory_space<vmem>>, vector<1x16x512xf32>
    %282 = vector.shape_cast %281 : vector<1x16x512xf32> to vector<16x512xf32>
    %283 = arith.mulf %280, %282 : vector<16x512xf32>
    %284 = arith.addf %274, %283 : vector<16x512xf32>
    %c16_i32_167 = arith.constant 16 : i32
    %285 = tpu.dynamic_rotate %197 by %c16_i32_167 dim 1 : vector<16x512xf32>, i32 -> vector<16x512xf32>
    %c17_168 = arith.constant 17 : index
    %c0_169 = arith.constant 0 : index
    %c0_170 = arith.constant 0 : index
    %286 = vector.load %arg8[%c17_168, %c0_169, %c0_170] : memref<49x16x512xf32, #tpu.memory_space<vmem>>, vector<1x16x512xf32>
    %287 = vector.shape_cast %286 : vector<1x16x512xf32> to vector<16x512xf32>
    %288 = arith.mulf %285, %287 : vector<16x512xf32>
    %289 = arith.addf %279, %288 : vector<16x512xf32>
    %c15_i32_171 = arith.constant 15 : i32
    %290 = tpu.dynamic_rotate %197 by %c15_i32_171 dim 1 : vector<16x512xf32>, i32 -> vector<16x512xf32>
    %c18_172 = arith.constant 18 : index
    %c0_173 = arith.constant 0 : index
    %c0_174 = arith.constant 0 : index
    %291 = vector.load %arg8[%c18_172, %c0_173, %c0_174] : memref<49x16x512xf32, #tpu.memory_space<vmem>>, vector<1x16x512xf32>
    %292 = vector.shape_cast %291 : vector<1x16x512xf32> to vector<16x512xf32>
    %293 = arith.mulf %290, %292 : vector<16x512xf32>
    %294 = arith.addf %284, %293 : vector<16x512xf32>
    %c14_i32_175 = arith.constant 14 : i32
    %295 = tpu.dynamic_rotate %197 by %c14_i32_175 dim 1 : vector<16x512xf32>, i32 -> vector<16x512xf32>
    %c19_176 = arith.constant 19 : index
    %c0_177 = arith.constant 0 : index
    %c0_178 = arith.constant 0 : index
    %296 = vector.load %arg8[%c19_176, %c0_177, %c0_178] : memref<49x16x512xf32, #tpu.memory_space<vmem>>, vector<1x16x512xf32>
    %297 = vector.shape_cast %296 : vector<1x16x512xf32> to vector<16x512xf32>
    %298 = arith.mulf %295, %297 : vector<16x512xf32>
    %299 = arith.addf %289, %298 : vector<16x512xf32>
    %c13_i32 = arith.constant 13 : i32
    %300 = tpu.dynamic_rotate %197 by %c13_i32 dim 1 : vector<16x512xf32>, i32 -> vector<16x512xf32>
    %c20_179 = arith.constant 20 : index
    %c0_180 = arith.constant 0 : index
    %c0_181 = arith.constant 0 : index
    %301 = vector.load %arg8[%c20_179, %c0_180, %c0_181] : memref<49x16x512xf32, #tpu.memory_space<vmem>>, vector<1x16x512xf32>
    %302 = vector.shape_cast %301 : vector<1x16x512xf32> to vector<16x512xf32>
    %303 = arith.mulf %300, %302 : vector<16x512xf32>
    %304 = arith.addf %294, %303 : vector<16x512xf32>
    %c3_i32 = arith.constant 3 : i32
    %305 = tpu.dynamic_rotate %197 by %c3_i32 dim 1 : vector<16x512xf32>, i32 -> vector<16x512xf32>
    %c21_182 = arith.constant 21 : index
    %c0_183 = arith.constant 0 : index
    %c0_184 = arith.constant 0 : index
    %306 = vector.load %arg8[%c21_182, %c0_183, %c0_184] : memref<49x16x512xf32, #tpu.memory_space<vmem>>, vector<1x16x512xf32>
    %307 = vector.shape_cast %306 : vector<1x16x512xf32> to vector<16x512xf32>
    %308 = arith.mulf %305, %307 : vector<16x512xf32>
    %309 = arith.addf %299, %308 : vector<16x512xf32>
    %c2_i32_185 = arith.constant 2 : i32
    %310 = tpu.dynamic_rotate %197 by %c2_i32_185 dim 1 : vector<16x512xf32>, i32 -> vector<16x512xf32>
    %c22_186 = arith.constant 22 : index
    %c0_187 = arith.constant 0 : index
    %c0_188 = arith.constant 0 : index
    %311 = vector.load %arg8[%c22_186, %c0_187, %c0_188] : memref<49x16x512xf32, #tpu.memory_space<vmem>>, vector<1x16x512xf32>
    %312 = vector.shape_cast %311 : vector<1x16x512xf32> to vector<16x512xf32>
    %313 = arith.mulf %310, %312 : vector<16x512xf32>
    %314 = arith.addf %304, %313 : vector<16x512xf32>
    %c1_i32_189 = arith.constant 1 : i32
    %315 = tpu.dynamic_rotate %197 by %c1_i32_189 dim 1 : vector<16x512xf32>, i32 -> vector<16x512xf32>
    %c23_190 = arith.constant 23 : index
    %c0_191 = arith.constant 0 : index
    %c0_192 = arith.constant 0 : index
    %316 = vector.load %arg8[%c23_190, %c0_191, %c0_192] : memref<49x16x512xf32, #tpu.memory_space<vmem>>, vector<1x16x512xf32>
    %317 = vector.shape_cast %316 : vector<1x16x512xf32> to vector<16x512xf32>
    %318 = arith.mulf %315, %317 : vector<16x512xf32>
    %319 = arith.addf %309, %318 : vector<16x512xf32>
    %c24_193 = arith.constant 24 : index
    %c0_194 = arith.constant 0 : index
    %c0_195 = arith.constant 0 : index
    %320 = vector.load %arg8[%c24_193, %c0_194, %c0_195] : memref<49x16x512xf32, #tpu.memory_space<vmem>>, vector<1x16x512xf32>
    %321 = vector.shape_cast %320 : vector<1x16x512xf32> to vector<16x512xf32>
    %322 = arith.mulf %197, %321 : vector<16x512xf32>
    %323 = arith.addf %314, %322 : vector<16x512xf32>
    %c511_i32_196 = arith.constant 511 : i32
    %324 = tpu.dynamic_rotate %197 by %c511_i32_196 dim 1 : vector<16x512xf32>, i32 -> vector<16x512xf32>
    %c25 = arith.constant 25 : index
    %c0_197 = arith.constant 0 : index
    %c0_198 = arith.constant 0 : index
    %325 = vector.load %arg8[%c25, %c0_197, %c0_198] : memref<49x16x512xf32, #tpu.memory_space<vmem>>, vector<1x16x512xf32>
    %326 = vector.shape_cast %325 : vector<1x16x512xf32> to vector<16x512xf32>
    %327 = arith.mulf %324, %326 : vector<16x512xf32>
    %328 = arith.addf %319, %327 : vector<16x512xf32>
    %c510_i32_199 = arith.constant 510 : i32
    %329 = tpu.dynamic_rotate %197 by %c510_i32_199 dim 1 : vector<16x512xf32>, i32 -> vector<16x512xf32>
    %c26 = arith.constant 26 : index
    %c0_200 = arith.constant 0 : index
    %c0_201 = arith.constant 0 : index
    %330 = vector.load %arg8[%c26, %c0_200, %c0_201] : memref<49x16x512xf32, #tpu.memory_space<vmem>>, vector<1x16x512xf32>
    %331 = vector.shape_cast %330 : vector<1x16x512xf32> to vector<16x512xf32>
    %332 = arith.mulf %329, %331 : vector<16x512xf32>
    %333 = arith.addf %323, %332 : vector<16x512xf32>
    %c509_i32 = arith.constant 509 : i32
    %334 = tpu.dynamic_rotate %197 by %c509_i32 dim 1 : vector<16x512xf32>, i32 -> vector<16x512xf32>
    %c27 = arith.constant 27 : index
    %c0_202 = arith.constant 0 : index
    %c0_203 = arith.constant 0 : index
    %335 = vector.load %arg8[%c27, %c0_202, %c0_203] : memref<49x16x512xf32, #tpu.memory_space<vmem>>, vector<1x16x512xf32>
    %336 = vector.shape_cast %335 : vector<1x16x512xf32> to vector<16x512xf32>
    %337 = arith.mulf %334, %336 : vector<16x512xf32>
    %338 = arith.addf %328, %337 : vector<16x512xf32>
    %c499_i32 = arith.constant 499 : i32
    %339 = tpu.dynamic_rotate %197 by %c499_i32 dim 1 : vector<16x512xf32>, i32 -> vector<16x512xf32>
    %c28 = arith.constant 28 : index
    %c0_204 = arith.constant 0 : index
    %c0_205 = arith.constant 0 : index
    %340 = vector.load %arg8[%c28, %c0_204, %c0_205] : memref<49x16x512xf32, #tpu.memory_space<vmem>>, vector<1x16x512xf32>
    %341 = vector.shape_cast %340 : vector<1x16x512xf32> to vector<16x512xf32>
    %342 = arith.mulf %339, %341 : vector<16x512xf32>
    %343 = arith.addf %333, %342 : vector<16x512xf32>
    %c498_i32_206 = arith.constant 498 : i32
    %344 = tpu.dynamic_rotate %197 by %c498_i32_206 dim 1 : vector<16x512xf32>, i32 -> vector<16x512xf32>
    %c29 = arith.constant 29 : index
    %c0_207 = arith.constant 0 : index
    %c0_208 = arith.constant 0 : index
    %345 = vector.load %arg8[%c29, %c0_207, %c0_208] : memref<49x16x512xf32, #tpu.memory_space<vmem>>, vector<1x16x512xf32>
    %346 = vector.shape_cast %345 : vector<1x16x512xf32> to vector<16x512xf32>
    %347 = arith.mulf %344, %346 : vector<16x512xf32>
    %348 = arith.addf %338, %347 : vector<16x512xf32>
    %c497_i32_209 = arith.constant 497 : i32
    %349 = tpu.dynamic_rotate %197 by %c497_i32_209 dim 1 : vector<16x512xf32>, i32 -> vector<16x512xf32>
    %c30 = arith.constant 30 : index
    %c0_210 = arith.constant 0 : index
    %c0_211 = arith.constant 0 : index
    %350 = vector.load %arg8[%c30, %c0_210, %c0_211] : memref<49x16x512xf32, #tpu.memory_space<vmem>>, vector<1x16x512xf32>
    %351 = vector.shape_cast %350 : vector<1x16x512xf32> to vector<16x512xf32>
    %352 = arith.mulf %349, %351 : vector<16x512xf32>
    %353 = arith.addf %343, %352 : vector<16x512xf32>
    %c496_i32_212 = arith.constant 496 : i32
    %354 = tpu.dynamic_rotate %197 by %c496_i32_212 dim 1 : vector<16x512xf32>, i32 -> vector<16x512xf32>
    %c31 = arith.constant 31 : index
    %c0_213 = arith.constant 0 : index
    %c0_214 = arith.constant 0 : index
    %355 = vector.load %arg8[%c31, %c0_213, %c0_214] : memref<49x16x512xf32, #tpu.memory_space<vmem>>, vector<1x16x512xf32>
    %356 = vector.shape_cast %355 : vector<1x16x512xf32> to vector<16x512xf32>
    %357 = arith.mulf %354, %356 : vector<16x512xf32>
    %358 = arith.addf %348, %357 : vector<16x512xf32>
    %c495_i32_215 = arith.constant 495 : i32
    %359 = tpu.dynamic_rotate %197 by %c495_i32_215 dim 1 : vector<16x512xf32>, i32 -> vector<16x512xf32>
    %c32 = arith.constant 32 : index
    %c0_216 = arith.constant 0 : index
    %c0_217 = arith.constant 0 : index
    %360 = vector.load %arg8[%c32, %c0_216, %c0_217] : memref<49x16x512xf32, #tpu.memory_space<vmem>>, vector<1x16x512xf32>
    %361 = vector.shape_cast %360 : vector<1x16x512xf32> to vector<16x512xf32>
    %362 = arith.mulf %359, %361 : vector<16x512xf32>
    %363 = arith.addf %353, %362 : vector<16x512xf32>
    %c494_i32_218 = arith.constant 494 : i32
    %364 = tpu.dynamic_rotate %197 by %c494_i32_218 dim 1 : vector<16x512xf32>, i32 -> vector<16x512xf32>
    %c33 = arith.constant 33 : index
    %c0_219 = arith.constant 0 : index
    %c0_220 = arith.constant 0 : index
    %365 = vector.load %arg8[%c33, %c0_219, %c0_220] : memref<49x16x512xf32, #tpu.memory_space<vmem>>, vector<1x16x512xf32>
    %366 = vector.shape_cast %365 : vector<1x16x512xf32> to vector<16x512xf32>
    %367 = arith.mulf %364, %366 : vector<16x512xf32>
    %368 = arith.addf %358, %367 : vector<16x512xf32>
    %c493_i32 = arith.constant 493 : i32
    %369 = tpu.dynamic_rotate %197 by %c493_i32 dim 1 : vector<16x512xf32>, i32 -> vector<16x512xf32>
    %c34 = arith.constant 34 : index
    %c0_221 = arith.constant 0 : index
    %c0_222 = arith.constant 0 : index
    %370 = vector.load %arg8[%c34, %c0_221, %c0_222] : memref<49x16x512xf32, #tpu.memory_space<vmem>>, vector<1x16x512xf32>
    %371 = vector.shape_cast %370 : vector<1x16x512xf32> to vector<16x512xf32>
    %372 = arith.mulf %369, %371 : vector<16x512xf32>
    %373 = arith.addf %363, %372 : vector<16x512xf32>
    %c483_i32 = arith.constant 483 : i32
    %374 = tpu.dynamic_rotate %197 by %c483_i32 dim 1 : vector<16x512xf32>, i32 -> vector<16x512xf32>
    %c35 = arith.constant 35 : index
    %c0_223 = arith.constant 0 : index
    %c0_224 = arith.constant 0 : index
    %375 = vector.load %arg8[%c35, %c0_223, %c0_224] : memref<49x16x512xf32, #tpu.memory_space<vmem>>, vector<1x16x512xf32>
    %376 = vector.shape_cast %375 : vector<1x16x512xf32> to vector<16x512xf32>
    %377 = arith.mulf %374, %376 : vector<16x512xf32>
    %378 = arith.addf %368, %377 : vector<16x512xf32>
    %c482_i32_225 = arith.constant 482 : i32
    %379 = tpu.dynamic_rotate %197 by %c482_i32_225 dim 1 : vector<16x512xf32>, i32 -> vector<16x512xf32>
    %c36 = arith.constant 36 : index
    %c0_226 = arith.constant 0 : index
    %c0_227 = arith.constant 0 : index
    %380 = vector.load %arg8[%c36, %c0_226, %c0_227] : memref<49x16x512xf32, #tpu.memory_space<vmem>>, vector<1x16x512xf32>
    %381 = vector.shape_cast %380 : vector<1x16x512xf32> to vector<16x512xf32>
    %382 = arith.mulf %379, %381 : vector<16x512xf32>
    %383 = arith.addf %373, %382 : vector<16x512xf32>
    %c481_i32_228 = arith.constant 481 : i32
    %384 = tpu.dynamic_rotate %197 by %c481_i32_228 dim 1 : vector<16x512xf32>, i32 -> vector<16x512xf32>
    %c37 = arith.constant 37 : index
    %c0_229 = arith.constant 0 : index
    %c0_230 = arith.constant 0 : index
    %385 = vector.load %arg8[%c37, %c0_229, %c0_230] : memref<49x16x512xf32, #tpu.memory_space<vmem>>, vector<1x16x512xf32>
    %386 = vector.shape_cast %385 : vector<1x16x512xf32> to vector<16x512xf32>
    %387 = arith.mulf %384, %386 : vector<16x512xf32>
    %388 = arith.addf %378, %387 : vector<16x512xf32>
    %c480_i32_231 = arith.constant 480 : i32
    %389 = tpu.dynamic_rotate %197 by %c480_i32_231 dim 1 : vector<16x512xf32>, i32 -> vector<16x512xf32>
    %c38 = arith.constant 38 : index
    %c0_232 = arith.constant 0 : index
    %c0_233 = arith.constant 0 : index
    %390 = vector.load %arg8[%c38, %c0_232, %c0_233] : memref<49x16x512xf32, #tpu.memory_space<vmem>>, vector<1x16x512xf32>
    %391 = vector.shape_cast %390 : vector<1x16x512xf32> to vector<16x512xf32>
    %392 = arith.mulf %389, %391 : vector<16x512xf32>
    %393 = arith.addf %383, %392 : vector<16x512xf32>
    %c479_i32_234 = arith.constant 479 : i32
    %394 = tpu.dynamic_rotate %197 by %c479_i32_234 dim 1 : vector<16x512xf32>, i32 -> vector<16x512xf32>
    %c39 = arith.constant 39 : index
    %c0_235 = arith.constant 0 : index
    %c0_236 = arith.constant 0 : index
    %395 = vector.load %arg8[%c39, %c0_235, %c0_236] : memref<49x16x512xf32, #tpu.memory_space<vmem>>, vector<1x16x512xf32>
    %396 = vector.shape_cast %395 : vector<1x16x512xf32> to vector<16x512xf32>
    %397 = arith.mulf %394, %396 : vector<16x512xf32>
    %398 = arith.addf %388, %397 : vector<16x512xf32>
    %c478_i32_237 = arith.constant 478 : i32
    %399 = tpu.dynamic_rotate %197 by %c478_i32_237 dim 1 : vector<16x512xf32>, i32 -> vector<16x512xf32>
    %c40 = arith.constant 40 : index
    %c0_238 = arith.constant 0 : index
    %c0_239 = arith.constant 0 : index
    %400 = vector.load %arg8[%c40, %c0_238, %c0_239] : memref<49x16x512xf32, #tpu.memory_space<vmem>>, vector<1x16x512xf32>
    %401 = vector.shape_cast %400 : vector<1x16x512xf32> to vector<16x512xf32>
    %402 = arith.mulf %399, %401 : vector<16x512xf32>
    %403 = arith.addf %393, %402 : vector<16x512xf32>
    %c477_i32 = arith.constant 477 : i32
    %404 = tpu.dynamic_rotate %197 by %c477_i32 dim 1 : vector<16x512xf32>, i32 -> vector<16x512xf32>
    %c41 = arith.constant 41 : index
    %c0_240 = arith.constant 0 : index
    %c0_241 = arith.constant 0 : index
    %405 = vector.load %arg8[%c41, %c0_240, %c0_241] : memref<49x16x512xf32, #tpu.memory_space<vmem>>, vector<1x16x512xf32>
    %406 = vector.shape_cast %405 : vector<1x16x512xf32> to vector<16x512xf32>
    %407 = arith.mulf %404, %406 : vector<16x512xf32>
    %408 = arith.addf %398, %407 : vector<16x512xf32>
    %c467_i32 = arith.constant 467 : i32
    %409 = tpu.dynamic_rotate %197 by %c467_i32 dim 1 : vector<16x512xf32>, i32 -> vector<16x512xf32>
    %c42 = arith.constant 42 : index
    %c0_242 = arith.constant 0 : index
    %c0_243 = arith.constant 0 : index
    %410 = vector.load %arg8[%c42, %c0_242, %c0_243] : memref<49x16x512xf32, #tpu.memory_space<vmem>>, vector<1x16x512xf32>
    %411 = vector.shape_cast %410 : vector<1x16x512xf32> to vector<16x512xf32>
    %412 = arith.mulf %409, %411 : vector<16x512xf32>
    %413 = arith.addf %403, %412 : vector<16x512xf32>
    %c466_i32 = arith.constant 466 : i32
    %414 = tpu.dynamic_rotate %197 by %c466_i32 dim 1 : vector<16x512xf32>, i32 -> vector<16x512xf32>
    %c43 = arith.constant 43 : index
    %c0_244 = arith.constant 0 : index
    %c0_245 = arith.constant 0 : index
    %415 = vector.load %arg8[%c43, %c0_244, %c0_245] : memref<49x16x512xf32, #tpu.memory_space<vmem>>, vector<1x16x512xf32>
    %416 = vector.shape_cast %415 : vector<1x16x512xf32> to vector<16x512xf32>
    %417 = arith.mulf %414, %416 : vector<16x512xf32>
    %418 = arith.addf %408, %417 : vector<16x512xf32>
    %c465_i32 = arith.constant 465 : i32
    %419 = tpu.dynamic_rotate %197 by %c465_i32 dim 1 : vector<16x512xf32>, i32 -> vector<16x512xf32>
    %c44 = arith.constant 44 : index
    %c0_246 = arith.constant 0 : index
    %c0_247 = arith.constant 0 : index
    %420 = vector.load %arg8[%c44, %c0_246, %c0_247] : memref<49x16x512xf32, #tpu.memory_space<vmem>>, vector<1x16x512xf32>
    %421 = vector.shape_cast %420 : vector<1x16x512xf32> to vector<16x512xf32>
    %422 = arith.mulf %419, %421 : vector<16x512xf32>
    %423 = arith.addf %413, %422 : vector<16x512xf32>
    %c464_i32 = arith.constant 464 : i32
    %424 = tpu.dynamic_rotate %197 by %c464_i32 dim 1 : vector<16x512xf32>, i32 -> vector<16x512xf32>
    %c45 = arith.constant 45 : index
    %c0_248 = arith.constant 0 : index
    %c0_249 = arith.constant 0 : index
    %425 = vector.load %arg8[%c45, %c0_248, %c0_249] : memref<49x16x512xf32, #tpu.memory_space<vmem>>, vector<1x16x512xf32>
    %426 = vector.shape_cast %425 : vector<1x16x512xf32> to vector<16x512xf32>
    %427 = arith.mulf %424, %426 : vector<16x512xf32>
    %428 = arith.addf %418, %427 : vector<16x512xf32>
    %c463_i32 = arith.constant 463 : i32
    %429 = tpu.dynamic_rotate %197 by %c463_i32 dim 1 : vector<16x512xf32>, i32 -> vector<16x512xf32>
    %c46 = arith.constant 46 : index
    %c0_250 = arith.constant 0 : index
    %c0_251 = arith.constant 0 : index
    %430 = vector.load %arg8[%c46, %c0_250, %c0_251] : memref<49x16x512xf32, #tpu.memory_space<vmem>>, vector<1x16x512xf32>
    %431 = vector.shape_cast %430 : vector<1x16x512xf32> to vector<16x512xf32>
    %432 = arith.mulf %429, %431 : vector<16x512xf32>
    %433 = arith.addf %423, %432 : vector<16x512xf32>
    %c462_i32 = arith.constant 462 : i32
    %434 = tpu.dynamic_rotate %197 by %c462_i32 dim 1 : vector<16x512xf32>, i32 -> vector<16x512xf32>
    %c47 = arith.constant 47 : index
    %c0_252 = arith.constant 0 : index
    %c0_253 = arith.constant 0 : index
    %435 = vector.load %arg8[%c47, %c0_252, %c0_253] : memref<49x16x512xf32, #tpu.memory_space<vmem>>, vector<1x16x512xf32>
    %436 = vector.shape_cast %435 : vector<1x16x512xf32> to vector<16x512xf32>
    %437 = arith.mulf %434, %436 : vector<16x512xf32>
    %438 = arith.addf %428, %437 : vector<16x512xf32>
    %c461_i32 = arith.constant 461 : i32
    %439 = tpu.dynamic_rotate %197 by %c461_i32 dim 1 : vector<16x512xf32>, i32 -> vector<16x512xf32>
    %c48 = arith.constant 48 : index
    %c0_254 = arith.constant 0 : index
    %c0_255 = arith.constant 0 : index
    %440 = vector.load %arg8[%c48, %c0_254, %c0_255] : memref<49x16x512xf32, #tpu.memory_space<vmem>>, vector<1x16x512xf32>
    %441 = vector.shape_cast %440 : vector<1x16x512xf32> to vector<16x512xf32>
    %442 = arith.mulf %439, %441 : vector<16x512xf32>
    %443 = arith.addf %433, %442 : vector<16x512xf32>
    %444 = arith.addf %443, %438 : vector<16x512xf32>
    %c0_256 = arith.constant 0 : index
    %c0_257 = arith.constant 0 : index
    %445 = vector.load %arg9[%c0_256, %c0_257] : memref<32x16xf32, #tpu.memory_space<vmem>>, vector<32x16xf32>
    %cst_258 = arith.constant dense<0.000000e+00> : vector<32x512xf32>
    %446 = tpu.matmul %445, %444, %cst_258 {dimension_numbers = #tpu.dot_dimension_numbers<[1], [0], [0], [1], [0, 0, 1, 1], [], []>} : vector<32x16xf32>, vector<16x512xf32>, vector<32x512xf32> -> vector<32x512xf32>
    %c0_259 = arith.constant 0 : index
    %c0_260 = arith.constant 0 : index
    %447 = vector.load %arg10[%c0_259, %c0_260] : memref<32x1xf32, #tpu.memory_space<vmem>>, vector<32x1xf32>
    %448 = vector.broadcast %447 : vector<32x1xf32> to vector<32x512xf32>
    %449 = arith.addf %446, %448 : vector<32x512xf32>
    %cst_261 = arith.constant 0.000000e+00 : f32
    %450 = vector.broadcast %cst_261 : f32 to vector<32x512xf32>
    %451 = arith.maximumf %449, %450 : vector<32x512xf32>
    %c0_262 = arith.constant 0 : index
    %c0_263 = arith.constant 0 : index
    %c0_264 = arith.constant 0 : index
    %452 = vector.load %arg11[%c0_262, %c0_263, %c0_264] : memref<1x112x512xf32, #tpu.memory_space<vmem>>, vector<1x8x512xf32>
    %453 = vector.shape_cast %452 : vector<1x8x512xf32> to vector<8x512xf32>
    %454 = vector.shape_cast %59 : vector<8x512xf32> to vector<1x8x512xf32>
    tpu.vector_store %arg11[%c0_262, %c0_263, %c0_264], %454 {strides = array<i32>} : memref<1x112x512xf32, #tpu.memory_space<vmem>>, vector<1x8x512xf32>,
    %c0_265 = arith.constant 0 : index
    %c8_266 = arith.constant 8 : index
    %c0_267 = arith.constant 0 : index
    %455 = vector.load %arg11[%c0_265, %c8_266, %c0_267] : memref<1x112x512xf32, #tpu.memory_space<vmem>>, vector<1x16x512xf32>
    %456 = vector.shape_cast %455 : vector<1x16x512xf32> to vector<16x512xf32>
    %457 = vector.shape_cast %197 : vector<16x512xf32> to vector<1x16x512xf32>
    tpu.vector_store %arg11[%c0_265, %c8_266, %c0_267], %457 {strides = array<i32>} : memref<1x112x512xf32, #tpu.memory_space<vmem>>, vector<1x16x512xf32>,
    %c0_268 = arith.constant 0 : index
    %c24_269 = arith.constant 24 : index
    %c0_270 = arith.constant 0 : index
    %458 = vector.load %arg11[%c0_268, %c24_269, %c0_270] : memref<1x112x512xf32, #tpu.memory_space<vmem>>, vector<1x32x512xf32>
    %459 = vector.shape_cast %458 : vector<1x32x512xf32> to vector<32x512xf32>
    %460 = vector.shape_cast %451 : vector<32x512xf32> to vector<1x32x512xf32>
    tpu.vector_store %arg11[%c0_268, %c24_269, %c0_270], %460 {strides = array<i32>} : memref<1x112x512xf32, #tpu.memory_space<vmem>>, vector<1x32x512xf32>,
    %c0_271 = arith.constant 0 : index
    %c56 = arith.constant 56 : index
    %c0_272 = arith.constant 0 : index
    %461 = vector.load %arg11[%c0_271, %c56, %c0_272] : memref<1x112x512xf32, #tpu.memory_space<vmem>>, vector<1x8x512xf32>
    %462 = vector.shape_cast %461 : vector<1x8x512xf32> to vector<8x512xf32>
    %463 = vector.shape_cast %59 : vector<8x512xf32> to vector<1x8x512xf32>
    tpu.vector_store %arg11[%c0_271, %c56, %c0_272], %463 {strides = array<i32>} : memref<1x112x512xf32, #tpu.memory_space<vmem>>, vector<1x8x512xf32>,
    %c0_273 = arith.constant 0 : index
    %c64 = arith.constant 64 : index
    %c0_274 = arith.constant 0 : index
    %464 = vector.load %arg11[%c0_273, %c64, %c0_274] : memref<1x112x512xf32, #tpu.memory_space<vmem>>, vector<1x16x512xf32>
    %465 = vector.shape_cast %464 : vector<1x16x512xf32> to vector<16x512xf32>
    %466 = vector.shape_cast %197 : vector<16x512xf32> to vector<1x16x512xf32>
    tpu.vector_store %arg11[%c0_273, %c64, %c0_274], %466 {strides = array<i32>} : memref<1x112x512xf32, #tpu.memory_space<vmem>>, vector<1x16x512xf32>,
    %c0_275 = arith.constant 0 : index
    %c80 = arith.constant 80 : index
    %c0_276 = arith.constant 0 : index
    %467 = vector.load %arg11[%c0_275, %c80, %c0_276] : memref<1x112x512xf32, #tpu.memory_space<vmem>>, vector<1x32x512xf32>
    %468 = vector.shape_cast %467 : vector<1x32x512xf32> to vector<32x512xf32>
    %469 = vector.shape_cast %451 : vector<32x512xf32> to vector<1x32x512xf32>
    tpu.vector_store %arg11[%c0_275, %c80, %c0_276], %469 {strides = array<i32>} : memref<1x112x512xf32, #tpu.memory_space<vmem>>, vector<1x32x512xf32>,
    return
  }
  func.func @transform_0(%arg0: i32) -> (i32, i32, i32) {
    %c0_i32 = arith.constant 0 : i32
    %c0_i32_0 = arith.constant 0 : i32
    %c0_i32_1 = arith.constant 0 : i32
    return %arg0, %c0_i32, %c0_i32_0 : i32, i32, i32
  }
  func.func @transform_1(%arg0: i32) -> (i32, i32, i32) {
    %c0_i32 = arith.constant 0 : i32
    %c0_i32_0 = arith.constant 0 : i32
    %c0_i32_1 = arith.constant 0 : i32
    %c0_i32_2 = arith.constant 0 : i32
    return %c0_i32, %c0_i32_0, %c0_i32_1 : i32, i32, i32
  }
  func.func @transform_2(%arg0: i32) -> (i32, i32) {
    %c0_i32 = arith.constant 0 : i32
    %c0_i32_0 = arith.constant 0 : i32
    %c0_i32_1 = arith.constant 0 : i32
    return %c0_i32, %c0_i32_0 : i32, i32
  }
  func.func @transform_3(%arg0: i32) -> (i32, i32) {
    %c0_i32 = arith.constant 0 : i32
    %c0_i32_0 = arith.constant 0 : i32
    %c0_i32_1 = arith.constant 0 : i32
    return %c0_i32, %c0_i32_0 : i32, i32
  }
  func.func @transform_4(%arg0: i32) -> (i32, i32, i32) {
    %c0_i32 = arith.constant 0 : i32
    %c0_i32_0 = arith.constant 0 : i32
    %c0_i32_1 = arith.constant 0 : i32
    %c0_i32_2 = arith.constant 0 : i32
    return %c0_i32, %c0_i32_0, %c0_i32_1 : i32, i32, i32
  }
  func.func @transform_5(%arg0: i32) -> (i32, i32) {
    %c0_i32 = arith.constant 0 : i32
    %c0_i32_0 = arith.constant 0 : i32
    %c0_i32_1 = arith.constant 0 : i32
    return %c0_i32, %c0_i32_0 : i32, i32
  }
  func.func @transform_6(%arg0: i32) -> (i32, i32) {
    %c0_i32 = arith.constant 0 : i32
    %c0_i32_0 = arith.constant 0 : i32
    %c0_i32_1 = arith.constant 0 : i32
    return %c0_i32, %c0_i32_0 : i32, i32
  }
  func.func @transform_7(%arg0: i32) -> (i32, i32, i32) {
    %c0_i32 = arith.constant 0 : i32
    %c0_i32_0 = arith.constant 0 : i32
    %c0_i32_1 = arith.constant 0 : i32
    %c0_i32_2 = arith.constant 0 : i32
    return %c0_i32, %c0_i32_0, %c0_i32_1 : i32, i32, i32
  }
  func.func @transform_8(%arg0: i32) -> (i32, i32) {
    %c0_i32 = arith.constant 0 : i32
    %c0_i32_0 = arith.constant 0 : i32
    %c0_i32_1 = arith.constant 0 : i32
    return %c0_i32, %c0_i32_0 : i32, i32
  }
  func.func @transform_9(%arg0: i32) -> (i32, i32) {
    %c0_i32 = arith.constant 0 : i32
    %c0_i32_0 = arith.constant 0 : i32
    %c0_i32_1 = arith.constant 0 : i32
    return %c0_i32, %c0_i32_0 : i32, i32
  }
  func.func @transform_10(%arg0: i32) -> (i32, i32, i32) {
    %c0_i32 = arith.constant 0 : i32
    %c0_i32_0 = arith.constant 0 : i32
    %c0_i32_1 = arith.constant 0 : i32
    return %arg0, %c0_i32, %c0_i32_0 : i32, i32, i32
  }
}

</mosaic_0001>

<bundles_post_ra>
// kernel: pyramid_multiscale_cnn.1
= control target key start
LH: loop header
LB: loop body
LE: loop exit
PB: predicated region body
PF: predicated region fallthrough
CT: control target
= control target key end

     0   :  { %s4623_s17 = smov 17   ;;  %s4624_s18 = smov 16   ;;  %v11783_v4 = vmov 0.0   ;;  %v4632_v5 = vmov 0   ;;  %v51_v25 = vlaneseq  ;;  %vm322_vm8 = vcmask 1043456   ;;  %s11772_s0 = inlined_call_operand.vmem [shape: f32[1,4,512], index: 0, kind: input, shape index: {}]   ;;  %s11773_s3 = inlined_call_operand.vmem [shape: f32[8,1], index: 3, kind: input, shape index: {}]   ;;  %s11774_s6 = inlined_call_operand.vmem [shape: f32[16,1], index: 6, kind: input, shape index: {}]   ;;  %s11775_s1 = inlined_call_operand.vmem [shape: f32[9,4,512], index: 1, kind: input, shape index: {}]   ;;  %s11776_s2 = inlined_call_operand.vmem [shape: f32[8,4], index: 2, kind: input, shape index: {}]   ;;  %s11777_s10 = inlined_call_operand.vmem [shape: f32[1,112,512], index: 10, kind: output, shape index: {}]   ;;  %s11778_s4 = inlined_call_operand.vmem [shape: f32[25,8,512], index: 4, kind: input, shape index: {}]   ;;  %s11779_s5 = inlined_call_operand.vmem [shape: f32[16,8], index: 5, kind: input, shape index: {}]   ;;  %s11780_s7 = inlined_call_operand.vmem [shape: f32[49,16,512], index: 7, kind: input, shape index: {}]   ;;  %s11781_s9 = inlined_call_operand.vmem [shape: f32[32,1], index: 9, kind: input, shape index: {}]   ;;  %s11782_s8 = inlined_call_operand.vmem [shape: f32[32,16], index: 8, kind: input, shape index: {}]  }
   0x1   :  { %v4731_v0 = vld [vmem:[%s11772_s0 + $0x8] sm:$0xff]  ;;  %v4736_v1 = vld [vmem:[%s11772_s0] sm:$0xff]  ;;  %s4625_s0 = smov 15   ;;  %s4626_s19 = smov 1   ;;  %399 = vmatprep.mubr.f32.mxu0 %v11783_v4  ;;  %470 = vmatprep.mubr.f32.mxu1 %v11783_v4  ;;  %v4852_v35 = vld [vmem:[%s11775_s1 + $0x10] sm:$0xff]  ;;  %vm318_vm9 = vcmask 31744  }
   0x2   :  { %47 = vrot.lane.b32.xlu1 %v4731_v0, %s4623_s17  ;;  %43 = vrot.lane.b32.xlu0 %v4736_v1, %s4623_s17  ;;  %v40_v2 = vcombine.high %v4731_v0, %v4731_v0  ;;  %v39_v3 = vcombine.high %v4736_v1, %v4736_v1  ;;  %s4627_s20 = smov 127   ;;  %s11844_s21 = smov 113   ;;  %v312_v6 = vld [vmem:[%s11773_s3] sm:$0xff]  ;;  %v1124_v7 = vld [vmem:[%s11774_s6 + $0x8] sm:$0xff]  ;;  %v4832_v29 = vand.u32 127, %v51_v25  ;;  %v92_v44 = vcombine.high %v4852_v35, %v4852_v35 }
   0x3   :  { %s11842_s22 = smov 112   ;;  %s11806_s23 = smov 111   ;;  %4579 = vset.pattern.permute.xlu0 %v4632_v5  ;;  %4580 = vset.pattern.permute.xlu1 %v4632_v5  ;;  %v1123_v8 = vld [vmem:[%s11774_s6] sm:$0xff]  ;;  %v4014_v30 = vld [vmem:[%s11775_s1 + $0x48] sm:$0xff]  ;;  %v4857_v36 = vld [vmem:[%s11775_s1 + $0x18] sm:$0xff] }
   0x4   :  { %v4013_v26 = vld [vmem:[%s11775_s1 + $0x40] sm:$0xff]  ;;  %v59_v32 = vld [vmem:[%s11775_s1 + $0x8] sm:$0xff]  ;;  %v4847_v34 = vmul.f32 %v4014_v30, %v4731_v0  ;;  %vm53_vm0 = vcmp.lt.s32.totalorder %v4832_v29, 17  ;;  %vm82_vm1 = vcmp.lt.s32.totalorder %v4832_v29, 16  ;;  %v93_v45 = vcombine.high %v4857_v36, %v4857_v36  ;;  %v4885_v46 = vld [vmem:[%s11775_s1 + $0x30] sm:$0xff]  ;;  %s4633_s29 = smov 34  }
   0x5   :  { %v58_v31 = vld [vmem:[%s11775_s1] sm:$0xff]  ;;  %v4844_v33 = vmul.f32 %v4013_v26, %v4736_v1  ;;  %v63_v40 = vcombine.high %v59_v32, %v59_v32  ;;  %v4873_v42 = vld [vmem:[%s11775_s1 + $0x28] sm:$0xff]  ;;  %vm11834_vm2 = vcmp.lt.s32.totalorder %v4832_v29, 15  ;;  %v4890_v47 = vld [vmem:[%s11775_s1 + $0x38] sm:$0xff]  ;;  %vm142_vm3 = vcmp.lt.s32.totalorder %v4832_v29, 1  ;;  %s4635_s15 = smov 32  }
   0x6   :  { %49 = vrot.lane.b32.xlu1 %v40_v2, %s4623_s17  ;;  %45 = vrot.lane.b32.xlu0 %v39_v3, %s4623_s17  ;;  %v4867_v39 = vld [vmem:[%s11775_s1 + $0x20] sm:$0xff]  ;;  %v62_v41 = vcombine.high %v58_v31, %v58_v31  ;;  %v4895_v48 = vld [vmem:[%s11775_s1 + $0x58] sm:$0xff]  ;;  %v172_v49 = vcombine.high %v4847_v34, %v4847_v34  ;;  %v123_v58 = vcombine.high %v4873_v42, %v4873_v42  ;;  %vm11839_vm4 = vcmp.lt.s32.totalorder %v4832_v29, 127  ;;  %s4636_s16 = smov 31   ;;  %s4637_s24 = smov 30  }
   0x7   :  { %v171_v43 = vcombine.high %v4844_v33, %v4844_v33  ;;  %v122_v52 = vcombine.high %v4867_v39, %v4867_v39  ;;  %v4912_v55 = vld [vmem:[%s11775_s1 + $0x68] sm:$0xff]  ;;  %v152_v59 = vcombine.high %v4885_v46, %v4885_v46  ;;  %v153_v60 = vcombine.high %v4890_v47, %v4890_v47  ;;  %v4929_v61 = vld [vmem:[%s11775_s1 + $0x50] sm:$0xff]  ;;  %v4936_v63 = vld [vmem:[%s11775_s1 + $0x78] sm:$0xff]  ;;  %s4638_s25 = smov 18   ;;  %s4639_s26 = smov 14  }
   0x8   :  { %v198_v62 = vcombine.high %v4895_v48, %v4895_v48  ;;  %v228_v5 = vcombine.high %v4912_v55, %v4912_v55  ;;  %vm11840_vm5 = vcmp.lt.s32.totalorder %v4832_v29, 112  ;;  %v258_v30 = vcombine.high %v4936_v63, %v4936_v63  ;;  %s4640_s27 = smov 2   ;;  %s11849_s28 = smov 126  }
   0x9   :  { %vm11838_vm6 = vcmp.lt.s32.totalorder %v4832_v29, 113  ;;  %vm277_vm7 = vcmp.lt.s32.totalorder %v4832_v29, 111  ;;  %s11847_s3 = smov 114   ;;  %s11804_s6 = smov 110   ;;  %vm489_vm10 = vcmp.lt.s32.totalorder %v4832_v29, 34  ;;  %vm514_vm11 = vcmp.lt.s32.totalorder %v4832_v29, 33 }
   0xa   :  { %76 = vrot.lane.b32.xlu1 %v39_v3, %s4624_s18  ;;  %74 = vrot.lane.b32.xlu0 %v4736_v1, %s4624_s18  ;;  %s11801_s30 = smov 98   ;;  %s11799_s11 = smov 97   ;;  %vm540_vm12 = vcmp.lt.s32.totalorder %v4832_v29, 32  ;;  %vm566_vm13 = vcmp.lt.s32.totalorder %v4832_v29, 31  ;;  %vm592_vm14 = vcmp.lt.s32.totalorder %v4832_v29, 30  ;;  %vm618_vm15 = vcmp.lt.s32.totalorder %v4832_v29, 18 }
   0xb   :  { %s11796_s12 = smov 96   ;;  %s11794_s13 = smov 95  }
   0xc   :  { %s4652_s14 = smov 48  }
   0xe   :  { %80 = vrot.lane.b32.xlu1 %v40_v2, %s4624_s18  ;;  %78 = vrot.lane.b32.xlu0 %v4731_v0, %s4624_s18 }
  0x12   :  { %106 = vrot.lane.b32.xlu1 %v39_v3, %s4625_s0  ;;  %104 = vrot.lane.b32.xlu0 %v4736_v1, %s4625_s0 }
  0x16   :  { %110 = vrot.lane.b32.xlu1 %v40_v2, %s4625_s0  ;;  %108 = vrot.lane.b32.xlu0 %v4731_v0, %s4625_s0 }
  0x1a   :  { %136 = vrot.lane.b32.xlu1 %v39_v3, %s4626_s19  ;;  %134 = vrot.lane.b32.xlu0 %v4736_v1, %s4626_s19 }
  0x1e   :  { %140 = vrot.lane.b32.xlu1 %v40_v2, %s4626_s19  ;;  %138 = vrot.lane.b32.xlu0 %v4731_v0, %s4626_s19 }
  0x22   :  { %181 = vrot.lane.b32.xlu1 %v39_v3, %s4627_s20  ;;  %179 = vrot.lane.b32.xlu0 %v4736_v1, %s4627_s20 }
  0x26   :  { %185 = vrot.lane.b32.xlu1 %v40_v2, %s4627_s20  ;;  %183 = vrot.lane.b32.xlu0 %v4731_v0, %s4627_s20 }
  0x2a   :  { %211 = vrot.lane.b32.xlu1 %v39_v3, %s11844_s21  ;;  %209 = vrot.lane.b32.xlu0 %v4736_v1, %s11844_s21 }
  0x2e   :  { %215 = vrot.lane.b32.xlu1 %v40_v2, %s11844_s21  ;;  %213 = vrot.lane.b32.xlu0 %v4731_v0, %s11844_s21 }
  0x32   :  { %241 = vrot.lane.b32.xlu1 %v39_v3, %s11842_s22  ;;  %239 = vrot.lane.b32.xlu0 %v4736_v1, %s11842_s22 }
  0x36   :  { %245 = vrot.lane.b32.xlu1 %v40_v2, %s11842_s22  ;;  %243 = vrot.lane.b32.xlu0 %v4731_v0, %s11842_s22 }
  0x3a   :  { %271 = vrot.lane.b32.xlu1 %v39_v3, %s11806_s23  ;;  %269 = vrot.lane.b32.xlu0 %v4736_v1, %s11806_s23  ;;  %v4943_v3 = vld [vmem:[%s11775_s1 + $0x60] sm:$0xff] }
  0x3e   :  { %275 = vrot.lane.b32.xlu1 %v40_v2, %s11806_s23  ;;  %273 = vrot.lane.b32.xlu0 %v4731_v0, %s11806_s23  ;;  %v197_v2 = vcombine.high %v4929_v61, %v4929_v61 }
  0x42   :  { %315 = vperm.xlu0 %4579, %v312_v6   ;;  %1132 = vperm.xlu1 %4580, %v1124_v7   ;;  %v4950_v6 = vld [vmem:[%s11775_s1 + $0x88] sm:$0xff] }
  0x46   :  { %1127 = vperm.xlu0 %4579, %v1123_v8  }
  0x74   :  { %v48_v9 = vpop.permute.xlu1 %47  ;;  %v44_v10 = vpop.permute.xlu0 %43 }
  0x78   :  { %v50_v11 = vpop.permute.xlu1 %49  ;;  %v46_v12 = vpop.permute.xlu0 %45 }
  0x79   :  { %v54_v50 = vsel %vm53_vm0, %v48_v9, %v50_v11  ;;  %v57_v51 = vsel %vm53_vm0, %v50_v11, %v44_v10  ;;  %v55_v56 = vsel %vm53_vm0, %v46_v12, %v48_v9  ;;  %v56_v57 = vsel %vm53_vm0, %v44_v10, %v46_v12  ;;  %v4960_v12 = vld [vmem:[%s11775_s1 + $0x70] sm:$0xff] }
  0x7a   :  { %v66_v0 = vmul.f32 %v58_v31, %v57_v51  ;;  %v69_v1 = vmul.f32 %v63_v40, %v54_v50  ;;  %v67_v7 = vmul.f32 %v62_v41, %v56_v57  ;;  %v68_v8 = vmul.f32 %v59_v32, %v55_v56  ;;  %v4977_v32 = vld [vmem:[%s11775_s1 + $0x80] sm:$0xff]  ;;  %s11791_s1 = smov 94  }
  0x7b   :  { %v227_v10 = vcombine.high %v4943_v3, %v4943_v3  ;;  %v257_v31 = vcombine.high %v4960_v12, %v4960_v12 }
  0x7c   :  { %v4801_v13 = vpop.permute.xlu1 %76  ;;  %v4803_v14 = vpop.permute.xlu0 %74  ;;  %v4990_v50 = vadd.f32 %v4844_v33, %v66_v0  ;;  %v4992_v51 = vadd.f32 %v172_v49, %v69_v1  ;;  %v5002_v57 = vadd.f32 %v171_v43, %v67_v7  ;;  %v5005_v4 = vadd.f32 %v4847_v34, %v68_v8 }
  0x7d   :  { %v85_v25 = vsel %vm82_vm1, %v4803_v14, %v4801_v13 }
  0x7e   :  { %v97_v41 = vmul.f32 %v92_v44, %v85_v25 }
  0x80   :  { %v4805_v15 = vpop.permute.xlu1 %80  ;;  %v4807_v16 = vpop.permute.xlu0 %78 }
  0x81   :  { %v86_v26 = vsel %vm82_vm1, %v4805_v15, %v4803_v14  ;;  %v84_v40 = vsel %vm82_vm1, %v4801_v13, %v4807_v16  ;;  %v288_v14 = vcombine.high %v4950_v6, %v4950_v6  ;;  %v83_v13 = vsel %vm82_vm1, %v4807_v16, %v4805_v15 }
  0x82   :  { %v96_v33 = vmul.f32 %v4852_v35, %v86_v26  ;;  %v98_v1 = vmul.f32 %v4857_v36, %v84_v40  ;;  %v99_v35 = vmul.f32 %v93_v45, %v83_v13 }
  0x84   :  { %v4809_v17 = vpop.permute.xlu1 %106  ;;  %v4811_v18 = vpop.permute.xlu0 %104 }
  0x85   :  { %v115_v56 = vsel %vm11834_vm2, %v4811_v18, %v4809_v17 }
  0x86   :  { %v127_v43 = vmul.f32 %v122_v52, %v115_v56 }
  0x88   :  { %v4813_v19 = vpop.permute.xlu1 %110  ;;  %v4815_v20 = vpop.permute.xlu0 %108 }
  0x89   :  { %v116_v15 = vsel %vm11834_vm2, %v4813_v19, %v4811_v18  ;;  %v113_v16 = vsel %vm11834_vm2, %v4815_v20, %v4813_v19  ;;  %v114_v34 = vsel %vm11834_vm2, %v4809_v17, %v4815_v20 }
  0x8a   :  { %v126_v45 = vmul.f32 %v4867_v39, %v116_v15  ;;  %v128_v52 = vmul.f32 %v4873_v42, %v114_v34 }
  0x8c   :  { %v4817_v21 = vpop.permute.xlu1 %136  ;;  %v4819_v22 = vpop.permute.xlu0 %134 }
  0x8d   :  { %v145_v36 = vsel %vm142_vm3, %v4819_v22, %v4817_v21 }
  0x8e   :  { %v157_v25 = vmul.f32 %v152_v59, %v145_v36 }
  0x90   :  { %v4821_v23 = vpop.permute.xlu1 %140  ;;  %v4823_v24 = vpop.permute.xlu0 %138 }
  0x91   :  { %v146_v19 = vsel %vm142_vm3, %v4821_v23, %v4819_v22  ;;  %v143_v17 = vsel %vm142_vm3, %v4823_v24, %v4821_v23  ;;  %v144_v20 = vsel %vm142_vm3, %v4817_v21, %v4823_v24  ;;  %v129_v22 = vmul.f32 %v123_v58, %v113_v16 }
  0x92   :  { %v156_v39 = vmul.f32 %v4885_v46, %v146_v19  ;;  %v158_v42 = vmul.f32 %v4890_v47, %v144_v20  ;;  %v159_v58 = vmul.f32 %v153_v60, %v143_v17 }
  0x94   :  { %v4828_v27 = vpop.permute.xlu1 %181  ;;  %v4830_v28 = vpop.permute.xlu0 %179 }
  0x95   :  { %v190_v18 = vsel %vm11839_vm4, %v4830_v28, %v4828_v27 }
  0x96   :  { %v201_v21 = vmul.f32 %v4929_v61, %v190_v18 }
  0x98   :  { %v4859_v37 = vpop.permute.xlu1 %185  ;;  %v4861_v38 = vpop.permute.xlu0 %183 }
  0x99   :  { %v188_v44 = vsel %vm11839_vm4, %v4861_v38, %v4859_v37  ;;  %v189_v23 = vsel %vm11839_vm4, %v4828_v27, %v4861_v38  ;;  %v191_v27 = vsel %vm11839_vm4, %v4859_v37, %v4830_v28  ;;  %v205_v37 = vadd.f32 %v201_v21, %v96_v33 }
  0x9a   :  { %v203_v40 = vmul.f32 %v4895_v48, %v188_v44  ;;  %v202_v38 = vmul.f32 %v197_v2, %v189_v23 }
  0x9c   :  { %v4905_v53 = vpop.permute.xlu1 %211  ;;  %v4907_v54 = vpop.permute.xlu0 %209 }
  0x9d   :  { %v220_v2 = vsel %vm11838_vm6, %v4907_v54, %v4905_v53 }
  0xa0   :  { %v4952_v9 = vpop.permute.xlu1 %215  ;;  %v214_v11 = vpop.permute.xlu0 %213 }
  0xa1   :  { %v221_v59 = vsel %vm11838_vm6, %v4952_v9, %v4907_v54  ;;  %v219_v46 = vsel %vm11838_vm6, %v4905_v53, %v214_v11  ;;  %v218_v15 = vsel %vm11838_vm6, %v214_v11, %v4952_v9  ;;  %v206_v11 = vadd.f32 %v202_v38, %v97_v41 }
  0xa2   :  { %v234_v53 = vmul.f32 %v228_v5, %v221_v59  ;;  %v232_v54 = vmul.f32 %v227_v10, %v219_v46  ;;  %v233_v48 = vmul.f32 %v4912_v55, %v218_v15 }
  0xa4   :  { %v242_v49 = vpop.permute.xlu1 %241  ;;  %v240_v0 = vpop.permute.xlu0 %239  ;;  %v236_v17 = vadd.f32 %v232_v54, %v127_v43  ;;  %v238_v44 = vadd.f32 %v234_v53, %v129_v22  ;;  %v237_v23 = vadd.f32 %v233_v48, %v128_v52 }
  0xa5   :  { %v250_v47 = vsel %vm11840_vm5, %v240_v0, %v242_v49 }
  0xa6   :  { %v261_v9 = vmul.f32 %v4960_v12, %v250_v47 }
  0xa8   :  { %v246_v7 = vpop.permute.xlu1 %245  ;;  %v244_v8 = vpop.permute.xlu0 %243  ;;  %v265_v19 = vadd.f32 %v261_v9, %v156_v39 }
  0xa9   :  { %v251_v24 = vsel %vm11840_vm5, %v246_v7, %v240_v0  ;;  %v249_v26 = vsel %vm11840_vm5, %v242_v49, %v244_v8  ;;  %v248_v61 = vsel %vm11840_vm5, %v244_v8, %v246_v7  ;;  %v231_v0 = vmul.f32 %v4943_v3, %v220_v2 }
  0xaa   :  { %v264_v60 = vmul.f32 %v258_v30, %v251_v24  ;;  %v262_v13 = vmul.f32 %v257_v31, %v249_v26  ;;  %v204_v30 = vmul.f32 %v198_v62, %v191_v27  ;;  %v207_v31 = vadd.f32 %v203_v40, %v98_v1 }
  0xab   :  { %v263_v49 = vmul.f32 %v4936_v63, %v248_v61  ;;  %v12099_v3 = vcombine.high %v4977_v32, %v4977_v32  ;;  %v235_v21 = vadd.f32 %v231_v0, %v126_v45 }
  0xac   :  { %v272_v56 = vpop.permute.xlu1 %271  ;;  %v270_v28 = vpop.permute.xlu0 %269  ;;  %v266_v63 = vadd.f32 %v262_v13, %v157_v25  ;;  %v268_v34 = vadd.f32 %v264_v60, %v159_v58  ;;  %v208_v20 = vadd.f32 %v204_v30, %v99_v35 }
  0xad   :  { %v280_v16 = vsel %vm277_vm7, %v270_v28, %v272_v56  ;;  %v267_v12 = vadd.f32 %v263_v49, %v158_v42 }
  0xae   :  { %v291_v33 = vmul.f32 %v4977_v32, %v280_v16  ;;  %v304_v24 = vadd.f32 %v266_v63, %v236_v17 }
  0xaf   :  { %v305_v40 = vadd.f32 %v267_v12, %v237_v23 }
  0xb0   :  { %v276_v62 = vpop.permute.xlu1 %275  ;;  %v274_v1 = vpop.permute.xlu0 %273  ;;  %v295_v36 = vadd.f32 %v291_v33, %v4990_v50 }
  0xb1   :  { %v281_v5 = vsel %vm277_vm7, %v276_v62, %v270_v28  ;;  %v278_v18 = vsel %vm277_vm7, %v274_v1, %v276_v62  ;;  %v279_v10 = vsel %vm277_vm7, %v272_v56, %v274_v1 }
  0xb2   :  { %v294_v55 = vmul.f32 %v288_v14, %v281_v5  ;;  %v292_v41 = vmul.f32 %v12099_v3, %v279_v10  ;;  %v293_v50 = vmul.f32 %v4950_v6, %v278_v18  ;;  %v306_v14 = vadd.f32 %v268_v34, %v238_v44 }
  0xb3   :  { %v299_v26 = vadd.f32 %v295_v36, %v205_v37  ;;  %v303_v6 = vadd.f32 %v265_v19, %v235_v21 }
  0xb4   :  { %v297_v7 = vadd.f32 %v293_v50, %v5005_v4  ;;  %v296_v8 = vadd.f32 %v292_v41, %v5002_v57  ;;  %v298_v25 = vadd.f32 %v294_v55, %v4992_v51  ;;  %v311_v4 = vld [vmem:[%s11776_s2] sm:$0xff]  ;;  %v12100_v51 = vmov 0.0   ;;  %s4634_s2 = smov 33  }
  0xb5   :  { %v307_v52 = vadd.f32 %v303_v6, %v299_v26 }
  0xb6   :  { %v300_v42 = vadd.f32 %v296_v8, %v206_v11  ;;  %v302_v32 = vadd.f32 %v298_v25, %v208_v20  ;;  %v301_v58 = vadd.f32 %v297_v7, %v207_v31 }
  0xb8   :  { %v308_v43 = vadd.f32 %v304_v24, %v300_v42  ;;  %v310_v35 = vadd.f32 %v306_v14, %v302_v32  ;;  %v309_v22 = vadd.f32 %v305_v40, %v301_v58 }
  0xba   :  { %4023 = vmatprep.subr.msk.mxu0 %vm322_vm8, %v308_v43  ;;  %4026 = vmatprep.subr.msk.mxu1 %vm322_vm8, %v310_v35 }
  0xbb   :  { %4024 = vmatpush1.msk.msra.mxu0 %vm322_vm8, %v307_v52  ;;  %4027 = vmatpush1.msk.msra.mxu1 %vm322_vm8, %v309_v22  ;;  %vm11835_vm8 = vcmp.lt.s32.totalorder %v4832_v29, 14 }
  0xbc   :  { %4025 = vmatmul.mubr.msk.f32.vlgmr.msra.gmra.mrb[0].mxu0 %vm318_vm9, %v311_v4  ;;  %4028 = vmatmul.mubr.msk.f32.vlgmr.msra.gmra.mrb[0].mxu1 %vm318_vm9, %v311_v4  ;;  %vm745_vm9 = vcmp.lt.s32.totalorder %v4832_v29, 2 }
  0xbd   :  { %1206 = vmatprep.mubr.f32.mxu0 %v12100_v51  ;;  %1283 = vmatprep.mubr.f32.mxu1 %v12100_v51 }
  0xc1   :  { %v316_v57 = vpop.permute.xlu0 %315  ;;  %v5271_v37 = vpop.permute.xlu1 %1132 }
  0xc2   :  { %12101 = vst [vmem:[#allocation2_spill] sm:$0xff] %v5271_v37 }
  0xc5   :  { %v5273_v2 = vpop.permute.xlu0 %1127 }
  0xc6   :  { %12102 = vst [vmem:[#allocation3_spill] sm:$0xff] %v5273_v2 }
 0x18f   :  { %v401_v45 = vpop.f32.mrb[0].mxu0  ;;  %v472_v39 = vpop.f32.mrb[0].mxu1 }
 0x190   :  { %v402_v27 = vadd.f32 %v401_v45, %v316_v57  ;;  %v473_v38 = vadd.f32 %v472_v39, %v316_v57  ;;  %v403_v59 = vpop.f32.mrb[1].mxu0  ;;  %v474_v61 = vpop.f32.mrb[1].mxu1 }
 0x191   :  { %v404_v46 = vadd.f32 %v403_v59, %v316_v57  ;;  %v475_v47 = vadd.f32 %v474_v61, %v316_v57 }
 0x192   :  { %v5119_v60 = vmax.f32 %v402_v27, 0.0  ;;  %v5121_v13 = vmax.f32 %v473_v38, 0.0 }
 0x193   :  { %v5123_v56 = vmax.f32 %v404_v46, 0.0  ;;  %v5125_v28 = vmax.f32 %v475_v47, 0.0 }
 0x194   :  { %3947 = vst [vmem:[%s11777_s10] sm:$0xff] %v5119_v60  ;;  %3975 = vst [vmem:[%s11777_s10 + $0xe0] sm:$0xff] %v5119_v60  ;;  %485 = vrot.lane.b32.xlu0 %v5121_v13, %s4633_s29  ;;  %481 = vrot.lane.b32.xlu1 %v5119_v60, %s4633_s29 }
 0x195   :  { %3949 = vst [vmem:[%s11777_s10 + $0x10] sm:$0xff] %v5121_v13  ;;  %3977 = vst [vmem:[%s11777_s10 + $0xf0] sm:$0xff] %v5121_v13 }
 0x196   :  { %3948 = vst [vmem:[%s11777_s10 + $0x8] sm:$0xff] %v5123_v56  ;;  %3976 = vst [vmem:[%s11777_s10 + $0xe8] sm:$0xff] %v5123_v56 }
 0x197   :  { %3950 = vst [vmem:[%s11777_s10 + $0x18] sm:$0xff] %v5125_v28  ;;  %3978 = vst [vmem:[%s11777_s10 + $0xf8] sm:$0xff] %v5125_v28 }
 0x198   :  { %506 = vrot.lane.b32.xlu0 %v5119_v60, %s4634_s2  ;;  %483 = vrot.lane.b32.xlu1 %v5123_v56, %s4633_s29 }
 0x19c   :  { %510 = vrot.lane.b32.xlu0 %v5121_v13, %s4634_s2  ;;  %487 = vrot.lane.b32.xlu1 %v5125_v28, %s4633_s29 }
 0x1a0   :  { %532 = vrot.lane.b32.xlu0 %v5119_v60, %s4635_s15  ;;  %508 = vrot.lane.b32.xlu1 %v5123_v56, %s4634_s2 }
 0x1a4   :  { %536 = vrot.lane.b32.xlu0 %v5121_v13, %s4635_s15  ;;  %512 = vrot.lane.b32.xlu1 %v5125_v28, %s4634_s2 }
 0x1a8   :  { %558 = vrot.lane.b32.xlu0 %v5119_v60, %s4636_s16  ;;  %534 = vrot.lane.b32.xlu1 %v5123_v56, %s4635_s15 }
 0x1ac   :  { %562 = vrot.lane.b32.xlu0 %v5121_v13, %s4636_s16  ;;  %538 = vrot.lane.b32.xlu1 %v5125_v28, %s4635_s15 }
 0x1b0   :  { %584 = vrot.lane.b32.xlu0 %v5119_v60, %s4637_s24  ;;  %560 = vrot.lane.b32.xlu1 %v5123_v56, %s4636_s16 }
 0x1b4   :  { %588 = vrot.lane.b32.xlu0 %v5121_v13, %s4637_s24  ;;  %564 = vrot.lane.b32.xlu1 %v5125_v28, %s4636_s16 }
 0x1b8   :  { %610 = vrot.lane.b32.xlu0 %v5119_v60, %s4638_s25  ;;  %586 = vrot.lane.b32.xlu1 %v5123_v56, %s4637_s24 }
 0x1bc   :  { %614 = vrot.lane.b32.xlu0 %v5121_v13, %s4638_s25  ;;  %590 = vrot.lane.b32.xlu1 %v5125_v28, %s4637_s24 }
 0x1c0   :  { %636 = vrot.lane.b32.xlu0 %v5119_v60, %s4623_s17  ;;  %612 = vrot.lane.b32.xlu1 %v5123_v56, %s4638_s25 }
 0x1c4   :  { %640 = vrot.lane.b32.xlu0 %v5121_v13, %s4623_s17  ;;  %616 = vrot.lane.b32.xlu1 %v5125_v28, %s4638_s25 }
 0x1c8   :  { %661 = vrot.lane.b32.xlu0 %v5119_v60, %s4624_s18  ;;  %638 = vrot.lane.b32.xlu1 %v5123_v56, %s4623_s17 }
 0x1cc   :  { %665 = vrot.lane.b32.xlu0 %v5121_v13, %s4624_s18  ;;  %642 = vrot.lane.b32.xlu1 %v5125_v28, %s4623_s17 }
 0x1d0   :  { %686 = vrot.lane.b32.xlu0 %v5119_v60, %s4625_s0  ;;  %663 = vrot.lane.b32.xlu1 %v5123_v56, %s4624_s18 }
 0x1d4   :  { %690 = vrot.lane.b32.xlu0 %v5121_v13, %s4625_s0  ;;  %667 = vrot.lane.b32.xlu1 %v5125_v28, %s4624_s18 }
 0x1d8   :  { %711 = vrot.lane.b32.xlu0 %v5119_v60, %s4639_s26  ;;  %688 = vrot.lane.b32.xlu1 %v5123_v56, %s4625_s0 }
 0x1dc   :  { %715 = vrot.lane.b32.xlu0 %v5121_v13, %s4639_s26  ;;  %692 = vrot.lane.b32.xlu1 %v5125_v28, %s4625_s0 }
 0x1e0   :  { %737 = vrot.lane.b32.xlu0 %v5119_v60, %s4640_s27  ;;  %713 = vrot.lane.b32.xlu1 %v5123_v56, %s4639_s26 }
 0x1e4   :  { %741 = vrot.lane.b32.xlu0 %v5121_v13, %s4640_s27  ;;  %717 = vrot.lane.b32.xlu1 %v5125_v28, %s4639_s26 }
 0x1e8   :  { %763 = vrot.lane.b32.xlu0 %v5119_v60, %s4626_s19  ;;  %739 = vrot.lane.b32.xlu1 %v5123_v56, %s4640_s27 }
 0x1ec   :  { %767 = vrot.lane.b32.xlu0 %v5121_v13, %s4626_s19  ;;  %743 = vrot.lane.b32.xlu1 %v5125_v28, %s4640_s27 }
 0x1f0   :  { %801 = vrot.lane.b32.xlu0 %v5119_v60, %s4627_s20  ;;  %765 = vrot.lane.b32.xlu1 %v5123_v56, %s4626_s19 }
 0x1f4   :  { %805 = vrot.lane.b32.xlu0 %v5121_v13, %s4627_s20  ;;  %769 = vrot.lane.b32.xlu1 %v5125_v28, %s4626_s19 }
 0x1f8   :  { %826 = vrot.lane.b32.xlu0 %v5119_v60, %s11849_s28  ;;  %803 = vrot.lane.b32.xlu1 %v5123_v56, %s4627_s20 }
 0x1fc   :  { %830 = vrot.lane.b32.xlu0 %v5121_v13, %s11849_s28  ;;  %807 = vrot.lane.b32.xlu1 %v5125_v28, %s4627_s20 }
 0x200   :  { %852 = vrot.lane.b32.xlu0 %v5119_v60, %s11847_s3  ;;  %828 = vrot.lane.b32.xlu1 %v5123_v56, %s11849_s28 }
 0x204   :  { %856 = vrot.lane.b32.xlu0 %v5121_v13, %s11847_s3  ;;  %832 = vrot.lane.b32.xlu1 %v5125_v28, %s11849_s28 }
 0x206   :  { %v5279_v15 = vpop.permute.xlu1 %481  ;;  %v5281_v16 = vpop.permute.xlu0 %485 }
 0x208   :  { %878 = vrot.lane.b32.xlu0 %v5119_v60, %s11844_s21  ;;  %854 = vrot.lane.b32.xlu1 %v5123_v56, %s11847_s3 }
 0x20a   :  { %v5287_v30 = vpop.permute.xlu1 %483  ;;  %v5289_v31 = vpop.permute.xlu0 %506 }
 0x20c   :  { %882 = vrot.lane.b32.xlu0 %v5121_v13, %s11844_s21  ;;  %858 = vrot.lane.b32.xlu1 %v5125_v28, %s11847_s3  ;;  %s4661_s3 = smov 125  }
 0x20e   :  { %v5295_v49 = vpop.permute.xlu1 %487  ;;  %v5297_v33 = vpop.permute.xlu0 %510 }
 0x210   :  { %903 = vrot.lane.b32.xlu0 %v5119_v60, %s11842_s22  ;;  %880 = vrot.lane.b32.xlu1 %v5123_v56, %s11844_s21 }
 0x212   :  { %v5303_v53 = vpop.permute.xlu1 %508  ;;  %v5305_v54 = vpop.permute.xlu0 %532 }
 0x214   :  { %907 = vrot.lane.b32.xlu0 %v5121_v13, %s11842_s22  ;;  %884 = vrot.lane.b32.xlu1 %v5125_v28, %s11844_s21  ;;  %s4649_s21 = smov 51  }
 0x216   :  { %v5311_v9 = vpop.permute.xlu1 %512  ;;  %v5313_v11 = vpop.permute.xlu0 %536 }
 0x218   :  { %928 = vrot.lane.b32.xlu0 %v5119_v60, %s11806_s23  ;;  %905 = vrot.lane.b32.xlu1 %v5123_v56, %s11842_s22 }
 0x21a   :  { %v5319_v0 = vpop.permute.xlu1 %534  ;;  %v5321_v48 = vpop.permute.xlu0 %558 }
 0x21c   :  { %932 = vrot.lane.b32.xlu0 %v5121_v13, %s11806_s23  ;;  %909 = vrot.lane.b32.xlu1 %v5125_v28, %s11842_s22  ;;  %s4655_s22 = smov 45  }
 0x21e   :  { %v5327_v62 = vpop.permute.xlu1 %538  ;;  %v5329_v1 = vpop.permute.xlu0 %562 }
 0x220   :  { %953 = vrot.lane.b32.xlu0 %v5119_v60, %s11804_s6  ;;  %930 = vrot.lane.b32.xlu1 %v5123_v56, %s11806_s23 }
 0x222   :  { %v5335_v63 = vpop.permute.xlu1 %560  ;;  %v5337_v34 = vpop.permute.xlu0 %584 }
 0x224   :  { %957 = vrot.lane.b32.xlu0 %v5121_v13, %s11804_s6  ;;  %934 = vrot.lane.b32.xlu1 %v5125_v28, %s11806_s23  ;;  %s4658_s23 = smov 19  }
 0x226   :  { %v5343_v36 = vpop.permute.xlu1 %564  ;;  %v5345_v5 = vpop.permute.xlu0 %588 }
 0x228   :  { %979 = vrot.lane.b32.xlu0 %v5119_v60, %s11801_s30  ;;  %955 = vrot.lane.b32.xlu1 %v5123_v56, %s11804_s6 }
 0x22a   :  { %v5351_v18 = vpop.permute.xlu1 %586  ;;  %v5353_v10 = vpop.permute.xlu0 %610 }
 0x22c   :  { %983 = vrot.lane.b32.xlu0 %v5121_v13, %s11801_s30  ;;  %959 = vrot.lane.b32.xlu1 %v5125_v28, %s11804_s6  ;;  %s4659_s6 = smov 13  }
 0x22e   :  { %v5359_v12 = vpop.permute.xlu1 %590  ;;  %v5361_v55 = vpop.permute.xlu0 %614 }
 0x230   :  { %1005 = vrot.lane.b32.xlu0 %v5119_v60, %s11799_s11  ;;  %981 = vrot.lane.b32.xlu1 %v5123_v56, %s11801_s30 }
 0x232   :  { %v5367_v3 = vpop.permute.xlu1 %612  ;;  %v5369_v41 = vpop.permute.xlu0 %636 }
 0x234   :  { %1009 = vrot.lane.b32.xlu0 %v5121_v13, %s11799_s11  ;;  %985 = vrot.lane.b32.xlu1 %v5125_v28, %s11801_s30  ;;  %s4656_s30 = smov 35  }
 0x236   :  { %v5375_v50 = vpop.permute.xlu1 %616  ;;  %v5377_v19 = vpop.permute.xlu0 %640 }
 0x238   :  { %1031 = vrot.lane.b32.xlu0 %v5119_v60, %s11796_s12  ;;  %1007 = vrot.lane.b32.xlu1 %v5123_v56, %s11799_s11 }
 0x23a   :  { %v5383_v17 = vpop.permute.xlu1 %638  ;;  %v5385_v20 = vpop.permute.xlu0 %661 }
 0x23c   :  { %1035 = vrot.lane.b32.xlu0 %v5121_v13, %s11796_s12  ;;  %1011 = vrot.lane.b32.xlu1 %v5125_v28, %s11799_s11  ;;  %s4650_s11 = smov 50  }
 0x23e   :  { %v5391_v44 = vpop.permute.xlu1 %642  ;;  %v5393_v23 = vpop.permute.xlu0 %665 }
 0x240   :  { %1057 = vrot.lane.b32.xlu0 %v5119_v60, %s11794_s13  ;;  %1033 = vrot.lane.b32.xlu1 %v5123_v56, %s11796_s12 }
 0x242   :  { %v5399_v7 = vpop.permute.xlu1 %663  ;;  %v5401_v8 = vpop.permute.xlu0 %686 }
 0x244   :  { %1061 = vrot.lane.b32.xlu0 %v5121_v13, %s11794_s13  ;;  %1037 = vrot.lane.b32.xlu1 %v5125_v28, %s11796_s12  ;;  %s4653_s12 = smov 47  }
 0x246   :  { %v5407_v25 = vpop.permute.xlu1 %667  ;;  %v5409_v21 = vpop.permute.xlu0 %690 }
 0x248   :  { %1083 = vrot.lane.b32.xlu0 %v5119_v60, %s11791_s1  ;;  %1059 = vrot.lane.b32.xlu1 %v5123_v56, %s11794_s13 }
 0x24a   :  { %v5415_v24 = vpop.permute.xlu1 %688  ;;  %v5417_v14 = vpop.permute.xlu0 %711 }
 0x24c   :  { %1087 = vrot.lane.b32.xlu0 %v5121_v13, %s11791_s1  ;;  %1063 = vrot.lane.b32.xlu1 %v5125_v28, %s11794_s13  ;;  %s4654_s13 = smov 46  }
 0x24e   :  { %v5423_v26 = vpop.permute.xlu1 %692  ;;  %v5425_v42 = vpop.permute.xlu0 %715 }
 0x250   :  { %1085 = vrot.lane.b32.xlu1 %v5123_v56, %s11791_s1 }
 0x252   :  { %v5429_v32 = vpop.permute.xlu1 %713  ;;  %v5431_v58 = vpop.permute.xlu0 %737 }
 0x253   :  { %12103 = vst [vmem:[#allocation4_spill] sm:$0xff] %v5431_v58 }
 0x254   :  { %1089 = vrot.lane.b32.xlu1 %v5125_v28, %s11791_s1  ;;  %s4660_s1 = smov 3  }
 0x256   :  { %v5435_v40 = vpop.permute.xlu1 %717  ;;  %v5437_v6 = vpop.permute.xlu0 %741 }
 0x257   :  { %12104 = vst [vmem:[#allocation5_spill] sm:$0xff] %v5437_v6 }
 0x25a   :  { %v5439_v43 = vpop.permute.xlu1 %739  ;;  %v5441_v35 = vpop.permute.xlu0 %763 }
 0x25b   :  { %12105 = vst [vmem:[#allocation6_spill] sm:$0xff] %v5439_v43  ;;  %12106 = vst [vmem:[#allocation7_spill] sm:$0xff] %v5441_v35  ;;  %v515_v35 = vsel %vm514_vm11, %v5297_v33, %v5311_v9 }
 0x25e   :  { %v5443_v22 = vpop.permute.xlu1 %743  ;;  %v5445_v52 = vpop.permute.xlu0 %767 }
 0x25f   :  { %12107 = vst [vmem:[#allocation8_spill] sm:$0xff] %v5443_v22  ;;  %12108 = vst [vmem:[#allocation9_spill] sm:$0xff] %v5445_v52  ;;  %v4035_v52 = vld [vmem:[%s11778_s4 + $0x50] sm:$0xff] }
 0x262   :  { %v5447_v4 = vpop.permute.xlu1 %765  ;;  %v5449_v57 = vpop.permute.xlu0 %801 }
 0x263   :  { %12109 = vst [vmem:[#allocation10_spill] sm:$0xff] %v5447_v4  ;;  %12110 = vst [vmem:[#allocation11_spill] sm:$0xff] %v5449_v57  ;;  %v4034_v4 = vld [vmem:[%s11778_s4 + $0x48] sm:$0xff] }
 0x266   :  { %v5451_v45 = vpop.permute.xlu1 %769  ;;  %v5453_v39 = vpop.permute.xlu0 %805 }
 0x267   :  { %12111 = vst [vmem:[#allocation12_spill] sm:$0xff] %v5451_v45  ;;  %12112 = vst [vmem:[#allocation13_spill] sm:$0xff] %v5453_v39  ;;  %v4032_v45 = vld [vmem:[%s11778_s4 + $0x38] sm:$0xff] }
 0x26a   :  { %v5455_v27 = vpop.permute.xlu1 %803  ;;  %v5457_v38 = vpop.permute.xlu0 %826 }
 0x26b   :  { %12113 = vst [vmem:[#allocation14_spill] sm:$0xff] %v5455_v27  ;;  %12114 = vst [vmem:[#allocation15_spill] sm:$0xff] %v5457_v38  ;;  %v4073_v38 = vld [vmem:[%s11778_s4 + $0x180] sm:$0xff] }
 0x26e   :  { %v5459_v59 = vpop.permute.xlu1 %807  ;;  %v5461_v61 = vpop.permute.xlu0 %830 }
 0x26f   :  { %12115 = vst [vmem:[#allocation16_spill] sm:$0xff] %v5459_v59  ;;  %12116 = vst [vmem:[#allocation17_spill] sm:$0xff] %v5461_v61  ;;  %v496_v61 = vld [vmem:[%s11778_s4 + $0x10] sm:$0xff]  ;;  %v490_v59 = vsel %vm489_vm10, %v5281_v16, %v5295_v49 }
 0x272   :  { %v5463_v46 = vpop.permute.xlu1 %828  ;;  %v5465_v47 = vpop.permute.xlu0 %852 }
 0x273   :  { %12117 = vst [vmem:[#allocation18_spill] sm:$0xff] %v5463_v46  ;;  %12118 = vst [vmem:[#allocation19_spill] sm:$0xff] %v5465_v47  ;;  %v4075_v47 = vld [vmem:[%s11778_s4 + $0x190] sm:$0xff]  ;;  %v495_v46 = vld [vmem:[%s11778_s4 + $0x8] sm:$0xff] }
 0x276   :  { %v5467_v37 = vpop.permute.xlu1 %832  ;;  %v5469_v2 = vpop.permute.xlu0 %856 }
 0x277   :  { %12119 = vst [vmem:[#allocation20_spill] sm:$0xff] %v5467_v37  ;;  %12120 = vst [vmem:[#allocation21_spill] sm:$0xff] %v5469_v2  ;;  %v5501_v37 = vmul.f32 %v4075_v47, %v5121_v13  ;;  %v494_v47 = vld [vmem:[%s11778_s4] sm:$0xff] }
 0x279   :  { %12128 = vst [vmem:[#allocation29_spill] sm:$0xff] %v5501_v37 }
 0x27a   :  { %v5471_v51 = vpop.permute.xlu1 %854  ;;  %v5473_v57 = vpop.permute.xlu0 %878 }
 0x27b   :  { %12121 = vst [vmem:[#allocation22_spill] sm:$0xff] %v5471_v51  ;;  %12122 = vst [vmem:[#allocation23_spill] sm:$0xff] %v5473_v57  ;;  %v4074_v51 = vld [vmem:[%s11778_s4 + $0x188] sm:$0xff]  ;;  %v4076_v57 = vld [vmem:[%s11778_s4 + $0x198] sm:$0xff] }
 0x27c   :  { %v5518_v13 = vmul.f32 %v4074_v51, %v5123_v56  ;;  %v493_v51 = vsel %vm489_vm10, %v5295_v49, %v5279_v15  ;;  %v4030_v56 = vld [vmem:[%s11778_s4 + $0x28] sm:$0xff] }
 0x27e   :  { %v5475_v39 = vpop.permute.xlu1 %858  ;;  %v5477_v27 = vpop.permute.xlu0 %882  ;;  %12129 = vst [vmem:[#allocation30_spill] sm:$0xff] %v5518_v13 }
 0x27f   :  { %12123 = vst [vmem:[#allocation24_spill] sm:$0xff] %v5475_v39  ;;  %12124 = vst [vmem:[#allocation25_spill] sm:$0xff] %v5477_v27  ;;  %v5496_v39 = vmul.f32 %v4073_v38, %v5119_v60  ;;  %v492_v60 = vsel %vm489_vm10, %v5279_v15, %v5287_v30  ;;  %v5521_v38 = vmul.f32 %v4076_v57, %v5125_v28  ;;  %v4031_v28 = vld [vmem:[%s11778_s4 + $0x30] sm:$0xff]  ;;  %v4029_v57 = vld [vmem:[%s11778_s4 + $0x20] sm:$0xff] }
 0x280   :  { %v517_v15 = vsel %vm514_vm11, %v5289_v31, %v5303_v53 }
 0x281   :  { %12126 = vst [vmem:[#allocation27_spill] sm:$0xff] %v5496_v39  ;;  %12130 = vst [vmem:[#allocation31_spill] sm:$0xff] %v5521_v38  ;;  %v4046_v38 = vld [vmem:[%s11778_s4 + $0xa8] sm:$0xff]  ;;  %v4047_v39 = vld [vmem:[%s11778_s4 + $0xb0] sm:$0xff] }
 0x282   :  { %v5493_v27 = vpop.permute.xlu1 %880  ;;  %v5498_v2 = vpop.permute.xlu0 %903 }
 0x283   :  { %12125 = vst [vmem:[#allocation26_spill] sm:$0xff] %v5493_v27  ;;  %12127 = vst [vmem:[#allocation28_spill] sm:$0xff] %v5498_v2  ;;  %v491_v27 = vsel %vm489_vm10, %v5287_v30, %v5281_v16  ;;  %v497_v2 = vld [vmem:[%s11778_s4 + $0x18] sm:$0xff]  ;;  %v516_v16 = vsel %vm514_vm11, %v5303_v53, %v5297_v33  ;;  %v499_v30 = vmul.f32 %v495_v46, %v492_v60 }
 0x284   :  { %v500_v49 = vmul.f32 %v496_v61, %v491_v27  ;;  %v518_v53 = vsel %vm514_vm11, %v5311_v9, %v5289_v31  ;;  %v498_v61 = vmul.f32 %v494_v47, %v493_v51  ;;  %v501_v60 = vmul.f32 %v497_v2, %v490_v59  ;;  %v4042_v59 = vld [vmem:[%s11778_s4 + $0x88] sm:$0xff]  ;;  %v4043_v47 = vld [vmem:[%s11778_s4 + $0x90] sm:$0xff] }
 0x285   :  { %v542_v33 = vsel %vm540_vm12, %v5319_v0, %v5313_v11  ;;  %v543_v31 = vsel %vm540_vm12, %v5305_v54, %v5319_v0  ;;  %v5587_v9 = vmul.f32 %v4030_v56, %v517_v15  ;;  %v5589_v2 = vmul.f32 %v4031_v28, %v516_v16  ;;  %v4041_v16 = vld [vmem:[%s11778_s4 + $0x80] sm:$0xff]  ;;  %v4044_v15 = vld [vmem:[%s11778_s4 + $0x98] sm:$0xff] }
 0x286   :  { %v5569_v46 = vpop.permute.xlu1 %884  ;;  %v5571_v27 = vpop.permute.xlu0 %907  ;;  %v594_v51 = vsel %vm592_vm14, %v5351_v18, %v5345_v5  ;;  %v595_v0 = vsel %vm592_vm14, %v5337_v34, %v5351_v18  ;;  %v5605_v56 = vmul.f32 %v4029_v57, %v518_v53  ;;  %v5607_v28 = vmul.f32 %v4032_v45, %v515_v35  ;;  %v4033_v57 = vld [vmem:[%s11778_s4 + $0x40] sm:$0xff]  ;;  %v4036_v53 = vld [vmem:[%s11778_s4 + $0x58] sm:$0xff] }
 0x287   :  { %12131 = vst [vmem:[#allocation32_spill] sm:$0xff] %v5569_v46  ;;  %12132 = vst [vmem:[#allocation33_spill] sm:$0xff] %v5571_v27  ;;  %v593_v27 = vsel %vm592_vm14, %v5345_v5, %v5359_v12  ;;  %v596_v18 = vsel %vm592_vm14, %v5359_v12, %v5337_v34  ;;  %v5623_v35 = vmul.f32 %v4034_v4, %v543_v31  ;;  %v4038_v4 = vld [vmem:[%s11778_s4 + $0x68] sm:$0xff] }
 0x288   :  { %v5625_v45 = vmul.f32 %v4035_v52, %v542_v33  ;;  %v541_v5 = vsel %vm540_vm12, %v5313_v11, %v5327_v62  ;;  %v544_v34 = vsel %vm540_vm12, %v5327_v62, %v5305_v54  ;;  %v4039_v33 = vld [vmem:[%s11778_s4 + $0x70] sm:$0xff]  ;;  %v568_v11 = vsel %vm566_vm13, %v5335_v63, %v5329_v1 }
 0x289   :  { %v569_v54 = vsel %vm566_vm13, %v5321_v48, %v5335_v63  ;;  %v603_v62 = vmul.f32 %v4042_v59, %v595_v0  ;;  %v604_v31 = vmul.f32 %v4043_v47, %v594_v51  ;;  %v567_v46 = vsel %vm566_vm13, %v5329_v1, %v5343_v36 }
 0x28a   :  { %v5641_v12 = vpop.permute.xlu1 %905  ;;  %v5643_v52 = vpop.permute.xlu0 %928  ;;  %v570_v63 = vsel %vm566_vm13, %v5343_v36, %v5321_v48  ;;  %v602_v59 = vmul.f32 %v4041_v16, %v596_v18  ;;  %v605_v47 = vmul.f32 %v4044_v15, %v593_v27  ;;  %v5673_v51 = vmul.f32 %v4033_v57, %v544_v34  ;;  %v4045_v16 = vld [vmem:[%s11778_s4 + $0xa0] sm:$0xff]  ;;  %v4048_v15 = vld [vmem:[%s11778_s4 + $0xb8] sm:$0xff] }
 0x28b   :  { %12133 = vst [vmem:[#allocation34_spill] sm:$0xff] %v5641_v12  ;;  %12134 = vst [vmem:[#allocation35_spill] sm:$0xff] %v5643_v52  ;;  %v4037_v52 = vld [vmem:[%s11778_s4 + $0x60] sm:$0xff]  ;;  %v4040_v12 = vld [vmem:[%s11778_s4 + $0x78] sm:$0xff]  ;;  %v5675_v0 = vmul.f32 %v4036_v53, %v541_v5  ;;  %v620_v1 = vsel %vm618_vm15, %v5367_v3, %v5361_v55  ;;  %v621_v48 = vsel %vm618_vm15, %v5353_v10, %v5367_v3 }
 0x28c   :  { %v5691_v36 = vmul.f32 %v4038_v4, %v569_v54  ;;  %v5693_v27 = vmul.f32 %v4039_v33, %v568_v11  ;;  %v619_v18 = vsel %vm618_vm15, %v5361_v55, %v5375_v50  ;;  %v622_v3 = vsel %vm618_vm15, %v5375_v50, %v5353_v10  ;;  %v4050_v10 = vld [vmem:[%s11778_s4 + $0xc8] sm:$0xff] }
 0x28d   :  { %v5713_v5 = vmul.f32 %v4037_v52, %v570_v63  ;;  %v5715_v34 = vmul.f32 %v4040_v12, %v567_v46  ;;  %v607_v4 = vadd.f32 %v603_v62, %v499_v30  ;;  %v608_v33 = vadd.f32 %v604_v31, %v500_v49  ;;  %v4058_v50 = vld [vmem:[%s11778_s4 + $0x108] sm:$0xff]  ;;  %v4059_v30 = vld [vmem:[%s11778_s4 + $0x110] sm:$0xff]  ;;  %v4060_v63 = vld [vmem:[%s11778_s4 + $0x118] sm:$0xff] }
 0x28e   :  { %v5709_v57 = vpop.permute.xlu1 %909  ;;  %v5711_v53 = vpop.permute.xlu0 %932  ;;  %v606_v11 = vadd.f32 %v602_v59, %v498_v61  ;;  %v609_v54 = vadd.f32 %v605_v47, %v501_v60  ;;  %v629_v55 = vmul.f32 %v4046_v38, %v621_v48  ;;  %v630_v22 = vmul.f32 %v4047_v39, %v620_v1  ;;  %v4051_v49 = vld [vmem:[%s11778_s4 + $0xd0] sm:$0xff]  ;;  %v4049_v60 = vld [vmem:[%s11778_s4 + $0xc0] sm:$0xff]  ;;  %v4054_v31 = vld [vmem:[%s11778_s4 + $0xe8] sm:$0xff] }
 0x28f   :  { %12135 = vst [vmem:[#allocation36_spill] sm:$0xff] %v5709_v57  ;;  %12136 = vst [vmem:[#allocation37_spill] sm:$0xff] %v5711_v53  ;;  %v628_v58 = vmul.f32 %v4045_v16, %v622_v3  ;;  %v631_v43 = vmul.f32 %v4048_v15, %v619_v18  ;;  %v695_v38 = vsel %vm11834_vm2, %v5415_v24, %v5409_v21  ;;  %v4053_v1 = vld [vmem:[%s11778_s4 + $0xe0] sm:$0xff]  ;;  %v4056_v48 = vld [vmem:[%s11778_s4 + $0xf8] sm:$0xff] }
 0x290   :  { %v696_v39 = vsel %vm11834_vm2, %v5401_v8, %v5415_v24  ;;  %v645_v46 = vsel %vm53_vm0, %v5383_v17, %v5377_v19  ;;  %v646_v61 = vsel %vm53_vm0, %v5369_v41, %v5383_v17  ;;  %v4052_v24 = vld [vmem:[%s11778_s4 + $0xd8] sm:$0xff]  ;;  %v644_v12 = vsel %vm53_vm0, %v5377_v19, %v5391_v44 }
 0x291   :  { %v647_v52 = vsel %vm53_vm0, %v5391_v44, %v5369_v41  ;;  %v670_v19 = vsel %vm82_vm1, %v5399_v7, %v5393_v23  ;;  %v671_v41 = vsel %vm82_vm1, %v5385_v20, %v5399_v7  ;;  %v4057_v44 = vld [vmem:[%s11778_s4 + $0x100] sm:$0xff]  ;;  %v694_v59 = vsel %vm11834_vm2, %v5409_v21, %v5423_v26  ;;  %v4055_v7 = vld [vmem:[%s11778_s4 + $0xf0] sm:$0xff] }
 0x292   :  { %v5761_v17 = vpop.permute.xlu1 %930  ;;  %v5763_v62 = vpop.permute.xlu0 %953  ;;  %v697_v47 = vsel %vm11834_vm2, %v5423_v26, %v5401_v8  ;;  %v669_v21 = vsel %vm82_vm1, %v5393_v23, %v5407_v25  ;;  %v672_v8 = vsel %vm82_vm1, %v5407_v25, %v5385_v20  ;;  %v704_v26 = vmul.f32 %v4058_v50, %v696_v39 }
 0x293   :  { %12137 = vst [vmem:[#allocation38_spill] sm:$0xff] %v5761_v17  ;;  %12138 = vst [vmem:[#allocation39_spill] sm:$0xff] %v5763_v62  ;;  %v705_v16 = vmul.f32 %v4059_v30, %v695_v38  ;;  %v654_v15 = vmul.f32 %v4050_v10, %v646_v61  ;;  %v655_v18 = vmul.f32 %v4051_v49, %v645_v46  ;;  %vm11836_vm2 = vcmp.lt.s32.totalorder %v4832_v29, 126  ;;  %v4066_v61 = vld [vmem:[%s11778_s4 + $0x148] sm:$0xff] }
 0x294   :  { %v653_v3 = vmul.f32 %v4049_v60, %v647_v52  ;;  %v656_v62 = vmul.f32 %v4052_v24, %v644_v12  ;;  %v5808_v17 = vadd.f32 %v629_v55, %v5587_v9  ;;  %v5811_v53 = vadd.f32 %v630_v22, %v5589_v2  ;;  %v12141_v60 = vld [vmem:[#allocation5_spill] sm:$0xff]  ;;  %v12143_v24 = vld [vmem:[#allocation4_spill] sm:$0xff]  ;;  %v4065_v52 = vld [vmem:[%s11778_s4 + $0x140] sm:$0xff] }
 0x295   :  { %v703_v57 = vmul.f32 %v4057_v44, %v697_v47  ;;  %v706_v6 = vmul.f32 %v4060_v63, %v694_v59  ;;  %v679_v13 = vmul.f32 %v4054_v31, %v671_v41  ;;  %v680_v20 = vmul.f32 %v4055_v7, %v670_v19  ;;  %v12144_v31 = vld [vmem:[#allocation8_spill] sm:$0xff]  ;;  %v12145_v44 = vld [vmem:[#allocation27_spill] sm:$0xff] }
 0x296   :  { %v5813_v23 = vpop.permute.xlu1 %934  ;;  %v5815_v37 = vpop.permute.xlu0 %957  ;;  %v678_v25 = vmul.f32 %v4053_v1, %v672_v8  ;;  %v681_v50 = vmul.f32 %v4056_v48, %v669_v21  ;;  %v5818_v10 = vadd.f32 %v628_v58, %v5605_v56  ;;  %v5821_v30 = vadd.f32 %v631_v43, %v5607_v28  ;;  %v4062_v43 = vld [vmem:[%s11778_s4 + $0x128] sm:$0xff]  ;;  %v4063_v56 = vld [vmem:[%s11778_s4 + $0x130] sm:$0xff] }
 0x297   :  { %v708_v9 = vadd.f32 %v704_v26, %v607_v4  ;;  %v709_v55 = vadd.f32 %v705_v16, %v608_v33  ;;  %v5824_v22 = vadd.f32 %v654_v15, %v5623_v35  ;;  %v5827_v2 = vadd.f32 %v655_v18, %v5625_v45  ;;  %v4064_v33 = vld [vmem:[%s11778_s4 + $0x138] sm:$0xff]  ;;  %v12146_v59 = vld [vmem:[#allocation31_spill] sm:$0xff]  ;;  %v4071_v26 = vld [vmem:[%s11778_s4 + $0x170] sm:$0xff] }
 0x298   :  { %v5830_v38 = vadd.f32 %v653_v3, %v5673_v51  ;;  %v5833_v39 = vadd.f32 %v656_v62, %v5675_v0  ;;  %v707_v49 = vadd.f32 %v703_v57, %v606_v11  ;;  %v710_v58 = vadd.f32 %v706_v6, %v609_v54  ;;  %v4068_v62 = vld [vmem:[%s11778_s4 + $0x158] sm:$0xff]  ;;  %v4070_v8 = vld [vmem:[%s11778_s4 + $0x168] sm:$0xff]  ;;  %v12148_v15 = vld [vmem:[#allocation10_spill] sm:$0xff] }
 0x299   :  { %v721_v28 = vsel %vm11835_vm8, %v5429_v32, %v5425_v42  ;;  %v722_v35 = vsel %vm11835_vm8, %v5417_v14, %v5429_v32  ;;  %v5854_v51 = vadd.f32 %v679_v13, %v5691_v36  ;;  %v5857_v0 = vadd.f32 %v680_v20, %v5693_v27  ;;  %v4061_v32 = vld [vmem:[%s11778_s4 + $0x120] sm:$0xff]  ;;  %v12147_v16 = vld [vmem:[#allocation9_spill] sm:$0xff]  ;;  %v12149_v3 = vld [vmem:[#allocation7_spill] sm:$0xff] }
 0x29a   :  { %v5849_v45 = vpop.permute.xlu1 %955  ;;  %v5851_v6 = vpop.permute.xlu0 %979  ;;  %v5860_v57 = vadd.f32 %v678_v25, %v5713_v5  ;;  %v5863_v4 = vadd.f32 %v681_v50, %v5715_v34  ;;  %v720_v13 = vsel %vm11835_vm8, %v5425_v42, %v5435_v40  ;;  %v723_v36 = vsel %vm11835_vm8, %v5435_v40, %v5417_v14  ;;  %v12139_v27 = vld [vmem:[#allocation30_spill] sm:$0xff]  ;;  %v12140_v34 = vld [vmem:[#allocation29_spill] sm:$0xff]  ;;  %v4067_v42 = vld [vmem:[%s11778_s4 + $0x150] sm:$0xff] }
 0x29b   :  { %v5881_v5 = vadd.f32 %v12139_v27, %v708_v9  ;;  %v5884_v11 = vadd.f32 %v12140_v34, %v709_v55  ;;  %v730_v54 = vmul.f32 %v4062_v43, %v722_v35  ;;  %v731_v46 = vmul.f32 %v4063_v56, %v721_v28  ;;  %v12142_v14 = vld [vmem:[#allocation6_spill] sm:$0xff]  ;;  %v4072_v55 = vld [vmem:[%s11778_s4 + $0x178] sm:$0xff]  ;;  %v12153_v27 = vld [vmem:[#allocation11_spill] sm:$0xff] }
 0x29c   :  { %v747_v40 = vsel %vm745_vm9, %v12142_v14, %v12141_v60  ;;  %v748_v12 = vsel %vm745_vm9, %v12143_v24, %v12142_v14  ;;  %v746_v19 = vsel %vm745_vm9, %v12141_v60, %v12144_v31  ;;  %v749_v41 = vsel %vm745_vm9, %v12144_v31, %v12143_v24  ;;  %v4069_v9 = vld [vmem:[%s11778_s4 + $0x160] sm:$0xff]  ;;  %v4079_v60 = vld [vmem:[%s11778_s4 + $0x1b0] sm:$0xff]  ;;  %v4080_v14 = vld [vmem:[%s11778_s4 + $0x1b8] sm:$0xff] }
 0x29d   :  { %vm11837_vm8 = vcmp.lt.s32.totalorder %v4832_v29, 114  ;;  %v5916_v63 = vadd.f32 %v12145_v44, %v707_v49  ;;  %v5919_v47 = vadd.f32 %v12146_v59, %v710_v58  ;;  %v729_v48 = vmul.f32 %v4061_v32, %v723_v36  ;;  %v12150_v49 = vld [vmem:[#allocation12_spill] sm:$0xff]  ;;  %v4077_v35 = vld [vmem:[%s11778_s4 + $0x1a0] sm:$0xff]  ;;  %v4078_v32 = vld [vmem:[%s11778_s4 + $0x1a8] sm:$0xff] }
 0x29e   :  { %v5921_v7 = vpop.permute.xlu1 %959  ;;  %v5923_v1 = vpop.permute.xlu0 %983  ;;  %v732_v21 = vmul.f32 %v4064_v33, %v720_v13  ;;  %v772_v18 = vsel %vm142_vm3, %v12148_v15, %v12147_v16  ;;  %v773_v20 = vsel %vm142_vm3, %v12149_v3, %v12148_v15  ;;  %v756_v25 = vmul.f32 %v4066_v61, %v748_v12  ;;  %v12151_v33 = vld [vmem:[#allocation13_spill] sm:$0xff]  ;;  %v12152_v13 = vld [vmem:[#allocation14_spill] sm:$0xff] }
 0x29f   :  { %v757_v50 = vmul.f32 %v4067_v42, %v747_v40  ;;  %v771_v58 = vsel %vm142_vm3, %v12147_v16, %v12150_v49  ;;  %v774_v43 = vsel %vm142_vm3, %v12150_v49, %v12149_v3  ;;  %v755_v56 = vmul.f32 %v4065_v52, %v749_v41  ;;  %v12154_v40 = vld [vmem:[#allocation16_spill] sm:$0xff] }
 0x2a0   :  { %v758_v28 = vmul.f32 %v4068_v62, %v746_v19  ;;  %v810_v36 = vsel %vm11839_vm4, %v12152_v13, %v12151_v33  ;;  %v811_v34 = vsel %vm11839_vm4, %v12153_v27, %v12152_v13  ;;  %v781_v61 = vmul.f32 %v4070_v8, %v773_v20 }
 0x2a1   :  { %v782_v42 = vmul.f32 %v4071_v26, %v772_v18  ;;  %v809_v24 = vsel %vm11839_vm4, %v12151_v33, %v12154_v40  ;;  %v812_v12 = vsel %vm11839_vm4, %v12154_v40, %v12153_v27  ;;  %v734_v31 = vadd.f32 %v730_v54, %v5808_v17  ;;  %v12160_v33 = vld [vmem:[#allocation22_spill] sm:$0xff] }
 0x2a2   :  { %v5981_v52 = vpop.permute.xlu1 %981  ;;  %v5983_v62 = vpop.permute.xlu0 %1005  ;;  %v735_v19 = vadd.f32 %v731_v46, %v5811_v53  ;;  %v780_v41 = vmul.f32 %v4069_v9, %v774_v43  ;;  %v783_v44 = vmul.f32 %v4072_v55, %v771_v58  ;;  %v733_v59 = vadd.f32 %v729_v48, %v5818_v10  ;;  %v12157_v48 = vld [vmem:[#allocation15_spill] sm:$0xff]  ;;  %v12158_v9 = vld [vmem:[#allocation20_spill] sm:$0xff] }
 0x2a3   :  { %v736_v8 = vadd.f32 %v732_v21, %v5821_v30  ;;  %v818_v26 = vmul.f32 %v4077_v35, %v811_v34  ;;  %v819_v16 = vmul.f32 %v4078_v32, %v810_v36  ;;  %v760_v15 = vadd.f32 %v756_v25, %v5824_v22  ;;  %v4083_v25 = vld [vmem:[%s11778_s4 + $0x1d0] sm:$0xff]  ;;  %v4086_v35 = vld [vmem:[%s11778_s4 + $0x1e8] sm:$0xff]  ;;  %v12159_v32 = vld [vmem:[#allocation21_spill] sm:$0xff] }
 0x2a4   :  { %v5991_v18 = vadd.f32 %v757_v50, %v5827_v2  ;;  %v820_v3 = vmul.f32 %v4079_v60, %v809_v24  ;;  %v821_v20 = vmul.f32 %v4080_v14, %v812_v12  ;;  %v759_v49 = vadd.f32 %v755_v56, %v5830_v38  ;;  %v4081_v38 = vld [vmem:[%s11778_s4 + $0x1c0] sm:$0xff]  ;;  %v4084_v50 = vld [vmem:[%s11778_s4 + $0x1d8] sm:$0xff]  ;;  %v12161_v36 = vld [vmem:[#allocation19_spill] sm:$0xff] }
 0x2a5   :  { %v5995_v17 = vadd.f32 %v758_v28, %v5833_v39  ;;  %v5998_v53 = vadd.f32 %v781_v61, %v5854_v51  ;;  %v6001_v10 = vadd.f32 %v782_v42, %v5857_v0  ;;  %v6008_v22 = vadd.f32 %v780_v41, %v5860_v57  ;;  %v4082_v39 = vld [vmem:[%s11778_s4 + $0x1c8] sm:$0xff]  ;;  %v12155_v51 = vld [vmem:[#allocation17_spill] sm:$0xff]  ;;  %v12156_v0 = vld [vmem:[#allocation18_spill] sm:$0xff] }
 0x2a6   :  { %v6003_v30 = vpop.permute.xlu1 %985  ;;  %v6005_v54 = vpop.permute.xlu0 %1009  ;;  %v6011_v2 = vadd.f32 %v783_v44, %v5863_v4  ;;  %v836_v46 = vsel %vm11836_vm2, %v12156_v0, %v12155_v51  ;;  %v837_v57 = vsel %vm11836_vm2, %v12157_v48, %v12156_v0  ;;  %v6027_v4 = vadd.f32 %v818_v26, %v733_v59  ;;  %v4085_v28 = vld [vmem:[%s11778_s4 + $0x1e0] sm:$0xff]  ;;  %v4087_v42 = vld [vmem:[%s11778_s4 + $0x1f0] sm:$0xff]  ;;  %v4088_v60 = vld [vmem:[%s11778_s4 + $0x1f8] sm:$0xff] }
 0x2a7   :  { %v6029_v21 = vadd.f32 %v819_v16, %v734_v31  ;;  %v835_v55 = vsel %vm11836_vm2, %v12155_v51, %v12158_v9  ;;  %v838_v58 = vsel %vm11836_vm2, %v12158_v9, %v12157_v48  ;;  %v6045_v43 = vadd.f32 %v820_v3, %v735_v19  ;;  %v12162_v14 = vld [vmem:[#allocation24_spill] sm:$0xff]  ;;  %v4089_v44 = vld [vmem:[%s11778_s4 + $0x200] sm:$0xff]  ;;  %v4090_v59 = vld [vmem:[%s11778_s4 + $0x208] sm:$0xff] }
 0x2a8   :  { %v6047_v56 = vadd.f32 %v821_v20, %v736_v8  ;;  %v862_v13 = vsel %vm11837_vm8, %v12160_v33, %v12159_v32  ;;  %v863_v27 = vsel %vm11837_vm8, %v12161_v36, %v12160_v33  ;;  %v844_v34 = vmul.f32 %v4081_v38, %v837_v57  ;;  %v12163_v8 = vld [vmem:[#allocation25_spill] sm:$0xff]  ;;  %v12164_v26 = vld [vmem:[#allocation26_spill] sm:$0xff]  ;;  %v12165_v3 = vld [vmem:[#allocation23_spill] sm:$0xff] }
 0x2a9   :  { %v845_v61 = vmul.f32 %v4082_v39, %v836_v46  ;;  %v861_v40 = vsel %vm11837_vm8, %v12159_v32, %v12162_v14  ;;  %v864_v24 = vsel %vm11837_vm8, %v12162_v14, %v12161_v36  ;;  %vm11841_vm2 = vcmp.lt.s32.totalorder %v4832_v29, 110  ;;  %v4091_v51 = vld [vmem:[%s11778_s4 + $0x210] sm:$0xff]  ;;  %v4092_v0 = vld [vmem:[%s11778_s4 + $0x218] sm:$0xff]  ;;  %v4093_v9 = vld [vmem:[%s11778_s4 + $0x220] sm:$0xff] }
 0x2aa   :  { %v6078_v12 = vpop.permute.xlu1 %1007  ;;  %v6080_v31 = vpop.permute.xlu0 %1031  ;;  %v846_v19 = vmul.f32 %v4083_v25, %v835_v55  ;;  %v847_v41 = vmul.f32 %v4084_v50, %v838_v58  ;;  %v887_v16 = vsel %vm11838_vm6, %v12164_v26, %v12163_v8  ;;  %v888_v20 = vsel %vm11838_vm6, %v12165_v3, %v12164_v26  ;;  %v12166_v46 = vld [vmem:[#allocation32_spill] sm:$0xff]  ;;  %v4094_v55 = vld [vmem:[%s11778_s4 + $0x228] sm:$0xff]  ;;  %v12167_v58 = vld [vmem:[#allocation33_spill] sm:$0xff] }
 0x2ab   :  { %v870_v38 = vmul.f32 %v4085_v28, %v863_v27  ;;  %v871_v39 = vmul.f32 %v4086_v35, %v862_v13  ;;  %v886_v48 = vsel %vm11838_vm6, %v12163_v8, %v12166_v46  ;;  %v889_v57 = vsel %vm11838_vm6, %v12166_v46, %v12165_v3  ;;  %v12168_v28 = vld [vmem:[#allocation34_spill] sm:$0xff]  ;;  %v12169_v32 = vld [vmem:[#allocation28_spill] sm:$0xff]  ;;  %v4096_v26 = vld [vmem:[%s11778_s4 + $0x238] sm:$0xff] }
 0x2ac   :  { %vm12008_vm8 = vcmp.lt.s32.totalorder %v4832_v29, 98  ;;  %v872_v25 = vmul.f32 %v4087_v42, %v861_v40  ;;  %v873_v50 = vmul.f32 %v4088_v60, %v864_v24  ;;  %v912_v35 = vsel %vm11840_vm5, %v12168_v28, %v12167_v58  ;;  %v4095_v8 = vld [vmem:[%s11778_s4 + $0x230] sm:$0xff] }
 0x2ad   :  { %v913_v33 = vsel %vm11840_vm5, %v12169_v32, %v12168_v28  ;;  %v6125_v13 = vadd.f32 %v844_v34, %v759_v49  ;;  %v6127_v36 = vadd.f32 %v845_v61, %v760_v15  ;;  %v895_v27 = vmul.f32 %v4089_v44, %v888_v20  ;;  %v12170_v49 = vld [vmem:[#allocation36_spill] sm:$0xff]  ;;  %v4102_v28 = vld [vmem:[%s11778_s4 + $0x268] sm:$0xff] }
 0x2ae   :  { %v896_v42 = vmul.f32 %v4090_v59, %v887_v16  ;;  %v6129_v60 = vpop.permute.xlu1 %1011  ;;  %v6131_v14 = vpop.permute.xlu0 %1035  ;;  %v897_v40 = vmul.f32 %v4091_v51, %v886_v48  ;;  %v898_v24 = vmul.f32 %v4092_v0, %v889_v57  ;;  %v911_v15 = vsel %vm11840_vm5, %v12167_v58, %v12170_v49  ;;  %v4101_v58 = vld [vmem:[%s11778_s4 + $0x260] sm:$0xff] }
 0x2af   :  { %v914_v34 = vsel %vm11840_vm5, %v12170_v49, %v12169_v32  ;;  %vm12020_vm6 = vcmp.lt.s32.totalorder %v4832_v29, 97  ;;  %v6149_v61 = vadd.f32 %v846_v19, %v5991_v18  ;;  %v6152_v44 = vadd.f32 %v847_v41, %v5995_v17  ;;  %v4097_v17 = vld [vmem:[%s11778_s4 + $0x240] sm:$0xff]  ;;  %v12171_v41 = vld [vmem:[#allocation37_spill] sm:$0xff]  ;;  %v12174_v32 = vld [vmem:[#allocation39_spill] sm:$0xff] }
 0x2b0   :  { %v920_v59 = vmul.f32 %v4093_v9, %v913_v33  ;;  %v921_v16 = vmul.f32 %v4094_v55, %v912_v35  ;;  %vm12011_vm4 = vcmp.lt.s32.totalorder %v4832_v29, 95  ;;  %v6156_v3 = vadd.f32 %v870_v38, %v6008_v22  ;;  %v4098_v22 = vld [vmem:[%s11778_s4 + $0x248] sm:$0xff]  ;;  %v12172_v38 = vld [vmem:[#allocation38_spill] sm:$0xff] }
 0x2b1   :  { %v6159_v20 = vadd.f32 %v871_v39, %v5998_v53  ;;  %v6162_v51 = vadd.f32 %v872_v25, %v6001_v10  ;;  %v6165_v0 = vadd.f32 %v873_v50, %v6011_v2  ;;  %v922_v18 = vmul.f32 %v4095_v8, %v911_v15  ;;  %v12173_v10 = vld [vmem:[#allocation35_spill] sm:$0xff]  ;;  %v4105_v49 = vld [vmem:[%s11778_s4 + $0x280] sm:$0xff] }
 0x2b2   :  { %v923_v19 = vmul.f32 %v4096_v26, %v914_v34  ;;  %v937_v53 = vsel %vm277_vm7, %v12172_v38, %v12171_v41  ;;  %v938_v2 = vsel %vm277_vm7, %v12173_v10, %v12172_v38  ;;  %vm12012_vm5 = vcmp.lt.s32.totalorder %v4832_v29, 96  ;;  %v6182_v39 = vpop.permute.xlu1 %1033  ;;  %v6184_v46 = vpop.permute.xlu0 %1057  ;;  %v4106_v15 = vld [vmem:[%s11778_s4 + $0x288] sm:$0xff] }
 0x2b3   :  { %v6187_v48 = vadd.f32 %v895_v27, %v5916_v63  ;;  %v6190_v57 = vadd.f32 %v896_v42, %v5881_v5  ;;  %v6193_v25 = vadd.f32 %v897_v40, %v5884_v11  ;;  %v6196_v50 = vadd.f32 %v898_v24, %v5919_v47  ;;  %v4099_v63 = vld [vmem:[%s11778_s4 + $0x250] sm:$0xff]  ;;  %v4100_v5 = vld [vmem:[%s11778_s4 + $0x258] sm:$0xff] }
 0x2b4   :  { %v6199_v9 = vadd.f32 %v920_v59, %v6027_v4  ;;  %v6202_v55 = vadd.f32 %v921_v16, %v6029_v21  ;;  %v936_v11 = vsel %vm277_vm7, %v12171_v41, %v5813_v23  ;;  %v939_v47 = vsel %vm277_vm7, %v5813_v23, %v12173_v10  ;;  %v4103_v42 = vld [vmem:[%s11778_s4 + $0x270] sm:$0xff]  ;;  %v4104_v40 = vld [vmem:[%s11778_s4 + $0x278] sm:$0xff] }
 0x2b5   :  { %v945_v4 = vmul.f32 %v4097_v17, %v938_v2  ;;  %v946_v21 = vmul.f32 %v4098_v22, %v937_v53  ;;  %v963_v35 = vsel %vm11841_vm2, %v5849_v45, %v5815_v37  ;;  %v964_v23 = vsel %vm11841_vm2, %v12174_v32, %v5849_v45  ;;  %v4107_v16 = vld [vmem:[%s11778_s4 + $0x290] sm:$0xff] }
 0x2b6   :  { %v6233_v33 = vadd.f32 %v922_v18, %v6045_v43  ;;  %v6236_v27 = vadd.f32 %v923_v19, %v6047_v56  ;;  %v962_v24 = vsel %vm11841_vm2, %v5815_v37, %v5921_v7  ;;  %v965_v45 = vsel %vm11841_vm2, %v5921_v7, %v12174_v32  ;;  %v6252_v43 = vpop.permute.xlu1 %1037  ;;  %v1062_v56 = vpop.permute.xlu0 %1061  ;;  %v4108_v18 = vld [vmem:[%s11778_s4 + $0x298] sm:$0xff] }
 0x2b7   :  { %v947_v8 = vmul.f32 %v4099_v63, %v936_v11  ;;  %v948_v26 = vmul.f32 %v4100_v5, %v939_v47  ;;  %v989_v37 = vsel %vm12008_vm8, %v5981_v52, %v5923_v1  ;;  %v990_v7 = vsel %vm12008_vm8, %v5851_v6, %v5981_v52  ;;  %v4117_v5 = vld [vmem:[%s11778_s4 + $0x2e0] sm:$0xff]  ;;  %v4118_v11 = vld [vmem:[%s11778_s4 + $0x2e8] sm:$0xff] }
 0x2b8   :  { %v971_v34 = vmul.f32 %v4101_v58, %v964_v23  ;;  %v972_v59 = vmul.f32 %v4102_v28, %v963_v35  ;;  %v988_v19 = vsel %vm12008_vm8, %v5923_v1, %v6003_v30  ;;  %v991_v52 = vsel %vm12008_vm8, %v6003_v30, %v5851_v6  ;;  %v4109_v1 = vld [vmem:[%s11778_s4 + $0x2a0] sm:$0xff]  ;;  %v4110_v6 = vld [vmem:[%s11778_s4 + $0x2a8] sm:$0xff] }
 0x2b9   :  { %vm11846_vm2 = vcmp.lt.s32.totalorder %v4832_v29, 94  ;;  %v6284_v17 = vadd.f32 %v945_v4, %v6125_v13  ;;  %v6287_v22 = vadd.f32 %v946_v21, %v6127_v36  ;;  %v973_v41 = vmul.f32 %v4103_v42, %v962_v24  ;;  %v4113_v42 = vld [vmem:[%s11778_s4 + $0x2c0] sm:$0xff] }
 0x2ba   :  { %v974_v38 = vmul.f32 %v4104_v40, %v965_v45  ;;  %v997_v53 = vmul.f32 %v4105_v49, %v990_v7  ;;  %v998_v10 = vmul.f32 %v4106_v15, %v989_v37  ;;  %v1015_v30 = vsel %vm12020_vm6, %v6078_v12, %v6005_v54  ;;  %v1060_v36 = vpop.permute.xlu1 %1059  ;;  %v1084_v35 = vpop.permute.xlu0 %1083  ;;  %v4114_v40 = vld [vmem:[%s11778_s4 + $0x2c8] sm:$0xff] }
 0x2bb   :  { %v1016_v13 = vsel %vm12020_vm6, %v5983_v62, %v6078_v12  ;;  %v999_v2 = vmul.f32 %v4107_v16, %v988_v19  ;;  %v1000_v63 = vmul.f32 %v4108_v18, %v991_v52  ;;  %v1067_v47 = vsel %vm12011_vm4, %v1060_v36, %v1062_v56 }
 0x2bc   :  { %v1068_v4 = vsel %vm12011_vm4, %v6184_v46, %v1060_v36  ;;  %v6315_v12 = vadd.f32 %v947_v8, %v6149_v61  ;;  %v6318_v21 = vadd.f32 %v948_v26, %v6152_v44  ;;  %v975_v58 = vadd.f32 %v971_v34, %v6156_v3 }
 0x2bd   :  { %v976_v28 = vadd.f32 %v972_v59, %v6159_v20  ;;  %v1023_v32 = vmul.f32 %v4109_v1, %v1016_v13  ;;  %v1024_v23 = vmul.f32 %v4110_v6, %v1015_v30  ;;  %v1041_v61 = vsel %vm12012_vm5, %v6182_v39, %v6131_v14 }
 0x2be   :  { %v1042_v44 = vsel %vm12012_vm5, %v6080_v31, %v6182_v39  ;;  %v977_v3 = vadd.f32 %v973_v41, %v6162_v51  ;;  %v978_v20 = vadd.f32 %v974_v38, %v6165_v0  ;;  %v1075_v24 = vmul.f32 %v4117_v5, %v1068_v4  ;;  %v1064_v8 = vpop.permute.xlu1 %1063  ;;  %v4119_v39 = vld [vmem:[%s11778_s4 + $0x2f0] sm:$0xff]  ;;  %v4120_v51 = vld [vmem:[%s11778_s4 + $0x2f8] sm:$0xff]  ;;  %v1088_v52 = vpop.permute.xlu0 %1087 }
 0x2bf   :  { %v1076_v45 = vmul.f32 %v4118_v11, %v1067_v47  ;;  %v1001_v26 = vadd.f32 %v997_v53, %v6187_v48  ;;  %v1002_v49 = vadd.f32 %v998_v10, %v6190_v57  ;;  %v1003_v15 = vadd.f32 %v999_v2, %v6193_v25  ;;  %v4124_v5 = vld [vmem:[%s11778_s4 + $0x318] sm:$0xff] }
 0x2c0   :  { %v1004_v37 = vadd.f32 %v1000_v63, %v6196_v50  ;;  %v1049_v7 = vmul.f32 %v4113_v42, %v1042_v44  ;;  %v1050_v34 = vmul.f32 %v4114_v40, %v1041_v61  ;;  %v1066_v0 = vsel %vm12011_vm4, %v1062_v56, %v1064_v8  ;;  %v4111_v50 = vld [vmem:[%s11778_s4 + $0x2b0] sm:$0xff] }
 0x2c1   :  { %v1069_v48 = vsel %vm12011_vm4, %v1064_v8, %v6184_v46  ;;  %v1027_v57 = vadd.f32 %v1023_v32, %v6199_v9  ;;  %v1028_v25 = vadd.f32 %v1024_v23, %v6202_v55  ;;  %v1014_v59 = vsel %vm12020_vm6, %v6005_v54, %v6129_v60  ;;  %v4121_v46 = vld [vmem:[%s11778_s4 + $0x300] sm:$0xff]  ;;  %v4122_v9 = vld [vmem:[%s11778_s4 + $0x308] sm:$0xff]  ;;  %v4112_v55 = vld [vmem:[%s11778_s4 + $0x2b8] sm:$0xff] }
 0x2c2   :  { %v1017_v56 = vsel %vm12020_vm6, %v6129_v60, %v5983_v62  ;;  %v4115_v54 = vld [vmem:[%s11778_s4 + $0x2d0] sm:$0xff]  ;;  %v4116_v62 = vld [vmem:[%s11778_s4 + $0x2d8] sm:$0xff]  ;;  %v1040_v60 = vsel %vm12012_vm5, %v6131_v14, %v6252_v43  ;;  %v1043_v16 = vsel %vm12012_vm5, %v6252_v43, %v6080_v31  ;;  %v1079_v18 = vadd.f32 %v1075_v24, %v975_v58  ;;  %v1086_v41 = vpop.permute.xlu1 %1085 }
 0x2c3   :  { %v1080_v19 = vadd.f32 %v1076_v45, %v976_v28  ;;  %v1077_v38 = vmul.f32 %v4119_v39, %v1066_v0  ;;  %v1078_v53 = vmul.f32 %v4120_v51, %v1069_v48  ;;  %v1093_v10 = vsel %vm11846_vm2, %v1086_v41, %v1088_v52  ;;  %v4123_v63 = vld [vmem:[%s11778_s4 + $0x310] sm:$0xff]  ;;  %v12176_v0 = vld [vmem:[#allocation3_spill] sm:$0xff]  ;;  %s4657_s4 = smov 29  }
 0x2c4   :  { %v1094_v1 = vsel %vm11846_vm2, %v1084_v35, %v1086_v41  ;;  %v1053_v6 = vadd.f32 %v1049_v7, %v6284_v17  ;;  %v1054_v14 = vadd.f32 %v1050_v34, %v6287_v22  ;;  %v1102_v13 = vmul.f32 %v4122_v9, %v1093_v10  ;;  %v12177_v9 = vld [vmem:[#allocation2_spill] sm:$0xff] }
 0x2c5   :  { %v1101_v30 = vmul.f32 %v4121_v46, %v1094_v1  ;;  %v1025_v36 = vmul.f32 %v4111_v50, %v1014_v59  ;;  %v1026_v31 = vmul.f32 %v4112_v55, %v1017_v56  ;;  %v1051_v43 = vmul.f32 %v4115_v54, %v1040_v60 }
 0x2c6   :  { %v1052_v2 = vmul.f32 %v4116_v62, %v1043_v16  ;;  %v1113_v11 = vadd.f32 %v1079_v18, %v1053_v6  ;;  %v1106_v4 = vadd.f32 %v1102_v13, %v1002_v49  ;;  %v1090_v17 = vpop.permute.xlu1 %1089  ;;  %v1114_v58 = vadd.f32 %v1080_v19, %v1054_v14 }
 0x2c7   :  { %v1105_v47 = vadd.f32 %v1101_v30, %v1001_v26  ;;  %v1081_v22 = vadd.f32 %v1077_v38, %v977_v3  ;;  %v1082_v28 = vadd.f32 %v1078_v53, %v978_v20  ;;  %v1092_v32 = vsel %vm11846_vm2, %v1088_v52, %v1090_v17 }
 0x2c8   :  { %v1095_v23 = vsel %vm11846_vm2, %v1090_v17, %v1084_v35  ;;  %v1103_v40 = vmul.f32 %v4123_v63, %v1092_v32  ;;  %v1110_v44 = vadd.f32 %v1106_v4, %v1028_v25  ;;  %v1029_v24 = vadd.f32 %v1025_v36, %v6233_v33  ;;  %v1121_v35 = vld [vmem:[%s11779_s5] sm:$0xff] }
 0x2c9   :  { %v1109_v42 = vadd.f32 %v1105_v47, %v1027_v57  ;;  %v1104_v61 = vmul.f32 %v4124_v5, %v1095_v23  ;;  %v1030_v45 = vadd.f32 %v1026_v31, %v6236_v27  ;;  %v1055_v8 = vadd.f32 %v1051_v43, %v6315_v12 }
 0x2ca   :  { %v1056_v26 = vadd.f32 %v1052_v2, %v6318_v21  ;;  %v1107_v3 = vadd.f32 %v1103_v40, %v1003_v15  ;;  %v1118_v49 = vadd.f32 %v1114_v58, %v1110_v44  ;;  %vm1135_vm2 = vcmask 64512   ;;  %v1122_v15 = vld [vmem:[%s11779_s5 + $0x8] sm:$0xff]  ;;  %s4651_s5 = smov 49  }
 0x2cb   :  { %v1108_v20 = vadd.f32 %v1104_v61, %v1004_v37  ;;  %v1117_v7 = vadd.f32 %v1113_v11, %v1109_v42  ;;  %v1115_v34 = vadd.f32 %v1081_v22, %v1055_v8  ;;  %v12175_v21 = vmov 0.0  }
 0x2cc   :  { %v1111_v39 = vadd.f32 %v1107_v3, %v1029_v24  ;;  %1142 = vmatprep.subr.mxu0 %v1118_v49  ;;  %v1116_v33 = vadd.f32 %v1082_v28, %v1056_v26  ;;  %vm1369_vm8 = vcmp.lt.s32.totalorder %v4832_v29, 50  ;;  %vm1419_vm4 = vcmp.lt.s32.totalorder %v4832_v29, 49 }
 0x2cd   :  { %v1112_v51 = vadd.f32 %v1108_v20, %v1030_v45  ;;  %1143 = vmatpush1.msra.mxu0 %v1117_v7  ;;  %vm1469_vm5 = vcmp.lt.s32.totalorder %v4832_v29, 48  ;;  %vm1569_vm6 = vcmp.lt.s32.totalorder %v4832_v29, 46 }
 0x2ce   :  { %4125 = vmatmul.mubr.msk.f32.vlgmr.msra.gmra.mrb[2].mxu0 %vm1135_vm2, %v1121_v35  ;;  %v1119_v12 = vadd.f32 %v1115_v34, %v1111_v39 }
 0x2cf   :  { %v1120_v27 = vadd.f32 %v1116_v33, %v1112_v51  ;;  %1212 = vmatprep.mubr.f32.mxu0 %v12175_v21 }
 0x2d1   :  { %1219 = vmatprep.subr.mxu1 %v1120_v27 }
 0x2d2   :  { %1220 = vmatpush1.msra.mxu1 %v1119_v12  ;;  %4126 = vmatmul.mubr.msk.f32.gmra.mrb[4].mxu0 %vm1135_vm2, %v1122_v15 }
 0x2d3   :  { %4127 = vmatmul.mubr.msk.f32.vlgmr.msra.gmra.mrb[2].mxu1 %vm1135_vm2, %v1121_v35  ;;  %3817 = vmatprep.mubr.f32.mxu0 %v12175_v21 }
 0x2d4   :  { %1289 = vmatprep.mubr.f32.mxu1 %v12175_v21 }
 0x2d7   :  { %4128 = vmatmul.mubr.msk.f32.gmra.mrb[4].mxu1 %vm1135_vm2, %v1122_v15  ;;  %vm1320_vm2 = vcmp.lt.s32.totalorder %v4832_v29, 51 }
 0x2d8   :  { %3906 = vmatprep.mubr.f32.mxu1 %v12175_v21 }
 0x3a1   :  { %v1208_v37 = vpop.f32.mrb[2].mxu0 }
 0x3a2   :  { %v1209_v48 = vadd.f32 %v1208_v37, %v12176_v0  ;;  %v1210_v57 = vpop.f32.mrb[3].mxu0 }
 0x3a3   :  { %v1211_v25 = vadd.f32 %v1210_v57, %v12176_v0 }
 0x3a4   :  { %v6425_v50 = vmax.f32 %v1209_v48, 0.0 }
 0x3a5   :  { %v6427_v59 = vmax.f32 %v1211_v25, 0.0  ;;  %v1214_v56 = vpop.f32.mrb[4].mxu0 }
 0x3a6   :  { %v1285_v46 = vpop.f32.mrb[2].mxu1  ;;  %3951 = vst [vmem:[%s11777_s10 + $0x20] sm:$0xff] %v6425_v50  ;;  %3979 = vst [vmem:[%s11777_s10 + $0x100] sm:$0xff] %v6425_v50  ;;  %v1215_v55 = vadd.f32 %v1214_v56, %v12177_v9  ;;  %v1216_v62 = vpop.f32.mrb[5].mxu0  ;;  %1304 = vrot.lane.b32.xlu0 %v6425_v50, %s4649_s21 }
 0x3a7   :  { %v1286_v54 = vadd.f32 %v1285_v46, %v12176_v0  ;;  %v1287_v60 = vpop.f32.mrb[3].mxu1  ;;  %3952 = vst [vmem:[%s11777_s10 + $0x28] sm:$0xff] %v6427_v59  ;;  %3980 = vst [vmem:[%s11777_s10 + $0x108] sm:$0xff] %v6427_v59  ;;  %v1217_v16 = vadd.f32 %v1216_v62, %v12177_v9 }
 0x3a8   :  { %v1288_v18 = vadd.f32 %v1287_v60, %v12176_v0  ;;  %v6451_v19 = vmax.f32 %v1215_v55, 0.0 }
 0x3a9   :  { %v6453_v52 = vmax.f32 %v1286_v54, 0.0  ;;  %v6455_v41 = vmax.f32 %v1217_v16, 0.0 }
 0x3aa   :  { %v6457_v38 = vmax.f32 %v1288_v18, 0.0  ;;  %v1291_v53 = vpop.f32.mrb[4].mxu1  ;;  %3955 = vst [vmem:[%s11777_s10 + $0x40] sm:$0xff] %v6451_v19  ;;  %3983 = vst [vmem:[%s11777_s10 + $0x120] sm:$0xff] %v6451_v19  ;;  %1306 = vrot.lane.b32.xlu1 %v6451_v19, %s4649_s21 }
 0x3ab   :  { %3953 = vst [vmem:[%s11777_s10 + $0x30] sm:$0xff] %v6453_v52  ;;  %3981 = vst [vmem:[%s11777_s10 + $0x110] sm:$0xff] %v6453_v52  ;;  %v1292_v10 = vadd.f32 %v1291_v53, %v12177_v9  ;;  %v1293_v1 = vpop.f32.mrb[5].mxu1  ;;  %1312 = vrot.lane.b32.xlu0 %v6453_v52, %s4649_s21 }
 0x3ac   :  { %3956 = vst [vmem:[%s11777_s10 + $0x48] sm:$0xff] %v6455_v41  ;;  %3984 = vst [vmem:[%s11777_s10 + $0x128] sm:$0xff] %v6455_v41  ;;  %v1294_v6 = vadd.f32 %v1293_v1, %v12177_v9 }
 0x3ad   :  { %3954 = vst [vmem:[%s11777_s10 + $0x38] sm:$0xff] %v6457_v38  ;;  %3982 = vst [vmem:[%s11777_s10 + $0x118] sm:$0xff] %v6457_v38  ;;  %v6497_v14 = vmax.f32 %v1292_v10, 0.0 }
 0x3ae   :  { %v6499_v30 = vmax.f32 %v1294_v6, 0.0 }
 0x3af   :  { %3957 = vst [vmem:[%s11777_s10 + $0x50] sm:$0xff] %v6497_v14  ;;  %3985 = vst [vmem:[%s11777_s10 + $0x130] sm:$0xff] %v6497_v14  ;;  %1314 = vrot.lane.b32.xlu1 %v6497_v14, %s4649_s21  ;;  %1353 = vrot.lane.b32.xlu0 %v6425_v50, %s4650_s11 }
 0x3b0   :  { %3958 = vst [vmem:[%s11777_s10 + $0x58] sm:$0xff] %v6499_v30  ;;  %3986 = vst [vmem:[%s11777_s10 + $0x138] sm:$0xff] %v6499_v30 }
 0x3b3   :  { %1355 = vrot.lane.b32.xlu1 %v6451_v19, %s4650_s11  ;;  %1361 = vrot.lane.b32.xlu0 %v6453_v52, %s4650_s11 }
 0x3b7   :  { %1363 = vrot.lane.b32.xlu1 %v6497_v14, %s4650_s11  ;;  %1403 = vrot.lane.b32.xlu0 %v6425_v50, %s4651_s5 }
 0x3bb   :  { %1405 = vrot.lane.b32.xlu1 %v6451_v19, %s4651_s5  ;;  %1411 = vrot.lane.b32.xlu0 %v6453_v52, %s4651_s5 }
 0x3bf   :  { %1413 = vrot.lane.b32.xlu1 %v6497_v14, %s4651_s5  ;;  %1453 = vrot.lane.b32.xlu0 %v6425_v50, %s4652_s14 }
 0x3c3   :  { %1455 = vrot.lane.b32.xlu1 %v6451_v19, %s4652_s14  ;;  %1461 = vrot.lane.b32.xlu0 %v6453_v52, %s4652_s14 }
 0x3c7   :  { %1463 = vrot.lane.b32.xlu1 %v6497_v14, %s4652_s14  ;;  %1503 = vrot.lane.b32.xlu0 %v6425_v50, %s4653_s12 }
 0x3cb   :  { %1505 = vrot.lane.b32.xlu1 %v6451_v19, %s4653_s12  ;;  %1511 = vrot.lane.b32.xlu0 %v6453_v52, %s4653_s12 }
 0x3cf   :  { %1513 = vrot.lane.b32.xlu1 %v6497_v14, %s4653_s12  ;;  %1553 = vrot.lane.b32.xlu0 %v6425_v50, %s4654_s13 }
 0x3d3   :  { %1555 = vrot.lane.b32.xlu1 %v6451_v19, %s4654_s13  ;;  %1561 = vrot.lane.b32.xlu0 %v6453_v52, %s4654_s13 }
 0x3d7   :  { %1563 = vrot.lane.b32.xlu1 %v6497_v14, %s4654_s13  ;;  %1603 = vrot.lane.b32.xlu0 %v6425_v50, %s4655_s22 }
 0x3db   :  { %1605 = vrot.lane.b32.xlu1 %v6451_v19, %s4655_s22  ;;  %1611 = vrot.lane.b32.xlu0 %v6453_v52, %s4655_s22 }
 0x3df   :  { %1613 = vrot.lane.b32.xlu1 %v6497_v14, %s4655_s22  ;;  %1653 = vrot.lane.b32.xlu0 %v6425_v50, %s4656_s30 }
 0x3e3   :  { %1655 = vrot.lane.b32.xlu1 %v6451_v19, %s4656_s30  ;;  %1661 = vrot.lane.b32.xlu0 %v6453_v52, %s4656_s30 }
 0x3e7   :  { %1663 = vrot.lane.b32.xlu1 %v6497_v14, %s4656_s30  ;;  %1703 = vrot.lane.b32.xlu0 %v6425_v50, %s4633_s29 }
 0x3eb   :  { %1705 = vrot.lane.b32.xlu1 %v6451_v19, %s4633_s29  ;;  %1711 = vrot.lane.b32.xlu0 %v6453_v52, %s4633_s29 }
 0x3ef   :  { %1713 = vrot.lane.b32.xlu1 %v6497_v14, %s4633_s29  ;;  %1752 = vrot.lane.b32.xlu0 %v6425_v50, %s4634_s2 }
 0x3f3   :  { %1754 = vrot.lane.b32.xlu1 %v6451_v19, %s4634_s2  ;;  %1760 = vrot.lane.b32.xlu0 %v6453_v52, %s4634_s2 }
 0x3f7   :  { %1762 = vrot.lane.b32.xlu1 %v6497_v14, %s4634_s2  ;;  %1801 = vrot.lane.b32.xlu0 %v6425_v50, %s4635_s15 }
 0x3fb   :  { %1803 = vrot.lane.b32.xlu1 %v6451_v19, %s4635_s15  ;;  %1809 = vrot.lane.b32.xlu0 %v6453_v52, %s4635_s15 }
 0x3ff   :  { %1811 = vrot.lane.b32.xlu1 %v6497_v14, %s4635_s15  ;;  %1850 = vrot.lane.b32.xlu0 %v6425_v50, %s4636_s16 }
 0x403   :  { %1852 = vrot.lane.b32.xlu1 %v6451_v19, %s4636_s16  ;;  %1858 = vrot.lane.b32.xlu0 %v6453_v52, %s4636_s16 }
 0x407   :  { %1860 = vrot.lane.b32.xlu1 %v6497_v14, %s4636_s16  ;;  %1899 = vrot.lane.b32.xlu0 %v6425_v50, %s4637_s24 }
 0x40b   :  { %1901 = vrot.lane.b32.xlu1 %v6451_v19, %s4637_s24  ;;  %1907 = vrot.lane.b32.xlu0 %v6453_v52, %s4637_s24 }
 0x40f   :  { %1909 = vrot.lane.b32.xlu1 %v6497_v14, %s4637_s24  ;;  %1948 = vrot.lane.b32.xlu0 %v6425_v50, %s4657_s4 }
 0x413   :  { %1950 = vrot.lane.b32.xlu1 %v6451_v19, %s4657_s4  ;;  %1956 = vrot.lane.b32.xlu0 %v6453_v52, %s4657_s4 }
 0x417   :  { %1958 = vrot.lane.b32.xlu1 %v6497_v14, %s4657_s4  ;;  %1998 = vrot.lane.b32.xlu0 %v6425_v50, %s4658_s23 }
 0x418   :  { %v6625_v13 = vpop.permute.xlu0 %1304 }
 0x41b   :  { %2000 = vrot.lane.b32.xlu1 %v6451_v19, %s4658_s23  ;;  %2006 = vrot.lane.b32.xlu0 %v6453_v52, %s4658_s23 }
 0x41c   :  { %v6631_v36 = vpop.permute.xlu1 %1306 }
 0x41d   :  { %v6633_v31 = vpop.permute.xlu0 %1312 }
 0x41f   :  { %2008 = vrot.lane.b32.xlu1 %v6497_v14, %s4658_s23  ;;  %2048 = vrot.lane.b32.xlu0 %v6425_v50, %s4638_s25 }
 0x421   :  { %v6639_v43 = vpop.permute.xlu1 %1314  ;;  %v6641_v2 = vpop.permute.xlu0 %1353 }
 0x423   :  { %2050 = vrot.lane.b32.xlu1 %v6451_v19, %s4638_s25  ;;  %2056 = vrot.lane.b32.xlu0 %v6453_v52, %s4638_s25 }
 0x425   :  { %v6647_v63 = vpop.permute.xlu1 %1355  ;;  %v6649_v5 = vpop.permute.xlu0 %1361 }
 0x427   :  { %2058 = vrot.lane.b32.xlu1 %v6497_v14, %s4638_s25  ;;  %2097 = vrot.lane.b32.xlu0 %v6425_v50, %s4623_s17 }
 0x429   :  { %v6655_v11 = vpop.permute.xlu1 %1363  ;;  %v6657_v47 = vpop.permute.xlu0 %1403 }
 0x42b   :  { %2099 = vrot.lane.b32.xlu1 %v6451_v19, %s4623_s17  ;;  %2105 = vrot.lane.b32.xlu0 %v6453_v52, %s4623_s17 }
 0x42d   :  { %v6663_v4 = vpop.permute.xlu1 %1405  ;;  %v6665_v17 = vpop.permute.xlu0 %1411 }
 0x42f   :  { %2107 = vrot.lane.b32.xlu1 %v6497_v14, %s4623_s17  ;;  %2146 = vrot.lane.b32.xlu0 %v6425_v50, %s4624_s18 }
 0x431   :  { %v6671_v58 = vpop.permute.xlu1 %1413  ;;  %v6673_v22 = vpop.permute.xlu0 %1453 }
 0x433   :  { %2148 = vrot.lane.b32.xlu1 %v6451_v19, %s4624_s18  ;;  %2154 = vrot.lane.b32.xlu0 %v6453_v52, %s4624_s18 }
 0x435   :  { %v6679_v28 = vpop.permute.xlu1 %1455  ;;  %v6681_v32 = vpop.permute.xlu0 %1461 }
 0x437   :  { %2156 = vrot.lane.b32.xlu1 %v6497_v14, %s4624_s18  ;;  %2195 = vrot.lane.b32.xlu0 %v6425_v50, %s4625_s0 }
 0x439   :  { %v6687_v23 = vpop.permute.xlu1 %1463  ;;  %v6689_v42 = vpop.permute.xlu0 %1503 }
 0x43b   :  { %2197 = vrot.lane.b32.xlu1 %v6451_v19, %s4625_s0  ;;  %2203 = vrot.lane.b32.xlu0 %v6453_v52, %s4625_s0 }
 0x43d   :  { %v6695_v40 = vpop.permute.xlu1 %1505  ;;  %v6697_v61 = vpop.permute.xlu0 %1511 }
 0x43f   :  { %2205 = vrot.lane.b32.xlu1 %v6497_v14, %s4625_s0  ;;  %2244 = vrot.lane.b32.xlu0 %v6425_v50, %s4639_s26 }
 0x441   :  { %v6703_v44 = vpop.permute.xlu1 %1513  ;;  %v6705_v24 = vpop.permute.xlu0 %1553 }
 0x443   :  { %2246 = vrot.lane.b32.xlu1 %v6451_v19, %s4639_s26  ;;  %2252 = vrot.lane.b32.xlu0 %v6453_v52, %s4639_s26 }
 0x445   :  { %v6711_v45 = vpop.permute.xlu1 %1555  ;;  %v6713_v8 = vpop.permute.xlu0 %1561 }
 0x446   :  { %12178 = vst [vmem:[#allocation30_spill] sm:$0xff] %v6711_v45 }
 0x447   :  { %2254 = vrot.lane.b32.xlu1 %v6497_v14, %s4639_s26  ;;  %2293 = vrot.lane.b32.xlu0 %v6425_v50, %s4659_s6 }
 0x449   :  { %v6719_v26 = vpop.permute.xlu1 %1563  ;;  %v6721_v3 = vpop.permute.xlu0 %1603 }
 0x44a   :  { %12179 = vst [vmem:[#allocation29_spill] sm:$0xff] %v6719_v26  ;;  %12180 = vst [vmem:[#allocation5_spill] sm:$0xff] %v6721_v3 }
 0x44b   :  { %2295 = vrot.lane.b32.xlu1 %v6451_v19, %s4659_s6  ;;  %2301 = vrot.lane.b32.xlu0 %v6453_v52, %s4659_s6 }
 0x44d   :  { %v6727_v20 = vpop.permute.xlu1 %1605  ;;  %v6729_v49 = vpop.permute.xlu0 %1611 }
 0x44e   :  { %12181 = vst [vmem:[#allocation6_spill] sm:$0xff] %v6727_v20  ;;  %12182 = vst [vmem:[#allocation4_spill] sm:$0xff] %v6729_v49  ;;  %v7454_v49 = vld [vmem:[%s11777_s10 + $0x20] sm:$0xff] }
 0x44f   :  { %2303 = vrot.lane.b32.xlu1 %v6497_v14, %s4659_s6  ;;  %2343 = vrot.lane.b32.xlu0 %v6425_v50, %s4660_s1  ;;  %12343 = vst [vmem:[#allocation161_spill] sm:$0xff] %v7454_v49 }
 0x451   :  { %v6735_v7 = vpop.permute.xlu1 %1613  ;;  %v6737_v35 = vpop.permute.xlu0 %1653 }
 0x452   :  { %12183 = vst [vmem:[#allocation8_spill] sm:$0xff] %v6735_v7  ;;  %12184 = vst [vmem:[#allocation27_spill] sm:$0xff] %v6737_v35 }
 0x453   :  { %2345 = vrot.lane.b32.xlu1 %v6451_v19, %s4660_s1  ;;  %2351 = vrot.lane.b32.xlu0 %v6453_v52, %s4660_s1 }
 0x455   :  { %v6743_v34 = vpop.permute.xlu1 %1655  ;;  %v6745_v39 = vpop.permute.xlu0 %1661 }
 0x456   :  { %12185 = vst [vmem:[#allocation31_spill] sm:$0xff] %v6743_v34  ;;  %12186 = vst [vmem:[#allocation9_spill] sm:$0xff] %v6745_v39 }
 0x457   :  { %2353 = vrot.lane.b32.xlu1 %v6497_v14, %s4660_s1  ;;  %2393 = vrot.lane.b32.xlu0 %v6425_v50, %s4640_s27 }
 0x459   :  { %v6751_v51 = vpop.permute.xlu1 %1663  ;;  %v6753_v33 = vpop.permute.xlu0 %1703 }
 0x45a   :  { %12187 = vst [vmem:[#allocation10_spill] sm:$0xff] %v6751_v51  ;;  %12188 = vst [vmem:[#allocation7_spill] sm:$0xff] %v6753_v33 }
 0x45b   :  { %2395 = vrot.lane.b32.xlu1 %v6451_v19, %s4640_s27  ;;  %2401 = vrot.lane.b32.xlu0 %v6453_v52, %s4640_s27 }
 0x45d   :  { %v6759_v27 = vpop.permute.xlu1 %1705  ;;  %v6761_v12 = vpop.permute.xlu0 %1711 }
 0x45e   :  { %12189 = vst [vmem:[#allocation12_spill] sm:$0xff] %v6759_v27  ;;  %12190 = vst [vmem:[#allocation13_spill] sm:$0xff] %v6761_v12 }
 0x45f   :  { %2403 = vrot.lane.b32.xlu1 %v6497_v14, %s4640_s27  ;;  %2442 = vrot.lane.b32.xlu0 %v6425_v50, %s4626_s19 }
 0x461   :  { %v6767_v15 = vpop.permute.xlu1 %1713  ;;  %v6769_v37 = vpop.permute.xlu0 %1752 }
 0x462   :  { %12191 = vst [vmem:[#allocation14_spill] sm:$0xff] %v6767_v15  ;;  %12192 = vst [vmem:[#allocation11_spill] sm:$0xff] %v6769_v37 }
 0x463   :  { %2444 = vrot.lane.b32.xlu1 %v6451_v19, %s4626_s19  ;;  %2450 = vrot.lane.b32.xlu0 %v6453_v52, %s4626_s19 }
 0x465   :  { %v6775_v0 = vpop.permute.xlu1 %1754  ;;  %v6777_v48 = vpop.permute.xlu0 %1760 }
 0x466   :  { %12193 = vst [vmem:[#allocation16_spill] sm:$0xff] %v6775_v0  ;;  %12194 = vst [vmem:[#allocation17_spill] sm:$0xff] %v6777_v48 }
 0x467   :  { %2452 = vrot.lane.b32.xlu1 %v6497_v14, %s4626_s19  ;;  %2516 = vrot.lane.b32.xlu0 %v6425_v50, %s4627_s20 }
 0x469   :  { %v6783_v57 = vpop.permute.xlu1 %1762  ;;  %v6785_v25 = vpop.permute.xlu0 %1801 }
 0x46a   :  { %12195 = vst [vmem:[#allocation18_spill] sm:$0xff] %v6783_v57  ;;  %12196 = vst [vmem:[#allocation15_spill] sm:$0xff] %v6785_v25 }
 0x46b   :  { %2518 = vrot.lane.b32.xlu1 %v6451_v19, %s4627_s20  ;;  %2524 = vrot.lane.b32.xlu0 %v6453_v52, %s4627_s20 }
 0x46d   :  { %v6791_v56 = vpop.permute.xlu1 %1803  ;;  %v6793_v46 = vpop.permute.xlu0 %1809 }
 0x46e   :  { %12197 = vst [vmem:[#allocation20_spill] sm:$0xff] %v6791_v56  ;;  %12198 = vst [vmem:[#allocation21_spill] sm:$0xff] %v6793_v46 }
 0x46f   :  { %2526 = vrot.lane.b32.xlu1 %v6497_v14, %s4627_s20  ;;  %2565 = vrot.lane.b32.xlu0 %v6425_v50, %s11849_s28 }
 0x471   :  { %v6799_v9 = vpop.permute.xlu1 %1811  ;;  %v6801_v55 = vpop.permute.xlu0 %1850 }
 0x472   :  { %12199 = vst [vmem:[#allocation22_spill] sm:$0xff] %v6799_v9  ;;  %12200 = vst [vmem:[#allocation19_spill] sm:$0xff] %v6801_v55 }
 0x473   :  { %2567 = vrot.lane.b32.xlu1 %v6451_v19, %s11849_s28  ;;  %2573 = vrot.lane.b32.xlu0 %v6453_v52, %s11849_s28 }
 0x475   :  { %v6807_v54 = vpop.permute.xlu1 %1852  ;;  %v6809_v62 = vpop.permute.xlu0 %1858 }
 0x476   :  { %12201 = vst [vmem:[#allocation24_spill] sm:$0xff] %v6807_v54  ;;  %12202 = vst [vmem:[#allocation25_spill] sm:$0xff] %v6809_v62 }
 0x477   :  { %2575 = vrot.lane.b32.xlu1 %v6497_v14, %s11849_s28  ;;  %2614 = vrot.lane.b32.xlu0 %v6425_v50, %s4661_s3  ;;  %s4662_s28 = smov 115  }
 0x479   :  { %v6815_v60 = vpop.permute.xlu1 %1860  ;;  %v6817_v16 = vpop.permute.xlu0 %1899 }
 0x47a   :  { %12203 = vst [vmem:[#allocation26_spill] sm:$0xff] %v6815_v60  ;;  %12204 = vst [vmem:[#allocation23_spill] sm:$0xff] %v6817_v16 }
 0x47b   :  { %2616 = vrot.lane.b32.xlu1 %v6451_v19, %s4661_s3  ;;  %2622 = vrot.lane.b32.xlu0 %v6453_v52, %s4661_s3 }
 0x47d   :  { %v6823_v18 = vpop.permute.xlu1 %1901  ;;  %v6825_v53 = vpop.permute.xlu0 %1907 }
 0x47e   :  { %12205 = vst [vmem:[#allocation32_spill] sm:$0xff] %v6823_v18  ;;  %12206 = vst [vmem:[#allocation33_spill] sm:$0xff] %v6825_v53 }
 0x47f   :  { %2624 = vrot.lane.b32.xlu1 %v6497_v14, %s4661_s3  ;;  %2664 = vrot.lane.b32.xlu0 %v6425_v50, %s4662_s28 }
 0x481   :  { %v6831_v10 = vpop.permute.xlu1 %1909  ;;  %v6833_v1 = vpop.permute.xlu0 %1948 }
 0x482   :  { %12207 = vst [vmem:[#allocation34_spill] sm:$0xff] %v6831_v10  ;;  %12208 = vst [vmem:[#allocation28_spill] sm:$0xff] %v6833_v1 }
 0x483   :  { %2666 = vrot.lane.b32.xlu1 %v6451_v19, %s4662_s28  ;;  %1308 = vrot.lane.b32.xlu0 %v6427_v59, %s4649_s21 }
 0x485   :  { %v6839_v6 = vpop.permute.xlu1 %1950  ;;  %v6841_v21 = vpop.permute.xlu0 %1956 }
 0x486   :  { %12209 = vst [vmem:[#allocation36_spill] sm:$0xff] %v6839_v6  ;;  %12210 = vst [vmem:[#allocation37_spill] sm:$0xff] %v6841_v21 }
 0x487   :  { %2674 = vrot.lane.b32.xlu1 %v6497_v14, %s4662_s28  ;;  %1316 = vrot.lane.b32.xlu0 %v6457_v38, %s4649_s21 }
 0x489   :  { %v6847_v18 = vpop.permute.xlu1 %1958  ;;  %v6849_v10 = vpop.permute.xlu0 %1998 }
 0x48a   :  { %12211 = vst [vmem:[#allocation38_spill] sm:$0xff] %v6847_v18  ;;  %12212 = vst [vmem:[#allocation35_spill] sm:$0xff] %v6849_v10 }
 0x48b   :  { %1310 = vrot.lane.b32.xlu1 %v6455_v41, %s4649_s21  ;;  %1357 = vrot.lane.b32.xlu0 %v6427_v59, %s4650_s11 }
 0x48d   :  { %v6855_v1 = vpop.permute.xlu1 %2000  ;;  %v6857_v6 = vpop.permute.xlu0 %2006 }
 0x48e   :  { %12213 = vst [vmem:[#allocation39_spill] sm:$0xff] %v6855_v1  ;;  %12214 = vst [vmem:[#allocation3_spill] sm:$0xff] %v6857_v6 }
 0x48f   :  { %1318 = vrot.lane.b32.xlu1 %v6499_v30, %s4649_s21  ;;  %1365 = vrot.lane.b32.xlu0 %v6457_v38, %s4650_s11 }
 0x491   :  { %v6863_v21 = vpop.permute.xlu1 %2008  ;;  %v6865_v18 = vpop.permute.xlu0 %2048 }
 0x492   :  { %12215 = vst [vmem:[#allocation2_spill] sm:$0xff] %v6863_v21  ;;  %12216 = vst [vmem:[#allocation40_spill] sm:$0xff] %v6865_v18 }
 0x493   :  { %1359 = vrot.lane.b32.xlu1 %v6455_v41, %s4650_s11  ;;  %1407 = vrot.lane.b32.xlu0 %v6427_v59, %s4651_s5 }
 0x495   :  { %v6871_v10 = vpop.permute.xlu1 %2050  ;;  %v6873_v1 = vpop.permute.xlu0 %2056 }
 0x496   :  { %12217 = vst [vmem:[#allocation41_spill] sm:$0xff] %v6871_v10  ;;  %12218 = vst [vmem:[#allocation42_spill] sm:$0xff] %v6873_v1 }
 0x497   :  { %1367 = vrot.lane.b32.xlu1 %v6499_v30, %s4650_s11  ;;  %1415 = vrot.lane.b32.xlu0 %v6457_v38, %s4651_s5 }
 0x499   :  { %v6879_v6 = vpop.permute.xlu1 %2058  ;;  %v6881_v21 = vpop.permute.xlu0 %2097 }
 0x49a   :  { %12219 = vst [vmem:[#allocation43_spill] sm:$0xff] %v6879_v6  ;;  %12220 = vst [vmem:[#allocation44_spill] sm:$0xff] %v6881_v21 }
 0x49b   :  { %1409 = vrot.lane.b32.xlu1 %v6455_v41, %s4651_s5  ;;  %1457 = vrot.lane.b32.xlu0 %v6427_v59, %s4652_s14 }
 0x49d   :  { %v6887_v18 = vpop.permute.xlu1 %2099  ;;  %v6889_v10 = vpop.permute.xlu0 %2105 }
 0x49e   :  { %12221 = vst [vmem:[#allocation45_spill] sm:$0xff] %v6887_v18  ;;  %12222 = vst [vmem:[#allocation46_spill] sm:$0xff] %v6889_v10 }
 0x49f   :  { %1417 = vrot.lane.b32.xlu1 %v6499_v30, %s4651_s5  ;;  %1465 = vrot.lane.b32.xlu0 %v6457_v38, %s4652_s14  ;;  %s4670_s5 = smov 79  }
 0x4a1   :  { %v6895_v1 = vpop.permute.xlu1 %2107  ;;  %v6897_v6 = vpop.permute.xlu0 %2146 }
 0x4a2   :  { %12223 = vst [vmem:[#allocation47_spill] sm:$0xff] %v6895_v1  ;;  %12224 = vst [vmem:[#allocation48_spill] sm:$0xff] %v6897_v6 }
 0x4a3   :  { %1459 = vrot.lane.b32.xlu1 %v6455_v41, %s4652_s14  ;;  %1507 = vrot.lane.b32.xlu0 %v6427_v59, %s4653_s12 }
 0x4a5   :  { %v6903_v21 = vpop.permute.xlu1 %2148  ;;  %v6905_v18 = vpop.permute.xlu0 %2154 }
 0x4a6   :  { %12225 = vst [vmem:[#allocation49_spill] sm:$0xff] %v6903_v21  ;;  %12226 = vst [vmem:[#allocation50_spill] sm:$0xff] %v6905_v18 }
 0x4a7   :  { %1467 = vrot.lane.b32.xlu1 %v6499_v30, %s4652_s14  ;;  %1515 = vrot.lane.b32.xlu0 %v6457_v38, %s4653_s12  ;;  %s12401_s14 = smov 98  }
 0x4a9   :  { %v6911_v10 = vpop.permute.xlu1 %2156  ;;  %v6913_v1 = vpop.permute.xlu0 %2195 }
 0x4aa   :  { %12227 = vst [vmem:[#allocation51_spill] sm:$0xff] %v6911_v10  ;;  %12228 = vst [vmem:[#allocation52_spill] sm:$0xff] %v6913_v1 }
 0x4ab   :  { %1509 = vrot.lane.b32.xlu1 %v6455_v41, %s4653_s12  ;;  %1557 = vrot.lane.b32.xlu0 %v6427_v59, %s4654_s13 }
 0x4ad   :  { %v6919_v6 = vpop.permute.xlu1 %2197  ;;  %v6921_v21 = vpop.permute.xlu0 %2203 }
 0x4ae   :  { %12229 = vst [vmem:[#allocation53_spill] sm:$0xff] %v6919_v6  ;;  %12230 = vst [vmem:[#allocation54_spill] sm:$0xff] %v6921_v21 }
 0x4af   :  { %1517 = vrot.lane.b32.xlu1 %v6499_v30, %s4653_s12  ;;  %1565 = vrot.lane.b32.xlu0 %v6457_v38, %s4654_s13 }
 0x4b1   :  { %v6927_v18 = vpop.permute.xlu1 %2205  ;;  %v6929_v10 = vpop.permute.xlu0 %2244 }
 0x4b2   :  { %12231 = vst [vmem:[#allocation55_spill] sm:$0xff] %v6927_v18  ;;  %12232 = vst [vmem:[#allocation56_spill] sm:$0xff] %v6929_v10 }
 0x4b3   :  { %1559 = vrot.lane.b32.xlu1 %v6455_v41, %s4654_s13  ;;  %1607 = vrot.lane.b32.xlu0 %v6427_v59, %s4655_s22 }
 0x4b5   :  { %v6935_v1 = vpop.permute.xlu1 %2246  ;;  %v6937_v6 = vpop.permute.xlu0 %2252 }
 0x4b6   :  { %12233 = vst [vmem:[#allocation57_spill] sm:$0xff] %v6935_v1  ;;  %12234 = vst [vmem:[#allocation58_spill] sm:$0xff] %v6937_v6 }
 0x4b7   :  { %1567 = vrot.lane.b32.xlu1 %v6499_v30, %s4654_s13  ;;  %1615 = vrot.lane.b32.xlu0 %v6457_v38, %s4655_s22 }
 0x4b9   :  { %v6943_v21 = vpop.permute.xlu1 %2254  ;;  %v6945_v18 = vpop.permute.xlu0 %2293 }
 0x4ba   :  { %12235 = vst [vmem:[#allocation59_spill] sm:$0xff] %v6943_v21  ;;  %12236 = vst [vmem:[#allocation60_spill] sm:$0xff] %v6945_v18 }
 0x4bb   :  { %1609 = vrot.lane.b32.xlu1 %v6455_v41, %s4655_s22  ;;  %1657 = vrot.lane.b32.xlu0 %v6427_v59, %s4656_s30 }
 0x4bd   :  { %v6951_v10 = vpop.permute.xlu1 %2295  ;;  %v6953_v1 = vpop.permute.xlu0 %2301 }
 0x4be   :  { %12237 = vst [vmem:[#allocation61_spill] sm:$0xff] %v6951_v10  ;;  %12238 = vst [vmem:[#allocation62_spill] sm:$0xff] %v6953_v1 }
 0x4bf   :  { %1617 = vrot.lane.b32.xlu1 %v6499_v30, %s4655_s22  ;;  %1665 = vrot.lane.b32.xlu0 %v6457_v38, %s4656_s30 }
 0x4c1   :  { %v6959_v6 = vpop.permute.xlu1 %2303  ;;  %v6961_v21 = vpop.permute.xlu0 %2343 }
 0x4c2   :  { %12239 = vst [vmem:[#allocation63_spill] sm:$0xff] %v6959_v6  ;;  %12240 = vst [vmem:[#allocation64_spill] sm:$0xff] %v6961_v21 }
 0x4c3   :  { %1659 = vrot.lane.b32.xlu1 %v6455_v41, %s4656_s30  ;;  %1707 = vrot.lane.b32.xlu0 %v6427_v59, %s4633_s29 }
 0x4c5   :  { %v6967_v18 = vpop.permute.xlu1 %2345  ;;  %v6969_v10 = vpop.permute.xlu0 %2351 }
 0x4c6   :  { %12241 = vst [vmem:[#allocation65_spill] sm:$0xff] %v6967_v18  ;;  %12242 = vst [vmem:[#allocation66_spill] sm:$0xff] %v6969_v10 }
 0x4c7   :  { %1667 = vrot.lane.b32.xlu1 %v6499_v30, %s4656_s30  ;;  %1715 = vrot.lane.b32.xlu0 %v6457_v38, %s4633_s29  ;;  %s4664_s30 = smov 99  }
 0x4c9   :  { %v6975_v1 = vpop.permute.xlu1 %2353  ;;  %v6977_v6 = vpop.permute.xlu0 %2393 }
 0x4ca   :  { %12243 = vst [vmem:[#allocation67_spill] sm:$0xff] %v6975_v1  ;;  %12244 = vst [vmem:[#allocation68_spill] sm:$0xff] %v6977_v6 }
 0x4cb   :  { %1709 = vrot.lane.b32.xlu1 %v6455_v41, %s4633_s29  ;;  %1756 = vrot.lane.b32.xlu0 %v6427_v59, %s4634_s2 }
 0x4cd   :  { %v6983_v21 = vpop.permute.xlu1 %2395  ;;  %v6985_v18 = vpop.permute.xlu0 %2401 }
 0x4ce   :  { %12245 = vst [vmem:[#allocation69_spill] sm:$0xff] %v6983_v21  ;;  %12246 = vst [vmem:[#allocation70_spill] sm:$0xff] %v6985_v18 }
 0x4cf   :  { %1717 = vrot.lane.b32.xlu1 %v6499_v30, %s4633_s29  ;;  %1764 = vrot.lane.b32.xlu0 %v6457_v38, %s4634_s2  ;;  %s12340_s29 = smov 110  }
 0x4d1   :  { %v6991_v10 = vpop.permute.xlu1 %2403  ;;  %v6993_v1 = vpop.permute.xlu0 %2442 }
 0x4d2   :  { %12247 = vst [vmem:[#allocation71_spill] sm:$0xff] %v6991_v10  ;;  %12248 = vst [vmem:[#allocation72_spill] sm:$0xff] %v6993_v1 }
 0x4d3   :  { %1758 = vrot.lane.b32.xlu1 %v6455_v41, %s4634_s2  ;;  %1805 = vrot.lane.b32.xlu0 %v6427_v59, %s4635_s15 }
 0x4d5   :  { %v6999_v6 = vpop.permute.xlu1 %2444  ;;  %v7001_v21 = vpop.permute.xlu0 %2450 }
 0x4d6   :  { %12249 = vst [vmem:[#allocation73_spill] sm:$0xff] %v6999_v6  ;;  %12250 = vst [vmem:[#allocation74_spill] sm:$0xff] %v7001_v21 }
 0x4d7   :  { %1766 = vrot.lane.b32.xlu1 %v6499_v30, %s4634_s2  ;;  %1813 = vrot.lane.b32.xlu0 %v6457_v38, %s4635_s15  ;;  %s4669_s2 = smov 80  }
 0x4d9   :  { %v7007_v18 = vpop.permute.xlu1 %2452  ;;  %v7009_v10 = vpop.permute.xlu0 %2516 }
 0x4da   :  { %12251 = vst [vmem:[#allocation75_spill] sm:$0xff] %v7007_v18  ;;  %12252 = vst [vmem:[#allocation76_spill] sm:$0xff] %v7009_v10 }
 0x4db   :  { %1807 = vrot.lane.b32.xlu1 %v6455_v41, %s4635_s15  ;;  %1854 = vrot.lane.b32.xlu0 %v6427_v59, %s4636_s16 }
 0x4dd   :  { %v7015_v1 = vpop.permute.xlu1 %2518  ;;  %v7017_v6 = vpop.permute.xlu0 %2524 }
 0x4de   :  { %12253 = vst [vmem:[#allocation77_spill] sm:$0xff] %v7015_v1  ;;  %12254 = vst [vmem:[#allocation78_spill] sm:$0xff] %v7017_v6 }
 0x4df   :  { %1815 = vrot.lane.b32.xlu1 %v6499_v30, %s4635_s15  ;;  %1862 = vrot.lane.b32.xlu0 %v6457_v38, %s4636_s16 }
 0x4e1   :  { %v7023_v21 = vpop.permute.xlu1 %2526  ;;  %v7025_v18 = vpop.permute.xlu0 %2565 }
 0x4e2   :  { %12255 = vst [vmem:[#allocation79_spill] sm:$0xff] %v7023_v21  ;;  %12256 = vst [vmem:[#allocation80_spill] sm:$0xff] %v7025_v18 }
 0x4e3   :  { %1856 = vrot.lane.b32.xlu1 %v6455_v41, %s4636_s16  ;;  %1903 = vrot.lane.b32.xlu0 %v6427_v59, %s4637_s24 }
 0x4e5   :  { %v7031_v10 = vpop.permute.xlu1 %2567  ;;  %v7033_v1 = vpop.permute.xlu0 %2573 }
 0x4e6   :  { %12257 = vst [vmem:[#allocation81_spill] sm:$0xff] %v7031_v10  ;;  %12258 = vst [vmem:[#allocation82_spill] sm:$0xff] %v7033_v1 }
 0x4e7   :  { %1864 = vrot.lane.b32.xlu1 %v6499_v30, %s4636_s16  ;;  %1911 = vrot.lane.b32.xlu0 %v6457_v38, %s4637_s24 }
 0x4e9   :  { %v7039_v6 = vpop.permute.xlu1 %2575  ;;  %v7041_v21 = vpop.permute.xlu0 %2614 }
 0x4ea   :  { %12259 = vst [vmem:[#allocation83_spill] sm:$0xff] %v7039_v6  ;;  %12260 = vst [vmem:[#allocation84_spill] sm:$0xff] %v7041_v21 }
 0x4eb   :  { %1905 = vrot.lane.b32.xlu1 %v6455_v41, %s4637_s24  ;;  %1952 = vrot.lane.b32.xlu0 %v6427_v59, %s4657_s4 }
 0x4ed   :  { %v7047_v18 = vpop.permute.xlu1 %2616  ;;  %v7049_v10 = vpop.permute.xlu0 %2622 }
 0x4ee   :  { %12261 = vst [vmem:[#allocation85_spill] sm:$0xff] %v7047_v18  ;;  %12262 = vst [vmem:[#allocation86_spill] sm:$0xff] %v7049_v10 }
 0x4ef   :  { %1913 = vrot.lane.b32.xlu1 %v6499_v30, %s4637_s24  ;;  %1960 = vrot.lane.b32.xlu0 %v6457_v38, %s4657_s4  ;;  %s4671_s24 = smov 78  }
 0x4f1   :  { %v7055_v1 = vpop.permute.xlu1 %2624  ;;  %v7057_v6 = vpop.permute.xlu0 %2664 }
 0x4f2   :  { %12263 = vst [vmem:[#allocation87_spill] sm:$0xff] %v7055_v1  ;;  %12264 = vst [vmem:[#allocation88_spill] sm:$0xff] %v7057_v6 }
 0x4f3   :  { %1954 = vrot.lane.b32.xlu1 %v6455_v41, %s4657_s4  ;;  %2002 = vrot.lane.b32.xlu0 %v6427_v59, %s4658_s23 }
 0x4f5   :  { %v7063_v21 = vpop.permute.xlu1 %2666  ;;  %v7065_v18 = vpop.permute.xlu0 %1308 }
 0x4f6   :  { %12265 = vst [vmem:[#allocation89_spill] sm:$0xff] %v7063_v21 }
 0x4f7   :  { %1962 = vrot.lane.b32.xlu1 %v6499_v30, %s4657_s4  ;;  %2010 = vrot.lane.b32.xlu0 %v6457_v38, %s4658_s23  ;;  %s12489_s4 = smov 95  }
 0x4f9   :  { %v7071_v10 = vpop.permute.xlu1 %2674  ;;  %v7073_v1 = vpop.permute.xlu0 %1316 }
 0x4fa   :  { %12266 = vst [vmem:[#allocation90_spill] sm:$0xff] %v7071_v10 }
 0x4fb   :  { %2004 = vrot.lane.b32.xlu1 %v6455_v41, %s4658_s23  ;;  %2052 = vrot.lane.b32.xlu0 %v6427_v59, %s4638_s25 }
 0x4fd   :  { %v7079_v6 = vpop.permute.xlu1 %1310  ;;  %v7081_v21 = vpop.permute.xlu0 %1357 }
 0x4ff   :  { %2012 = vrot.lane.b32.xlu1 %v6499_v30, %s4658_s23  ;;  %2060 = vrot.lane.b32.xlu0 %v6457_v38, %s4638_s25 }
 0x501   :  { %v7087_v53 = vpop.permute.xlu1 %1318  ;;  %v7089_v10 = vpop.permute.xlu0 %1365 }
 0x503   :  { %2054 = vrot.lane.b32.xlu1 %v6455_v41, %s4638_s25  ;;  %2101 = vrot.lane.b32.xlu0 %v6427_v59, %s4623_s17 }
 0x505   :  { %v7095_v16 = vpop.permute.xlu1 %1359  ;;  %v7097_v54 = vpop.permute.xlu0 %1407 }
 0x507   :  { %2062 = vrot.lane.b32.xlu1 %v6499_v30, %s4638_s25  ;;  %2109 = vrot.lane.b32.xlu0 %v6457_v38, %s4623_s17  ;;  %s4665_s25 = smov 93  }
 0x509   :  { %v7103_v60 = vpop.permute.xlu1 %1367  ;;  %v7105_v62 = vpop.permute.xlu0 %1415 }
 0x50b   :  { %2103 = vrot.lane.b32.xlu1 %v6455_v41, %s4623_s17  ;;  %2150 = vrot.lane.b32.xlu0 %v6427_v59, %s4624_s18 }
 0x50d   :  { %v7111_v55 = vpop.permute.xlu1 %1409  ;;  %v7113_v9 = vpop.permute.xlu0 %1457 }
 0x50f   :  { %2111 = vrot.lane.b32.xlu1 %v6499_v30, %s4623_s17  ;;  %2158 = vrot.lane.b32.xlu0 %v6457_v38, %s4624_s18  ;;  %s12289_s17 = smov 126  }
 0x511   :  { %v7119_v56 = vpop.permute.xlu1 %1417  ;;  %v7121_v46 = vpop.permute.xlu0 %1465 }
 0x513   :  { %2152 = vrot.lane.b32.xlu1 %v6455_v41, %s4624_s18  ;;  %2199 = vrot.lane.b32.xlu0 %v6427_v59, %s4625_s0 }
 0x515   :  { %v7127_v25 = vpop.permute.xlu1 %1459  ;;  %v7129_v0 = vpop.permute.xlu0 %1507 }
 0x517   :  { %2160 = vrot.lane.b32.xlu1 %v6499_v30, %s4624_s18  ;;  %2207 = vrot.lane.b32.xlu0 %v6457_v38, %s4625_s0  ;;  %s12304_s18 = smov 114  }
 0x519   :  { %v7135_v57 = vpop.permute.xlu1 %1467  ;;  %v7137_v37 = vpop.permute.xlu0 %1515 }
 0x51b   :  { %2201 = vrot.lane.b32.xlu1 %v6455_v41, %s4625_s0  ;;  %2248 = vrot.lane.b32.xlu0 %v6427_v59, %s4639_s26 }
 0x51d   :  { %v7143_v48 = vpop.permute.xlu1 %1509  ;;  %v7145_v15 = vpop.permute.xlu0 %1557 }
 0x51f   :  { %2209 = vrot.lane.b32.xlu1 %v6499_v30, %s4625_s0  ;;  %2256 = vrot.lane.b32.xlu0 %v6457_v38, %s4639_s26  ;;  %s12313_s0 = smov 113  }
 0x521   :  { %v7151_v27 = vpop.permute.xlu1 %1517  ;;  %v7153_v33 = vpop.permute.xlu0 %1565 }
 0x522   :  { %12267 = vst [vmem:[#allocation91_spill] sm:$0xff] %v7151_v27  ;;  %12268 = vst [vmem:[#allocation92_spill] sm:$0xff] %v7153_v33 }
 0x523   :  { %2250 = vrot.lane.b32.xlu1 %v6455_v41, %s4639_s26  ;;  %2297 = vrot.lane.b32.xlu0 %v6427_v59, %s4659_s6 }
 0x525   :  { %v7159_v12 = vpop.permute.xlu1 %1559  ;;  %v7161_v51 = vpop.permute.xlu0 %1607 }
 0x526   :  { %12269 = vst [vmem:[#allocation93_spill] sm:$0xff] %v7159_v12  ;;  %12270 = vst [vmem:[#allocation94_spill] sm:$0xff] %v7161_v51  ;;  %v4319_v51 = vld [vmem:[%s11780_s7 + $0x630] sm:$0xff]  ;;  %v4320_v12 = vld [vmem:[%s11780_s7 + $0x638] sm:$0xff] }
 0x527   :  { %2258 = vrot.lane.b32.xlu1 %v6499_v30, %s4639_s26  ;;  %2305 = vrot.lane.b32.xlu0 %v6457_v38, %s4659_s6  ;;  %s4668_s26 = smov 81  }
 0x529   :  { %v7167_v34 = vpop.permute.xlu1 %1567  ;;  %v7169_v39 = vpop.permute.xlu0 %1615 }
 0x52a   :  { %12271 = vst [vmem:[#allocation95_spill] sm:$0xff] %v7167_v34  ;;  %12272 = vst [vmem:[#allocation96_spill] sm:$0xff] %v7169_v39 }
 0x52b   :  { %2299 = vrot.lane.b32.xlu1 %v6455_v41, %s4659_s6  ;;  %2347 = vrot.lane.b32.xlu0 %v6427_v59, %s4660_s1 }
 0x52d   :  { %v7175_v35 = vpop.permute.xlu1 %1609  ;;  %v7177_v7 = vpop.permute.xlu0 %1657 }
 0x52e   :  { %12273 = vst [vmem:[#allocation97_spill] sm:$0xff] %v7175_v35  ;;  %12274 = vst [vmem:[#allocation98_spill] sm:$0xff] %v7177_v7 }
 0x52f   :  { %2307 = vrot.lane.b32.xlu1 %v6499_v30, %s4659_s6  ;;  %2355 = vrot.lane.b32.xlu0 %v6457_v38, %s4660_s1 }
 0x531   :  { %v7183_v20 = vpop.permute.xlu1 %1617  ;;  %v7185_v34 = vpop.permute.xlu0 %1665 }
 0x532   :  { %12275 = vst [vmem:[#allocation99_spill] sm:$0xff] %v7183_v20  ;;  %12276 = vst [vmem:[#allocation100_spill] sm:$0xff] %v7185_v34 }
 0x533   :  { %2349 = vrot.lane.b32.xlu1 %v6455_v41, %s4660_s1  ;;  %2397 = vrot.lane.b32.xlu0 %v6427_v59, %s4640_s27 }
 0x535   :  { %v7191_v39 = vpop.permute.xlu1 %1659  ;;  %v7193_v35 = vpop.permute.xlu0 %1707 }
 0x536   :  { %12277 = vst [vmem:[#allocation101_spill] sm:$0xff] %v7191_v39  ;;  %12278 = vst [vmem:[#allocation102_spill] sm:$0xff] %v7193_v35 }
 0x537   :  { %2357 = vrot.lane.b32.xlu1 %v6499_v30, %s4660_s1  ;;  %2405 = vrot.lane.b32.xlu0 %v6457_v38, %s4640_s27 }
 0x539   :  { %v7199_v7 = vpop.permute.xlu1 %1667  ;;  %v7201_v20 = vpop.permute.xlu0 %1715 }
 0x53a   :  { %12279 = vst [vmem:[#allocation103_spill] sm:$0xff] %v7199_v7  ;;  %12280 = vst [vmem:[#allocation104_spill] sm:$0xff] %v7201_v20 }
 0x53b   :  { %2399 = vrot.lane.b32.xlu1 %v6455_v41, %s4640_s27  ;;  %2446 = vrot.lane.b32.xlu0 %v6427_v59, %s4626_s19 }
 0x53d   :  { %v7207_v34 = vpop.permute.xlu1 %1709  ;;  %v7209_v39 = vpop.permute.xlu0 %1756 }
 0x53e   :  { %12281 = vst [vmem:[#allocation105_spill] sm:$0xff] %v7207_v34  ;;  %12282 = vst [vmem:[#allocation106_spill] sm:$0xff] %v7209_v39 }
 0x53f   :  { %2407 = vrot.lane.b32.xlu1 %v6499_v30, %s4640_s27  ;;  %2454 = vrot.lane.b32.xlu0 %v6457_v38, %s4626_s19 }
 0x541   :  { %v7215_v35 = vpop.permute.xlu1 %1717  ;;  %v7217_v7 = vpop.permute.xlu0 %1764 }
 0x542   :  { %12283 = vst [vmem:[#allocation107_spill] sm:$0xff] %v7215_v35  ;;  %12284 = vst [vmem:[#allocation108_spill] sm:$0xff] %v7217_v7 }
 0x543   :  { %2448 = vrot.lane.b32.xlu1 %v6455_v41, %s4626_s19  ;;  %2520 = vrot.lane.b32.xlu0 %v6427_v59, %s4627_s20 }
 0x545   :  { %v7223_v20 = vpop.permute.xlu1 %1758  ;;  %v7225_v34 = vpop.permute.xlu0 %1805 }
 0x546   :  { %12285 = vst [vmem:[#allocation109_spill] sm:$0xff] %v7223_v20  ;;  %12286 = vst [vmem:[#allocation110_spill] sm:$0xff] %v7225_v34 }
 0x547   :  { %2456 = vrot.lane.b32.xlu1 %v6499_v30, %s4626_s19  ;;  %2528 = vrot.lane.b32.xlu0 %v6457_v38, %s4627_s20  ;;  %s12322_s19 = smov 112  }
 0x549   :  { %v7231_v39 = vpop.permute.xlu1 %1766  ;;  %v7233_v35 = vpop.permute.xlu0 %1813 }
 0x54a   :  { %12287 = vst [vmem:[#allocation111_spill] sm:$0xff] %v7231_v39  ;;  %12288 = vst [vmem:[#allocation112_spill] sm:$0xff] %v7233_v35 }
 0x54b   :  { %2522 = vrot.lane.b32.xlu1 %v6455_v41, %s4627_s20  ;;  %2569 = vrot.lane.b32.xlu0 %v6427_v59, %s12289_s17 }
 0x54d   :  { %v7239_v7 = vpop.permute.xlu1 %1807  ;;  %v7241_v20 = vpop.permute.xlu0 %1854 }
 0x54e   :  { %12290 = vst [vmem:[#allocation113_spill] sm:$0xff] %v7239_v7  ;;  %12291 = vst [vmem:[#allocation114_spill] sm:$0xff] %v7241_v20 }
 0x54f   :  { %2530 = vrot.lane.b32.xlu1 %v6499_v30, %s4627_s20  ;;  %2577 = vrot.lane.b32.xlu0 %v6457_v38, %s12289_s17  ;;  %s12331_s20 = smov 111  }
 0x551   :  { %v7247_v34 = vpop.permute.xlu1 %1815  ;;  %v7249_v39 = vpop.permute.xlu0 %1862 }
 0x552   :  { %12292 = vst [vmem:[#allocation115_spill] sm:$0xff] %v7247_v34  ;;  %12293 = vst [vmem:[#allocation116_spill] sm:$0xff] %v7249_v39 }
 0x553   :  { %2571 = vrot.lane.b32.xlu1 %v6455_v41, %s12289_s17  ;;  %2618 = vrot.lane.b32.xlu0 %v6427_v59, %s4661_s3 }
 0x555   :  { %v7255_v35 = vpop.permute.xlu1 %1856  ;;  %v7257_v7 = vpop.permute.xlu0 %1903 }
 0x556   :  { %12294 = vst [vmem:[#allocation117_spill] sm:$0xff] %v7255_v35  ;;  %12295 = vst [vmem:[#allocation118_spill] sm:$0xff] %v7257_v7 }
 0x557   :  { %2579 = vrot.lane.b32.xlu1 %v6499_v30, %s12289_s17  ;;  %2626 = vrot.lane.b32.xlu0 %v6457_v38, %s4661_s3 }
 0x559   :  { %v7263_v20 = vpop.permute.xlu1 %1864  ;;  %v7265_v34 = vpop.permute.xlu0 %1911 }
 0x55a   :  { %12296 = vst [vmem:[#allocation119_spill] sm:$0xff] %v7263_v20  ;;  %12297 = vst [vmem:[#allocation120_spill] sm:$0xff] %v7265_v34 }
 0x55b   :  { %2620 = vrot.lane.b32.xlu1 %v6455_v41, %s4661_s3  ;;  %2668 = vrot.lane.b32.xlu0 %v6427_v59, %s4662_s28 }
 0x55d   :  { %v7271_v39 = vpop.permute.xlu1 %1905  ;;  %v7273_v35 = vpop.permute.xlu0 %1952 }
 0x55e   :  { %12298 = vst [vmem:[#allocation121_spill] sm:$0xff] %v7271_v39  ;;  %12299 = vst [vmem:[#allocation122_spill] sm:$0xff] %v7273_v35 }
 0x55f   :  { %2628 = vrot.lane.b32.xlu1 %v6499_v30, %s4661_s3  ;;  %2672 = vrot.lane.b32.xlu0 %v6453_v52, %s4662_s28 }
 0x561   :  { %v7279_v7 = vpop.permute.xlu1 %1913  ;;  %v7281_v20 = vpop.permute.xlu0 %1960 }
 0x562   :  { %12300 = vst [vmem:[#allocation123_spill] sm:$0xff] %v7279_v7  ;;  %12301 = vst [vmem:[#allocation124_spill] sm:$0xff] %v7281_v20 }
 0x563   :  { %2670 = vrot.lane.b32.xlu1 %v6455_v41, %s4662_s28  ;;  %2676 = vrot.lane.b32.xlu0 %v6457_v38, %s4662_s28 }
 0x565   :  { %v7287_v34 = vpop.permute.xlu1 %1954  ;;  %v7289_v39 = vpop.permute.xlu0 %2002 }
 0x566   :  { %12302 = vst [vmem:[#allocation125_spill] sm:$0xff] %v7287_v34  ;;  %12303 = vst [vmem:[#allocation126_spill] sm:$0xff] %v7289_v39 }
 0x567   :  { %2678 = vrot.lane.b32.xlu1 %v6499_v30, %s4662_s28  ;;  %2714 = vrot.lane.b32.xlu0 %v6425_v50, %s12304_s18 }
 0x569   :  { %v7295_v35 = vpop.permute.xlu1 %1962  ;;  %v7297_v7 = vpop.permute.xlu0 %2010 }
 0x56a   :  { %12305 = vst [vmem:[#allocation127_spill] sm:$0xff] %v7295_v35  ;;  %12306 = vst [vmem:[#allocation128_spill] sm:$0xff] %v7297_v7 }
 0x56b   :  { %2716 = vrot.lane.b32.xlu1 %v6451_v19, %s12304_s18  ;;  %2718 = vrot.lane.b32.xlu0 %v6427_v59, %s12304_s18 }
 0x56d   :  { %v7303_v20 = vpop.permute.xlu1 %2004  ;;  %v7305_v34 = vpop.permute.xlu0 %2052 }
 0x56e   :  { %12307 = vst [vmem:[#allocation129_spill] sm:$0xff] %v7303_v20  ;;  %12308 = vst [vmem:[#allocation130_spill] sm:$0xff] %v7305_v34 }
 0x56f   :  { %2720 = vrot.lane.b32.xlu1 %v6455_v41, %s12304_s18  ;;  %2722 = vrot.lane.b32.xlu0 %v6453_v52, %s12304_s18 }
 0x571   :  { %v7311_v39 = vpop.permute.xlu1 %2012  ;;  %v7313_v35 = vpop.permute.xlu0 %2060 }
 0x572   :  { %12309 = vst [vmem:[#allocation131_spill] sm:$0xff] %v7311_v39  ;;  %12310 = vst [vmem:[#allocation132_spill] sm:$0xff] %v7313_v35 }
 0x573   :  { %2724 = vrot.lane.b32.xlu1 %v6497_v14, %s12304_s18  ;;  %2726 = vrot.lane.b32.xlu0 %v6457_v38, %s12304_s18 }
 0x575   :  { %v7319_v7 = vpop.permute.xlu1 %2054  ;;  %v7321_v20 = vpop.permute.xlu0 %2101 }
 0x576   :  { %12311 = vst [vmem:[#allocation133_spill] sm:$0xff] %v7319_v7  ;;  %12312 = vst [vmem:[#allocation134_spill] sm:$0xff] %v7321_v20 }
 0x577   :  { %2728 = vrot.lane.b32.xlu1 %v6499_v30, %s12304_s18  ;;  %2763 = vrot.lane.b32.xlu0 %v6425_v50, %s12313_s0 }
 0x579   :  { %v7327_v34 = vpop.permute.xlu1 %2062  ;;  %v7329_v39 = vpop.permute.xlu0 %2109 }
 0x57a   :  { %12314 = vst [vmem:[#allocation135_spill] sm:$0xff] %v7327_v34  ;;  %12315 = vst [vmem:[#allocation136_spill] sm:$0xff] %v7329_v39 }
 0x57b   :  { %2765 = vrot.lane.b32.xlu1 %v6451_v19, %s12313_s0  ;;  %2767 = vrot.lane.b32.xlu0 %v6427_v59, %s12313_s0 }
 0x57d   :  { %v7335_v35 = vpop.permute.xlu1 %2103  ;;  %v7337_v7 = vpop.permute.xlu0 %2150 }
 0x57e   :  { %12316 = vst [vmem:[#allocation137_spill] sm:$0xff] %v7335_v35  ;;  %12317 = vst [vmem:[#allocation138_spill] sm:$0xff] %v7337_v7 }
 0x57f   :  { %2769 = vrot.lane.b32.xlu1 %v6455_v41, %s12313_s0  ;;  %2771 = vrot.lane.b32.xlu0 %v6453_v52, %s12313_s0 }
 0x581   :  { %v7343_v20 = vpop.permute.xlu1 %2111  ;;  %v7345_v34 = vpop.permute.xlu0 %2158 }
 0x582   :  { %12318 = vst [vmem:[#allocation139_spill] sm:$0xff] %v7343_v20  ;;  %12319 = vst [vmem:[#allocation140_spill] sm:$0xff] %v7345_v34 }
 0x583   :  { %2773 = vrot.lane.b32.xlu1 %v6497_v14, %s12313_s0  ;;  %2775 = vrot.lane.b32.xlu0 %v6457_v38, %s12313_s0 }
 0x585   :  { %v7351_v39 = vpop.permute.xlu1 %2152  ;;  %v7353_v35 = vpop.permute.xlu0 %2199 }
 0x586   :  { %12320 = vst [vmem:[#allocation141_spill] sm:$0xff] %v7351_v39  ;;  %12321 = vst [vmem:[#allocation142_spill] sm:$0xff] %v7353_v35 }
 0x587   :  { %2777 = vrot.lane.b32.xlu1 %v6499_v30, %s12313_s0  ;;  %2812 = vrot.lane.b32.xlu0 %v6425_v50, %s12322_s19 }
 0x589   :  { %v7359_v7 = vpop.permute.xlu1 %2160  ;;  %v7361_v20 = vpop.permute.xlu0 %2207 }
 0x58a   :  { %12323 = vst [vmem:[#allocation143_spill] sm:$0xff] %v7359_v7  ;;  %12324 = vst [vmem:[#allocation144_spill] sm:$0xff] %v7361_v20 }
 0x58b   :  { %2814 = vrot.lane.b32.xlu1 %v6451_v19, %s12322_s19  ;;  %2816 = vrot.lane.b32.xlu0 %v6427_v59, %s12322_s19 }
 0x58d   :  { %v7367_v34 = vpop.permute.xlu1 %2201  ;;  %v7369_v39 = vpop.permute.xlu0 %2248 }
 0x58e   :  { %12325 = vst [vmem:[#allocation145_spill] sm:$0xff] %v7367_v34  ;;  %12326 = vst [vmem:[#allocation146_spill] sm:$0xff] %v7369_v39 }
 0x58f   :  { %2818 = vrot.lane.b32.xlu1 %v6455_v41, %s12322_s19  ;;  %2820 = vrot.lane.b32.xlu0 %v6453_v52, %s12322_s19 }
 0x591   :  { %v7375_v35 = vpop.permute.xlu1 %2209  ;;  %v7377_v7 = vpop.permute.xlu0 %2256 }
 0x592   :  { %12327 = vst [vmem:[#allocation147_spill] sm:$0xff] %v7375_v35  ;;  %12328 = vst [vmem:[#allocation148_spill] sm:$0xff] %v7377_v7 }
 0x593   :  { %2822 = vrot.lane.b32.xlu1 %v6497_v14, %s12322_s19  ;;  %2824 = vrot.lane.b32.xlu0 %v6457_v38, %s12322_s19 }
 0x595   :  { %v7383_v20 = vpop.permute.xlu1 %2250  ;;  %v7385_v34 = vpop.permute.xlu0 %2297 }
 0x596   :  { %12329 = vst [vmem:[#allocation149_spill] sm:$0xff] %v7383_v20  ;;  %12330 = vst [vmem:[#allocation150_spill] sm:$0xff] %v7385_v34 }
 0x597   :  { %2826 = vrot.lane.b32.xlu1 %v6499_v30, %s12322_s19  ;;  %2861 = vrot.lane.b32.xlu0 %v6425_v50, %s12331_s20  ;;  %s4672_s19 = smov 77  }
 0x599   :  { %v7391_v39 = vpop.permute.xlu1 %2258  ;;  %v7393_v35 = vpop.permute.xlu0 %2305 }
 0x59a   :  { %12332 = vst [vmem:[#allocation151_spill] sm:$0xff] %v7391_v39  ;;  %12333 = vst [vmem:[#allocation152_spill] sm:$0xff] %v7393_v35 }
 0x59b   :  { %2863 = vrot.lane.b32.xlu1 %v6451_v19, %s12331_s20  ;;  %2865 = vrot.lane.b32.xlu0 %v6427_v59, %s12331_s20 }
 0x59d   :  { %v7399_v7 = vpop.permute.xlu1 %2299  ;;  %v7401_v20 = vpop.permute.xlu0 %2347 }
 0x59e   :  { %12334 = vst [vmem:[#allocation153_spill] sm:$0xff] %v7399_v7  ;;  %12335 = vst [vmem:[#allocation154_spill] sm:$0xff] %v7401_v20 }
 0x59f   :  { %2867 = vrot.lane.b32.xlu1 %v6455_v41, %s12331_s20  ;;  %2869 = vrot.lane.b32.xlu0 %v6453_v52, %s12331_s20 }
 0x5a1   :  { %v7407_v34 = vpop.permute.xlu1 %2307  ;;  %v7409_v39 = vpop.permute.xlu0 %2355 }
 0x5a2   :  { %12336 = vst [vmem:[#allocation155_spill] sm:$0xff] %v7407_v34  ;;  %12337 = vst [vmem:[#allocation156_spill] sm:$0xff] %v7409_v39  ;;  %v4313_v39 = vld [vmem:[%s11780_s7 + $0x600] sm:$0xff]  ;;  %v4314_v34 = vld [vmem:[%s11780_s7 + $0x608] sm:$0xff] }
 0x5a3   :  { %2871 = vrot.lane.b32.xlu1 %v6497_v14, %s12331_s20  ;;  %2873 = vrot.lane.b32.xlu0 %v6457_v38, %s12331_s20  ;;  %v7457_v45 = vmul.f32 %v7454_v49, %v4313_v39 }
 0x5a5   :  { %v7415_v35 = vpop.permute.xlu1 %2349  ;;  %v7417_v7 = vpop.permute.xlu0 %2397  ;;  %12344 = vst [vmem:[#allocation162_spill] sm:$0xff] %v7457_v45  ;;  %v1331_v45 = vld [vmem:[%s11780_s7 + $0x10] sm:$0xff] }
 0x5a6   :  { %12338 = vst [vmem:[#allocation157_spill] sm:$0xff] %v7415_v35  ;;  %12339 = vst [vmem:[#allocation158_spill] sm:$0xff] %v7417_v7  ;;  %v4315_v35 = vld [vmem:[%s11780_s7 + $0x610] sm:$0xff]  ;;  %v4316_v7 = vld [vmem:[%s11780_s7 + $0x618] sm:$0xff] }
 0x5a7   :  { %2875 = vrot.lane.b32.xlu1 %v6499_v30, %s12331_s20  ;;  %2910 = vrot.lane.b32.xlu0 %v6425_v50, %s12340_s29  ;;  %v4317_v50 = vld [vmem:[%s11780_s7 + $0x620] sm:$0xff]  ;;  %v7469_v26 = vmul.f32 %v4316_v7, %v6457_v38  ;;  %v7472_v33 = vmul.f32 %v4315_v35, %v6453_v52  ;;  %v1325_v52 = vsel %vm1320_vm2, %v6625_v13, %v7065_v18 }
 0x5a8   :  { %v7475_v39 = vmul.f32 %v4317_v50, %v6451_v19  ;;  %v7497_v7 = vmul.f32 %v4319_v51, %v6497_v14  ;;  %v1329_v35 = vld [vmem:[%s11780_s7] sm:$0xff]  ;;  %v1332_v50 = vld [vmem:[%s11780_s7 + $0x18] sm:$0xff]  ;;  %v1334_v51 = vld [vmem:[%s11780_s7 + $0x28] sm:$0xff] }
 0x5a9   :  { %v7429_v20 = vpop.permute.xlu1 %2357  ;;  %v7441_v3 = vpop.permute.xlu0 %2405  ;;  %12346 = vst [vmem:[#allocation164_spill] sm:$0xff] %v7469_v26  ;;  %12347 = vst [vmem:[#allocation165_spill] sm:$0xff] %v7472_v33  ;;  %v1333_v26 = vld [vmem:[%s11780_s7 + $0x20] sm:$0xff] }
 0x5aa   :  { %12341 = vst [vmem:[#allocation159_spill] sm:$0xff] %v7429_v20  ;;  %12342 = vst [vmem:[#allocation160_spill] sm:$0xff] %v7441_v3  ;;  %v4318_v20 = vld [vmem:[%s11780_s7 + $0x628] sm:$0xff]  ;;  %v7460_v3 = vmul.f32 %v4314_v34, %v6427_v59  ;;  %v4129_v33 = vld [vmem:[%s11780_s7 + $0x40] sm:$0xff] }
 0x5ab   :  { %2912 = vrot.lane.b32.xlu1 %v6451_v19, %s12340_s29  ;;  %2914 = vrot.lane.b32.xlu0 %v6427_v59, %s12340_s29  ;;  %12348 = vst [vmem:[#allocation166_spill] sm:$0xff] %v7475_v39  ;;  %v1330_v34 = vld [vmem:[%s11780_s7 + $0x8] sm:$0xff]  ;;  %v1323_v59 = vsel %vm1320_vm2, %v7065_v18, %v6633_v31  ;;  %v7494_v38 = vmul.f32 %v4318_v20, %v6455_v41  ;;  %12351 = vst [vmem:[#allocation169_spill] sm:$0xff] %v7497_v7  ;;  %v4131_v7 = vld [vmem:[%s11780_s7 + $0x50] sm:$0xff] }
 0x5ac   :  { %12345 = vst [vmem:[#allocation163_spill] sm:$0xff] %v7460_v3  ;;  %v1321_v18 = vsel %vm1320_vm2, %v6633_v31, %v7073_v1  ;;  %v1327_v41 = vsel %vm1320_vm2, %v7073_v1, %v6625_v13  ;;  %v7517_v20 = vmul.f32 %v4320_v12, %v6499_v30  ;;  %v1335_v31 = vld [vmem:[%s11780_s7 + $0x30] sm:$0xff]  ;;  %v1324_v13 = vsel %vm1320_vm2, %v7079_v6, %v6639_v43  ;;  %v4130_v30 = vld [vmem:[%s11780_s7 + $0x48] sm:$0xff] }
 0x5ad   :  { %v7491_v19 = vpop.permute.xlu1 %2399  ;;  %12350 = vst [vmem:[#allocation168_spill] sm:$0xff] %v7494_v38  ;;  %v7514_v14 = vpop.permute.xlu0 %2446  ;;  %v1326_v1 = vsel %vm1320_vm2, %v6631_v36, %v7079_v6  ;;  %v1374_v12 = vsel %vm1369_vm8, %v6641_v2, %v7081_v21  ;;  %v7548_v6 = vmul.f32 %v1330_v34, %v1325_v52  ;;  %v7550_v39 = vmul.f32 %v1331_v45, %v1323_v59  ;;  %v7569_v45 = vld [vmem:[%s11777_s10 + $0x30] sm:$0xff]  ;;  %v1336_v52 = vld [vmem:[%s11780_s7 + $0x38] sm:$0xff] }
 0x5ae   :  { %12349 = vst [vmem:[#allocation167_spill] sm:$0xff] %v7491_v19  ;;  %12352 = vst [vmem:[#allocation170_spill] sm:$0xff] %v7514_v14  ;;  %v1372_v38 = vsel %vm1369_vm8, %v7081_v21, %v6649_v5  ;;  %v1328_v34 = vsel %vm1320_vm2, %v7087_v53, %v6631_v36  ;;  %v7573_v59 = vmul.f32 %v1329_v35, %v1327_v41  ;;  %v4146_v19 = vld [vmem:[%s11780_s7 + $0xc8] sm:$0xff] }
 0x5af   :  { %12353 = vst [vmem:[#allocation171_spill] sm:$0xff] %v7517_v20  ;;  %v7544_v20 = vld [vmem:[%s11777_s10 + $0x48] sm:$0xff]  ;;  %2918 = vrot.lane.b32.xlu0 %v7569_v45, %s12340_s29  ;;  %v7575_v21 = vmul.f32 %v1332_v50, %v1321_v18  ;;  %v1322_v36 = vsel %vm1320_vm2, %v6639_v43, %v7087_v53  ;;  %v1376_v35 = vsel %vm1369_vm8, %v7089_v10, %v6641_v2  ;;  %v4132_v43 = vld [vmem:[%s11780_s7 + $0x58] sm:$0xff]  ;;  %vm1519_vm2 = vcmp.lt.s32.totalorder %v4832_v29, 47 }
 0x5b0   :  { %2916 = vrot.lane.b32.xlu1 %v7544_v20, %s12340_s29  ;;  %v7593_v18 = vmul.f32 %v1334_v51, %v1326_v1  ;;  %v7595_v41 = vmul.f32 %v1335_v31, %v1324_v13  ;;  %v7597_v3 = vmul.f32 %v4130_v30, %v1374_v12  ;;  %v1370_v53 = vsel %vm1369_vm8, %v6649_v5, %v7089_v10  ;;  %v4138_v51 = vld [vmem:[%s11780_s7 + $0x88] sm:$0xff]  ;;  %v4139_v31 = vld [vmem:[%s11780_s7 + $0x90] sm:$0xff]  ;;  %v4137_v1 = vld [vmem:[%s11780_s7 + $0x80] sm:$0xff] }
 0x5b1   :  { %v7591_v50 = vpop.permute.xlu1 %2407  ;;  %v7606_v14 = vpop.permute.xlu0 %2454  ;;  %v7608_v2 = vmul.f32 %v4131_v7, %v1372_v38  ;;  %v1422_v13 = vsel %vm1419_vm4, %v7097_v54, %v6665_v17  ;;  %v1424_v5 = vsel %vm1419_vm4, %v6657_v47, %v7097_v54  ;;  %v7634_v10 = vmul.f32 %v1336_v52, %v1322_v36  ;;  %v4134_v7 = vld [vmem:[%s11780_s7 + $0x68] sm:$0xff]  ;;  %v4140_v52 = vld [vmem:[%s11780_s7 + $0x98] sm:$0xff] }
 0x5b2   :  { %12354 = vst [vmem:[#allocation172_spill] sm:$0xff] %v7591_v50  ;;  %12355 = vst [vmem:[#allocation173_spill] sm:$0xff] %v7606_v14  ;;  %v7610_v50 = vmul.f32 %v1333_v26, %v1328_v34  ;;  %v7630_v26 = vld [vmem:[%s11777_s10 + $0x50] sm:$0xff]  ;;  %v7636_v38 = vmul.f32 %v4129_v33, %v1376_v35  ;;  %v1375_v54 = vsel %vm1369_vm8, %v6647_v63, %v7095_v16  ;;  %v7655_v33 = vld [vmem:[%s11777_s10 + $0x38] sm:$0xff] }
 0x5b3   :  { %v1426_v30 = vsel %vm1419_vm4, %v7105_v62, %v6657_v47  ;;  %12356 = vst [vmem:[#allocation174_spill] sm:$0xff] %v7655_v33  ;;  %2922 = vrot.lane.b32.xlu0 %v7655_v33, %s12340_s29  ;;  %v7659_v12 = vmul.f32 %v4132_v43, %v1370_v53  ;;  %v1373_v34 = vsel %vm1369_vm8, %v7095_v16, %v6655_v11  ;;  %v4142_v36 = vld [vmem:[%s11780_s7 + $0xa8] sm:$0xff]  ;;  %v4135_v16 = vld [vmem:[%s11780_s7 + $0x70] sm:$0xff] }
 0x5b4   :  { %2920 = vrot.lane.b32.xlu1 %v7630_v26, %s12340_s29  ;;  %v1420_v47 = vsel %vm1419_vm4, %v6665_v17, %v7105_v62  ;;  %v1425_v35 = vsel %vm1419_vm4, %v6663_v4, %v7111_v55  ;;  %v1438_v53 = vmul.f32 %v4138_v51, %v1424_v5  ;;  %v1439_v14 = vmul.f32 %v4139_v31, %v1422_v13  ;;  %v4143_v17 = vld [vmem:[%s11780_s7 + $0xb0] sm:$0xff]  ;;  %v4133_v13 = vld [vmem:[%s11780_s7 + $0x60] sm:$0xff] }
 0x5b5   :  { %v7679_v43 = vpop.permute.xlu1 %2448  ;;  %v1423_v62 = vsel %vm1419_vm4, %v7111_v55, %v6671_v58  ;;  %v7698_v51 = vpop.permute.xlu0 %2520  ;;  %v7700_v31 = vmul.f32 %v4134_v7, %v1375_v54  ;;  %v1377_v55 = vsel %vm1369_vm8, %v7103_v60, %v6647_v63  ;;  %v1437_v5 = vmul.f32 %v4137_v1, %v1426_v30  ;;  %v4147_v33 = vld [vmem:[%s11780_s7 + $0xd0] sm:$0xff]  ;;  %v7720_v54 = vld [vmem:[%s11777_s10 + $0x58] sm:$0xff]  ;;  %v4141_v30 = vld [vmem:[%s11780_s7 + $0xa0] sm:$0xff] }
 0x5b6   :  { %12357 = vst [vmem:[#allocation175_spill] sm:$0xff] %v7679_v43  ;;  %v1474_v43 = vsel %vm1469_vm5, %v6673_v22, %v7113_v9  ;;  %12358 = vst [vmem:[#allocation176_spill] sm:$0xff] %v7698_v51  ;;  %v1472_v7 = vsel %vm1469_vm5, %v7113_v9, %v6681_v32  ;;  %v1440_v63 = vmul.f32 %v4140_v52, %v1420_v47  ;;  %v4144_v9 = vld [vmem:[%s11780_s7 + $0xb8] sm:$0xff] }
 0x5b7   :  { %12359 = vst [vmem:[#allocation177_spill] sm:$0xff] %v7700_v31  ;;  %12360 = vst [vmem:[#allocation178_spill] sm:$0xff] %v7720_v54  ;;  %v1442_v1 = vmul.f32 %v4142_v36, %v1425_v35  ;;  %v1421_v51 = vsel %vm1419_vm4, %v6671_v58, %v7119_v56  ;;  %v7740_v52 = vmul.f32 %v4135_v16, %v1373_v34  ;;  %v4136_v47 = vld [vmem:[%s11780_s7 + $0x78] sm:$0xff] }
 0x5b8   :  { %2924 = vrot.lane.b32.xlu1 %v7720_v54, %s12340_s29  ;;  %v1427_v54 = vsel %vm1419_vm4, %v7119_v56, %v6663_v4  ;;  %s4663_s29 = smov 109   ;;  %v1371_v58 = vsel %vm1369_vm8, %v6655_v11, %v7103_v60  ;;  %v1443_v36 = vmul.f32 %v4143_v17, %v1423_v62  ;;  %v1488_v35 = vmul.f32 %v4146_v19, %v1474_v43  ;;  %v4145_v11 = vld [vmem:[%s11780_s7 + $0xc0] sm:$0xff]  ;;  %v4148_v60 = vld [vmem:[%s11780_s7 + $0xd8] sm:$0xff] }
 0x5b9   :  { %2959 = vrot.lane.b32.xlu0 %v7454_v49, %s4663_s29  ;;  %12361 = vst [vmem:[#allocation179_spill] sm:$0xff] %v7740_v52  ;;  %v7749_v31 = vpop.permute.xlu1 %2456  ;;  %v7752_v4 = vadd.f32 %v1438_v53, %v7548_v6  ;;  %v7755_v56 = vadd.f32 %v1439_v14, %v7550_v39  ;;  %v7757_v34 = vmul.f32 %v4133_v13, %v1377_v55  ;;  %v7759_v49 = vpop.permute.xlu0 %2528  ;;  %v7778_v14 = vld [vmem:[%s11777_s10 + $0x40] sm:$0xff]  ;;  %v4154_v13 = vld [vmem:[%s11780_s7 + $0x108] sm:$0xff]  ;;  %vm1619_vm4 = vcmp.lt.s32.totalorder %v4832_v29, 45 }
 0x5ba   :  { %v1489_v16 = vmul.f32 %v4147_v33, %v1472_v7  ;;  %v1441_v52 = vmul.f32 %v4141_v30, %v1427_v54  ;;  %v1444_v27 = vmul.f32 %v4144_v9, %v1421_v51  ;;  %v1470_v39 = vsel %vm1469_vm5, %v6681_v32, %v7121_v46 }
 0x5bb   :  { %v1476_v19 = vsel %vm1469_vm5, %v7121_v46, %v6673_v22  ;;  %v7782_v6 = vmul.f32 %v4136_v47, %v1371_v58  ;;  %v7785_v33 = vadd.f32 %v1437_v5, %v7573_v59  ;;  %v7788_v32 = vadd.f32 %v1440_v63, %v7575_v21  ;;  %v7796_v22 = vld [vmem:[%s11777_s10 + $0x28] sm:$0xff]  ;;  %v4149_v63 = vld [vmem:[%s11780_s7 + $0xe0] sm:$0xff] }
 0x5bc   :  { %2961 = vrot.lane.b32.xlu1 %v7778_v14, %s4663_s29  ;;  %v7791_v43 = vadd.f32 %v1442_v1, %v7593_v18  ;;  %v7801_v46 = vadd.f32 %v1443_v36, %v7595_v41  ;;  %v7804_v59 = vadd.f32 %v1488_v35, %v7597_v3  ;;  %v4150_v21 = vld [vmem:[%s11780_s7 + $0xe8] sm:$0xff]  ;;  %v4151_v18 = vld [vmem:[%s11780_s7 + $0xf0] sm:$0xff]  ;;  %v1473_v53 = vsel %vm1469_vm5, %v7127_v25, %v6687_v23 }
 0x5bd   :  { %2963 = vrot.lane.b32.xlu0 %v7796_v22, %s4663_s29  ;;  %v1475_v41 = vsel %vm1469_vm5, %v6679_v28, %v7127_v25  ;;  %v7820_v3 = vpop.permute.xlu1 %2522  ;;  %v7823_v17 = vadd.f32 %v1489_v16, %v7608_v2  ;;  %v1487_v62 = vmul.f32 %v4145_v11, %v1476_v19  ;;  %v1490_v51 = vmul.f32 %v4148_v60, %v1470_v39  ;;  %v7832_v5 = vpop.permute.xlu0 %2569  ;;  %v4155_v2 = vld [vmem:[%s11780_s7 + $0x110] sm:$0xff]  ;;  %v4162_v16 = vld [vmem:[%s11780_s7 + $0x148] sm:$0xff] }
 0x5be   :  { %v1524_v55 = vsel %vm1519_vm2, %v6689_v42, %v7129_v0  ;;  %v7835_v25 = vadd.f32 %v1441_v52, %v7610_v50  ;;  %v7838_v7 = vadd.f32 %v1444_v27, %v7634_v10  ;;  %v1522_v54 = vsel %vm1519_vm2, %v7129_v0, %v6697_v61  ;;  %v4152_v0 = vld [vmem:[%s11780_s7 + $0xf8] sm:$0xff] }
 0x5bf   :  { %v1477_v50 = vsel %vm1469_vm5, %v7135_v57, %v6679_v28  ;;  %v1492_v27 = vmul.f32 %v4150_v21, %v1475_v41  ;;  %v1493_v10 = vmul.f32 %v4151_v18, %v1473_v53  ;;  %v1471_v1 = vsel %vm1469_vm5, %v6687_v23, %v7135_v57  ;;  %v4153_v28 = vld [vmem:[%s11780_s7 + $0x100] sm:$0xff]  ;;  %v4156_v52 = vld [vmem:[%s11780_s7 + $0x118] sm:$0xff]  ;;  %v4158_v57 = vld [vmem:[%s11780_s7 + $0x128] sm:$0xff] }
 0x5c0   :  { %2965 = vrot.lane.b32.xlu1 %v7544_v20, %s4663_s29  ;;  %v1526_v30 = vsel %vm1519_vm2, %v7137_v37, %v6689_v42  ;;  %v1538_v9 = vmul.f32 %v4154_v13, %v1524_v55  ;;  %v1520_v23 = vsel %vm1519_vm2, %v6697_v61, %v7137_v37  ;;  %v4159_v42 = vld [vmem:[%s11780_s7 + $0x130] sm:$0xff]  ;;  %v1523_v47 = vsel %vm1519_vm2, %v7143_v48, %v6703_v44  ;;  %v4157_v41 = vld [vmem:[%s11780_s7 + $0x120] sm:$0xff] }
 0x5c1   :  { %2967 = vrot.lane.b32.xlu0 %v7569_v45, %s4663_s29  ;;  %v1525_v58 = vsel %vm1519_vm2, %v6695_v40, %v7143_v48  ;;  %v7894_v36 = vpop.permute.xlu1 %2530  ;;  %v7897_v61 = vadd.f32 %v1487_v62, %v7636_v38  ;;  %v1539_v37 = vmul.f32 %v4155_v2, %v1522_v54  ;;  %v1491_v35 = vmul.f32 %v4149_v63, %v1477_v50  ;;  %v7906_v60 = vpop.permute.xlu0 %2577  ;;  %v4163_v38 = vld [vmem:[%s11780_s7 + $0x150] sm:$0xff]  ;;  %v12362_v62 = vld [vmem:[#allocation91_spill] sm:$0xff]  ;;  %v12363_v13 = vld [vmem:[#allocation174_spill] sm:$0xff] }
 0x5c2   :  { %v1574_v11 = vsel %vm1569_vm6, %v6705_v24, %v7145_v15  ;;  %v7909_v48 = vadd.f32 %v1490_v51, %v7659_v12  ;;  %v1494_v39 = vmul.f32 %v4152_v0, %v1471_v1  ;;  %v1537_v19 = vmul.f32 %v4153_v28, %v1526_v30  ;;  %v12365_v2 = vld [vmem:[#allocation179_spill] sm:$0xff] }
 0x5c3   :  { %v1572_v21 = vsel %vm1569_vm6, %v7145_v15, %v6713_v8  ;;  %vm1669_vm5 = vcmp.lt.s32.totalorder %v4832_v29, 35  ;;  %v1540_v18 = vmul.f32 %v4156_v52, %v1520_v23  ;;  %v1542_v53 = vmul.f32 %v4158_v57, %v1525_v58  ;;  %v12364_v15 = vld [vmem:[#allocation177_spill] sm:$0xff]  ;;  %v12366_v52 = vld [vmem:[#allocation92_spill] sm:$0xff] }
 0x5c4   :  { %2969 = vrot.lane.b32.xlu1 %v7630_v26, %s4663_s29  ;;  %v1543_v12 = vmul.f32 %v4159_v42, %v1523_v47  ;;  %v1527_v51 = vsel %vm1519_vm2, %v12362_v62, %v6695_v40  ;;  %v7931_v55 = vadd.f32 %v1492_v27, %v12364_v15  ;;  %v7934_v54 = vadd.f32 %v1493_v10, %v12365_v2  ;;  %v4160_v27 = vld [vmem:[%s11780_s7 + $0x138] sm:$0xff]  ;;  %v4167_v58 = vld [vmem:[%s11780_s7 + $0x170] sm:$0xff]  ;;  %v4165_v2 = vld [vmem:[%s11780_s7 + $0x160] sm:$0xff] }
 0x5c5   :  { %2971 = vrot.lane.b32.xlu0 %v12363_v13, %s4663_s29  ;;  %v7937_v63 = vadd.f32 %v1538_v9, %v7752_v4  ;;  %v1588_v50 = vmul.f32 %v4162_v16, %v1574_v11  ;;  %v7939_v0 = vpop.permute.xlu1 %2571  ;;  %v7942_v1 = vadd.f32 %v1539_v37, %v7755_v56  ;;  %v7945_v40 = vadd.f32 %v1491_v35, %v7757_v34  ;;  %v7954_v10 = vpop.permute.xlu0 %2618  ;;  %v4161_v9 = vld [vmem:[%s11780_s7 + $0x140] sm:$0xff]  ;;  %v4164_v42 = vld [vmem:[%s11780_s7 + $0x158] sm:$0xff] }
 0x5c6   :  { %v1589_v28 = vmul.f32 %v4163_v38, %v1572_v21  ;;  %v1521_v4 = vsel %vm1519_vm2, %v6703_v44, %v12362_v62  ;;  %v7957_v30 = vadd.f32 %v1494_v39, %v7782_v6  ;;  %v7960_v56 = vadd.f32 %v1537_v19, %v7785_v33  ;;  %v12367_v44 = vld [vmem:[#allocation178_spill] sm:$0xff]  ;;  %v12368_v47 = vld [vmem:[#allocation161_spill] sm:$0xff]  ;;  %v4170_v38 = vld [vmem:[%s11780_s7 + $0x188] sm:$0xff] }
 0x5c7   :  { %v1541_v34 = vmul.f32 %v4157_v41, %v1527_v51  ;;  %v1576_v23 = vsel %vm1569_vm6, %v12366_v52, %v6705_v24  ;;  %v7972_v57 = vadd.f32 %v1540_v18, %v7788_v32  ;;  %v7975_v6 = vadd.f32 %v1542_v53, %v7791_v43  ;;  %v12369_v37 = vld [vmem:[#allocation29_spill] sm:$0xff]  ;;  %v12371_v16 = vld [vmem:[#allocation30_spill] sm:$0xff]  ;;  %v4171_v21 = vld [vmem:[%s11780_s7 + $0x190] sm:$0xff] }
 0x5c8   :  { %2973 = vrot.lane.b32.xlu1 %v12367_v44, %s4663_s29  ;;  %v7978_v33 = vadd.f32 %v1543_v12, %v7801_v46  ;;  %v1570_v24 = vsel %vm1569_vm6, %v6713_v8, %v12366_v52  ;;  %v7990_v32 = vadd.f32 %v1588_v50, %v7804_v59  ;;  %v1544_v43 = vmul.f32 %v4160_v27, %v1521_v4  ;;  %v4166_v46 = vld [vmem:[%s11780_s7 + $0x168] sm:$0xff]  ;;  %v12370_v35 = vld [vmem:[#allocation93_spill] sm:$0xff]  ;;  %v12373_v18 = vld [vmem:[#allocation4_spill] sm:$0xff] }
 0x5c9   :  { %3009 = vrot.lane.b32.xlu0 %v12368_v47, %s4664_s30  ;;  %v1573_v8 = vsel %vm1569_vm6, %v12370_v35, %v12369_v37  ;;  %v1575_v59 = vsel %vm1569_vm6, %v12371_v16, %v12370_v35  ;;  %v8006_v11 = vpop.permute.xlu1 %2579  ;;  %v8009_v39 = vadd.f32 %v1589_v28, %v7823_v17  ;;  %v1587_v19 = vmul.f32 %v4161_v9, %v1576_v23  ;;  %v12374_v53 = vld [vmem:[#allocation94_spill] sm:$0xff]  ;;  %v12375_v41 = vld [vmem:[#allocation5_spill] sm:$0xff]  ;;  %v8025_v62 = vpop.permute.xlu0 %2626  ;;  %v12377_v28 = vld [vmem:[#allocation95_spill] sm:$0xff] }
 0x5ca   :  { %12372 = vst [vmem:[#allocation91_spill] sm:$0xff] %v8006_v11  ;;  %v1622_v12 = vsel %vm1619_vm4, %v12374_v53, %v12373_v18  ;;  %v1624_v17 = vsel %vm1619_vm4, %v12375_v41, %v12374_v53  ;;  %12376 = vst [vmem:[#allocation174_spill] sm:$0xff] %v8025_v62  ;;  %v8028_v51 = vadd.f32 %v1541_v34, %v7835_v25  ;;  %v4168_v50 = vld [vmem:[%s11780_s7 + $0x178] sm:$0xff]  ;;  %v4169_v9 = vld [vmem:[%s11780_s7 + $0x180] sm:$0xff]  ;;  %vm12525_vm8 = vcmp.lt.s32.totalorder %v4832_v29, 14 }
 0x5cb   :  { %v1590_v15 = vmul.f32 %v4164_v42, %v1570_v24  ;;  %v1571_v27 = vsel %vm1569_vm6, %v12369_v37, %v12377_v28  ;;  %v1577_v25 = vsel %vm1569_vm6, %v12377_v28, %v12371_v16  ;;  %v1592_v4 = vmul.f32 %v4166_v46, %v1575_v59  ;;  %v4172_v52 = vld [vmem:[%s11780_s7 + $0x198] sm:$0xff]  ;;  %v12378_v23 = vld [vmem:[#allocation96_spill] sm:$0xff]  ;;  %v4174_v35 = vld [vmem:[%s11780_s7 + $0x1a8] sm:$0xff] }
 0x5cc   :  { %3011 = vrot.lane.b32.xlu1 %v7778_v14, %s4664_s30  ;;  %v1593_v34 = vmul.f32 %v4167_v58, %v1573_v8  ;;  %v1620_v42 = vsel %vm1619_vm4, %v12373_v18, %v12378_v23  ;;  %v1626_v24 = vsel %vm1619_vm4, %v12378_v23, %v12375_v41  ;;  %v8063_v46 = vadd.f32 %v1544_v43, %v7838_v7  ;;  %v12379_v8 = vld [vmem:[#allocation97_spill] sm:$0xff]  ;;  %v12380_v16 = vld [vmem:[#allocation6_spill] sm:$0xff]  ;;  %v4175_v7 = vld [vmem:[%s11780_s7 + $0x1b0] sm:$0xff] }
 0x5cd   :  { %3013 = vrot.lane.b32.xlu0 %v7796_v22, %s4664_s30  ;;  %v1638_v58 = vmul.f32 %v4170_v38, %v1624_v17  ;;  %v1639_v37 = vmul.f32 %v4171_v21, %v1622_v12  ;;  %v1625_v59 = vsel %vm1619_vm4, %v12380_v16, %v12379_v8  ;;  %v8072_v18 = vpop.permute.xlu1 %2620  ;;  %v1591_v53 = vmul.f32 %v4165_v2, %v1577_v25  ;;  %v12382_v43 = vld [vmem:[#allocation8_spill] sm:$0xff]  ;;  %v4178_v21 = vld [vmem:[%s11780_s7 + $0x1c8] sm:$0xff]  ;;  %v12383_v12 = vld [vmem:[#allocation98_spill] sm:$0xff]  ;;  %v8088_v2 = vpop.permute.xlu0 %2668 }
 0x5ce   :  { %12381 = vst [vmem:[#allocation177_spill] sm:$0xff] %v8072_v18  ;;  %v1594_v41 = vmul.f32 %v4168_v50, %v1571_v27  ;;  %v1623_v38 = vsel %vm1619_vm4, %v12379_v8, %v12382_v43  ;;  %v12384_v17 = vld [vmem:[#allocation27_spill] sm:$0xff]  ;;  %12385 = vst [vmem:[#allocation179_spill] sm:$0xff] %v8088_v2  ;;  %v8091_v50 = vadd.f32 %v1587_v19, %v7897_v61  ;;  %v4179_v61 = vld [vmem:[%s11780_s7 + $0x1d0] sm:$0xff]  ;;  %vm1964_vm6 = vcmp.lt.s32.totalorder %v4832_v29, 29 }
 0x5cf   :  { %v1674_v28 = vsel %vm1669_vm5, %v12384_v17, %v12383_v12  ;;  %v8094_v27 = vadd.f32 %v1590_v15, %v7909_v48  ;;  %v1637_v25 = vmul.f32 %v4169_v9, %v1626_v24  ;;  %v1640_v23 = vmul.f32 %v4172_v52, %v1620_v42  ;;  %v12386_v19 = vld [vmem:[#allocation9_spill] sm:$0xff]  ;;  %v12422_v2 = vld [vmem:[#allocation112_spill] sm:$0xff]  ;;  %vm12528_vm2 = vmmov %vm12525_vm8 }
 0x5d0   :  { %3015 = vrot.lane.b32.xlu1 %v7544_v20, %s4664_s30  ;;  %v8099_v8 = vadd.f32 %v1592_v4, %v7931_v55  ;;  %v8102_v18 = vadd.f32 %v1593_v34, %v7934_v54  ;;  %v1642_v62 = vmul.f32 %v4174_v35, %v1625_v59  ;;  %v1672_v48 = vsel %vm1669_vm5, %v12383_v12, %v12386_v19  ;;  %v4173_v54 = vld [vmem:[%s11780_s7 + $0x1a0] sm:$0xff]  ;;  %v12387_v34 = vld [vmem:[#allocation99_spill] sm:$0xff]  ;;  %v12390_v59 = vld [vmem:[#allocation100_spill] sm:$0xff] }
 0x5d1   :  { %3017 = vrot.lane.b32.xlu0 %v7569_v45, %s4664_s30  ;;  %v8114_v15 = vadd.f32 %v1638_v58, %v7937_v63  ;;  %v1643_v55 = vmul.f32 %v4175_v7, %v1623_v38  ;;  %v1688_v4 = vmul.f32 %v4178_v21, %v1674_v28  ;;  %v1627_v9 = vsel %vm1619_vm4, %v12387_v34, %v12380_v16  ;;  %v8123_v52 = vpop.permute.xlu1 %2628  ;;  %v4176_v58 = vld [vmem:[%s11780_s7 + $0x1b8] sm:$0xff]  ;;  %v8141_v16 = vpop.permute.xlu0 %2672  ;;  %v12392_v21 = vld [vmem:[#allocation31_spill] sm:$0xff]  ;;  %v4183_v28 = vld [vmem:[%s11780_s7 + $0x1f0] sm:$0xff] }
 0x5d2   :  { %12388 = vst [vmem:[#allocation92_spill] sm:$0xff] %v8123_v52  ;;  %v8126_v42 = vadd.f32 %v1639_v37, %v7942_v1  ;;  %v8129_v24 = vadd.f32 %v1591_v53, %v7945_v40  ;;  %v8132_v63 = vadd.f32 %v1594_v41, %v7957_v30  ;;  %v1621_v35 = vsel %vm1619_vm4, %v12382_v43, %v12387_v34  ;;  %v4177_v30 = vld [vmem:[%s11780_s7 + $0x1c0] sm:$0xff]  ;;  %v4182_v43 = vld [vmem:[%s11780_s7 + $0x1e8] sm:$0xff]  ;;  %v12391_v38 = vld [vmem:[#allocation101_spill] sm:$0xff] }
 0x5d3   :  { %12389 = vst [vmem:[#allocation178_spill] sm:$0xff] %v8141_v16  ;;  %v8144_v1 = vadd.f32 %v1637_v25, %v7960_v56  ;;  %v8147_v40 = vadd.f32 %v1640_v23, %v7972_v57  ;;  %v1689_v37 = vmul.f32 %v4179_v61, %v1672_v48  ;;  %v1676_v53 = vsel %vm1669_vm5, %v12390_v59, %v12384_v17  ;;  %v4180_v57 = vld [vmem:[%s11780_s7 + $0x1d8] sm:$0xff]  ;;  %v12393_v25 = vld [vmem:[#allocation10_spill] sm:$0xff]  ;;  %v12400_v16 = vld [vmem:[#allocation104_spill] sm:$0xff] }
 0x5d4   :  { %3019 = vrot.lane.b32.xlu1 %v7630_v26, %s4664_s30  ;;  %v8159_v41 = vadd.f32 %v1642_v62, %v7975_v6  ;;  %v1641_v56 = vmul.f32 %v4173_v54, %v1627_v9  ;;  %v1670_v7 = vsel %vm1669_vm5, %v12386_v19, %v12390_v59  ;;  %v1675_v6 = vsel %vm1669_vm5, %v12392_v21, %v12391_v38  ;;  %v12395_v48 = vld [vmem:[#allocation13_spill] sm:$0xff]  ;;  %v12397_v54 = vld [vmem:[#allocation7_spill] sm:$0xff]  ;;  %v4181_v9 = vld [vmem:[%s11780_s7 + $0x1e0] sm:$0xff] }
 0x5d5   :  { %3021 = vrot.lane.b32.xlu0 %v12363_v13, %s4664_s30  ;;  %v8178_v62 = vadd.f32 %v1643_v55, %v7978_v33  ;;  %v8181_v12 = vadd.f32 %v1688_v4, %v7990_v32  ;;  %v1644_v17 = vmul.f32 %v4176_v58, %v1621_v35  ;;  %v1673_v23 = vsel %vm1669_vm5, %v12391_v38, %v12393_v25  ;;  %v8190_v61 = vpop.permute.xlu1 %2670  ;;  %v4186_v33 = vld [vmem:[%s11780_s7 + $0x208] sm:$0xff]  ;;  %v4187_v32 = vld [vmem:[%s11780_s7 + $0x210] sm:$0xff]  ;;  %v12396_v55 = vld [vmem:[#allocation102_spill] sm:$0xff] }
 0x5d6   :  { %12394 = vst [vmem:[#allocation161_spill] sm:$0xff] %v8190_v61  ;;  %v1687_v19 = vmul.f32 %v4177_v30, %v1676_v53  ;;  %v1721_v4 = vsel %vm489_vm10, %v12396_v55, %v12395_v48  ;;  %v1723_v34 = vsel %vm489_vm10, %v12397_v54, %v12396_v55  ;;  %v12398_v58 = vld [vmem:[#allocation103_spill] sm:$0xff]  ;;  %v8213_v30 = vpop.permute.xlu0 %2676  ;;  %v1690_v59 = vmul.f32 %v4180_v57, %v1670_v7  ;;  %v4184_v38 = vld [vmem:[%s11780_s7 + $0x1f8] sm:$0xff]  ;;  %v4185_v61 = vld [vmem:[%s11780_s7 + $0x200] sm:$0xff] }
 0x5d7   :  { %v1677_v35 = vsel %vm1669_vm5, %v12398_v58, %v12392_v21  ;;  %12399 = vst [vmem:[#allocation29_spill] sm:$0xff] %v8213_v30  ;;  %v1692_v53 = vmul.f32 %v4182_v43, %v1675_v6  ;;  %v1671_v55 = vsel %vm1669_vm5, %v12393_v25, %v12398_v58  ;;  %v1725_v21 = vsel %vm489_vm10, %v12400_v16, %v12397_v54  ;;  %v4188_v6 = vld [vmem:[%s11780_s7 + $0x218] sm:$0xff]  ;;  %v4201_v52 = vld [vmem:[%s11780_s7 + $0x280] sm:$0xff] }
 0x5d8   :  { %3023 = vrot.lane.b32.xlu1 %v12367_v44, %s4664_s30  ;;  %v8232_v57 = vadd.f32 %v1689_v37, %v8009_v39  ;;  %v8235_v7 = vadd.f32 %v1641_v56, %v8028_v51  ;;  %v1693_v43 = vmul.f32 %v4183_v28, %v1673_v23  ;;  %v1719_v25 = vsel %vm489_vm10, %v12395_v48, %v12400_v16  ;;  %v4190_v51 = vld [vmem:[%s11780_s7 + $0x228] sm:$0xff]  ;;  %v12402_v37 = vld [vmem:[#allocation105_spill] sm:$0xff]  ;;  %v12403_v56 = vld [vmem:[#allocation12_spill] sm:$0xff]  ;;  %s12526_s30 = smov 94  }
 0x5d9   :  { %3059 = vrot.lane.b32.xlu0 %v12368_v47, %s12401_s14  ;;  %v1737_v54 = vmul.f32 %v4186_v33, %v1723_v34  ;;  %v1738_v58 = vmul.f32 %v4187_v32, %v1721_v4  ;;  %v1691_v39 = vmul.f32 %v4181_v9, %v1677_v35  ;;  %v1724_v28 = vsel %vm489_vm10, %v12403_v56, %v12402_v37  ;;  %v8253_v23 = vpop.permute.xlu1 %2678  ;;  %v4191_v33 = vld [vmem:[%s11780_s7 + $0x230] sm:$0xff]  ;;  %v12405_v32 = vld [vmem:[#allocation14_spill] sm:$0xff] }
 0x5da   :  { %12404 = vst [vmem:[#allocation93_spill] sm:$0xff] %v8253_v23  ;;  %v8256_v30 = vadd.f32 %v1644_v17, %v8063_v46  ;;  %v1694_v16 = vmul.f32 %v4184_v38, %v1671_v55  ;;  %v1736_v48 = vmul.f32 %v4185_v61, %v1725_v21  ;;  %v1722_v4 = vsel %vm489_vm10, %v12402_v37, %v12405_v32  ;;  %v8265_v34 = vpop.permute.xlu0 %2714  ;;  %v4194_v55 = vld [vmem:[%s11780_s7 + $0x248] sm:$0xff] }
 0x5db   :  { %12406 = vst [vmem:[#allocation30_spill] sm:$0xff] %v8265_v34  ;;  %v8268_v9 = vadd.f32 %v1687_v19, %v8091_v50  ;;  %v8271_v35 = vadd.f32 %v1690_v59, %v8094_v27  ;;  %v8274_v46 = vadd.f32 %v1692_v53, %v8099_v8  ;;  %v1739_v17 = vmul.f32 %v4188_v6, %v1719_v25  ;;  %v4195_v50 = vld [vmem:[%s11780_s7 + $0x250] sm:$0xff]  ;;  %v12407_v27 = vld [vmem:[#allocation17_spill] sm:$0xff]  ;;  %v12408_v19 = vld [vmem:[#allocation106_spill] sm:$0xff] }
 0x5dc   :  { %3061 = vrot.lane.b32.xlu1 %v7778_v14, %s12401_s14  ;;  %v8279_v61 = vadd.f32 %v1693_v43, %v8102_v18  ;;  %v1741_v38 = vmul.f32 %v4190_v51, %v1724_v28  ;;  %v1770_v8 = vsel %vm514_vm11, %v12408_v19, %v12407_v27  ;;  %v12409_v59 = vld [vmem:[#allocation11_spill] sm:$0xff]  ;;  %v8298_v53 = vadd.f32 %v1737_v54, %v8114_v15  ;;  %v4189_v15 = vld [vmem:[%s11780_s7 + $0x220] sm:$0xff] }
 0x5dd   :  { %v1772_v18 = vsel %vm514_vm11, %v12409_v59, %v12408_v19  ;;  %3063 = vrot.lane.b32.xlu0 %v7796_v22, %s12401_s14  ;;  %v8301_v21 = vadd.f32 %v1738_v58, %v8126_v42  ;;  %v8304_v43 = vadd.f32 %v1691_v39, %v8129_v24  ;;  %v1742_v6 = vmul.f32 %v4191_v33, %v1722_v4  ;;  %v8306_v25 = vpop.permute.xlu1 %2716  ;;  %v4192_v42 = vld [vmem:[%s11780_s7 + $0x238] sm:$0xff]  ;;  %v12411_v54 = vld [vmem:[#allocation107_spill] sm:$0xff] }
 0x5de   :  { %12410 = vst [vmem:[#allocation4_spill] sm:$0xff] %v8306_v25  ;;  %v8309_v51 = vadd.f32 %v1694_v16, %v8132_v63  ;;  %v8312_v37 = vadd.f32 %v1736_v48, %v8144_v1  ;;  %v1720_v24 = vsel %vm489_vm10, %v12405_v32, %v12411_v54  ;;  %v1726_v63 = vsel %vm489_vm10, %v12411_v54, %v12403_v56  ;;  %v8328_v1 = vpop.permute.xlu0 %2718  ;;  %v4193_v16 = vld [vmem:[%s11780_s7 + $0x240] sm:$0xff]  ;;  %v12413_v48 = vld [vmem:[#allocation108_spill] sm:$0xff]  ;;  %v4198_v4 = vld [vmem:[%s11780_s7 + $0x268] sm:$0xff] }
 0x5df   :  { %12412 = vst [vmem:[#allocation94_spill] sm:$0xff] %v8328_v1  ;;  %v8331_v58 = vadd.f32 %v1739_v17, %v8147_v40  ;;  %v1786_v39 = vmul.f32 %v4194_v55, %v1772_v18  ;;  %v1787_v28 = vmul.f32 %v4195_v50, %v1770_v8  ;;  %v1774_v33 = vsel %vm514_vm11, %v12413_v48, %v12409_v59  ;;  %v4196_v40 = vld [vmem:[%s11780_s7 + $0x258] sm:$0xff]  ;;  %v4199_v17 = vld [vmem:[%s11780_s7 + $0x270] sm:$0xff]  ;;  %v12414_v55 = vld [vmem:[#allocation18_spill] sm:$0xff] }
 0x5e0   :  { %3065 = vrot.lane.b32.xlu1 %v7544_v20, %s12401_s14  ;;  %v8343_v56 = vadd.f32 %v1741_v38, %v8159_v41  ;;  %v1768_v32 = vsel %vm514_vm11, %v12407_v27, %v12413_v48  ;;  %v12415_v41 = vld [vmem:[#allocation109_spill] sm:$0xff]  ;;  %v12416_v50 = vld [vmem:[#allocation16_spill] sm:$0xff]  ;;  %v8369_v27 = vadd.f32 %v1742_v6, %v8178_v62  ;;  %v1740_v8 = vmul.f32 %v4189_v15, %v1726_v63  ;;  %v4202_v18 = vld [vmem:[%s11780_s7 + $0x288] sm:$0xff] }
 0x5e1   :  { %v1771_v38 = vsel %vm514_vm11, %v12415_v41, %v12414_v55  ;;  %v1773_v19 = vsel %vm514_vm11, %v12416_v50, %v12415_v41  ;;  %3067 = vrot.lane.b32.xlu0 %v7569_v45, %s12401_s14  ;;  %v1743_v59 = vmul.f32 %v4192_v42, %v1720_v24  ;;  %v12417_v54 = vld [vmem:[#allocation110_spill] sm:$0xff]  ;;  %v12418_v48 = vld [vmem:[#allocation15_spill] sm:$0xff]  ;;  %v8378_v34 = vpop.permute.xlu1 %2720  ;;  %v1785_v41 = vmul.f32 %v4193_v16, %v1774_v33  ;;  %v4203_v1 = vld [vmem:[%s11780_s7 + $0x290] sm:$0xff] }
 0x5e2   :  { %v1821_v25 = vsel %vm540_vm12, %v12418_v48, %v12417_v54  ;;  %12419 = vst [vmem:[#allocation5_spill] sm:$0xff] %v8378_v34  ;;  %v12420_v62 = vld [vmem:[#allocation21_spill] sm:$0xff]  ;;  %v4197_v15 = vld [vmem:[%s11780_s7 + $0x260] sm:$0xff]  ;;  %v12421_v24 = vld [vmem:[#allocation111_spill] sm:$0xff]  ;;  %v8401_v33 = vpop.permute.xlu0 %2722  ;;  %v1790_v34 = vmul.f32 %v4198_v4, %v1773_v19  ;;  %v1791_v23 = vmul.f32 %v4199_v17, %v1771_v38  ;;  %v1823_v11 = vsel %vm540_vm12, %v12422_v2, %v12418_v48 }
 0x5e3   :  { %v1819_v6 = vsel %vm540_vm12, %v12417_v54, %v12420_v62  ;;  %v4200_v42 = vld [vmem:[%s11780_s7 + $0x278] sm:$0xff]  ;;  %v1769_v63 = vsel %vm514_vm11, %v12414_v55, %v12421_v24  ;;  %v1775_v16 = vsel %vm514_vm11, %v12421_v24, %v12416_v50  ;;  %v1788_v54 = vmul.f32 %v4196_v40, %v1768_v32 }
 0x5e4   :  { %3069 = vrot.lane.b32.xlu1 %v7630_v26, %s12401_s14  ;;  %v8413_v55 = vadd.f32 %v1786_v39, %v8181_v12  ;;  %v8416_v50 = vadd.f32 %v1787_v28, %v8232_v57  ;;  %v1835_v40 = vmul.f32 %v4202_v18, %v1821_v25  ;;  %v4204_v32 = vld [vmem:[%s11780_s7 + $0x298] sm:$0xff]  ;;  %v1817_v4 = vsel %vm540_vm12, %v12420_v62, %v12422_v2  ;;  %v4206_v57 = vld [vmem:[%s11780_s7 + $0x2a8] sm:$0xff]  ;;  %v12424_v39 = vld [vmem:[#allocation20_spill] sm:$0xff] }
 0x5e5   :  { %3071 = vrot.lane.b32.xlu0 %v12363_v13, %s12401_s14  ;;  %v1836_v17 = vmul.f32 %v4203_v1, %v1819_v6  ;;  %v1789_v38 = vmul.f32 %v4197_v15, %v1775_v16  ;;  %v1792_v12 = vmul.f32 %v4200_v42, %v1769_v63  ;;  %v12423_v25 = vld [vmem:[#allocation113_spill] sm:$0xff]  ;;  %v8434_v19 = vpop.permute.xlu1 %2724  ;;  %v8437_v18 = vadd.f32 %v1740_v8, %v8235_v7 }
 0x5e6   :  { %v1822_v28 = vsel %vm540_vm12, %v12424_v39, %v12423_v25  ;;  %12425 = vst [vmem:[#allocation95_spill] sm:$0xff] %v8434_v19  ;;  %v8440_v2 = vadd.f32 %v1743_v59, %v8256_v30  ;;  %v8443_v1 = vadd.f32 %v1785_v41, %v8268_v9  ;;  %v1834_v48 = vmul.f32 %v4201_v52, %v1823_v11  ;;  %v8445_v62 = vpop.permute.xlu0 %2726  ;;  %v4207_v11 = vld [vmem:[%s11780_s7 + $0x2b0] sm:$0xff]  ;;  %v12427_v52 = vld [vmem:[#allocation22_spill] sm:$0xff]  ;;  %v12431_v24 = vld [vmem:[#allocation25_spill] sm:$0xff] }
 0x5e7   :  { %12426 = vst [vmem:[#allocation96_spill] sm:$0xff] %v8445_v62  ;;  %v8448_v6 = vadd.f32 %v1788_v54, %v8271_v35  ;;  %v8451_v15 = vadd.f32 %v1790_v34, %v8274_v46  ;;  %v8454_v42 = vadd.f32 %v1791_v23, %v8279_v61  ;;  %v1837_v7 = vmul.f32 %v4204_v32, %v1817_v4  ;;  %v4210_v23 = vld [vmem:[%s11780_s7 + $0x2c8] sm:$0xff]  ;;  %v12428_v35 = vld [vmem:[#allocation114_spill] sm:$0xff]  ;;  %v4211_v41 = vld [vmem:[%s11780_s7 + $0x2d0] sm:$0xff] }
 0x5e8   :  { %3073 = vrot.lane.b32.xlu1 %v12367_v44, %s12401_s14  ;;  %v8459_v30 = vadd.f32 %v1835_v40, %v8298_v53  ;;  %v1820_v34 = vsel %vm540_vm12, %v12423_v25, %v12427_v52  ;;  %v1839_v9 = vmul.f32 %v4206_v57, %v1822_v28  ;;  %v12429_v46 = vld [vmem:[#allocation19_spill] sm:$0xff]  ;;  %s12430_s14 = smov 97   ;;  %v8478_v53 = vadd.f32 %v1836_v17, %v8301_v21  ;;  %v12434_v4 = vld [vmem:[#allocation116_spill] sm:$0xff]  ;;  %v4220_v62 = vld [vmem:[%s11780_s7 + $0x318] sm:$0xff] }
 0x5e9   :  { %v1870_v61 = vsel %vm566_vm13, %v12429_v46, %v12428_v35  ;;  %3108 = vrot.lane.b32.xlu0 %v12368_v47, %s12430_s14  ;;  %v8481_v8 = vadd.f32 %v1789_v38, %v8304_v43  ;;  %v8484_v59 = vadd.f32 %v1792_v12, %v8309_v51  ;;  %v1868_v63 = vsel %vm566_vm13, %v12428_v35, %v12431_v24  ;;  %v8494_v16 = vpop.permute.xlu1 %2728  ;;  %v4205_v43 = vld [vmem:[%s11780_s7 + $0x2a0] sm:$0xff]  ;;  %v4208_v51 = vld [vmem:[%s11780_s7 + $0x2b8] sm:$0xff]  ;;  %v12433_v54 = vld [vmem:[#allocation115_spill] sm:$0xff] }
 0x5ea   :  { %12432 = vst [vmem:[#allocation97_spill] sm:$0xff] %v8494_v16  ;;  %v8497_v21 = vadd.f32 %v1834_v48, %v8312_v37  ;;  %v1818_v40 = vsel %vm540_vm12, %v12427_v52, %v12433_v54  ;;  %v1824_v32 = vsel %vm540_vm12, %v12433_v54, %v12424_v39  ;;  %v4209_v37 = vld [vmem:[%s11780_s7 + $0x2c0] sm:$0xff]  ;;  %v1872_v17 = vsel %vm566_vm13, %v12434_v4, %v12429_v46  ;;  %v8520_v38 = vpop.permute.xlu0 %2763  ;;  %v4212_v39 = vld [vmem:[%s11780_s7 + $0x2d8] sm:$0xff]  ;;  %v12438_v35 = vld [vmem:[#allocation24_spill] sm:$0xff] }
 0x5eb   :  { %12435 = vst [vmem:[#allocation6_spill] sm:$0xff] %v8520_v38  ;;  %v8523_v12 = vadd.f32 %v1837_v7, %v8331_v58  ;;  %v1840_v57 = vmul.f32 %v4207_v11, %v1820_v34  ;;  %v1884_v25 = vmul.f32 %v4210_v23, %v1870_v61  ;;  %v1866_v28 = vsel %vm566_vm13, %v12431_v24, %v12434_v4  ;;  %v4214_v58 = vld [vmem:[%s11780_s7 + $0x2e8] sm:$0xff]  ;;  %v4215_v7 = vld [vmem:[%s11780_s7 + $0x2f0] sm:$0xff]  ;;  %v12436_v11 = vld [vmem:[#allocation26_spill] sm:$0xff] }
 0x5ec   :  { %3110 = vrot.lane.b32.xlu1 %v7778_v14, %s12430_s14  ;;  %v8535_v48 = vadd.f32 %v1839_v9, %v8343_v56  ;;  %v1885_v52 = vmul.f32 %v4211_v41, %v1868_v63  ;;  %v12437_v34 = vld [vmem:[#allocation117_spill] sm:$0xff]  ;;  %v1838_v9 = vmul.f32 %v4205_v43, %v1824_v32  ;;  %v1841_v46 = vmul.f32 %v4208_v51, %v1818_v40  ;;  %v4218_v41 = vld [vmem:[%s11780_s7 + $0x308] sm:$0xff]  ;;  %v12439_v24 = vld [vmem:[#allocation118_spill] sm:$0xff] }
 0x5ed   :  { %v1869_v23 = vsel %vm566_vm13, %v12437_v34, %v12436_v11  ;;  %v1871_v56 = vsel %vm566_vm13, %v12438_v35, %v12437_v34  ;;  %3112 = vrot.lane.b32.xlu0 %v7796_v22, %s12430_s14  ;;  %v1883_v61 = vmul.f32 %v4209_v37, %v1872_v17  ;;  %v12440_v63 = vld [vmem:[#allocation23_spill] sm:$0xff]  ;;  %v8560_v4 = vpop.permute.xlu1 %2765  ;;  %v1886_v38 = vmul.f32 %v4212_v39, %v1866_v28  ;;  %v4219_v34 = vld [vmem:[%s11780_s7 + $0x310] sm:$0xff]  ;;  %v12442_v16 = vld [vmem:[#allocation33_spill] sm:$0xff] }
 0x5ee   :  { %v1919_v54 = vsel %vm592_vm14, %v12440_v63, %v12439_v24  ;;  %12441 = vst [vmem:[#allocation8_spill] sm:$0xff] %v8560_v4  ;;  %v1917_v43 = vsel %vm592_vm14, %v12439_v24, %v12442_v16  ;;  %v4213_v51 = vld [vmem:[%s11780_s7 + $0x2e0] sm:$0xff]  ;;  %v4216_v40 = vld [vmem:[%s11780_s7 + $0x2f8] sm:$0xff]  ;;  %v12443_v32 = vld [vmem:[#allocation119_spill] sm:$0xff]  ;;  %vm2014_vm10 = vcmp.lt.s32.totalorder %v4832_v29, 19  ;;  %v8584_v39 = vpop.permute.xlu0 %2767  ;;  %v1888_v28 = vmul.f32 %v4214_v58, %v1871_v56 }
 0x5ef   :  { %v1867_v37 = vsel %vm566_vm13, %v12436_v11, %v12443_v32  ;;  %v1873_v17 = vsel %vm566_vm13, %v12443_v32, %v12438_v35  ;;  %12444 = vst [vmem:[#allocation98_spill] sm:$0xff] %v8584_v39  ;;  %v1889_v24 = vmul.f32 %v4215_v7, %v1869_v23  ;;  %v4217_v4 = vld [vmem:[%s11780_s7 + $0x300] sm:$0xff]  ;;  %v12445_v11 = vld [vmem:[#allocation120_spill] sm:$0xff]  ;;  %v8603_v58 = vadd.f32 %v1840_v57, %v8369_v27 }
 0x5f0   :  { %v1915_v19 = vsel %vm592_vm14, %v12442_v16, %v12445_v11  ;;  %v1921_v35 = vsel %vm592_vm14, %v12445_v11, %v12440_v63  ;;  %3114 = vrot.lane.b32.xlu1 %v7544_v20, %s12430_s14  ;;  %v8606_v7 = vadd.f32 %v1884_v25, %v8413_v55  ;;  %v8609_v23 = vadd.f32 %v1885_v52, %v8416_v50  ;;  %v4222_v20 = vld [vmem:[%s11780_s7 + $0x328] sm:$0xff]  ;;  %v12446_v63 = vld [vmem:[#allocation121_spill] sm:$0xff]  ;;  %v12447_v27 = vld [vmem:[#allocation32_spill] sm:$0xff] }
 0x5f1   :  { %v1933_v56 = vmul.f32 %v4218_v41, %v1919_v54  ;;  %3116 = vrot.lane.b32.xlu0 %v7569_v45, %s12430_s14  ;;  %v1934_v16 = vmul.f32 %v4219_v34, %v1917_v43  ;;  %v1887_v32 = vmul.f32 %v4213_v51, %v1873_v17  ;;  %v1890_v39 = vmul.f32 %v4216_v40, %v1867_v37  ;;  %v8620_v57 = vpop.permute.xlu1 %2769  ;;  %v12453_v37 = vld [vmem:[#allocation123_spill] sm:$0xff]  ;;  %v4228_v11 = vld [vmem:[%s11780_s7 + $0x358] sm:$0xff] }
 0x5f2   :  { %v1920_v55 = vsel %vm592_vm14, %v12447_v27, %v12446_v63  ;;  %v8623_v50 = vadd.f32 %v1838_v9, %v8437_v18  ;;  %v8626_v25 = vadd.f32 %v1841_v46, %v8440_v2  ;;  %v1932_v45 = vmul.f32 %v4217_v4, %v1921_v35  ;;  %v8628_v41 = vpop.permute.xlu0 %2771  ;;  %v12448_v2 = vld [vmem:[#allocation34_spill] sm:$0xff]  ;;  %v4227_v46 = vld [vmem:[%s11780_s7 + $0x350] sm:$0xff] }
 0x5f3   :  { %v1935_v52 = vmul.f32 %v4220_v62, %v1915_v19  ;;  %v8631_v54 = vadd.f32 %v1883_v61, %v8443_v1  ;;  %v8634_v34 = vadd.f32 %v1886_v38, %v8448_v6  ;;  %v8637_v43 = vadd.f32 %v1888_v28, %v8451_v15  ;;  %v4223_v19 = vld [vmem:[%s11780_s7 + $0x330] sm:$0xff]  ;;  %v4226_v6 = vld [vmem:[%s11780_s7 + $0x348] sm:$0xff]  ;;  %v12449_v15 = vld [vmem:[#allocation122_spill] sm:$0xff] }
 0x5f4   :  { %v8640_v51 = vadd.f32 %v1889_v24, %v8454_v42  ;;  %3118 = vrot.lane.b32.xlu1 %v7630_v26, %s12430_s14  ;;  %v8645_v18 = vadd.f32 %v1933_v56, %v8459_v30  ;;  %v1918_v1 = vsel %vm592_vm14, %v12446_v63, %v12448_v2  ;;  %v1937_v62 = vmul.f32 %v4222_v20, %v1920_v55  ;;  %v12450_v42 = vld [vmem:[#allocation28_spill] sm:$0xff]  ;;  %v12451_v61 = vld [vmem:[#allocation37_spill] sm:$0xff]  ;;  %v4225_v24 = vld [vmem:[%s11780_s7 + $0x340] sm:$0xff] }
 0x5f5   :  { %v1969_v26 = vsel %vm1964_vm6, %v12450_v42, %v12449_v15  ;;  %3120 = vrot.lane.b32.xlu0 %v12363_v13, %s12430_s14  ;;  %v8664_v30 = vadd.f32 %v1934_v16, %v8478_v53  ;;  %v8667_v38 = vadd.f32 %v1887_v32, %v8481_v8  ;;  %v8670_v9 = vadd.f32 %v1890_v39, %v8484_v59  ;;  %v8679_v40 = vpop.permute.xlu1 %2773  ;;  %v4221_v8 = vld [vmem:[%s11780_s7 + $0x320] sm:$0xff]  ;;  %v4224_v59 = vld [vmem:[%s11780_s7 + $0x338] sm:$0xff]  ;;  %v12455_v35 = vld [vmem:[#allocation124_spill] sm:$0xff] }
 0x5f6   :  { %v1967_v4 = vsel %vm1964_vm6, %v12449_v15, %v12451_v61  ;;  %12452 = vst [vmem:[#allocation27_spill] sm:$0xff] %v8679_v40  ;;  %v8682_v13 = vadd.f32 %v1932_v45, %v8497_v21  ;;  %v8685_v53 = vadd.f32 %v1935_v52, %v8523_v12  ;;  %v1916_v17 = vsel %vm592_vm14, %v12448_v2, %v12453_v37  ;;  %v8701_v12 = vpop.permute.xlu0 %2775  ;;  %v4230_v63 = vld [vmem:[%s11780_s7 + $0x368] sm:$0xff]  ;;  %v12456_v55 = vld [vmem:[#allocation38_spill] sm:$0xff]  ;;  %v12457_v45 = vld [vmem:[#allocation125_spill] sm:$0xff] }
 0x5f7   :  { %v1922_v21 = vsel %vm592_vm14, %v12453_v37, %v12447_v27  ;;  %12454 = vst [vmem:[#allocation9_spill] sm:$0xff] %v8701_v12  ;;  %v1938_v39 = vmul.f32 %v4223_v19, %v1918_v1  ;;  %v1983_v28 = vmul.f32 %v4226_v6, %v1969_v26  ;;  %v1965_v56 = vsel %vm1964_vm6, %v12451_v61, %v12455_v35  ;;  %v4231_v27 = vld [vmem:[%s11780_s7 + $0x370] sm:$0xff]  ;;  %v12460_v15 = vld [vmem:[#allocation3_spill] sm:$0xff]  ;;  %v4232_v37 = vld [vmem:[%s11780_s7 + $0x378] sm:$0xff] }
 0x5f8   :  { %v1971_v16 = vsel %vm1964_vm6, %v12455_v35, %v12450_v42  ;;  %3122 = vrot.lane.b32.xlu1 %v12367_v44, %s12430_s14  ;;  %v8720_v32 = vadd.f32 %v1937_v62, %v8535_v48  ;;  %v1984_v20 = vmul.f32 %v4227_v46, %v1967_v4  ;;  %v1968_v52 = vsel %vm1964_vm6, %v12457_v45, %v12456_v55  ;;  %v12458_v19 = vld [vmem:[#allocation36_spill] sm:$0xff]  ;;  %s12459_s14 = smov 96   ;;  %v4234_v62 = vld [vmem:[%s11780_s7 + $0x388] sm:$0xff]  ;;  %v12461_v42 = vld [vmem:[#allocation126_spill] sm:$0xff] }
 0x5f9   :  { %v1970_v48 = vsel %vm1964_vm6, %v12458_v19, %v12457_v45  ;;  %3157 = vrot.lane.b32.xlu0 %v12368_v47, %s12459_s14  ;;  %v1936_v2 = vmul.f32 %v4221_v8, %v1922_v21  ;;  %v1939_v1 = vmul.f32 %v4224_v59, %v1916_v17  ;;  %v4235_v6 = vld [vmem:[%s11780_s7 + $0x390] sm:$0xff]  ;;  %v2017_v26 = vsel %vm2014_vm10, %v12461_v42, %v12460_v15  ;;  %v12462_v46 = vld [vmem:[#allocation35_spill] sm:$0xff]  ;;  %v8752_v61 = vpop.permute.xlu1 %2777  ;;  %v4229_v59 = vld [vmem:[%s11780_s7 + $0x360] sm:$0xff] }
 0x5fa   :  { %v2019_v47 = vsel %vm2014_vm10, %v12462_v46, %v12461_v42  ;;  %12463 = vst [vmem:[#allocation99_spill] sm:$0xff] %v8752_v61  ;;  %v1982_v4 = vmul.f32 %v4225_v24, %v1971_v16  ;;  %v1985_v8 = vmul.f32 %v4228_v11, %v1965_v56  ;;  %v12464_v17 = vld [vmem:[#allocation127_spill] sm:$0xff]  ;;  %v8768_v24 = vpop.permute.xlu0 %2812  ;;  %v8771_v11 = vadd.f32 %v1938_v39, %v8603_v58  ;;  %v12466_v12 = vld [vmem:[#allocation128_spill] sm:$0xff]  ;;  %v4233_v39 = vld [vmem:[%s11780_s7 + $0x380] sm:$0xff] }
 0x5fb   :  { %v1966_v21 = vsel %vm1964_vm6, %v12456_v55, %v12464_v17  ;;  %v1972_v35 = vsel %vm1964_vm6, %v12464_v17, %v12458_v19  ;;  %12465 = vst [vmem:[#allocation100_spill] sm:$0xff] %v8768_v24  ;;  %v8774_v56 = vadd.f32 %v1983_v28, %v8606_v7  ;;  %v1987_v16 = vmul.f32 %v4230_v63, %v1970_v48  ;;  %v4238_v28 = vld [vmem:[%s11780_s7 + $0x3a8] sm:$0xff]  ;;  %v8857_v17 = vld [vmem:[%s11777_s10 + $0x30] sm:$0xff] }
 0x5fc   :  { %v1988_v45 = vmul.f32 %v4231_v27, %v1968_v52  ;;  %3159 = vrot.lane.b32.xlu1 %v7778_v14, %s12459_s14  ;;  %v8779_v55 = vadd.f32 %v1984_v20, %v8609_v23  ;;  %v2033_v42 = vmul.f32 %v4234_v62, %v2019_v47  ;;  %v2034_v61 = vmul.f32 %v4235_v6, %v2017_v26  ;;  %v4236_v14 = vld [vmem:[%s11780_s7 + $0x398] sm:$0xff]  ;;  %v12468_v20 = vld [vmem:[#allocation39_spill] sm:$0xff] }
 0x5fd   :  { %v2015_v19 = vsel %vm2014_vm10, %v12460_v15, %v12466_v12  ;;  %3161 = vrot.lane.b32.xlu0 %v7796_v22, %s12459_s14  ;;  %v1986_v58 = vmul.f32 %v4229_v59, %v1972_v35  ;;  %v1989_v7 = vmul.f32 %v4232_v37, %v1966_v21  ;;  %v2021_v23 = vsel %vm2014_vm10, %v12466_v12, %v12462_v46  ;;  %v12467_v22 = vld [vmem:[#allocation129_spill] sm:$0xff]  ;;  %v8804_v27 = vpop.permute.xlu1 %2814  ;;  %v12474_v59 = vld [vmem:[#allocation42_spill] sm:$0xff] }
 0x5fe   :  { %v2020_v63 = vsel %vm2014_vm10, %v12468_v20, %v12467_v22  ;;  %12469 = vst [vmem:[#allocation101_spill] sm:$0xff] %v8804_v27  ;;  %v8807_v52 = vadd.f32 %v1936_v2, %v8623_v50  ;;  %v8810_v48 = vadd.f32 %v1939_v1, %v8626_v25  ;;  %v8813_v62 = vadd.f32 %v1982_v4, %v8631_v54  ;;  %v8818_v6 = vpop.permute.xlu0 %2816  ;;  %v4239_v50 = vld [vmem:[%s11780_s7 + $0x3b0] sm:$0xff]  ;;  %v12471_v25 = vld [vmem:[#allocation2_spill] sm:$0xff] }
 0x5ff   :  { %v8816_v12 = vadd.f32 %v1985_v8, %v8634_v34  ;;  %12470 = vst [vmem:[#allocation31_spill] sm:$0xff] %v8818_v6  ;;  %v8821_v15 = vadd.f32 %v1987_v16, %v8637_v43  ;;  %v8824_v26 = vadd.f32 %v1988_v45, %v8640_v51  ;;  %v2018_v54 = vsel %vm2014_vm10, %v12467_v22, %v12471_v25  ;;  %v4242_v34 = vld [vmem:[%s11780_s7 + $0x3c8] sm:$0xff]  ;;  %v12472_v2 = vld [vmem:[#allocation130_spill] sm:$0xff]  ;;  %v12473_v1 = vld [vmem:[#allocation40_spill] sm:$0xff] }
 0x600   :  { %v2068_v43 = vsel %vm618_vm15, %v12473_v1, %v12472_v2  ;;  %v8843_v51 = vld [vmem:[%s11777_s10 + $0x48] sm:$0xff]  ;;  %v2032_v46 = vmul.f32 %v4233_v39, %v2021_v23  ;;  %v2035_v47 = vmul.f32 %v4236_v14, %v2015_v19  ;;  %v2037_v4 = vmul.f32 %v4238_v28, %v2020_v63  ;;  %v4243_v8 = vld [vmem:[%s11780_s7 + $0x3d0] sm:$0xff]  ;;  %v4237_v23 = vld [vmem:[%s11780_s7 + $0x3a0] sm:$0xff] }
 0x601   :  { %3163 = vrot.lane.b32.xlu1 %v8843_v51, %s12459_s14  ;;  %v2066_v37 = vsel %vm618_vm15, %v12472_v2, %v12474_v59  ;;  %3165 = vrot.lane.b32.xlu0 %v8857_v17, %s12459_s14  ;;  %v8862_v21 = vadd.f32 %v2033_v42, %v8645_v18  ;;  %v8865_v35 = vadd.f32 %v2034_v61, %v8664_v30  ;;  %v8873_v19 = vpop.permute.xlu1 %2818  ;;  %v4240_v18 = vld [vmem:[%s11780_s7 + $0x3b8] sm:$0xff]  ;;  %v12476_v30 = vld [vmem:[#allocation131_spill] sm:$0xff]  ;;  %v12478_v28 = vld [vmem:[#allocation132_spill] sm:$0xff]  ;;  %vm2309_vm12 = vcmp.lt.s32.totalorder %v4832_v29, 13 }
 0x602   :  { %v8868_v16 = vadd.f32 %v1986_v58, %v8667_v38  ;;  %v8871_v45 = vadd.f32 %v1989_v7, %v8670_v9  ;;  %12475 = vst [vmem:[#allocation10_spill] sm:$0xff] %v8873_v19  ;;  %v2038_v39 = vmul.f32 %v4239_v50, %v2018_v54  ;;  %v2082_v14 = vmul.f32 %v4242_v34, %v2068_v43  ;;  %v8889_v61 = vpop.permute.xlu0 %2820  ;;  %v4241_v58 = vld [vmem:[%s11780_s7 + $0x3c0] sm:$0xff]  ;;  %v4244_v7 = vld [vmem:[%s11780_s7 + $0x3d8] sm:$0xff]  ;;  %v4246_v63 = vld [vmem:[%s11780_s7 + $0x3e8] sm:$0xff] }
 0x603   :  { %v2016_v38 = vsel %vm2014_vm10, %v12471_v25, %v12476_v30  ;;  %v2022_v9 = vsel %vm2014_vm10, %v12476_v30, %v12468_v20  ;;  %12477 = vst [vmem:[#allocation13_spill] sm:$0xff] %v8889_v61  ;;  %v2083_v42 = vmul.f32 %v4243_v8, %v2066_v37  ;;  %v2064_v22 = vsel %vm618_vm15, %v12474_v59, %v12478_v28  ;;  %v12479_v50 = vld [vmem:[#allocation133_spill] sm:$0xff]  ;;  %v8915_v34 = vld [vmem:[%s11777_s10 + $0x50] sm:$0xff]  ;;  %v12481_v59 = vld [vmem:[#allocation43_spill] sm:$0xff] }
 0x604   :  { %v2070_v20 = vsel %vm618_vm15, %v12478_v28, %v12473_v1  ;;  %v12480_v25 = vld [vmem:[#allocation41_spill] sm:$0xff]  ;;  %v8920_v2 = vadd.f32 %v2032_v46, %v8682_v13  ;;  %v8923_v1 = vadd.f32 %v2035_v47, %v8685_v53  ;;  %v8926_v43 = vadd.f32 %v2037_v4, %v8720_v32  ;;  %v4247_v8 = vld [vmem:[%s11780_s7 + $0x3f0] sm:$0xff]  ;;  %v4250_v46 = vld [vmem:[%s11780_s7 + $0x408] sm:$0xff] }
 0x605   :  { %v2069_v54 = vsel %vm618_vm15, %v12480_v25, %v12479_v50  ;;  %3167 = vrot.lane.b32.xlu1 %v8915_v34, %s12459_s14  ;;  %v2067_v37 = vsel %vm618_vm15, %v12479_v50, %v12481_v59  ;;  %v8938_v13 = vld [vmem:[%s11777_s10 + $0x38] sm:$0xff]  ;;  %v2036_v53 = vmul.f32 %v4237_v23, %v2022_v9  ;;  %v2039_v32 = vmul.f32 %v4240_v18, %v2016_v38  ;;  %v4251_v47 = vld [vmem:[%s11780_s7 + $0x410] sm:$0xff]  ;;  %v12482_v4 = vld [vmem:[#allocation46_spill] sm:$0xff]  ;;  %v8956_v23 = vpop.permute.xlu1 %2822 }
 0x606   :  { %3169 = vrot.lane.b32.xlu0 %v8938_v13, %s12459_s14  ;;  %v12483_v30 = vld [vmem:[#allocation134_spill] sm:$0xff]  ;;  %v12484_v50 = vld [vmem:[#allocation44_spill] sm:$0xff]  ;;  %12485 = vst [vmem:[#allocation102_spill] sm:$0xff] %v8956_v23  ;;  %v2081_v18 = vmul.f32 %v4241_v58, %v2070_v20  ;;  %v2084_v38 = vmul.f32 %v4244_v7, %v2064_v22  ;;  %v2086_v9 = vmul.f32 %v4246_v63, %v2069_v54  ;;  %v12486_v19 = vld [vmem:[#allocation135_spill] sm:$0xff]  ;;  %v8965_v6 = vpop.permute.xlu0 %2824  ;;  %vm2359_vm6 = vcmp.lt.s32.totalorder %v4832_v29, 3 }
 0x607   :  { %v2115_v28 = vsel %vm53_vm0, %v12483_v30, %v12482_v4  ;;  %v2117_v61 = vsel %vm53_vm0, %v12484_v50, %v12483_v30  ;;  %v4245_v27 = vld [vmem:[%s11780_s7 + $0x3e0] sm:$0xff]  ;;  %v2071_v24 = vsel %vm618_vm15, %v12486_v19, %v12480_v25  ;;  %12487 = vst [vmem:[#allocation7_spill] sm:$0xff] %v8965_v6  ;;  %v8968_v40 = vadd.f32 %v2038_v39, %v8771_v11  ;;  %v4248_v63 = vld [vmem:[%s11780_s7 + $0x3f8] sm:$0xff]  ;;  %vm12534_vm10 = vmmov %vm12528_vm2 }
 0x608   :  { %v8971_v30 = vadd.f32 %v2082_v14, %v8774_v56  ;;  %v8974_v58 = vadd.f32 %v2083_v42, %v8779_v55  ;;  %v2087_v7 = vmul.f32 %v4247_v8, %v2067_v37  ;;  %v2131_v22 = vmul.f32 %v4250_v46, %v2117_v61  ;;  %v4249_v56 = vld [vmem:[%s11780_s7 + $0x400] sm:$0xff]  ;;  %v12488_v55 = vld [vmem:[#allocation136_spill] sm:$0xff]  ;;  %v4252_v42 = vld [vmem:[%s11780_s7 + $0x418] sm:$0xff] }
 0x609   :  { %3171 = vrot.lane.b32.xlu1 %v12367_v44, %s12459_s14  ;;  %v2132_v20 = vmul.f32 %v4251_v47, %v2115_v28  ;;  %v2065_v11 = vsel %vm618_vm15, %v12481_v59, %v12486_v19  ;;  %v2119_v44 = vsel %vm53_vm0, %v12488_v55, %v12484_v50  ;;  %v8995_v39 = vld [vmem:[%s11777_s10 + $0x20] sm:$0xff]  ;;  %v9000_v14 = vadd.f32 %v2036_v53, %v8807_v52  ;;  %v9012_v54 = vpop.permute.xlu1 %2826  ;;  %v12492_v59 = vld [vmem:[#allocation45_spill] sm:$0xff]  ;;  %v12494_v46 = vld [vmem:[#allocation47_spill] sm:$0xff] }
 0x60a   :  { %3206 = vrot.lane.b32.xlu0 %v8995_v39, %s12489_s4  ;;  %v9003_v19 = vadd.f32 %v2039_v32, %v8810_v48  ;;  %v2085_v61 = vmul.f32 %v4245_v27, %v2071_v24  ;;  %v2113_v25 = vsel %vm53_vm0, %v12482_v4, %v12488_v55  ;;  %12490 = vst [vmem:[#allocation103_spill] sm:$0xff] %v9012_v54  ;;  %v4254_v24 = vld [vmem:[%s11780_s7 + $0x428] sm:$0xff]  ;;  %v12491_v27 = vld [vmem:[#allocation137_spill] sm:$0xff]  ;;  %v9030_v53 = vpop.permute.xlu0 %2861  ;;  %v12495_v4 = vld [vmem:[#allocation138_spill] sm:$0xff] }
 0x60b   :  { %v9015_v8 = vadd.f32 %v2081_v18, %v8813_v62  ;;  %v9018_v52 = vadd.f32 %v2084_v38, %v8816_v12  ;;  %v9021_v48 = vadd.f32 %v2086_v9, %v8821_v15  ;;  %v2118_v37 = vsel %vm53_vm0, %v12492_v59, %v12491_v27  ;;  %12493 = vst [vmem:[#allocation104_spill] sm:$0xff] %v9030_v53  ;;  %v4255_v12 = vld [vmem:[%s11780_s7 + $0x430] sm:$0xff]  ;;  %v4258_v47 = vld [vmem:[%s11780_s7 + $0x448] sm:$0xff]  ;;  %v9049_v18 = vld [vmem:[%s11777_s10 + $0x40] sm:$0xff] }
 0x60c   :  { %v2088_v32 = vmul.f32 %v4248_v63, %v2065_v11  ;;  %v2130_v62 = vmul.f32 %v4249_v56, %v2119_v44  ;;  %v2116_v15 = vsel %vm53_vm0, %v12491_v27, %v12494_v46  ;;  %v12496_v28 = vld [vmem:[#allocation48_spill] sm:$0xff]  ;;  %v9054_v38 = vadd.f32 %v2087_v7, %v8824_v26  ;;  %v9065_v56 = vld [vmem:[%s11777_s10 + $0x28] sm:$0xff]  ;;  %v12497_v7 = vld [vmem:[#allocation50_spill] sm:$0xff] }
 0x60d   :  { %v2166_v50 = vsel %vm82_vm1, %v12496_v28, %v12495_v4  ;;  %3208 = vrot.lane.b32.xlu1 %v9049_v18, %s12489_s4  ;;  %v9057_v9 = vadd.f32 %v2131_v22, %v8862_v21  ;;  %v9060_v63 = vadd.f32 %v2132_v20, %v8865_v35  ;;  %v2133_v11 = vmul.f32 %v4252_v42, %v2113_v25  ;;  %v4259_v21 = vld [vmem:[%s11780_s7 + $0x450] sm:$0xff]  ;;  %v4253_v22 = vld [vmem:[%s11780_s7 + $0x420] sm:$0xff]  ;;  %v12498_v20 = vld [vmem:[#allocation139_spill] sm:$0xff]  ;;  %v9086_v44 = vpop.permute.xlu1 %2863 }
 0x60e   :  { %3210 = vrot.lane.b32.xlu0 %v9065_v56, %s12489_s4  ;;  %v9070_v55 = vadd.f32 %v2085_v61, %v8868_v16  ;;  %v2135_v26 = vmul.f32 %v4254_v24, %v2118_v37  ;;  %v2164_v35 = vsel %vm82_vm1, %v12495_v4, %v12497_v7  ;;  %v2120_v16 = vsel %vm53_vm0, %v12498_v20, %v12492_v59  ;;  %v4256_v25 = vld [vmem:[%s11780_s7 + $0x438] sm:$0xff]  ;;  %v4257_v27 = vld [vmem:[%s11780_s7 + $0x440] sm:$0xff]  ;;  %v12500_v37 = vld [vmem:[#allocation140_spill] sm:$0xff] }
 0x60f   :  { %12499 = vst [vmem:[#allocation105_spill] sm:$0xff] %v9086_v44  ;;  %v2136_v61 = vmul.f32 %v4255_v12, %v2116_v15  ;;  %v2180_v42 = vmul.f32 %v4258_v47, %v2166_v50  ;;  %v2114_v24 = vsel %vm53_vm0, %v12494_v46, %v12498_v20  ;;  %v2168_v59 = vsel %vm82_vm1, %v12500_v37, %v12496_v28  ;;  %v9102_v12 = vpop.permute.xlu0 %2865  ;;  %v4260_v46 = vld [vmem:[%s11780_s7 + $0x458] sm:$0xff]  ;;  %v4262_v28 = vld [vmem:[%s11780_s7 + $0x468] sm:$0xff] }
 0x610   :  { %12501 = vst [vmem:[#allocation12_spill] sm:$0xff] %v9102_v12  ;;  %v9105_v15 = vadd.f32 %v2088_v32, %v8871_v45  ;;  %v9108_v47 = vadd.f32 %v2130_v62, %v8920_v2  ;;  %v2162_v4 = vsel %vm82_vm1, %v12497_v7, %v12500_v37  ;;  %v12502_v50 = vld [vmem:[#allocation141_spill] sm:$0xff]  ;;  %v9127_v2 = vadd.f32 %v2133_v11, %v8923_v1  ;;  %v4263_v7 = vld [vmem:[%s11780_s7 + $0x470] sm:$0xff]  ;;  %v12504_v37 = vld [vmem:[#allocation51_spill] sm:$0xff] }
 0x611   :  { %v12503_v20 = vld [vmem:[#allocation49_spill] sm:$0xff]  ;;  %3212 = vrot.lane.b32.xlu1 %v8843_v51, %s12489_s4  ;;  %v2181_v32 = vmul.f32 %v4259_v21, %v2164_v35  ;;  %v2134_v62 = vmul.f32 %v4253_v22, %v2120_v16  ;;  %v2165_v44 = vsel %vm82_vm1, %v12502_v50, %v12504_v37  ;;  %v9139_v53 = vadd.f32 %v2135_v26, %v8926_v43  ;;  %v4266_v11 = vld [vmem:[%s11780_s7 + $0x488] sm:$0xff]  ;;  %v12505_v21 = vld [vmem:[#allocation142_spill] sm:$0xff]  ;;  %v9148_v16 = vpop.permute.xlu1 %2867 }
 0x612   :  { %v2167_v45 = vsel %vm82_vm1, %v12503_v20, %v12502_v50  ;;  %3214 = vrot.lane.b32.xlu0 %v8857_v17, %s12489_s4  ;;  %v2137_v12 = vmul.f32 %v4256_v25, %v2114_v24  ;;  %v2179_v1 = vmul.f32 %v4257_v27, %v2168_v59  ;;  %v12506_v35 = vld [vmem:[#allocation52_spill] sm:$0xff]  ;;  %vm12507_vm0 = vcmp.lt.s32.totalorder %v4832_v29, 15  ;;  %12508 = vst [vmem:[#allocation14_spill] sm:$0xff] %v9148_v16  ;;  %v12510_v59 = vld [vmem:[#allocation54_spill] sm:$0xff] }
 0x613   :  { %v2215_v22 = vsel %vm12507_vm0, %v12506_v35, %v12505_v21  ;;  %v9151_v50 = vadd.f32 %v2136_v61, %v8968_v40  ;;  %v9154_v54 = vadd.f32 %v2180_v42, %v8971_v30  ;;  %v2182_v43 = vmul.f32 %v4260_v46, %v2162_v4  ;;  %v9156_v25 = vpop.permute.xlu0 %2869  ;;  %v4267_v27 = vld [vmem:[%s11780_s7 + $0x490] sm:$0xff]  ;;  %vm12511_vm11 = vmmov %vm12507_vm0  ;;  %v4261_v40 = vld [vmem:[%s11780_s7 + $0x460] sm:$0xff] }
 0x614   :  { %v2184_v26 = vmul.f32 %v4262_v28, %v2167_v45  ;;  %12509 = vst [vmem:[#allocation17_spill] sm:$0xff] %v9156_v25  ;;  %v2185_v24 = vmul.f32 %v4263_v7, %v2165_v44  ;;  %v2213_v16 = vsel %vm12511_vm11, %v12505_v21, %v12510_v59  ;;  %v4264_v30 = vld [vmem:[%s11780_s7 + $0x478] sm:$0xff]  ;;  %v12512_v61 = vld [vmem:[#allocation143_spill] sm:$0xff]  ;;  %v9183_v46 = vadd.f32 %v2181_v32, %v8974_v58  ;;  %v4265_v45 = vld [vmem:[%s11780_s7 + $0x480] sm:$0xff] }
 0x615   :  { %v2163_v44 = vsel %vm82_vm1, %v12504_v37, %v12512_v61  ;;  %v2169_v42 = vsel %vm82_vm1, %v12512_v61, %v12503_v20  ;;  %3216 = vrot.lane.b32.xlu1 %v8915_v34, %s12489_s4  ;;  %v9186_v4 = vadd.f32 %v2134_v62, %v9000_v14  ;;  %v2229_v28 = vmul.f32 %v4266_v11, %v2215_v22  ;;  %v12513_v7 = vld [vmem:[#allocation144_spill] sm:$0xff]  ;;  %vm12514_vm1 = vmmov %vm12507_vm0  ;;  %v4268_v14 = vld [vmem:[%s11780_s7 + $0x498] sm:$0xff] }
 0x616   :  { %v2217_v20 = vsel %vm12514_vm1, %v12513_v7, %v12506_v35  ;;  %3218 = vrot.lane.b32.xlu0 %v8938_v13, %s12489_s4  ;;  %v9198_v37 = vadd.f32 %v2137_v12, %v9003_v19  ;;  %v9201_v58 = vadd.f32 %v2179_v1, %v9015_v8  ;;  %vm12515_vm13 = vmmov %vm12507_vm0  ;;  %v4270_v62 = vld [vmem:[%s11780_s7 + $0x4a8] sm:$0xff]  ;;  %v12516_v11 = vld [vmem:[#allocation145_spill] sm:$0xff]  ;;  %v9217_v8 = vpop.permute.xlu1 %2871  ;;  %v2230_v12 = vmul.f32 %v4267_v27, %v2213_v16 }
 0x617   :  { %v2211_v32 = vsel %vm12515_vm13, %v12510_v59, %v12513_v7  ;;  %v12517_v21 = vld [vmem:[#allocation53_spill] sm:$0xff]  ;;  %vm12518_vm14 = vmmov %vm12507_vm0  ;;  %12519 = vst [vmem:[#allocation106_spill] sm:$0xff] %v9217_v8  ;;  %v2183_v1 = vmul.f32 %v4261_v40, %v2169_v42  ;;  %v2186_v35 = vmul.f32 %v4264_v30, %v2163_v44  ;;  %v4271_v22 = vld [vmem:[%s11780_s7 + $0x4b0] sm:$0xff]  ;;  %v9226_v7 = vpop.permute.xlu0 %2873  ;;  %v9229_v25 = vadd.f32 %v2182_v43, %v9018_v52 }
 0x618   :  { %v2216_v19 = vsel %vm12518_vm14, %v12517_v21, %v12516_v11  ;;  %v12520_v61 = vld [vmem:[#allocation55_spill] sm:$0xff]  ;;  %vm12521_vm15 = vmmov %vm12507_vm0  ;;  %12522 = vst [vmem:[#allocation11_spill] sm:$0xff] %v9226_v7  ;;  %v9232_v6 = vadd.f32 %v2184_v26, %v9021_v48  ;;  %v9235_v16 = vadd.f32 %v2185_v24, %v9054_v38  ;;  %v2228_v27 = vmul.f32 %v4265_v45, %v2217_v20  ;;  %v9240_v40 = vld [vmem:[%s11777_s10 + $0x58] sm:$0xff] }
 0x619   :  { %v2214_v59 = vsel %vm12521_vm15, %v12516_v11, %v12520_v61  ;;  %3220 = vrot.lane.b32.xlu1 %v9240_v40, %s12489_s4  ;;  %v9245_v30 = vadd.f32 %v2229_v28, %v9057_v9  ;;  %v2231_v52 = vmul.f32 %v4268_v14, %v2211_v32  ;;  %v2233_v43 = vmul.f32 %v4270_v62, %v2216_v19  ;;  %v4274_v48 = vld [vmem:[%s11780_s7 + $0x4c8] sm:$0xff]  ;;  %v12523_v38 = vld [vmem:[#allocation146_spill] sm:$0xff]  ;;  %v12524_v26 = vld [vmem:[#allocation56_spill] sm:$0xff] }
 0x61a   :  { %v2264_v24 = vsel %vm12525_vm8, %v12524_v26, %v12523_v38  ;;  %3255 = vrot.lane.b32.xlu0 %v8995_v39, %s12526_s30  ;;  %v2234_v44 = vmul.f32 %v4271_v22, %v2214_v59  ;;  %v4275_v9 = vld [vmem:[%s11780_s7 + $0x4d0] sm:$0xff]  ;;  %v12527_v42 = vld [vmem:[#allocation58_spill] sm:$0xff]  ;;  %v4272_v20 = vld [vmem:[%s11780_s7 + $0x4b8] sm:$0xff]  ;;  %v9278_v11 = vpop.permute.xlu1 %2875  ;;  %v9281_v19 = vadd.f32 %v2230_v12, %v9060_v63  ;;  %v9284_v22 = vadd.f32 %v2183_v1, %v9070_v55 }
 0x61b   :  { %v2262_v28 = vsel %vm12528_vm2, %v12523_v38, %v12527_v42  ;;  %v4269_v45 = vld [vmem:[%s11780_s7 + $0x4a0] sm:$0xff]  ;;  %v12529_v14 = vld [vmem:[#allocation147_spill] sm:$0xff]  ;;  %vm12530_vm4 = vmmov %vm12507_vm0  ;;  %12532 = vst [vmem:[#allocation107_spill] sm:$0xff] %v9278_v11  ;;  %v9287_v59 = vadd.f32 %v2186_v35, %v9105_v15  ;;  %v9299_v63 = vadd.f32 %v2228_v27, %v9108_v47  ;;  %v2278_v12 = vmul.f32 %v4274_v48, %v2264_v24 }
 0x61c   :  { %v2212_v32 = vsel %vm12530_vm4, %v12520_v61, %v12529_v14  ;;  %vm12531_vm5 = vmmov %vm12507_vm0  ;;  %v4273_v61 = vld [vmem:[%s11780_s7 + $0x4c0] sm:$0xff]  ;;  %v12533_v38 = vld [vmem:[#allocation148_spill] sm:$0xff]  ;;  %v2279_v27 = vmul.f32 %v4275_v9, %v2262_v28  ;;  %v9327_v11 = vadd.f32 %v2231_v52, %v9127_v2  ;;  %v9330_v7 = vadd.f32 %v2233_v43, %v9139_v53 }
 0x61d   :  { %v2218_v62 = vsel %vm12531_vm5, %v12529_v14, %v12517_v21  ;;  %v2266_v21 = vsel %vm12534_vm10, %v12533_v38, %v12524_v26  ;;  %v9296_v14 = vpop.permute.xlu0 %2910  ;;  %v4276_v55 = vld [vmem:[%s11780_s7 + $0x4d8] sm:$0xff]  ;;  %vm12536_vm0 = vmmov %vm12528_vm2  ;;  %v4278_v1 = vld [vmem:[%s11780_s7 + $0x4e8] sm:$0xff]  ;;  %3257 = vrot.lane.b32.xlu1 %v9049_v18, %s12526_s30  ;;  %v2235_v24 = vmul.f32 %v4272_v20, %v2212_v32  ;;  %v9333_v9 = vadd.f32 %v2234_v44, %v9151_v50 }
 0x61e   :  { %12535 = vst [vmem:[#allocation108_spill] sm:$0xff] %v9296_v14  ;;  %v2260_v15 = vsel %vm12536_vm0, %v12527_v42, %v12533_v38  ;;  %v12537_v35 = vld [vmem:[#allocation149_spill] sm:$0xff]  ;;  %vm12539_vm11 = vmmov %vm12536_vm0  ;;  %v2232_v48 = vmul.f32 %v4269_v45, %v2218_v62  ;;  %v4279_v14 = vld [vmem:[%s11780_s7 + $0x4f0] sm:$0xff]  ;;  %3259 = vrot.lane.b32.xlu0 %v9065_v56, %s12526_s30  ;;  %v2277_v28 = vmul.f32 %v4273_v61, %v2266_v21  ;;  %v9335_v45 = vpop.permute.xlu1 %2912  ;;  %vm2630_vm15 = vcmp.lt.s32.totalorder %v4832_v29, 125 }
 0x61f   :  { %v12538_v26 = vld [vmem:[#allocation57_spill] sm:$0xff]  ;;  %v12540_v42 = vld [vmem:[#allocation59_spill] sm:$0xff]  ;;  %vm12541_vm1 = vmmov %vm12536_vm0  ;;  %12542 = vst [vmem:[#allocation18_spill] sm:$0xff] %v9335_v45  ;;  %v2280_v20 = vmul.f32 %v4276_v55, %v2260_v15  ;;  %v9377_v45 = vadd.f32 %v2278_v12, %v9154_v54  ;;  %vm12612_vm5 = vcmp.lt.s32.totalorder %v4832_v29, 126  ;;  %vm2680_vm10 = vcmp.lt.s32.totalorder %v4832_v29, 115 }
 0x620   :  { %v2265_v47 = vsel %vm12539_vm11, %v12538_v26, %v12537_v35  ;;  %v2263_v38 = vsel %vm12541_vm1, %v12537_v35, %v12540_v42  ;;  %v4282_v62 = vld [vmem:[%s11780_s7 + $0x508] sm:$0xff]  ;;  %v4283_v2 = vld [vmem:[%s11780_s7 + $0x510] sm:$0xff]  ;;  %v12543_v52 = vld [vmem:[#allocation62_spill] sm:$0xff] }
 0x621   :  { %v2282_v32 = vmul.f32 %v4278_v1, %v2265_v47  ;;  %v12544_v35 = vld [vmem:[#allocation150_spill] sm:$0xff]  ;;  %v12545_v50 = vld [vmem:[#allocation60_spill] sm:$0xff]  ;;  %v9351_v44 = vpop.permute.xlu0 %2914  ;;  %v2283_v61 = vmul.f32 %v4279_v14, %v2263_v38  ;;  %v4280_v55 = vld [vmem:[%s11780_s7 + $0x4f8] sm:$0xff]  ;;  %3261 = vrot.lane.b32.xlu1 %v8843_v51, %s12526_s30  ;;  %v9419_v23 = vadd.f32 %v2280_v20, %v9229_v25 }
 0x622   :  { %v2312_v53 = vsel %vm2309_vm12, %v12544_v35, %v12543_v52  ;;  %v2314_v43 = vsel %vm2309_vm12, %v12545_v50, %v12544_v35  ;;  %12546 = vst [vmem:[#allocation109_spill] sm:$0xff] %v9351_v44  ;;  %v4277_v21 = vld [vmem:[%s11780_s7 + $0x4e0] sm:$0xff]  ;;  %v12547_v15 = vld [vmem:[#allocation151_spill] sm:$0xff]  ;;  %vm12548_vm13 = vmmov %vm12536_vm0  ;;  %3263 = vrot.lane.b32.xlu0 %v8857_v17, %s12526_s30 }
 0x623   :  { %v2261_v1 = vsel %vm12548_vm13, %v12540_v42, %v12547_v15  ;;  %vm12549_vm14 = vmmov %vm12536_vm0  ;;  %v4281_v14 = vld [vmem:[%s11780_s7 + $0x500] sm:$0xff]  ;;  %v12550_v38 = vld [vmem:[#allocation152_spill] sm:$0xff]  ;;  %v9380_v42 = vadd.f32 %v2279_v27, %v9183_v46  ;;  %v2328_v44 = vmul.f32 %v4282_v62, %v2314_v43  ;;  %v9404_v27 = vpop.permute.xlu1 %2916 }
 0x624   :  { %v2267_v47 = vsel %vm12549_vm14, %v12547_v15, %v12538_v26  ;;  %v2316_v35 = vsel %vm2309_vm12, %v12550_v38, %v12545_v50  ;;  %v9383_v26 = vadd.f32 %v2232_v48, %v9186_v4  ;;  %v9386_v15 = vadd.f32 %v2235_v24, %v9198_v37  ;;  %v4284_v8 = vld [vmem:[%s11780_s7 + $0x518] sm:$0xff]  ;;  %v4286_v46 = vld [vmem:[%s11780_s7 + $0x528] sm:$0xff]  ;;  %12553 = vst [vmem:[#allocation16_spill] sm:$0xff] %v9404_v27  ;;  %v4291_v25 = vld [vmem:[%s11780_s7 + $0x550] sm:$0xff] }
 0x625   :  { %v2329_v50 = vmul.f32 %v4283_v2, %v2312_v53  ;;  %v2310_v54 = vsel %vm2309_vm12, %v12543_v52, %v12550_v38  ;;  %v12551_v4 = vld [vmem:[#allocation153_spill] sm:$0xff]  ;;  %v2281_v48 = vmul.f32 %v4277_v21, %v2267_v47  ;;  %v2284_v24 = vmul.f32 %v4280_v55, %v2261_v1  ;;  %v4287_v2 = vld [vmem:[%s11780_s7 + $0x530] sm:$0xff]  ;;  %v12554_v53 = vld [vmem:[#allocation63_spill] sm:$0xff]  ;;  %v9413_v43 = vpop.permute.xlu0 %2918  ;;  %3265 = vrot.lane.b32.xlu1 %v8915_v34, %s12526_s30 }
 0x626   :  { %v12552_v37 = vld [vmem:[#allocation61_spill] sm:$0xff]  ;;  %v2327_v62 = vmul.f32 %v4281_v14, %v2316_v35  ;;  %v2313_v52 = vsel %vm2309_vm12, %v12551_v4, %v12554_v53  ;;  %12555 = vst [vmem:[#allocation110_spill] sm:$0xff] %v9413_v43  ;;  %v9416_v38 = vadd.f32 %v2277_v28, %v9201_v58  ;;  %v9422_v21 = vadd.f32 %v2282_v32, %v9232_v6  ;;  %v4290_v14 = vld [vmem:[%s11780_s7 + $0x548] sm:$0xff]  ;;  %v12556_v58 = vld [vmem:[#allocation66_spill] sm:$0xff] }
 0x627   :  { %v2315_v12 = vsel %vm2309_vm12, %v12552_v37, %v12551_v4  ;;  %v9425_v55 = vadd.f32 %v2283_v61, %v9235_v16  ;;  %v2330_v1 = vmul.f32 %v4284_v8, %v2310_v54  ;;  %v12557_v28 = vld [vmem:[#allocation154_spill] sm:$0xff]  ;;  %v12558_v16 = vld [vmem:[#allocation64_spill] sm:$0xff]  ;;  %3267 = vrot.lane.b32.xlu0 %v8938_v13, %s12526_s30  ;;  %v2336_v8 = vadd.f32 %v2328_v44, %v9245_v30  ;;  %v12559_v54 = vld [vmem:[#allocation155_spill] sm:$0xff]  ;;  %v9456_v4 = vpop.permute.xlu1 %2920 }
 0x628   :  { %v2332_v47 = vmul.f32 %v4286_v46, %v2315_v12  ;;  %v2362_v6 = vsel %vm2359_vm6, %v12557_v28, %v12556_v58  ;;  %v2364_v20 = vsel %vm2359_vm6, %v12558_v16, %v12557_v28  ;;  %v9447_v32 = vadd.f32 %v2329_v50, %v9281_v19  ;;  %v4285_v35 = vld [vmem:[%s11780_s7 + $0x520] sm:$0xff]  ;;  %12560 = vst [vmem:[#allocation15_spill] sm:$0xff] %v9456_v4  ;;  %v4288_v44 = vld [vmem:[%s11780_s7 + $0x538] sm:$0xff]  ;;  %v12571_v4 = vld [vmem:[#allocation67_spill] sm:$0xff] }
 0x629   :  { %v2333_v61 = vmul.f32 %v4287_v2, %v2313_v52  ;;  %v2317_v46 = vsel %vm2309_vm12, %v12559_v54, %v12552_v37  ;;  %v9459_v12 = vadd.f32 %v2281_v48, %v9284_v22  ;;  %v9462_v30 = vadd.f32 %v2284_v24, %v9287_v59  ;;  %v9474_v37 = vpop.permute.xlu0 %2922  ;;  %v4289_v59 = vld [vmem:[%s11780_s7 + $0x540] sm:$0xff]  ;;  %v4298_v24 = vld [vmem:[%s11780_s7 + $0x588] sm:$0xff]  ;;  %v12564_v52 = vld [vmem:[#allocation68_spill] sm:$0xff]  ;;  %3269 = vrot.lane.b32.xlu1 %v9240_v40, %s12526_s30  ;;  %s4667_s30 = smov 82  }
 0x62a   :  { %v9465_v19 = vadd.f32 %v2327_v62, %v9299_v63  ;;  %v2311_v50 = vsel %vm2309_vm12, %v12554_v53, %v12559_v54  ;;  %12561 = vst [vmem:[#allocation21_spill] sm:$0xff] %v9474_v37  ;;  %v2378_v2 = vmul.f32 %v4290_v14, %v2364_v20  ;;  %v2379_v22 = vmul.f32 %v4291_v25, %v2362_v6  ;;  %v12562_v63 = vld [vmem:[#allocation156_spill] sm:$0xff]  ;;  %v12563_v62 = vld [vmem:[#allocation158_spill] sm:$0xff]  ;;  %vm12617_vm1 = vmmov %vm12612_vm5 }
 0x62b   :  { %v2366_v48 = vsel %vm2359_vm6, %v12562_v63, %v12558_v16  ;;  %v2413_v53 = vsel %vm745_vm9, %v12564_v52, %v12563_v62  ;;  %v2338_v14 = vadd.f32 %v2330_v1, %v9327_v11  ;;  %v9494_v25 = vadd.f32 %v2332_v47, %v9330_v7  ;;  %v4299_v6 = vld [vmem:[%s11780_s7 + $0x590] sm:$0xff]  ;;  %v12565_v16 = vld [vmem:[#allocation70_spill] sm:$0xff]  ;;  %3304 = vrot.lane.b32.xlu0 %v8995_v39, %s4665_s25  ;;  %v4292_v7 = vld [vmem:[%s11780_s7 + $0x558] sm:$0xff] }
 0x62c   :  { %v2331_v28 = vmul.f32 %v4285_v35, %v2317_v46  ;;  %v2411_v20 = vsel %vm745_vm9, %v12563_v62, %v12565_v16  ;;  %v9506_v54 = vadd.f32 %v2333_v61, %v9333_v9  ;;  %v2334_v11 = vmul.f32 %v4288_v44, %v2311_v50  ;;  %v4294_v47 = vld [vmem:[%s11780_s7 + $0x568] sm:$0xff]  ;;  %v12566_v35 = vld [vmem:[#allocation157_spill] sm:$0xff]  ;;  %v9522_v61 = vpop.permute.xlu1 %2924  ;;  %v4297_v62 = vld [vmem:[%s11780_s7 + $0x580] sm:$0xff] }
 0x62d   :  { %v2360_v1 = vsel %vm2359_vm6, %v12556_v58, %v12562_v63  ;;  %v12567_v46 = vld [vmem:[#allocation65_spill] sm:$0xff]  ;;  %12568 = vst [vmem:[#allocation111_spill] sm:$0xff] %v9522_v61  ;;  %v2377_v44 = vmul.f32 %v4289_v59, %v2366_v48  ;;  %v2427_v50 = vmul.f32 %v4298_v24, %v2413_v53  ;;  %v12569_v63 = vld [vmem:[#allocation160_spill] sm:$0xff]  ;;  %v9538_v59 = vpop.permute.xlu0 %2959  ;;  %v9541_v48 = vadd.f32 %v2378_v2, %v9377_v45  ;;  %vm12618_vm13 = vmmov %vm12617_vm1 }
 0x62e   :  { %v2365_v9 = vsel %vm2359_vm6, %v12567_v46, %v12566_v35  ;;  %v4300_v58 = vld [vmem:[%s11780_s7 + $0x598] sm:$0xff]  ;;  %v2409_v37 = vsel %vm745_vm9, %v12565_v16, %v12569_v63  ;;  %v2415_v61 = vsel %vm745_vm9, %v12569_v63, %v12564_v52  ;;  %12570 = vst [vmem:[#allocation112_spill] sm:$0xff] %v9538_v59  ;;  %v9544_v24 = vadd.f32 %v2379_v22, %v9380_v42  ;;  %v4295_v53 = vld [vmem:[%s11780_s7 + $0x570] sm:$0xff]  ;;  %v4293_v42 = vld [vmem:[%s11780_s7 + $0x560] sm:$0xff] }
 0x62f   :  { %v2363_v16 = vsel %vm2359_vm6, %v12566_v35, %v12571_v4  ;;  %v2428_v43 = vmul.f32 %v4299_v6, %v2411_v20  ;;  %3306 = vrot.lane.b32.xlu1 %v9049_v18, %s4665_s25  ;;  %v9556_v52 = vadd.f32 %v2331_v28, %v9383_v26  ;;  %v2380_v45 = vmul.f32 %v4292_v7, %v2360_v1  ;;  %v12572_v22 = vld [vmem:[#allocation159_spill] sm:$0xff]  ;;  %v4296_v26 = vld [vmem:[%s11780_s7 + $0x578] sm:$0xff]  ;;  %vm12620_vm14 = vmmov %vm12617_vm1 }
 0x630   :  { %v2382_v2 = vmul.f32 %v4294_v47, %v2365_v9  ;;  %v2367_v63 = vsel %vm2359_vm6, %v12572_v22, %v12567_v46  ;;  %3308 = vrot.lane.b32.xlu0 %v9065_v56, %s4665_s25  ;;  %v9568_v6 = vadd.f32 %v2334_v11, %v9386_v15  ;;  %v2361_v28 = vsel %vm2359_vm6, %v12571_v4, %v12572_v22  ;;  %v9577_v1 = vpop.permute.xlu1 %2961  ;;  %v4302_v15 = vld [vmem:[%s11780_s7 + $0x5a8] sm:$0xff]  ;;  %v12575_v9 = vld [vmem:[#allocation69_spill] sm:$0xff]  ;;  %vm12614_vm6 = vmmov %vm12612_vm5 }
 0x631   :  { %v2426_v20 = vmul.f32 %v4297_v62, %v2415_v61  ;;  %v2429_v7 = vmul.f32 %v4300_v58, %v2409_v37  ;;  %12573 = vst [vmem:[#allocation113_spill] sm:$0xff] %v9577_v1  ;;  %v9580_v47 = vadd.f32 %v2377_v44, %v9416_v38  ;;  %v2383_v35 = vmul.f32 %v4295_v53, %v2363_v16  ;;  %v12574_v11 = vld [vmem:[#allocation167_spill] sm:$0xff]  ;;  %v9589_v27 = vpop.permute.xlu0 %2963  ;;  %v4303_v38 = vld [vmem:[%s11780_s7 + $0x5b0] sm:$0xff]  ;;  %v4301_v16 = vld [vmem:[%s11780_s7 + $0x5a0] sm:$0xff] }
 0x632   :  { %v2435_v46 = vadd.f32 %v2427_v50, %v2336_v8  ;;  %v2414_v59 = vsel %vm745_vm9, %v12575_v9, %v12574_v11  ;;  %12576 = vst [vmem:[#allocation20_spill] sm:$0xff] %v9589_v27  ;;  %v2436_v4 = vadd.f32 %v2428_v43, %v9447_v32  ;;  %v2381_v37 = vmul.f32 %v4293_v42, %v2367_v63  ;;  %v12577_v61 = vld [vmem:[#allocation71_spill] sm:$0xff]  ;;  %v12578_v50 = vld [vmem:[#allocation170_spill] sm:$0xff]  ;;  %v12579_v62 = vld [vmem:[#allocation72_spill] sm:$0xff] }
 0x633   :  { %v2412_v8 = vsel %vm745_vm9, %v12574_v11, %v12577_v61  ;;  %v4306_v44 = vld [vmem:[%s11780_s7 + $0x5c8] sm:$0xff]  ;;  %v2462_v58 = vsel %vm142_vm3, %v12579_v62, %v12578_v50  ;;  %3310 = vrot.lane.b32.xlu1 %v8843_v51, %s4665_s25  ;;  %v9609_v43 = vadd.f32 %v2380_v45, %v9419_v23  ;;  %v9612_v32 = vadd.f32 %v2382_v2, %v9422_v21  ;;  %v12580_v42 = vld [vmem:[#allocation172_spill] sm:$0xff]  ;;  %v4304_v21 = vld [vmem:[%s11780_s7 + $0x5b8] sm:$0xff] }
 0x634   :  { %v2384_v53 = vmul.f32 %v4296_v26, %v2361_v28  ;;  %v2416_v22 = vsel %vm745_vm9, %v12580_v42, %v12575_v9  ;;  %3312 = vrot.lane.b32.xlu0 %v8857_v17, %s4665_s25  ;;  %v2434_v63 = vadd.f32 %v2426_v20, %v9465_v19  ;;  %v2437_v23 = vadd.f32 %v2429_v7, %v2338_v14  ;;  %v9631_v26 = vpop.permute.xlu1 %2965  ;;  %v4307_v19 = vld [vmem:[%s11780_s7 + $0x5d0] sm:$0xff]  ;;  %v12582_v14 = vld [vmem:[#allocation74_spill] sm:$0xff] }
 0x635   :  { %v2431_v45 = vmul.f32 %v4302_v15, %v2414_v59  ;;  %v2410_v2 = vsel %vm745_vm9, %v12577_v61, %v12580_v42  ;;  %12581 = vst [vmem:[#allocation22_spill] sm:$0xff] %v9631_v26  ;;  %v9634_v28 = vadd.f32 %v2383_v35, %v9425_v55  ;;  %v2432_v11 = vmul.f32 %v4303_v38, %v2412_v8  ;;  %v9643_v7 = vpop.permute.xlu0 %2967  ;;  %v12584_v61 = vld [vmem:[#allocation163_spill] sm:$0xff]  ;;  %v12585_v35 = vld [vmem:[#allocation165_spill] sm:$0xff]  ;;  %v12588_v42 = vld [vmem:[#allocation164_spill] sm:$0xff] }
 0x636   :  { %v2460_v59 = vsel %vm142_vm3, %v12578_v50, %v12582_v14  ;;  %v2476_v20 = vmul.f32 %v4306_v44, %v2462_v58  ;;  %12583 = vst [vmem:[#allocation114_spill] sm:$0xff] %v9643_v7  ;;  %v9646_v15 = vadd.f32 %v2381_v37, %v9459_v12  ;;  %v2430_v9 = vmul.f32 %v4301_v16, %v2416_v22  ;;  %v4305_v44 = vld [vmem:[%s11780_s7 + $0x5c0] sm:$0xff]  ;;  %v4308_v12 = vld [vmem:[%s11780_s7 + $0x5d8] sm:$0xff] }
 0x637   :  { %v9649_v55 = vadd.f32 %v12584_v61, %v2435_v46  ;;  %v9652_v38 = vadd.f32 %v12585_v35, %v2436_v4  ;;  %3314 = vrot.lane.b32.xlu1 %v8915_v34, %s4665_s25  ;;  %v9657_v8 = vadd.f32 %v2384_v53, %v9462_v30  ;;  %v2433_v50 = vmul.f32 %v4304_v21, %v2410_v2  ;;  %v12586_v46 = vld [vmem:[#allocation173_spill] sm:$0xff]  ;;  %v12587_v53 = vld [vmem:[#allocation162_spill] sm:$0xff]  ;;  %v12594_v35 = vld [vmem:[#allocation176_spill] sm:$0xff] }
 0x638   :  { %v2458_v4 = vsel %vm142_vm3, %v12582_v14, %v12586_v46  ;;  %v2464_v30 = vsel %vm142_vm3, %v12586_v46, %v12579_v62  ;;  %3316 = vrot.lane.b32.xlu0 %v8938_v13, %s4665_s25  ;;  %v2439_v37 = vadd.f32 %v2431_v45, %v9494_v25  ;;  %v2477_v58 = vmul.f32 %v4307_v19, %v2460_v59  ;;  %v9682_v21 = vpop.permute.xlu1 %2969  ;;  %v4310_v62 = vld [vmem:[%s11780_s7 + $0x5e8] sm:$0xff]  ;;  %v4311_v25 = vld [vmem:[%s11780_s7 + $0x5f0] sm:$0xff]  ;;  %v12592_v19 = vld [vmem:[#allocation73_spill] sm:$0xff] }
 0x639   :  { %v9677_v16 = vadd.f32 %v12587_v53, %v2434_v63  ;;  %v9680_v22 = vadd.f32 %v12588_v42, %v2437_v23  ;;  %12589 = vst [vmem:[#allocation19_spill] sm:$0xff] %v9682_v21  ;;  %v2440_v2 = vadd.f32 %v2432_v11, %v9506_v54  ;;  %v2484_v14 = vadd.f32 %v2476_v20, %v9541_v48  ;;  %v12590_v45 = vld [vmem:[#allocation75_spill] sm:$0xff]  ;;  %v9700_v11 = vpop.permute.xlu0 %2971  ;;  %v4321_v61 = vld [vmem:[%s11780_s7 + $0x640] sm:$0xff]  ;;  %v12595_v46 = vld [vmem:[#allocation76_spill] sm:$0xff] }
 0x63a   :  { %v12591_v63 = vld [vmem:[#allocation175_spill] sm:$0xff]  ;;  %12593 = vst [vmem:[#allocation25_spill] sm:$0xff] %v9700_v11  ;;  %v2438_v48 = vadd.f32 %v2430_v9, %v9556_v52  ;;  %v2475_v59 = vmul.f32 %v4305_v44, %v2464_v30  ;;  %v2478_v20 = vmul.f32 %v4308_v12, %v2458_v4  ;;  %vm12596_vm9 = vcmp.lt.s32.totalorder %v4832_v29, 127  ;;  %v12597_v9 = vld [vmem:[#allocation78_spill] sm:$0xff]  ;;  %v4312_v4 = vld [vmem:[%s11780_s7 + $0x5f8] sm:$0xff] }
 0x63b   :  { %v2461_v23 = vsel %vm142_vm3, %v12591_v63, %v12590_v45  ;;  %v2463_v54 = vsel %vm142_vm3, %v12592_v19, %v12591_v63  ;;  %v2536_v53 = vsel %vm12596_vm9, %v12595_v46, %v12594_v35  ;;  %3318 = vrot.lane.b32.xlu1 %v9240_v40, %s4665_s25  ;;  %v2441_v42 = vadd.f32 %v2433_v50, %v9568_v6  ;;  %v4322_v52 = vld [vmem:[%s11780_s7 + $0x648] sm:$0xff]  ;;  %vm12598_vm12 = vmmov %vm12596_vm9  ;;  %v4309_v12 = vld [vmem:[%s11780_s7 + $0x5e0] sm:$0xff]  ;;  %s4666_s25 = smov 83  }
 0x63c   :  { %v2534_v44 = vsel %vm12598_vm12, %v12594_v35, %v12597_v9  ;;  %v2459_v6 = vsel %vm142_vm3, %v12590_v45, %v7749_v31  ;;  %v2465_v50 = vsel %vm142_vm3, %v7749_v31, %v12592_v19  ;;  %3354 = vrot.lane.b32.xlu0 %v8995_v39, %s4666_s25  ;;  %v2480_v30 = vmul.f32 %v4310_v62, %v2463_v54  ;;  %v4323_v35 = vld [vmem:[%s11780_s7 + $0x650] sm:$0xff]  ;;  %v4324_v45 = vld [vmem:[%s11780_s7 + $0x658] sm:$0xff]  ;;  %vm12599_vm3 = vmmov %vm12596_vm9  ;;  %v9751_v62 = vpop.permute.xlu1 %2973 }
 0x63d   :  { %v2481_v63 = vmul.f32 %v4311_v25, %v2461_v23  ;;  %v2532_v31 = vsel %vm12599_vm3, %v12597_v9, %v7759_v49  ;;  %vm12600_vm8 = vmmov %vm12599_vm3  ;;  %12601 = vst [vmem:[#allocation115_spill] sm:$0xff] %v9751_v62  ;;  %v2485_v25 = vadd.f32 %v2477_v58, %v9544_v24  ;;  %v2549_v23 = vmul.f32 %v4321_v61, %v2536_v53  ;;  %v12602_v54 = vld [vmem:[#allocation168_spill] sm:$0xff]  ;;  %v12603_v21 = vld [vmem:[#allocation169_spill] sm:$0xff]  ;;  %v9760_v1 = vpop.permute.xlu0 %3009 }
 0x63e   :  { %v2538_v19 = vsel %vm12600_vm8, %v7759_v49, %v12595_v46  ;;  %v9755_v11 = vadd.f32 %v12602_v54, %v2439_v37  ;;  %v9758_v7 = vadd.f32 %v12603_v21, %v2440_v2  ;;  %v2550_v26 = vmul.f32 %v4322_v52, %v2534_v44  ;;  %v4325_v49 = vld [vmem:[%s11780_s7 + $0x660] sm:$0xff]  ;;  %v12604_v46 = vld [vmem:[#allocation77_spill] sm:$0xff]  ;;  %vm12605_vm2 = vmmov %vm12599_vm3 }
 0x63f   :  { %v2479_v9 = vmul.f32 %v4309_v12, %v2465_v50  ;;  %v2482_v27 = vmul.f32 %v4312_v4, %v2459_v6  ;;  %v2537_v24 = vsel %vm12605_vm2, %v12604_v46, %v7820_v3  ;;  %3356 = vrot.lane.b32.xlu1 %v9049_v18, %s4666_s25  ;;  %v2483_v37 = vadd.f32 %v2475_v59, %v9580_v47  ;;  %v12606_v52 = vld [vmem:[#allocation166_spill] sm:$0xff]  ;;  %v12607_v12 = vld [vmem:[#allocation171_spill] sm:$0xff]  ;;  %vm12610_vm4 = vmmov %vm12605_vm2 }
 0x640   :  { %v2486_v58 = vadd.f32 %v2478_v20, %v9609_v43  ;;  %v2551_v21 = vmul.f32 %v4323_v35, %v2532_v31  ;;  %v2552_v2 = vmul.f32 %v4324_v45, %v2538_v19  ;;  %3358 = vrot.lane.b32.xlu0 %v9065_v56, %s4666_s25  ;;  %v2488_v61 = vadd.f32 %v2480_v30, %v9612_v32  ;;  %v9785_v6 = vpop.permute.xlu1 %3011  ;;  %v4326_v43 = vld [vmem:[%s11780_s7 + $0x668] sm:$0xff]  ;;  %v12611_v20 = vld [vmem:[#allocation80_spill] sm:$0xff]  ;;  %v12613_v45 = vld [vmem:[#allocation82_spill] sm:$0xff] }
 0x641   :  { %v9777_v53 = vadd.f32 %v2481_v63, %v9634_v28  ;;  %v9780_v44 = vadd.f32 %v12606_v52, %v2438_v48  ;;  %v9783_v4 = vadd.f32 %v12607_v12, %v2441_v42  ;;  %12608 = vst [vmem:[#allocation116_spill] sm:$0xff] %v9785_v6  ;;  %v9787_v47 = vadd.f32 %v2549_v23, %v2483_v37  ;;  %v12609_v59 = vld [vmem:[#allocation79_spill] sm:$0xff]  ;;  %v4329_v48 = vld [vmem:[%s11780_s7 + $0x680] sm:$0xff]  ;;  %v9803_v50 = vpop.permute.xlu0 %3013  ;;  %vm12615_vm0 = vmmov %vm12605_vm2 }
 0x642   :  { %v2535_v32 = vsel %vm12610_vm4, %v7820_v3, %v12609_v59  ;;  %v2553_v28 = vmul.f32 %v4325_v49, %v2537_v24  ;;  %v2585_v42 = vsel %vm12612_vm5, %v12611_v20, %v7832_v5  ;;  %v9805_v30 = vadd.f32 %v2550_v26, %v2484_v14  ;;  %v4330_v3 = vld [vmem:[%s11780_s7 + $0x688] sm:$0xff]  ;;  %vm12616_vm11 = vmmov %vm12615_vm0  ;;  %v4332_v23 = vld [vmem:[%s11780_s7 + $0x698] sm:$0xff] }
 0x643   :  { %v2487_v63 = vadd.f32 %v2479_v9, %v9646_v15  ;;  %v2490_v35 = vadd.f32 %v2482_v27, %v9657_v8  ;;  %v2583_v31 = vsel %vm12614_vm6, %v7832_v5, %v12613_v45  ;;  %3360 = vrot.lane.b32.xlu1 %v8843_v51, %s4666_s25  ;;  %v9819_v26 = vadd.f32 %v2551_v21, %v2485_v25  ;;  %v4327_v27 = vld [vmem:[%s11780_s7 + $0x670] sm:$0xff]  ;;  %v4328_v15 = vld [vmem:[%s11780_s7 + $0x678] sm:$0xff]  ;;  %v4334_v24 = vld [vmem:[%s11780_s7 + $0x6a8] sm:$0xff] }
 0x644   :  { %v9821_v14 = vadd.f32 %v2552_v2, %v2486_v58  ;;  %v2533_v5 = vsel %vm12615_vm0, %v12609_v59, %v7894_v36  ;;  %v2539_v51 = vsel %vm12616_vm11, %v7894_v36, %v12604_v46  ;;  %3362 = vrot.lane.b32.xlu0 %v8857_v17, %s4666_s25  ;;  %v2554_v8 = vmul.f32 %v4326_v43, %v2535_v32  ;;  %v4331_v25 = vld [vmem:[%s11780_s7 + $0x690] sm:$0xff]  ;;  %v9853_v17 = vpop.permute.xlu1 %3015  ;;  %v4333_v46 = vld [vmem:[%s11780_s7 + $0x6a0] sm:$0xff]  ;;  %v12619_v37 = vld [vmem:[#allocation83_spill] sm:$0xff] }
 0x645   :  { %v2598_v19 = vmul.f32 %v4329_v48, %v2585_v42  ;;  %v2581_v54 = vsel %vm12617_vm1, %v12613_v45, %v7906_v60  ;;  %v2587_v36 = vsel %vm12618_vm13, %v7906_v60, %v12611_v20  ;;  %v9855_v9 = vadd.f32 %v2553_v28, %v2487_v63  ;;  %v12621_v60 = vld [vmem:[#allocation81_spill] sm:$0xff]  ;;  %vm12622_vm9 = vmmov %vm12617_vm1  ;;  %v9871_v2 = vpop.permute.xlu0 %3017  ;;  %v4337_v43 = vld [vmem:[%s11780_s7 + $0x6c0] sm:$0xff] }
 0x646   :  { %v2599_v49 = vmul.f32 %v4330_v3, %v2583_v31  ;;  %v2584_v58 = vsel %vm12620_vm14, %v7939_v0, %v12619_v37  ;;  %v2586_v21 = vsel %vm12622_vm9, %v12621_v60, %v7939_v0  ;;  %12623 = vst [vmem:[#allocation26_spill] sm:$0xff] %v9871_v2  ;;  %v2555_v52 = vmul.f32 %v4327_v27, %v2533_v5  ;;  %v4338_v59 = vld [vmem:[%s11780_s7 + $0x6c8] sm:$0xff]  ;;  %v12624_v32 = vld [vmem:[#allocation86_spill] sm:$0xff]  ;;  %v12625_v48 = vld [vmem:[#allocation84_spill] sm:$0xff] }
 0x647   :  { %v2556_v12 = vmul.f32 %v4328_v15, %v2539_v51  ;;  %v2633_v28 = vsel %vm2630_vm15, %v7954_v10, %v12624_v32  ;;  %v2635_v0 = vsel %vm2630_vm15, %v12625_v48, %v7954_v10  ;;  %3364 = vrot.lane.b32.xlu1 %v8915_v34, %s4666_s25  ;;  %v2600_v20 = vmul.f32 %v4331_v25, %v2581_v54  ;;  %v4335_v63 = vld [vmem:[%s11780_s7 + $0x6b0] sm:$0xff]  ;;  %v4336_v3 = vld [vmem:[%s11780_s7 + $0x6b8] sm:$0xff]  ;;  %v12626_v45 = vld [vmem:[#allocation91_spill] sm:$0xff] }
 0x648   :  { %v2601_v42 = vmul.f32 %v4332_v23, %v2587_v36  ;;  %vm12627_vm12 = vmmov %vm12617_vm1  ;;  %3366 = vrot.lane.b32.xlu0 %v8938_v13, %s4666_s25  ;;  %v9905_v27 = vadd.f32 %v2554_v8, %v2488_v61  ;;  %v2602_v15 = vmul.f32 %v4333_v46, %v2586_v21  ;;  %v2603_v5 = vmul.f32 %v4334_v24, %v2584_v58  ;;  %v4339_v51 = vld [vmem:[%s11780_s7 + $0x6d0] sm:$0xff]  ;;  %v12629_v25 = vld [vmem:[#allocation174_spill] sm:$0xff]  ;;  %v9914_v54 = vpop.permute.xlu1 %3019 }
 0x649   :  { %v2582_v31 = vsel %vm12627_vm12, %v12619_v37, %v12626_v45  ;;  %vm12628_vm3 = vmmov %vm12617_vm1  ;;  %v2631_v23 = vsel %vm2630_vm15, %v12624_v32, %v12629_v25  ;;  %12630 = vst [vmem:[#allocation117_spill] sm:$0xff] %v9914_v54  ;;  %v9917_v36 = vadd.f32 %v2598_v19, %v9677_v16  ;;  %v9920_v37 = vadd.f32 %v2599_v49, %v9649_v55  ;;  %v9922_v46 = vpop.permute.xlu0 %3021  ;;  %v4340_v19 = vld [vmem:[%s11780_s7 + $0x6d8] sm:$0xff]  ;;  %v4341_v49 = vld [vmem:[%s11780_s7 + $0x6e0] sm:$0xff] }
 0x64a   :  { %v2588_v10 = vsel %vm12628_vm3, %v12626_v45, %v12621_v60  ;;  %v2648_v61 = vmul.f32 %v4337_v43, %v2635_v0  ;;  %v2649_v8 = vmul.f32 %v4338_v59, %v2633_v28  ;;  %12631 = vst [vmem:[#allocation24_spill] sm:$0xff] %v9922_v46  ;;  %v9925_v24 = vadd.f32 %v2555_v52, %v9777_v53  ;;  %v4342_v52 = vld [vmem:[%s11780_s7 + $0x6e8] sm:$0xff]  ;;  %v12633_v43 = vld [vmem:[#allocation177_spill] sm:$0xff] }
 0x64b   :  { %v9927_v58 = vadd.f32 %v2556_v12, %v2490_v35  ;;  %v2604_v60 = vmul.f32 %v4335_v63, %v2582_v31  ;;  %v2605_v21 = vmul.f32 %v4336_v3, %v2588_v10  ;;  %3368 = vrot.lane.b32.xlu1 %v9240_v40, %s4666_s25  ;;  %v9932_v16 = vadd.f32 %v2600_v20, %v9652_v38  ;;  %v12632_v12 = vld [vmem:[#allocation87_spill] sm:$0xff]  ;;  %v12637_v20 = vld [vmem:[#allocation88_spill] sm:$0xff] }
 0x64c   :  { %v9935_v55 = vadd.f32 %v2601_v42, %v9680_v22  ;;  %v2637_v53 = vsel %vm2630_vm15, %v12629_v25, %v12625_v48  ;;  %v2650_v35 = vmul.f32 %v4339_v51, %v2631_v23  ;;  %3404 = vrot.lane.b32.xlu0 %v8995_v39, %s4667_s30  ;;  %v9947_v38 = vadd.f32 %v2602_v15, %v9780_v44  ;;  %v12634_v39 = vld [vmem:[#allocation85_spill] sm:$0xff]  ;;  %v4345_v48 = vld [vmem:[%s11780_s7 + $0x700] sm:$0xff]  ;;  %v12636_v0 = vld [vmem:[#allocation179_spill] sm:$0xff] }
 0x64d   :  { %v9950_v22 = vadd.f32 %v2603_v5, %v9755_v11  ;;  %v2634_v59 = vsel %vm2630_vm15, %v12633_v43, %v12632_v12  ;;  %v2636_v44 = vsel %vm2630_vm15, %v12634_v39, %v12633_v43  ;;  %v9966_v11 = vpop.permute.xlu1 %3023  ;;  %v9969_v32 = vadd.f32 %v2648_v61, %v9787_v47  ;;  %v4343_v63 = vld [vmem:[%s11780_s7 + $0x6f0] sm:$0xff]  ;;  %v4344_v15 = vld [vmem:[%s11780_s7 + $0x6f8] sm:$0xff]  ;;  %v12640_v23 = vld [vmem:[#allocation178_spill] sm:$0xff] }
 0x64e   :  { %12635 = vst [vmem:[#allocation118_spill] sm:$0xff] %v9966_v11  ;;  %v9972_v28 = vadd.f32 %v2649_v8, %v9805_v30  ;;  %v2685_v42 = vsel %vm2680_vm10, %v12637_v20, %v12636_v0  ;;  %v12638_v3 = vld [vmem:[#allocation92_spill] sm:$0xff]  ;;  %v9988_v30 = vpop.permute.xlu0 %3059  ;;  %v9991_v45 = vadd.f32 %v2604_v60, %v9758_v7  ;;  %v9994_v31 = vadd.f32 %v2605_v21, %v9783_v4  ;;  %v4346_v4 = vld [vmem:[%s11780_s7 + $0x708] sm:$0xff]  ;;  %v12641_v21 = vld [vmem:[#allocation90_spill] sm:$0xff] }
 0x64f   :  { %v2632_v47 = vsel %vm2630_vm15, %v12632_v12, %v12638_v3  ;;  %12639 = vst [vmem:[#allocation23_spill] sm:$0xff] %v9988_v30  ;;  %v2651_v10 = vmul.f32 %v4340_v19, %v2637_v53  ;;  %v2638_v5 = vsel %vm2630_vm15, %v12638_v3, %v12634_v39  ;;  %3406 = vrot.lane.b32.xlu1 %v9049_v18, %s4667_s30  ;;  %v4349_v18 = vld [vmem:[%s11780_s7 + $0x720] sm:$0xff]  ;;  %v12642_v19 = vld [vmem:[#allocation161_spill] sm:$0xff]  ;;  %v4347_v12 = vld [vmem:[%s11780_s7 + $0x710] sm:$0xff]  ;;  %vm12650_vm15 = vcmp.lt.s32.totalorder %v4832_v29, 114 }
 0x650   :  { %v10006_v51 = vadd.f32 %v2650_v35, %v9819_v26  ;;  %v2652_v7 = vmul.f32 %v4341_v49, %v2636_v44  ;;  %v2653_v25 = vmul.f32 %v4342_v52, %v2634_v59  ;;  %v2683_v61 = vsel %vm2680_vm10, %v12636_v0, %v12640_v23  ;;  %3408 = vrot.lane.b32.xlu0 %v9065_v56, %s4667_s30  ;;  %v4350_v26 = vld [vmem:[%s11780_s7 + $0x728] sm:$0xff]  ;;  %v12643_v35 = vld [vmem:[#allocation89_spill] sm:$0xff]  ;;  %vm12653_vm8 = vmmov %vm12650_vm15 }
 0x651   :  { %v2698_v8 = vmul.f32 %v4345_v48, %v2685_v42  ;;  %v2654_v60 = vmul.f32 %v4343_v63, %v2632_v47  ;;  %v2684_v53 = vsel %vm2680_vm10, %v12642_v19, %v12641_v21  ;;  %v2686_v56 = vsel %vm2680_vm10, %v12643_v35, %v12642_v19  ;;  %v10031_v49 = vpop.permute.xlu1 %3061  ;;  %v4348_v43 = vld [vmem:[%s11780_s7 + $0x718] sm:$0xff]  ;;  %v4351_v48 = vld [vmem:[%s11780_s7 + $0x730] sm:$0xff]  ;;  %vm12656_vm2 = vmmov %vm12653_vm8 }
 0x652   :  { %12644 = vst [vmem:[#allocation33_spill] sm:$0xff] %v10031_v49  ;;  %v2655_v52 = vmul.f32 %v4344_v15, %v2638_v5  ;;  %v12645_v59 = vld [vmem:[#allocation29_spill] sm:$0xff]  ;;  %v10054_v63 = vpop.permute.xlu0 %3063  ;;  %v2699_v3 = vmul.f32 %v4346_v4, %v2683_v61  ;;  %v4353_v15 = vld [vmem:[%s11780_s7 + $0x740] sm:$0xff]  ;;  %v12652_v19 = vld [vmem:[#allocation4_spill] sm:$0xff]  ;;  %v2660_v49 = vadd.f32 %v2652_v7, %v9855_v9  ;;  %v2702_v30 = vmul.f32 %v4349_v18, %v2686_v56 }
 0x653   :  { %v2681_v39 = vsel %vm2680_vm10, %v12640_v23, %v12645_v59  ;;  %v2687_v44 = vsel %vm2680_vm10, %v12645_v59, %v12637_v20  ;;  %v12646_v0 = vld [vmem:[#allocation93_spill] sm:$0xff]  ;;  %12647 = vst [vmem:[#allocation119_spill] sm:$0xff] %v10054_v63  ;;  %v12648_v5 = vld [vmem:[#allocation94_spill] sm:$0xff]  ;;  %v2703_v63 = vmul.f32 %v4350_v26, %v2684_v53  ;;  %v10091_v11 = vld [vmem:[%s11777_s10 + $0x30] sm:$0xff]  ;;  %v10096_v46 = vadd.f32 %v2653_v25, %v9905_v27 }
 0x654   :  { %v2682_v42 = vsel %vm2680_vm10, %v12641_v21, %v12646_v0  ;;  %v4352_v47 = vld [vmem:[%s11780_s7 + $0x738] sm:$0xff]  ;;  %v2688_v20 = vsel %vm2680_vm10, %v12646_v0, %v12643_v35  ;;  %v12649_v23 = vld [vmem:[#allocation30_spill] sm:$0xff]  ;;  %v10080_v35 = vld [vmem:[%s11777_s10 + $0x48] sm:$0xff]  ;;  %v10085_v0 = vadd.f32 %v2651_v10, %v9821_v14  ;;  %3412 = vrot.lane.b32.xlu0 %v10091_v11, %s4667_s30  ;;  %v2700_v54 = vmul.f32 %v4347_v12, %v2681_v39 }
 0x655   :  { %v2734_v21 = vsel %vm12650_vm15, %v12649_v23, %v12648_v5  ;;  %v4357_v4 = vld [vmem:[%s11780_s7 + $0x760] sm:$0xff]  ;;  %v12651_v61 = vld [vmem:[#allocation5_spill] sm:$0xff]  ;;  %3410 = vrot.lane.b32.xlu1 %v10080_v35, %s4667_s30  ;;  %v2701_v2 = vmul.f32 %v4348_v43, %v2687_v44  ;;  %v2704_v62 = vmul.f32 %v4351_v48, %v2682_v42  ;;  %v10098_v14 = vpop.permute.xlu1 %3065  ;;  %v10101_v9 = vadd.f32 %v2698_v8, %v9917_v36  ;;  %v4354_v25 = vld [vmem:[%s11780_s7 + $0x748] sm:$0xff] }
 0x656   :  { %v2735_v59 = vsel %vm12653_vm8, %v12652_v19, %v12651_v61  ;;  %12654 = vst [vmem:[#allocation120_spill] sm:$0xff] %v10098_v14  ;;  %v2705_v10 = vmul.f32 %v4352_v47, %v2688_v20  ;;  %v2747_v7 = vmul.f32 %v4353_v15, %v2734_v21  ;;  %v10103_v26 = vpop.permute.xlu0 %3067  ;;  %v10106_v53 = vadd.f32 %v2654_v60, %v9925_v24  ;;  %v12657_v8 = vld [vmem:[#allocation95_spill] sm:$0xff]  ;;  %vm12658_vm4 = vmmov %vm12656_vm2  ;;  %v4356_v43 = vld [vmem:[%s11780_s7 + $0x758] sm:$0xff] }
 0x657   :  { %v2751_v18 = vmul.f32 %v4357_v4, %v2735_v59  ;;  %12655 = vst [vmem:[#allocation121_spill] sm:$0xff] %v10103_v26  ;;  %v10109_v56 = vadd.f32 %v2655_v52, %v9927_v58  ;;  %v10112_v27 = vadd.f32 %v2699_v3, %v9920_v37  ;;  %v2732_v36 = vsel %vm12656_vm2, %v12648_v5, %v8401_v33  ;;  %v4358_v37 = vld [vmem:[%s11780_s7 + $0x768] sm:$0xff]  ;;  %v4355_v52 = vld [vmem:[%s11780_s7 + $0x750] sm:$0xff]  ;;  %vm12660_vm5 = vmmov %vm12656_vm2 }
 0x658   :  { %v10124_v24 = vadd.f32 %v2702_v30, %v9947_v38  ;;  %v10127_v58 = vadd.f32 %v2703_v63, %v9950_v22  ;;  %v2733_v60 = vsel %vm12658_vm4, %v12651_v61, %v12657_v8  ;;  %3416 = vrot.lane.b32.xlu0 %v8938_v13, %s4667_s30  ;;  %v10146_v22 = vadd.f32 %v2700_v54, %v9932_v16  ;;  %vm12661_vm6 = vmmov %vm12656_vm2  ;;  %v4359_v44 = vld [vmem:[%s11780_s7 + $0x770] sm:$0xff]  ;;  %v4360_v48 = vld [vmem:[%s11780_s7 + $0x778] sm:$0xff] }
 0x659   :  { %3414 = vrot.lane.b32.xlu1 %v8915_v34, %s4667_s30  ;;  %v12659_v34 = vld [vmem:[#allocation96_spill] sm:$0xff]  ;;  %v10149_v30 = vadd.f32 %v2701_v2, %v9935_v55  ;;  %v10152_v12 = vadd.f32 %v2704_v62, %v9991_v45  ;;  %v10161_v39 = vpop.permute.xlu1 %3069  ;;  %v10164_v13 = vadd.f32 %v2705_v10, %v9994_v31  ;;  %v10167_v2 = vadd.f32 %v2747_v7, %v9969_v32  ;;  %v12664_v31 = vld [vmem:[#allocation97_spill] sm:$0xff]  ;;  %vm12665_vm10 = vmmov %vm12656_vm2 }
 0x65a   :  { %v2730_v38 = vsel %vm12660_vm5, %v8401_v33, %v12659_v34  ;;  %v2736_v33 = vsel %vm12661_vm6, %v12659_v34, %v12649_v23  ;;  %12662 = vst [vmem:[#allocation32_spill] sm:$0xff] %v10161_v39  ;;  %v10169_v54 = vadd.f32 %v2751_v18, %v2660_v49  ;;  %v2748_v62 = vmul.f32 %v4354_v25, %v2732_v36  ;;  %v10171_v16 = vpop.permute.xlu0 %3071  ;;  %vm12666_vm0 = vmmov %vm12656_vm2  ;;  %v4361_v42 = vld [vmem:[%s11780_s7 + $0x780] sm:$0xff]  ;;  %v12670_v5 = vld [vmem:[#allocation8_spill] sm:$0xff] }
 0x65b   :  { %12663 = vst [vmem:[#allocation34_spill] sm:$0xff] %v10171_v16  ;;  %v2752_v55 = vmul.f32 %v4358_v37, %v2733_v60  ;;  %v2749_v45 = vmul.f32 %v4355_v52, %v2730_v38  ;;  %v2731_v32 = vsel %vm12665_vm10, %v12657_v8, %v12664_v31  ;;  %v2737_v49 = vsel %vm12666_vm0, %v12664_v31, %v12652_v19  ;;  %v12667_v3 = vld [vmem:[#allocation98_spill] sm:$0xff]  ;;  %v4362_v21 = vld [vmem:[%s11780_s7 + $0x788] sm:$0xff]  ;;  %v4363_v10 = vld [vmem:[%s11780_s7 + $0x790] sm:$0xff] }
 0x65c   :  { %v2750_v63 = vmul.f32 %v4356_v43, %v2736_v33  ;;  %v12668_v47 = vld [vmem:[#allocation6_spill] sm:$0xff]  ;;  %vm12669_vm11 = vcmp.lt.s32.totalorder %v4832_v29, 113  ;;  %v4366_v4 = vld [vmem:[%s11780_s7 + $0x7a8] sm:$0xff]  ;;  %v4364_v7 = vld [vmem:[%s11780_s7 + $0x798] sm:$0xff]  ;;  %v2753_v52 = vmul.f32 %v4359_v44, %v2731_v32  ;;  %v2754_v34 = vmul.f32 %v4360_v48, %v2737_v49 }
 0x65d   :  { %3418 = vrot.lane.b32.xlu1 %v9240_v40, %s4667_s30  ;;  %v2783_v20 = vsel %vm12669_vm11, %v12668_v47, %v12667_v3  ;;  %v4365_v15 = vld [vmem:[%s11780_s7 + $0x7a0] sm:$0xff]  ;;  %vm12671_vm1 = vmmov %vm12669_vm11  ;;  %v12673_v19 = vld [vmem:[#allocation27_spill] sm:$0xff]  ;;  %v10245_v60 = vpop.permute.xlu1 %3073  ;;  %vm12684_vm8 = vcmp.lt.s32.totalorder %v4832_v29, 112  ;;  %v10264_v48 = vadd.f32 %v2748_v62, %v9972_v28  ;;  %v10281_v62 = vadd.f32 %v2752_v55, %v10096_v46 }
 0x65e   :  { %v2784_v23 = vsel %vm12671_vm1, %v12670_v5, %v8620_v57  ;;  %vm12672_vm13 = vmmov %vm12671_vm1  ;;  %v10216_v61 = vld [vmem:[%s11777_s10 + $0x20] sm:$0xff]  ;;  %v12675_v18 = vld [vmem:[#allocation9_spill] sm:$0xff]  ;;  %12680 = vst [vmem:[#allocation122_spill] sm:$0xff] %v10245_v60  ;;  %v10261_v44 = vpop.permute.xlu0 %3108  ;;  %v2796_v32 = vmul.f32 %v4361_v42, %v2783_v20  ;;  %v10284_v42 = vadd.f32 %v2749_v45, %v10006_v51 }
 0x65f   :  { %v2781_v40 = vsel %vm12672_vm13, %v12667_v3, %v8628_v41  ;;  %3454 = vrot.lane.b32.xlu0 %v10216_v61, %s4668_s26  ;;  %vm12674_vm14 = vmmov %vm12671_vm1  ;;  %v12678_v37 = vld [vmem:[#allocation99_spill] sm:$0xff]  ;;  %v4369_v43 = vld [vmem:[%s11780_s7 + $0x7c0] sm:$0xff]  ;;  %12685 = vst [vmem:[#allocation28_spill] sm:$0xff] %v10261_v44  ;;  %v2800_v49 = vmul.f32 %v4365_v15, %v2784_v23  ;;  %vm12705_vm13 = vcmp.lt.s32.totalorder %v4832_v29, 97 }
 0x660   :  { %v2782_v59 = vsel %vm12674_vm14, %v8620_v57, %v12673_v19  ;;  %vm12676_vm9 = vmmov %vm12671_vm1  ;;  %v4367_v57 = vld [vmem:[%s11780_s7 + $0x7b0] sm:$0xff]  ;;  %v12682_v33 = vld [vmem:[#allocation31_spill] sm:$0xff] }
 0x661   :  { %v2779_v25 = vsel %vm12676_vm9, %v8628_v41, %v12675_v18  ;;  %vm12677_vm12 = vmmov %vm12671_vm1  ;;  %v4368_v41 = vld [vmem:[%s11780_s7 + $0x7b8] sm:$0xff]  ;;  %v12683_v31 = vld [vmem:[#allocation100_spill] sm:$0xff]  ;;  %v10286_v23 = vpop.permute.xlu1 %3110 }
 0x662   :  { %v2785_v36 = vsel %vm12677_vm12, %v12675_v18, %v12668_v47  ;;  %vm12679_vm3 = vmmov %vm12671_vm1  ;;  %v2832_v3 = vsel %vm12684_vm8, %v12683_v31, %v12682_v33  ;;  %v2797_v47 = vmul.f32 %v4362_v21, %v2781_v40  ;;  %v2798_v18 = vmul.f32 %v4363_v10, %v2779_v25  ;;  %v10276_v28 = vld [vmem:[%s11777_s10 + $0x28] sm:$0xff]  ;;  %12686 = vst [vmem:[#allocation37_spill] sm:$0xff] %v10286_v23  ;;  %v4373_v46 = vld [vmem:[%s11780_s7 + $0x7e0] sm:$0xff] }
 0x663   :  { %v2780_v8 = vsel %vm12679_vm3, %v12673_v19, %v12678_v37  ;;  %vm12681_vm15 = vmmov %vm12671_vm1  ;;  %v2801_v19 = vmul.f32 %v4366_v4, %v2782_v59  ;;  %3458 = vrot.lane.b32.xlu0 %v10276_v28, %s4668_s26  ;;  %v2845_v15 = vmul.f32 %v4369_v43, %v2832_v3  ;;  %v10289_v21 = vadd.f32 %v2750_v63, %v10085_v0  ;;  %v12687_v55 = vld [vmem:[#allocation10_spill] sm:$0xff]  ;;  %v12688_v51 = vld [vmem:[#allocation101_spill] sm:$0xff]  ;;  %v10304_v59 = vpop.permute.xlu0 %3112 }
 0x664   :  { %v2786_v38 = vsel %vm12681_vm15, %v12678_v37, %v12670_v5  ;;  %v10269_v5 = vld [vmem:[%s11777_s10 + $0x40] sm:$0xff]  ;;  %v2799_v37 = vmul.f32 %v4364_v7, %v2785_v36  ;;  %v2802_v60 = vmul.f32 %v4367_v57, %v2780_v8  ;;  %v10292_v40 = vadd.f32 %v2753_v52, %v10106_v53  ;;  %vm12689_vm2 = vmmov %vm12684_vm8  ;;  %12690 = vst [vmem:[#allocation123_spill] sm:$0xff] %v10304_v59  ;;  %v4370_v63 = vld [vmem:[%s11780_s7 + $0x7c8] sm:$0xff] }
 0x665   :  { %3456 = vrot.lane.b32.xlu1 %v10269_v5, %s4668_s26  ;;  %v2803_v20 = vmul.f32 %v4368_v41, %v2786_v38  ;;  %v10295_v4 = vadd.f32 %v2754_v34, %v10109_v56  ;;  %v2833_v45 = vsel %vm12689_vm2, %v12688_v51, %v12687_v55  ;;  %v10307_v0 = vadd.f32 %v2796_v32, %v10101_v9  ;;  %v12691_v10 = vld [vmem:[#allocation13_spill] sm:$0xff]  ;;  %vm12692_vm4 = vmmov %vm12689_vm2  ;;  %v12693_v8 = vld [vmem:[#allocation102_spill] sm:$0xff] }
 0x666   :  { %v10310_v53 = vadd.f32 %v2800_v49, %v10124_v24  ;;  %v10313_v56 = vadd.f32 %v2797_v47, %v10112_v27  ;;  %v2830_v7 = vsel %vm12692_vm4, %v12682_v33, %v12691_v10  ;;  %v10325_v9 = vadd.f32 %v2801_v19, %v10127_v58  ;;  %vm12694_vm5 = vmmov %vm12689_vm2  ;;  %v12695_v52 = vld [vmem:[#allocation7_spill] sm:$0xff]  ;;  %v4375_v38 = vld [vmem:[%s11780_s7 + $0x7f0] sm:$0xff] }
 0x667   :  { %v10328_v24 = vadd.f32 %v2798_v18, %v10146_v22  ;;  %v10331_v27 = vadd.f32 %v2799_v37, %v10149_v30  ;;  %v10334_v25 = vadd.f32 %v2802_v60, %v10152_v12  ;;  %3462 = vrot.lane.b32.xlu0 %v10091_v11, %s4668_s26  ;;  %v10339_v36 = vadd.f32 %v2803_v20, %v10164_v13  ;;  %v4374_v22 = vld [vmem:[%s11780_s7 + $0x7e8] sm:$0xff]  ;;  %v10351_v12 = vpop.permute.xlu1 %3114  ;;  %v4371_v13 = vld [vmem:[%s11780_s7 + $0x7d0] sm:$0xff]  ;;  %vm12696_vm6 = vmmov %vm12689_vm2  ;;  %v3117_v3 = vpop.permute.xlu0 %3116 }
 0x668   :  { %v10342_v57 = vadd.f32 %v2845_v15, %v10167_v2  ;;  %v2849_v58 = vmul.f32 %v4373_v46, %v2833_v45  ;;  %v2831_v30 = vsel %vm12694_vm5, %v12687_v55, %v12693_v8  ;;  %v2846_v60 = vmul.f32 %v4370_v63, %v2830_v7  ;;  %v4372_v2 = vld [vmem:[%s11780_s7 + $0x7d8] sm:$0xff]  ;;  %vm12697_vm10 = vmmov %vm12689_vm2  ;;  %v12698_v43 = vld [vmem:[#allocation103_spill] sm:$0xff] }
 0x669   :  { %3460 = vrot.lane.b32.xlu1 %v10080_v35, %s4668_s26  ;;  %v2828_v34 = vsel %vm12696_vm6, %v12691_v10, %v12695_v52  ;;  %v2834_v41 = vsel %vm12697_vm10, %v12695_v52, %v12683_v31  ;;  %vm12699_vm0 = vmmov %vm12689_vm2  ;;  %v4376_v32 = vld [vmem:[%s11780_s7 + $0x7f8] sm:$0xff]  ;;  %v4377_v31 = vld [vmem:[%s11780_s7 + $0x800] sm:$0xff]  ;;  %vm2975_vm1 = vcmp.lt.s32.totalorder %v4832_v29, 109  ;;  %v10399_v55 = vsel %vm12705_vm13, %v10304_v59, %v3117_v3 }
 0x66a   :  { %v2829_v33 = vsel %vm12699_vm0, %v12693_v8, %v12698_v43  ;;  %vm12700_vm11 = vmmov %vm12699_vm0  ;;  %v12701_v47 = vld [vmem:[#allocation12_spill] sm:$0xff]  ;;  %v4381_v37 = vld [vmem:[%s11780_s7 + $0x820] sm:$0xff]  ;;  %12706 = vst [vmem:[#allocation124_spill] sm:$0xff] %v10399_v55  ;;  %v2850_v45 = vmul.f32 %v4374_v22, %v2831_v30  ;;  %v2847_v39 = vmul.f32 %v4371_v13, %v2828_v34  ;;  %v2848_v26 = vmul.f32 %v4372_v2, %v2834_v41 }
 0x66b   :  { %v2835_v49 = vsel %vm12700_vm11, %v12698_v43, %v12688_v51  ;;  %v12702_v19 = vld [vmem:[#allocation104_spill] sm:$0xff]  ;;  %v12703_v20 = vld [vmem:[#allocation14_spill] sm:$0xff]  ;;  %v12704_v15 = vld [vmem:[#allocation105_spill] sm:$0xff]  ;;  %v3119_v55 = vpop.permute.xlu1 %3118  ;;  %v10448_v13 = vpop.permute.xlu0 %3120  ;;  %vm3025_vm3 = vcmp.lt.s32.totalorder %v4832_v29, 99  ;;  %vm12724_vm15 = vcmp.lt.s32.totalorder %v4832_v29, 110  ;;  %vm12742_vm0 = vcmp.lt.s32.totalorder %v4832_v29, 96 }
 0x66c   :  { %v2881_v18 = vsel %vm277_vm7, %v12702_v19, %v12701_v47  ;;  %v2882_v46 = vsel %vm277_vm7, %v12704_v15, %v12703_v20  ;;  %v10404_v51 = vld [vmem:[%s11777_s10 + $0x50] sm:$0xff]  ;;  %v4378_v63 = vld [vmem:[%s11780_s7 + $0x808] sm:$0xff]  ;;  %v12707_v10 = vld [vmem:[#allocation17_spill] sm:$0xff]  ;;  %v2852_v23 = vmul.f32 %v4376_v32, %v2835_v49  ;;  %12712 = vst [vmem:[#allocation125_spill] sm:$0xff] %v10448_v13  ;;  %v10463_v32 = vadd.f32 %v2849_v58, %v10169_v54 }
 0x66d   :  { %3464 = vrot.lane.b32.xlu1 %v10404_v51, %s4668_s26  ;;  %v2879_v7 = vsel %vm277_vm7, %v12701_v47, %v12707_v10  ;;  %v4382_v8 = vld [vmem:[%s11780_s7 + $0x828] sm:$0xff]  ;;  %v12708_v52 = vld [vmem:[#allocation106_spill] sm:$0xff]  ;;  %v4379_v22 = vld [vmem:[%s11780_s7 + $0x810] sm:$0xff]  ;;  %v2894_v44 = vmul.f32 %v4377_v31, %v2881_v18  ;;  %v2898_v59 = vmul.f32 %v4381_v37, %v2882_v46  ;;  %v10466_v49 = vadd.f32 %v2846_v60, %v10264_v48 }
 0x66e   :  { %v2880_v43 = vsel %vm277_vm7, %v12703_v20, %v12708_v52  ;;  %v12709_v30 = vld [vmem:[#allocation11_spill] sm:$0xff]  ;;  %v10432_v47 = vld [vmem:[%s11777_s10 + $0x38] sm:$0xff]  ;;  %v2851_v20 = vmul.f32 %v4375_v38, %v2829_v33  ;;  %vm12710_vm14 = vmmov %vm12705_vm13  ;;  %v2895_v2 = vmul.f32 %v4378_v63, %v2879_v7 }
 0x66f   :  { %v2877_v16 = vsel %vm277_vm7, %v12707_v10, %v12709_v30  ;;  %3466 = vrot.lane.b32.xlu0 %v10432_v47, %s4668_s26  ;;  %v4380_v14 = vld [vmem:[%s11780_s7 + $0x818] sm:$0xff]  ;;  %v2883_v10 = vsel %vm277_vm7, %v12709_v30, %v12702_v19  ;;  %v10446_v6 = vsel %vm12710_vm14, %v10351_v12, %v3119_v55  ;;  %v2899_v34 = vmul.f32 %v4382_v8, %v2880_v43  ;;  %vm12713_vm9 = vmmov %vm12705_vm13  ;;  %v4383_v48 = vld [vmem:[%s11780_s7 + $0x830] sm:$0xff]  ;;  %v10489_v58 = vpop.permute.xlu1 %3122 }
 0x670   :  { %12711 = vst [vmem:[#allocation38_spill] sm:$0xff] %v10446_v6  ;;  %v2896_v41 = vmul.f32 %v4379_v22, %v2877_v16  ;;  %v10453_v38 = vsel %vm12713_vm9, %v3117_v3, %v10448_v13  ;;  %v10458_v33 = vld [vmem:[%s11777_s10 + $0x58] sm:$0xff]  ;;  %v10469_v16 = vadd.f32 %v2850_v45, %v10281_v62  ;;  %v2897_v31 = vmul.f32 %v4380_v14, %v2883_v10  ;;  %v12715_v62 = vld [vmem:[#allocation107_spill] sm:$0xff]  ;;  %vm12717_vm12 = vmmov %vm12713_vm9 }
 0x671   :  { %12714 = vst [vmem:[#allocation36_spill] sm:$0xff] %v10453_v38  ;;  %3468 = vrot.lane.b32.xlu1 %v10458_v33, %s4668_s26  ;;  %v10474_v3 = vadd.f32 %v2847_v39, %v10284_v42  ;;  %v10477_v19 = vadd.f32 %v2848_v26, %v10289_v21  ;;  %v10480_v54 = vadd.f32 %v2851_v20, %v10292_v40  ;;  %12716 = vst [vmem:[#allocation3_spill] sm:$0xff] %v10489_v58  ;;  %v10505_v40 = vpop.permute.xlu0 %3157  ;;  %v4389_v37 = vld [vmem:[%s11780_s7 + $0x860] sm:$0xff]  ;;  %v4390_v7 = vld [vmem:[%s11780_s7 + $0x868] sm:$0xff] }
 0x672   :  { %v2878_v14 = vsel %vm277_vm7, %v12708_v52, %v12715_v62  ;;  %v10492_v39 = vadd.f32 %v2852_v23, %v10295_v4  ;;  %v10495_v26 = vadd.f32 %v2894_v44, %v10307_v0  ;;  %v10498_v42 = vadd.f32 %v2898_v59, %v10310_v53  ;;  %v4384_v44 = vld [vmem:[%s11780_s7 + $0x838] sm:$0xff]  ;;  %v4385_v53 = vld [vmem:[%s11780_s7 + $0x840] sm:$0xff]  ;;  %v12730_v8 = vld [vmem:[#allocation15_spill] sm:$0xff] }
 0x673   :  { %3504 = vrot.lane.b32.xlu0 %v10216_v61, %s4669_s2  ;;  %v10503_v21 = vsel %vm12717_vm12, %v3119_v55, %v10489_v58  ;;  %v10508_v60 = vadd.f32 %v2895_v2, %v10313_v56  ;;  %v10511_v18 = vadd.f32 %v2899_v34, %v10325_v9  ;;  %v10514_v23 = vadd.f32 %v2896_v41, %v10328_v24  ;;  %v12722_v56 = vld [vmem:[#allocation109_spill] sm:$0xff]  ;;  %v12723_v9 = vld [vmem:[#allocation108_spill] sm:$0xff]  ;;  %v12726_v46 = vld [vmem:[#allocation18_spill] sm:$0xff]  ;;  %v10573_v2 = vpop.permute.xlu1 %3159 }
 0x674   :  { %12718 = vst [vmem:[#allocation126_spill] sm:$0xff] %v10503_v21  ;;  %v2884_v4 = vsel %vm277_vm7, %v12715_v62, %v12704_v15  ;;  %v10527_v59 = vadd.f32 %v2897_v31, %v10331_v27  ;;  %v2900_v0 = vmul.f32 %v4383_v48, %v2878_v14  ;;  %v2930_v24 = vsel %vm12724_vm15, %v12723_v9, %v12722_v56  ;;  %v12725_v15 = vld [vmem:[#allocation16_spill] sm:$0xff]  ;;  %vm12727_vm7 = vmmov %vm12724_vm15  ;;  %v4386_v55 = vld [vmem:[%s11780_s7 + $0x848] sm:$0xff] }
 0x675   :  { %12719 = vst [vmem:[#allocation35_spill] sm:$0xff] %v10511_v18  ;;  %12720 = vst [vmem:[#allocation127_spill] sm:$0xff] %v10514_v23  ;;  %3506 = vrot.lane.b32.xlu1 %v10269_v5, %s4669_s2  ;;  %v2931_v27 = vsel %vm12727_vm7, %v12726_v46, %v12725_v15  ;;  %v12728_v45 = vld [vmem:[#allocation110_spill] sm:$0xff]  ;;  %v4387_v43 = vld [vmem:[%s11780_s7 + $0x850] sm:$0xff]  ;;  %v2901_v34 = vmul.f32 %v4384_v44, %v2884_v4 }
 0x676   :  { %12721 = vst [vmem:[#allocation128_spill] sm:$0xff] %v10527_v59  ;;  %vm12729_vm8 = vmmov %vm12727_vm7  ;;  %v4388_v22 = vld [vmem:[%s11780_s7 + $0x858] sm:$0xff]  ;;  %v4391_v41 = vld [vmem:[%s11780_s7 + $0x870] sm:$0xff] }
 0x677   :  { %3508 = vrot.lane.b32.xlu0 %v10276_v28, %s4669_s2  ;;  %v2928_v63 = vsel %vm12729_vm8, %v12722_v56, %v12728_v45  ;;  %vm12731_vm2 = vmmov %vm12727_vm7  ;;  %v12732_v30 = vld [vmem:[#allocation21_spill] sm:$0xff]  ;;  %v12735_v48 = vld [vmem:[#allocation111_spill] sm:$0xff]  ;;  %v3164_v13 = vpop.permute.xlu1 %3163  ;;  %v10616_v18 = vadd.f32 %v2901_v34, %v10339_v36 }
 0x678   :  { %v2929_v52 = vsel %vm12731_vm2, %v12725_v15, %v12730_v8  ;;  %vm12733_vm4 = vmmov %vm12731_vm2  ;;  %v4392_v31 = vld [vmem:[%s11780_s7 + $0x878] sm:$0xff]  ;;  %v4393_v44 = vld [vmem:[%s11780_s7 + $0x880] sm:$0xff]  ;;  %v3162_v15 = vpop.permute.xlu0 %3161  ;;  %v2944_v21 = vmul.f32 %v4386_v55, %v2928_v63 }
 0x679   :  { %v2926_v20 = vsel %vm12733_vm4, %v12728_v45, %v12732_v30  ;;  %vm12734_vm5 = vmmov %vm12731_vm2  ;;  %v12738_v4 = vld [vmem:[#allocation20_spill] sm:$0xff]  ;;  %v2943_v45 = vmul.f32 %v4385_v53, %v2930_v24  ;;  %v12740_v59 = vld [vmem:[#allocation22_spill] sm:$0xff]  ;;  %3510 = vrot.lane.b32.xlu1 %v10080_v35, %s4669_s2  ;;  %v2948_v53 = vmul.f32 %v4390_v7, %v2929_v52  ;;  %vm12773_vm4 = vcmp.lt.s32.totalorder %v4832_v29, 98 }
 0x67a   :  { %v2932_v10 = vsel %vm12734_vm5, %v12732_v30, %v12723_v9  ;;  %vm12736_vm6 = vmmov %vm12731_vm2  ;;  %v12739_v56 = vld [vmem:[#allocation112_spill] sm:$0xff]  ;;  %v2947_v30 = vmul.f32 %v4389_v37, %v2931_v27  ;;  %v12741_v23 = vld [vmem:[#allocation113_spill] sm:$0xff]  ;;  %v2945_v24 = vmul.f32 %v4387_v43, %v2926_v20  ;;  %v10613_v27 = vadd.f32 %v2900_v0, %v10334_v25 }
 0x67b   :  { %v2927_v62 = vsel %vm12736_vm6, %v12730_v8, %v12735_v48  ;;  %vm12737_vm10 = vmmov %vm12731_vm2  ;;  %v2980_v9 = vsel %vm2975_vm1, %v12739_v56, %v12738_v4  ;;  %v4397_v8 = vld [vmem:[%s11780_s7 + $0x8a0] sm:$0xff]  ;;  %v2946_v37 = vmul.f32 %v4388_v22, %v2932_v10  ;;  %3512 = vrot.lane.b32.xlu0 %v10091_v11, %s4669_s2  ;;  %v4394_v55 = vld [vmem:[%s11780_s7 + $0x888] sm:$0xff]  ;;  %v10631_v52 = vadd.f32 %v2943_v45, %v10342_v57 }
 0x67c   :  { %v2933_v14 = vsel %vm12737_vm10, %v12735_v48, %v12726_v46  ;;  %v2981_v46 = vsel %vm2975_vm1, %v12741_v23, %v12740_v59  ;;  %v10606_v48 = vsel %vm12742_vm0, %v10505_v40, %v3162_v15  ;;  %v2949_v58 = vmul.f32 %v4391_v41, %v2927_v62  ;;  %v12744_v63 = vld [vmem:[#allocation114_spill] sm:$0xff]  ;;  %vm12745_vm11 = vmmov %vm12742_vm0  ;;  %v3166_v0 = vpop.permute.xlu0 %3165  ;;  %v4398_v43 = vld [vmem:[%s11780_s7 + $0x8a8] sm:$0xff] }
 0x67d   :  { %12743 = vst [vmem:[#allocation129_spill] sm:$0xff] %v10606_v48  ;;  %v2950_v38 = vmul.f32 %v4392_v31, %v2933_v14  ;;  %v2993_v6 = vmul.f32 %v4393_v44, %v2980_v9  ;;  %v2997_v48 = vmul.f32 %v4397_v8, %v2981_v46  ;;  %v2978_v7 = vsel %vm2975_vm1, %v12738_v4, %v12744_v63  ;;  %v12746_v22 = vld [vmem:[#allocation19_spill] sm:$0xff]  ;;  %vm12747_vm13 = vmmov %vm12742_vm0  ;;  %v4395_v4 = vld [vmem:[%s11780_s7 + $0x890] sm:$0xff] }
 0x67e   :  { %v10628_v25 = vsel %vm12745_vm11, %v10573_v2, %v3164_v13  ;;  %v10634_v36 = vadd.f32 %v2947_v30, %v10463_v32  ;;  %v2979_v20 = vsel %vm2975_vm1, %v12740_v59, %v12746_v22  ;;  %v10645_v10 = vsel %vm12747_vm13, %v3162_v15, %v3166_v0  ;;  %3514 = vrot.lane.b32.xlu1 %v10404_v51, %s4669_s2  ;;  %vm12748_vm14 = vmmov %vm12742_vm0  ;;  %v4396_v9 = vld [vmem:[%s11780_s7 + $0x898] sm:$0xff]  ;;  %v12754_v45 = vld [vmem:[#allocation115_spill] sm:$0xff] }
 0x67f   :  { %v10650_v57 = vadd.f32 %v2944_v21, %v10466_v49  ;;  %v10653_v32 = vadd.f32 %v2948_v53, %v10469_v16  ;;  %v10656_v34 = vadd.f32 %v2945_v24, %v10474_v3  ;;  %v10659_v41 = vadd.f32 %v2946_v37, %v10477_v19  ;;  %3516 = vrot.lane.b32.xlu0 %v10432_v47, %s4669_s2  ;;  %v3168_v21 = vpop.permute.xlu1 %3167  ;;  %v4401_v19 = vld [vmem:[%s11780_s7 + $0x8c0] sm:$0xff]  ;;  %vm12751_vm9 = vmmov %vm12742_vm0  ;;  %v4402_v8 = vld [vmem:[%s11780_s7 + $0x8c8] sm:$0xff] }
 0x680   :  { %v10664_v59 = vadd.f32 %v2949_v58, %v10480_v54  ;;  %v10667_v31 = vadd.f32 %v2950_v38, %v10492_v39  ;;  %v10670_v49 = vadd.f32 %v2993_v6, %v10495_v26  ;;  %v2994_v16 = vmul.f32 %v4394_v55, %v2978_v7  ;;  %v3170_v6 = vpop.permute.xlu0 %3169  ;;  %v12749_v58 = vld [vmem:[#allocation25_spill] sm:$0xff]  ;;  %v4405_v26 = vld [vmem:[%s11780_s7 + $0x8e0] sm:$0xff]  ;;  %vm12752_vm12 = vmmov %vm12742_vm0 }
 0x681   :  { %v10673_v3 = vadd.f32 %v2997_v48, %v10498_v42  ;;  %v2998_v62 = vmul.f32 %v4398_v43, %v2979_v20  ;;  %v3030_v54 = vsel %vm3025_vm3, %v9760_v1, %v9803_v50  ;;  %v10684_v38 = vsel %vm12748_vm14, %v3164_v13, %v3168_v21  ;;  %v12750_v42 = vld [vmem:[#allocation116_spill] sm:$0xff]  ;;  %v12755_v46 = vld [vmem:[#allocation26_spill] sm:$0xff]  ;;  %v4406_v53 = vld [vmem:[%s11780_s7 + $0x8e8] sm:$0xff] }
 0x682   :  { %v2976_v39 = vsel %vm2975_vm1, %v12744_v63, %v12749_v58  ;;  %v3031_v14 = vsel %vm3025_vm3, %v12750_v42, %v9853_v17  ;;  %v10699_v44 = vsel %vm12751_vm9, %v3166_v0, %v3170_v6  ;;  %v10704_v13 = vsel %vm12752_vm12, %v3170_v6, %v10505_v40  ;;  %3518 = vrot.lane.b32.xlu1 %v10458_v33, %s4669_s2  ;;  %v12756_v24 = vld [vmem:[#allocation117_spill] sm:$0xff]  ;;  %v4403_v37 = vld [vmem:[%s11780_s7 + $0x8d0] sm:$0xff]  ;;  %v4417_v63 = vld [vmem:[%s11780_s7 + $0x940] sm:$0xff] }
 0x683   :  { %12753 = vst [vmem:[#allocation39_spill] sm:$0xff] %v10704_v13  ;;  %v2982_v15 = vsel %vm2975_vm1, %v12749_v58, %v12739_v56  ;;  %v2977_v40 = vsel %vm2975_vm1, %v12746_v22, %v12754_v45  ;;  %v2983_v30 = vsel %vm2975_vm1, %v12754_v45, %v12741_v23  ;;  %v3028_v48 = vsel %vm3025_vm3, %v9803_v50, %v12755_v46  ;;  %v12757_v55 = vld [vmem:[#allocation24_spill] sm:$0xff]  ;;  %v12758_v7 = vld [vmem:[#allocation123_spill] sm:$0xff]  ;;  %v3172_v22 = vpop.permute.xlu1 %3171  ;;  %v4400_v20 = vld [vmem:[%s11780_s7 + $0x8b8] sm:$0xff] }
 0x684   :  { %3554 = vrot.lane.b32.xlu0 %v10216_v61, %s4670_s5  ;;  %v3043_v56 = vmul.f32 %v4401_v19, %v3030_v54  ;;  %v3029_v23 = vsel %vm3025_vm3, %v9853_v17, %v12756_v24  ;;  %v3026_v50 = vsel %vm3025_vm3, %v12755_v46, %v12757_v55  ;;  %v12759_v0 = vld [vmem:[#allocation28_spill] sm:$0xff]  ;;  %vm12760_vm1 = vcmp.lt.s32.totalorder %v4832_v29, 97  ;;  %v4404_v54 = vld [vmem:[%s11780_s7 + $0x8d8] sm:$0xff]  ;;  %vm12761_vm15 = vmmov %vm12742_vm0  ;;  %v10778_v46 = vpop.permute.xlu0 %3206 }
 0x685   :  { %v3128_v43 = vsel %vm12760_vm1, %v12759_v0, %v12758_v7  ;;  %v4399_v17 = vld [vmem:[%s11780_s7 + $0x8b0] sm:$0xff]  ;;  %v3047_v19 = vmul.f32 %v4405_v26, %v3031_v14  ;;  %v3032_v6 = vsel %vm3025_vm3, %v12757_v55, %v9760_v1  ;;  %v10771_v58 = vsel %vm12761_vm15, %v3168_v21, %v3172_v22  ;;  %vm12762_vm7 = vmmov %vm12742_vm0 }
 0x686   :  { %v10776_v45 = vsel %vm12762_vm7, %v3172_v22, %v10573_v2  ;;  %v10781_v26 = vadd.f32 %v2994_v16, %v10508_v60  ;;  %v10783_v14 = vmul.f32 %v4395_v4, %v2976_v39  ;;  %v10785_v7 = vmul.f32 %v4396_v9, %v2982_v15  ;;  %3556 = vrot.lane.b32.xlu1 %v10269_v5, %s4670_s5  ;;  %v4421_v2 = vld [vmem:[%s11780_s7 + $0x960] sm:$0xff]  ;;  %v12763_v22 = vld [vmem:[#allocation37_spill] sm:$0xff]  ;;  %vm12764_vm8 = vmmov %vm12760_vm1 }
 0x687   :  { %v3044_v13 = vmul.f32 %v4402_v8, %v3028_v48  ;;  %v3048_v1 = vmul.f32 %v4406_v53, %v3029_v23  ;;  %v3045_v21 = vmul.f32 %v4403_v37, %v3026_v50  ;;  %v3141_v55 = vmul.f32 %v4417_v63, %v3128_v43  ;;  %v4418_v16 = vld [vmem:[%s11780_s7 + $0x948] sm:$0xff]  ;;  %v10808_v48 = vpop.permute.xlu1 %3208  ;;  %v12767_v63 = vld [vmem:[#allocation124_spill] sm:$0xff]  ;;  %vm12779_vm10 = vmmov %vm12760_vm1 }
 0x688   :  { %v3129_v60 = vsel %vm12764_vm8, %v12763_v22, %v10351_v12  ;;  %3558 = vrot.lane.b32.xlu0 %v10276_v28, %s4670_s5  ;;  %v12765_v39 = vld [vmem:[#allocation35_spill] sm:$0xff]  ;;  %v10804_v9 = vmul.f32 %v4399_v17, %v2977_v40  ;;  %v10806_v15 = vmul.f32 %v4400_v20, %v2983_v30  ;;  %v3046_v8 = vmul.f32 %v4404_v54, %v3032_v6  ;;  %v4433_v12 = vld [vmem:[%s11780_s7 + $0x9c0] sm:$0xff]  ;;  %v4408_v40 = vld [vmem:[%s11780_s7 + $0x8f8] sm:$0xff] }
 0x689   :  { %v10802_v4 = vadd.f32 %v2998_v62, %v12765_v39  ;;  %v3051_v53 = vadd.f32 %v3043_v56, %v10631_v52  ;;  %v3055_v23 = vadd.f32 %v3047_v19, %v10634_v36  ;;  %v4407_v62 = vld [vmem:[%s11780_s7 + $0x8f0] sm:$0xff]  ;;  %v12766_v30 = vld [vmem:[#allocation118_spill] sm:$0xff]  ;;  %v3211_v56 = vpop.permute.xlu0 %3210  ;;  %v3052_v36 = vadd.f32 %v3044_v13, %v10650_v57  ;;  %v4422_v17 = vld [vmem:[%s11780_s7 + $0x968] sm:$0xff] }
 0x68a   :  { %v3027_v37 = vsel %vm3025_vm3, %v12756_v24, %v12766_v30  ;;  %v3033_v52 = vsel %vm3025_vm3, %v12766_v30, %v12750_v42  ;;  %v3145_v50 = vmul.f32 %v4421_v2, %v3129_v60  ;;  %v3142_v43 = vmul.f32 %v4418_v16, %v12767_v63  ;;  %3560 = vrot.lane.b32.xlu1 %v10080_v35, %s4670_s5  ;;  %v4437_v13 = vld [vmem:[%s11780_s7 + $0x9e0] sm:$0xff]  ;;  %v4419_v60 = vld [vmem:[%s11780_s7 + $0x950] sm:$0xff]  ;;  %vm12770_vm3 = vmmov %vm12760_vm1 }
 0x68b   :  { %vm12768_vm2 = vcmp.lt.s32.totalorder %v4832_v29, 95  ;;  %v3056_v24 = vadd.f32 %v3048_v1, %v10653_v32  ;;  %v3053_v42 = vadd.f32 %v3045_v21, %v10656_v34  ;;  %v3149_v19 = vadd.f32 %v3141_v55, %v3051_v53  ;;  %v4420_v32 = vld [vmem:[%s11780_s7 + $0x958] sm:$0xff]  ;;  %v3213_v21 = vpop.permute.xlu1 %3212  ;;  %v4409_v55 = vld [vmem:[%s11780_s7 + $0x900] sm:$0xff]  ;;  %v12771_v16 = vld [vmem:[#allocation119_spill] sm:$0xff] }
 0x68c   :  { %v3226_v20 = vsel %vm12768_vm2, %v10778_v46, %v3211_v56  ;;  %3562 = vrot.lane.b32.xlu0 %v10091_v11, %s4670_s5  ;;  %v3054_v54 = vadd.f32 %v3046_v8, %v10659_v41  ;;  %v3049_v6 = vmul.f32 %v4407_v62, %v3027_v37  ;;  %v3050_v2 = vmul.f32 %v4408_v40, %v3033_v52  ;;  %v12769_v34 = vld [vmem:[#allocation125_spill] sm:$0xff]  ;;  %v4434_v41 = vld [vmem:[%s11780_s7 + $0x9c8] sm:$0xff]  ;;  %vm12775_vm5 = vmmov %vm12768_vm2 }
 0x68d   :  { %v3239_v57 = vmul.f32 %v4433_v12, %v3226_v20  ;;  %v3130_v1 = vsel %vm12770_vm3, %v12769_v34, %v12759_v0  ;;  %v12772_v39 = vld [vmem:[#allocation23_spill] sm:$0xff]  ;;  %v12774_v12 = vld [vmem:[#allocation38_spill] sm:$0xff]  ;;  %v3227_v0 = vsel %vm12775_vm5, %v10808_v48, %v3213_v21  ;;  %v3215_v40 = vpop.permute.xlu0 %3214  ;;  %v3153_v30 = vadd.f32 %v3145_v50, %v3055_v23  ;;  %v4423_v52 = vld [vmem:[%s11780_s7 + $0x970] sm:$0xff] }
 0x68e   :  { %v3079_v8 = vsel %vm12773_vm4, %v12772_v39, %v12771_v16  ;;  %v3146_v53 = vmul.f32 %v4422_v17, %v12774_v12  ;;  %v3150_v37 = vadd.f32 %v3142_v43, %v3052_v36  ;;  %v3243_v63 = vmul.f32 %v4437_v13, %v3227_v0  ;;  %vm12776_vm6 = vmmov %vm12768_vm2  ;;  %3564 = vrot.lane.b32.xlu1 %v10404_v51, %s4670_s5  ;;  %v12777_v17 = vld [vmem:[#allocation36_spill] sm:$0xff]  ;;  %v4424_v34 = vld [vmem:[%s11780_s7 + $0x978] sm:$0xff] }
 0x68f   :  { %v10868_v62 = vadd.f32 %v3239_v57, %v3149_v19  ;;  %v3224_v20 = vsel %vm12776_vm6, %v3211_v56, %v3215_v40  ;;  %v3143_v19 = vmul.f32 %v4419_v60, %v12777_v17  ;;  %v3144_v57 = vmul.f32 %v4420_v32, %v3130_v1  ;;  %v12778_v23 = vld [vmem:[#allocation3_spill] sm:$0xff]  ;;  %v3217_v1 = vpop.permute.xlu1 %3216  ;;  %v12780_v0 = vld [vmem:[#allocation126_spill] sm:$0xff]  ;;  %vm12781_vm0 = vmmov %vm12768_vm2 }
 0x690   :  { %v3131_v36 = vsel %vm12779_vm10, %v12778_v23, %v12763_v22  ;;  %v3240_v50 = vmul.f32 %v4434_v41, %v3224_v20  ;;  %3566 = vrot.lane.b32.xlu0 %v10432_v47, %s4670_s5  ;;  %v4438_v56 = vld [vmem:[%s11780_s7 + $0x9e8] sm:$0xff]  ;;  %v3057_v43 = vadd.f32 %v3049_v6, %v10664_v59  ;;  %v3058_v13 = vadd.f32 %v3050_v2, %v10667_v31  ;;  %v4435_v22 = vld [vmem:[%s11780_s7 + $0x9d0] sm:$0xff]  ;;  %v4436_v41 = vld [vmem:[%s11780_s7 + $0x9d8] sm:$0xff] }
 0x691   :  { %v3092_v60 = vmul.f32 %v4409_v55, %v3079_v8  ;;  %v10895_v32 = vadd.f32 %v3243_v63, %v3153_v30  ;;  %v3154_v12 = vadd.f32 %v3146_v53, %v3056_v24  ;;  %v3147_v20 = vmul.f32 %v4423_v52, %v12780_v0  ;;  %v3219_v31 = vpop.permute.xlu0 %3218  ;;  %vm12782_vm11 = vmmov %vm12781_vm0  ;;  %v12787_v63 = vld [vmem:[#allocation121_spill] sm:$0xff]  ;;  %v4425_v23 = vld [vmem:[%s11780_s7 + $0x980] sm:$0xff] }
 0x692   :  { %v10904_v17 = vadd.f32 %v3240_v50, %v3150_v37  ;;  %v3225_v59 = vsel %vm12781_vm0, %v3213_v21, %v3217_v1  ;;  %v3148_v6 = vmul.f32 %v4424_v34, %v3131_v36  ;;  %v3222_v55 = vsel %vm12782_vm11, %v3215_v40, %v3219_v31  ;;  %vm12783_vm13 = vmmov %vm12781_vm0  ;;  %3568 = vrot.lane.b32.xlu1 %v10458_v33, %s4670_s5  ;;  %v4439_v21 = vld [vmem:[%s11780_s7 + $0x9f0] sm:$0xff]  ;;  %v4440_v40 = vld [vmem:[%s11780_s7 + $0x9f8] sm:$0xff] }
 0x693   :  { %v3244_v2 = vmul.f32 %v4438_v56, %v3225_v59  ;;  %v3228_v8 = vsel %vm12783_vm13, %v3219_v31, %v10778_v46  ;;  %v3151_v24 = vadd.f32 %v3143_v19, %v3053_v42  ;;  %v3152_v53 = vadd.f32 %v3144_v57, %v3054_v54  ;;  %v4413_v46 = vld [vmem:[%s11780_s7 + $0x920] sm:$0xff]  ;;  %v12784_v42 = vld [vmem:[#allocation120_spill] sm:$0xff]  ;;  %v12785_v54 = vld [vmem:[#allocation33_spill] sm:$0xff]  ;;  %v3221_v50 = vpop.permute.xlu1 %3220 }
 0x694   :  { %v3241_v30 = vmul.f32 %v4435_v22, %v3222_v55  ;;  %v3242_v37 = vmul.f32 %v4436_v41, %v3228_v8  ;;  %3604 = vrot.lane.b32.xlu0 %v10216_v61, %s4671_s24  ;;  %vm12786_vm14 = vmmov %vm12773_vm4  ;;  %v12789_v57 = vld [vmem:[#allocation32_spill] sm:$0xff]  ;;  %v4410_v56 = vld [vmem:[%s11780_s7 + $0x908] sm:$0xff]  ;;  %v3155_v31 = vadd.f32 %v3147_v20, %v3057_v43  ;;  %vm12799_vm2 = vcmp.lt.s32.totalorder %v4832_v29, 94 }
 0x695   :  { %v3080_v52 = vsel %vm12786_vm14, %v12785_v54, %v12784_v42  ;;  %vm12788_vm9 = vmmov %vm12773_vm4  ;;  %v10941_v36 = vadd.f32 %v3244_v2, %v3154_v12  ;;  %v10958_v59 = vpop.permute.xlu0 %3255  ;;  %v3156_v2 = vadd.f32 %v3148_v6, %v3058_v13  ;;  %v12796_v43 = vld [vmem:[#allocation129_spill] sm:$0xff]  ;;  %v4429_v20 = vld [vmem:[%s11780_s7 + $0x9a0] sm:$0xff] }
 0x696   :  { %v3077_v19 = vsel %vm12788_vm9, %v12771_v16, %v12787_v63  ;;  %vm12790_vm12 = vmmov %vm12773_vm4  ;;  %v4414_v16 = vld [vmem:[%s11780_s7 + $0x928] sm:$0xff]  ;;  %v10949_v22 = vadd.f32 %v3241_v30, %v3151_v24  ;;  %v10951_v41 = vadd.f32 %v3242_v37, %v3152_v53  ;;  %3606 = vrot.lane.b32.xlu1 %v10269_v5, %s4671_s24  ;;  %v3096_v30 = vmul.f32 %v4413_v46, %v3080_v52  ;;  %v12794_v37 = vld [vmem:[#allocation34_spill] sm:$0xff] }
 0x697   :  { %v3078_v34 = vsel %vm12790_vm12, %v12784_v42, %v12789_v57  ;;  %vm12791_vm1 = vmmov %vm12781_vm0  ;;  %v12793_v24 = vld [vmem:[#allocation127_spill] sm:$0xff]  ;;  %v3190_v13 = vmul.f32 %v4425_v23, %v12796_v43  ;;  %v10984_v42 = vpop.permute.xlu1 %3257  ;;  %v4441_v52 = vld [vmem:[%s11780_s7 + $0xa00] sm:$0xff]  ;;  %vm3320_vm9 = vcmp.lt.s32.totalorder %v4832_v29, 93  ;;  %vm3370_vm12 = vcmp.lt.s32.totalorder %v4832_v29, 83 }
 0x698   :  { %v3223_v0 = vsel %vm12791_vm1, %v3217_v1, %v3221_v50  ;;  %vm12792_vm15 = vmmov %vm12781_vm0  ;;  %v3003_v53 = vadd.f32 %v10783_v14, %v12793_v24  ;;  %v4411_v1 = vld [vmem:[%s11780_s7 + $0x910] sm:$0xff]  ;;  %3608 = vrot.lane.b32.xlu0 %v10276_v28, %s4671_s24  ;;  %v3093_v14 = vmul.f32 %v4410_v56, %v3077_v19  ;;  %v3097_v6 = vmul.f32 %v4414_v16, %v3078_v34 }
 0x699   :  { %v3229_v12 = vsel %vm12792_vm15, %v3221_v50, %v10808_v48  ;;  %v3245_v55 = vmul.f32 %v4439_v21, %v3223_v0  ;;  %vm12795_vm7 = vmmov %vm12773_vm4  ;;  %v4426_v21 = vld [vmem:[%s11780_s7 + $0x988] sm:$0xff]  ;;  %v10993_v19 = vadd.f32 %v10804_v9, %v10613_v27  ;;  %v3100_v34 = vadd.f32 %v3092_v60, %v10670_v49  ;;  %v4412_v50 = vld [vmem:[%s11780_s7 + $0x918] sm:$0xff]  ;;  %v3260_v16 = vpop.permute.xlu0 %3259 }
 0x69a   :  { %v3246_v8 = vmul.f32 %v4440_v40, %v3229_v12  ;;  %v3075_v48 = vsel %vm12795_vm7, %v12787_v63, %v12794_v37  ;;  %v12797_v63 = vld [vmem:[#allocation128_spill] sm:$0xff]  ;;  %vm12798_vm8 = vmmov %vm12773_vm4  ;;  %v11005_v0 = vadd.f32 %v10806_v15, %v10616_v18  ;;  %v3194_v27 = vmul.f32 %v4429_v20, %v10628_v25  ;;  %v4430_v49 = vld [vmem:[%s11780_s7 + $0x9a8] sm:$0xff]  ;;  %3610 = vrot.lane.b32.xlu1 %v10080_v35, %s4671_s24 }
 0x69b   :  { %v10980_v40 = vadd.f32 %v3245_v55, %v3155_v31  ;;  %v3004_v23 = vadd.f32 %v10785_v7, %v12797_v63  ;;  %v3081_v56 = vsel %vm12798_vm8, %v12794_v37, %v12772_v39  ;;  %v3094_v7 = vmul.f32 %v4411_v1, %v3075_v48  ;;  %v4445_v25 = vld [vmem:[%s11780_s7 + $0xa20] sm:$0xff]  ;;  %vm12801_vm3 = vmmov %vm12773_vm4  ;;  %v3262_v24 = vpop.permute.xlu1 %3261 }
 0x69c   :  { %v10982_v46 = vadd.f32 %v3246_v8, %v3156_v2  ;;  %v3275_v9 = vsel %vm12799_vm2, %v10958_v59, %v3260_v16  ;;  %v3104_v39 = vadd.f32 %v3096_v30, %v10673_v3  ;;  %v3198_v60 = vadd.f32 %v3190_v13, %v3100_v34  ;;  %3612 = vrot.lane.b32.xlu0 %v10091_v11, %s4671_s24  ;;  %v12800_v55 = vld [vmem:[#allocation122_spill] sm:$0xff]  ;;  %v4428_v8 = vld [vmem:[%s11780_s7 + $0x998] sm:$0xff]  ;;  %vm12802_vm4 = vmmov %vm12801_vm3 }
 0x69d   :  { %v3191_v18 = vmul.f32 %v4426_v21, %v10645_v10  ;;  %v3288_v15 = vmul.f32 %v4441_v52, %v3275_v9  ;;  %v3101_v12 = vadd.f32 %v3093_v14, %v10781_v26  ;;  %v3105_v31 = vadd.f32 %v3097_v6, %v10802_v4  ;;  %v4427_v10 = vld [vmem:[%s11780_s7 + $0x990] sm:$0xff]  ;;  %v4442_v26 = vld [vmem:[%s11780_s7 + $0xa08] sm:$0xff]  ;;  %vm12803_vm5 = vmmov %vm12799_vm2  ;;  %v3264_v43 = vpop.permute.xlu0 %3263 }
 0x69e   :  { %v3095_v2 = vmul.f32 %v4412_v50, %v3081_v56  ;;  %v3076_v3 = vsel %vm12801_vm3, %v12789_v57, %v12800_v55  ;;  %v4415_v4 = vld [vmem:[%s11780_s7 + $0x930] sm:$0xff]  ;;  %v4416_v57 = vld [vmem:[%s11780_s7 + $0x938] sm:$0xff]  ;;  %v3082_v30 = vsel %vm12802_vm4, %v12800_v55, %v12785_v54  ;;  %v3195_v1 = vmul.f32 %v4430_v49, %v10684_v38  ;;  %vm12804_vm6 = vmmov %vm12799_vm2  ;;  %3614 = vrot.lane.b32.xlu1 %v10404_v51, %s4671_s24 }
 0x69f   :  { %v11049_v37 = vadd.f32 %v3288_v15, %v3198_v60  ;;  %v3276_v48 = vsel %vm12803_vm5, %v10984_v42, %v3262_v24  ;;  %v3102_v13 = vadd.f32 %v3094_v7, %v3003_v53  ;;  %v3202_v20 = vadd.f32 %v3194_v27, %v3104_v39  ;;  %v4431_v14 = vld [vmem:[%s11780_s7 + $0x9b0] sm:$0xff]  ;;  %v12805_v52 = vld [vmem:[#allocation39_spill] sm:$0xff]  ;;  %v4432_v53 = vld [vmem:[%s11780_s7 + $0x9b8] sm:$0xff] }
 0x6a0   :  { %v3292_v6 = vmul.f32 %v4445_v25, %v3276_v48  ;;  %v3273_v21 = vsel %vm12804_vm6, %v3260_v16, %v3264_v43  ;;  %v3199_v38 = vadd.f32 %v3191_v18, %v3101_v12  ;;  %v3192_v54 = vmul.f32 %v4427_v10, %v10699_v44  ;;  %3616 = vrot.lane.b32.xlu0 %v10432_v47, %s4671_s24  ;;  %v4446_v50 = vld [vmem:[%s11780_s7 + $0xa28] sm:$0xff]  ;;  %v3266_v44 = vpop.permute.xlu1 %3265  ;;  %v4443_v49 = vld [vmem:[%s11780_s7 + $0xa10] sm:$0xff]  ;;  %v4444_v9 = vld [vmem:[%s11780_s7 + $0xa18] sm:$0xff] }
 0x6a1   :  { %v3193_v63 = vmul.f32 %v4428_v8, %v12805_v52  ;;  %v3289_v34 = vmul.f32 %v4442_v26, %v3273_v21  ;;  %v3103_v56 = vadd.f32 %v3095_v2, %v3004_v23  ;;  %v3098_v16 = vmul.f32 %v4415_v4, %v3076_v3  ;;  %vm12806_vm10 = vmmov %vm12799_vm2  ;;  %v3268_v15 = vpop.permute.xlu0 %3267  ;;  %v4448_v8 = vld [vmem:[%s11780_s7 + $0xa38] sm:$0xff]  ;;  %v4450_v52 = vld [vmem:[%s11780_s7 + $0xa48] sm:$0xff] }
 0x6a2   :  { %v3099_v7 = vmul.f32 %v4416_v57, %v3082_v30  ;;  %v11071_v27 = vadd.f32 %v3292_v6, %v3202_v20  ;;  %v3203_v39 = vadd.f32 %v3195_v1, %v3105_v31  ;;  %v3196_v60 = vmul.f32 %v4431_v14, %v10771_v58  ;;  %vm12807_vm0 = vmmov %vm12799_vm2  ;;  %3618 = vrot.lane.b32.xlu1 %v10458_v33, %s4671_s24 }
 0x6a3   :  { %v11080_v18 = vadd.f32 %v3289_v34, %v3199_v38  ;;  %v3274_v23 = vsel %vm12806_vm10, %v3262_v24, %v3266_v44  ;;  %v3197_v25 = vmul.f32 %v4432_v53, %v10776_v45  ;;  %v3271_v2 = vsel %vm12807_vm0, %v3264_v43, %v3268_v15  ;;  %vm12808_vm11 = vmmov %vm12807_vm0  ;;  %v4447_v45 = vld [vmem:[%s11780_s7 + $0xa30] sm:$0xff] }
 0x6a4   :  { %v3293_v12 = vmul.f32 %v4446_v50, %v3274_v23  ;;  %v3277_v55 = vsel %vm12808_vm11, %v3268_v15, %v10958_v59  ;;  %v3200_v58 = vadd.f32 %v3192_v54, %v3102_v13  ;;  %v3201_v31 = vadd.f32 %v3193_v63, %v3103_v56  ;;  %3654 = vrot.lane.b32.xlu0 %v10216_v61, %s4672_s19  ;;  %v3270_v4 = vpop.permute.xlu1 %3269  ;;  %vm12809_vm13 = vmmov %vm12807_vm0 }
 0x6a5   :  { %v3290_v3 = vmul.f32 %v4443_v49, %v3271_v2  ;;  %v3291_v10 = vmul.f32 %v4444_v9, %v3277_v55  ;;  %v3106_v59 = vadd.f32 %v3098_v16, %v10993_v19  ;;  %v3107_v24 = vadd.f32 %v3099_v7, %v11005_v0  ;;  %vm12810_vm14 = vmmov %vm12807_vm0  ;;  %v3305_v48 = vpop.permute.xlu0 %3304  ;;  %v4451_v7 = vld [vmem:[%s11780_s7 + $0xa50] sm:$0xff] }
 0x6a6   :  { %v11102_v26 = vadd.f32 %v3293_v12, %v3203_v39  ;;  %v3272_v61 = vsel %vm12809_vm13, %v3266_v44, %v3270_v4  ;;  %v3278_v1 = vsel %vm12810_vm14, %v3270_v4, %v10984_v42  ;;  %3656 = vrot.lane.b32.xlu1 %v10269_v5, %s4672_s19  ;;  %v4449_v42 = vld [vmem:[%s11780_s7 + $0xa40] sm:$0xff]  ;;  %v3717_v12 = vld [vmem:[%s11781_s9 + $0x8] sm:$0xff]  ;;  %vm3420_vm1 = vcmp.lt.s32.totalorder %v4832_v29, 82 }
 0x6a7   :  { %v11104_v57 = vadd.f32 %v3290_v3, %v3200_v58  ;;  %v11106_v30 = vadd.f32 %v3291_v10, %v3201_v31  ;;  %v3204_v43 = vadd.f32 %v3196_v60, %v3106_v59  ;;  %v3205_v13 = vadd.f32 %v3197_v25, %v3107_v24  ;;  %v4456_v25 = vld [vmem:[%s11780_s7 + $0xa78] sm:$0xff]  ;;  %v4457_v4 = vld [vmem:[%s11780_s7 + $0xa80] sm:$0xff] }
 0x6a8   :  { %v3294_v19 = vmul.f32 %v4447_v45, %v3272_v61  ;;  %v3295_v20 = vmul.f32 %v4448_v8, %v3278_v1  ;;  %3658 = vrot.lane.b32.xlu0 %v10276_v28, %s4672_s19  ;;  %v3307_v6 = vpop.permute.xlu1 %3306  ;;  %v4453_v28 = vld [vmem:[%s11780_s7 + $0xa60] sm:$0xff]  ;;  %vm3470_vm15 = vcmp.lt.s32.totalorder %v4832_v29, 81  ;;  %vm3520_vm7 = vcmp.lt.s32.totalorder %v4832_v29, 80 }
 0x6a9   :  { %v3309_v21 = vpop.permute.xlu0 %3308  ;;  %vm3570_vm8 = vcmp.lt.s32.totalorder %v4832_v29, 79  ;;  %vm3620_vm2 = vcmp.lt.s32.totalorder %v4832_v29, 78  ;;  %vm3670_vm3 = vcmp.lt.s32.totalorder %v4832_v29, 77  ;;  %v3712_v29 = vld [vmem:[%s11782_s8] sm:$0xff]  ;;  %vm3740_vm4 = vcmask 130048  }
 0x6aa   :  { %v11118_v0 = vadd.f32 %v3294_v19, %v3204_v43  ;;  %v11120_v14 = vadd.f32 %v3295_v20, %v3205_v13  ;;  %v3325_v38 = vsel %vm3320_vm9, %v3305_v48, %v3309_v21  ;;  %3660 = vrot.lane.b32.xlu1 %v10080_v35, %s4672_s19  ;;  %v4461_v43 = vld [vmem:[%s11780_s7 + $0xaa0] sm:$0xff] }
 0x6ab   :  { %v3338_v5 = vmul.f32 %v4449_v42, %v3325_v38  ;;  %v4462_v38 = vld [vmem:[%s11780_s7 + $0xaa8] sm:$0xff] }
 0x6ac   :  { %3662 = vrot.lane.b32.xlu0 %v10091_v11, %s4672_s19  ;;  %v3311_v54 = vpop.permute.xlu1 %3310 }
 0x6ad   :  { %v11138_v63 = vadd.f32 %v3338_v5, %v10868_v62  ;;  %v3326_v53 = vsel %vm3320_vm9, %v3307_v6, %v3311_v54  ;;  %v3313_v35 = vpop.permute.xlu0 %3312  ;;  %v4454_v62 = vld [vmem:[%s11780_s7 + $0xa68] sm:$0xff] }
 0x6ae   :  { %v3342_v34 = vmul.f32 %v4453_v28, %v3326_v53  ;;  %v3323_v11 = vsel %vm3320_vm9, %v3309_v21, %v3313_v35  ;;  %3664 = vrot.lane.b32.xlu1 %v10404_v51, %s4672_s19  ;;  %v4452_v51 = vld [vmem:[%s11780_s7 + $0xa58] sm:$0xff] }
 0x6af   :  { %v3339_v50 = vmul.f32 %v4450_v52, %v3323_v11 }
 0x6b0   :  { %3666 = vrot.lane.b32.xlu0 %v10432_v47, %s4672_s19  ;;  %v11152_v56 = vadd.f32 %v3342_v34, %v10895_v32  ;;  %v3315_v16 = vpop.permute.xlu1 %3314  ;;  %v3716_v47 = vld [vmem:[%s11781_s9] sm:$0xff] }
 0x6b1   :  { %v11164_v44 = vadd.f32 %v3339_v50, %v10904_v17  ;;  %v3324_v32 = vsel %vm3320_vm9, %v3311_v54, %v3315_v16  ;;  %v3317_v49 = vpop.permute.xlu0 %3316  ;;  %v4455_v17 = vld [vmem:[%s11780_s7 + $0xa70] sm:$0xff]  ;;  %v4460_v54 = vld [vmem:[%s11780_s7 + $0xa98] sm:$0xff] }
 0x6b2   :  { %v3343_v9 = vmul.f32 %v4454_v62, %v3324_v32  ;;  %v3321_v39 = vsel %vm3320_vm9, %v3313_v35, %v3317_v49  ;;  %v3327_v60 = vsel %vm3320_vm9, %v3317_v49, %v3305_v48  ;;  %3668 = vrot.lane.b32.xlu1 %v10458_v33, %s4672_s19  ;;  %v3718_v33 = vld [vmem:[%s11781_s9 + $0x10] sm:$0xff] }
 0x6b3   :  { %v3340_v23 = vmul.f32 %v4451_v7, %v3321_v39  ;;  %v3341_v15 = vmul.f32 %v4452_v51, %v3327_v60 }
 0x6b4   :  { %3722 = vperm.xlu0 %4579, %v3716_v47   ;;  %v11184_v2 = vadd.f32 %v3343_v9, %v10941_v36  ;;  %v3319_v55 = vpop.permute.xlu1 %3318 }
 0x6b5   :  { %v11190_v58 = vadd.f32 %v3340_v23, %v10949_v22  ;;  %v11193_v31 = vadd.f32 %v3341_v15, %v10951_v41  ;;  %v3322_v3 = vsel %vm3320_vm9, %v3315_v16, %v3319_v55  ;;  %v3328_v10 = vsel %vm3320_vm9, %v3319_v55, %v3307_v6  ;;  %v3355_v45 = vpop.permute.xlu0 %3354  ;;  %v3719_v22 = vld [vmem:[%s11781_s9 + $0x18] sm:$0xff]  ;;  %v4463_v16 = vld [vmem:[%s11780_s7 + $0xab0] sm:$0xff]  ;;  %v4469_v55 = vld [vmem:[%s11780_s7 + $0xae0] sm:$0xff] }
 0x6b6   :  { %v3344_v36 = vmul.f32 %v4455_v17, %v3322_v3  ;;  %v3345_v8 = vmul.f32 %v4456_v25, %v3328_v10  ;;  %3727 = vperm.xlu1 %4580, %v3717_v12  }
 0x6b8   :  { %3732 = vperm.xlu0 %4579, %v3718_v33   ;;  %v11204_v41 = vadd.f32 %v3344_v36, %v10980_v40  ;;  %v11207_v59 = vadd.f32 %v3345_v8, %v10982_v46  ;;  %v3357_v24 = vpop.permute.xlu1 %3356  ;;  %v4458_v46 = vld [vmem:[%s11780_s7 + $0xa88] sm:$0xff] }
 0x6b9   :  { %v3359_v61 = vpop.permute.xlu0 %3358 }
 0x6ba   :  { %v3375_v1 = vsel %vm3370_vm12, %v3355_v45, %v3359_v61  ;;  %3737 = vperm.xlu1 %4580, %v3719_v22   ;;  %v4470_v22 = vld [vmem:[%s11780_s7 + $0xae8] sm:$0xff] }
 0x6bb   :  { %v3388_v48 = vmul.f32 %v4457_v4, %v3375_v1 }
 0x6bc   :  { %v3361_v40 = vpop.permute.xlu1 %3360 }
 0x6bd   :  { %v11221_v13 = vadd.f32 %v3388_v48, %v11049_v37  ;;  %v3376_v19 = vsel %vm3370_vm12, %v3357_v24, %v3361_v40  ;;  %v3363_v20 = vpop.permute.xlu0 %3362  ;;  %v4459_v37 = vld [vmem:[%s11780_s7 + $0xa90] sm:$0xff] }
 0x6be   :  { %v3392_v6 = vmul.f32 %v4461_v43, %v3376_v19  ;;  %v3373_v42 = vsel %vm3370_vm12, %v3359_v61, %v3363_v20  ;;  %v4468_v61 = vld [vmem:[%s11780_s7 + $0xad8] sm:$0xff] }
 0x6bf   :  { %v3389_v21 = vmul.f32 %v4458_v46, %v3373_v42 }
 0x6c0   :  { %v11231_v5 = vadd.f32 %v3392_v6, %v11071_v27  ;;  %v3365_v28 = vpop.permute.xlu1 %3364  ;;  %v4471_v6 = vld [vmem:[%s11780_s7 + $0xaf0] sm:$0xff] }
 0x6c1   :  { %v11240_v52 = vadd.f32 %v3389_v21, %v11080_v18  ;;  %v3374_v53 = vsel %vm3370_vm12, %v3361_v40, %v3365_v28  ;;  %v3367_v35 = vpop.permute.xlu0 %3366  ;;  %v4464_v18 = vld [vmem:[%s11780_s7 + $0xab8] sm:$0xff] }
 0x6c2   :  { %v3393_v34 = vmul.f32 %v4462_v38, %v3374_v53  ;;  %v3371_v27 = vsel %vm3370_vm12, %v3363_v20, %v3367_v35  ;;  %v3377_v11 = vsel %vm3370_vm12, %v3367_v35, %v3355_v45 }
 0x6c3   :  { %v3390_v50 = vmul.f32 %v4459_v37, %v3371_v27  ;;  %v3391_v62 = vmul.f32 %v4460_v54, %v3377_v11 }
 0x6c4   :  { %v11255_v7 = vadd.f32 %v3393_v34, %v11102_v26  ;;  %v3369_v51 = vpop.permute.xlu1 %3368 }
 0x6c5   :  { %v11258_v47 = vadd.f32 %v3390_v50, %v11104_v57  ;;  %v11261_v32 = vadd.f32 %v3391_v62, %v11106_v30  ;;  %v3372_v49 = vsel %vm3370_vm12, %v3365_v28, %v3369_v51  ;;  %v3378_v9 = vsel %vm3370_vm12, %v3369_v51, %v3357_v24  ;;  %v3405_v39 = vpop.permute.xlu0 %3404  ;;  %v4465_v30 = vld [vmem:[%s11780_s7 + $0xac0] sm:$0xff] }
 0x6c6   :  { %v3394_v60 = vmul.f32 %v4463_v16, %v3372_v49  ;;  %v3395_v23 = vmul.f32 %v4464_v18, %v3378_v9  ;;  %v4477_v16 = vld [vmem:[%s11780_s7 + $0xb20] sm:$0xff] }
 0x6c8   :  { %v11269_v26 = vadd.f32 %v3394_v60, %v11118_v0  ;;  %v11272_v57 = vadd.f32 %v3395_v23, %v11120_v14  ;;  %v3407_v15 = vpop.permute.xlu1 %3406  ;;  %v4466_v0 = vld [vmem:[%s11780_s7 + $0xac8] sm:$0xff] }
 0x6c9   :  { %v3409_v17 = vpop.permute.xlu0 %3408  ;;  %v4478_v23 = vld [vmem:[%s11780_s7 + $0xb28] sm:$0xff] }
 0x6ca   :  { %v3425_v25 = vsel %vm3420_vm1, %v3405_v39, %v3409_v17 }
 0x6cb   :  { %v3438_v12 = vmul.f32 %v4465_v30, %v3425_v25 }
 0x6cc   :  { %v3411_v33 = vpop.permute.xlu1 %3410 }
 0x6cd   :  { %v11286_v14 = vadd.f32 %v3438_v12, %v11138_v63  ;;  %v3426_v3 = vsel %vm3420_vm1, %v3407_v15, %v3411_v33  ;;  %v3413_v10 = vpop.permute.xlu0 %3412  ;;  %v4467_v63 = vld [vmem:[%s11780_s7 + $0xad0] sm:$0xff] }
 0x6ce   :  { %v3442_v45 = vmul.f32 %v4469_v55, %v3426_v3  ;;  %v3423_v36 = vsel %vm3420_vm1, %v3409_v17, %v3413_v10  ;;  %v4476_v17 = vld [vmem:[%s11780_s7 + $0xb18] sm:$0xff] }
 0x6cf   :  { %v3439_v8 = vmul.f32 %v4466_v0, %v3423_v36 }
 0x6d0   :  { %v11296_v24 = vadd.f32 %v3442_v45, %v11152_v56  ;;  %v3415_v4 = vpop.permute.xlu1 %3414  ;;  %v4479_v45 = vld [vmem:[%s11780_s7 + $0xb30] sm:$0xff] }
 0x6d1   :  { %v11305_v1 = vadd.f32 %v3439_v8, %v11164_v44  ;;  %v3424_v48 = vsel %vm3420_vm1, %v3411_v33, %v3415_v4  ;;  %v3417_v43 = vpop.permute.xlu0 %3416  ;;  %v4472_v44 = vld [vmem:[%s11780_s7 + $0xaf8] sm:$0xff] }
 0x6d2   :  { %v3443_v40 = vmul.f32 %v4470_v22, %v3424_v48  ;;  %v3421_v56 = vsel %vm3420_vm1, %v3413_v10, %v3417_v43  ;;  %v3427_v46 = vsel %vm3420_vm1, %v3417_v43, %v3405_v39 }
 0x6d3   :  { %v3440_v19 = vmul.f32 %v4467_v63, %v3421_v56  ;;  %v3441_v20 = vmul.f32 %v4468_v61, %v3427_v46 }
 0x6d4   :  { %v11320_v42 = vadd.f32 %v3443_v40, %v11184_v2  ;;  %v3419_v21 = vpop.permute.xlu1 %3418 }
 0x6d5   :  { %v11323_v38 = vadd.f32 %v3440_v19, %v11190_v58  ;;  %v11326_v28 = vadd.f32 %v3441_v20, %v11193_v31  ;;  %v3422_v37 = vsel %vm3420_vm1, %v3415_v4, %v3419_v21  ;;  %v3428_v54 = vsel %vm3420_vm1, %v3419_v21, %v3407_v15  ;;  %v3455_v53 = vpop.permute.xlu0 %3454  ;;  %v4473_v31 = vld [vmem:[%s11780_s7 + $0xb00] sm:$0xff] }
 0x6d6   :  { %v3444_v35 = vmul.f32 %v4471_v6, %v3422_v37  ;;  %v3445_v34 = vmul.f32 %v4472_v44, %v3428_v54 }
 0x6d8   :  { %v11334_v2 = vadd.f32 %v3444_v35, %v11204_v41  ;;  %v11337_v58 = vadd.f32 %v3445_v34, %v11207_v59  ;;  %v3457_v27 = vpop.permute.xlu1 %3456  ;;  %v4474_v41 = vld [vmem:[%s11780_s7 + $0xb08] sm:$0xff] }
 0x6d9   :  { %v3459_v11 = vpop.permute.xlu0 %3458 }
 0x6da   :  { %v3475_v50 = vsel %vm3470_vm15, %v3455_v53, %v3459_v11 }
 0x6db   :  { %v3488_v62 = vmul.f32 %v4473_v31, %v3475_v50  ;;  %v4481_v50 = vld [vmem:[%s11780_s7 + $0xb40] sm:$0xff] }
 0x6dc   :  { %v3461_v18 = vpop.permute.xlu1 %3460 }
 0x6dd   :  { %v11351_v59 = vadd.f32 %v3488_v62, %v11221_v13  ;;  %v3476_v51 = vsel %vm3470_vm15, %v3457_v27, %v3461_v18  ;;  %v3463_v49 = vpop.permute.xlu0 %3462  ;;  %v4475_v13 = vld [vmem:[%s11780_s7 + $0xb10] sm:$0xff] }
 0x6de   :  { %v3492_v9 = vmul.f32 %v4477_v16, %v3476_v51  ;;  %v3473_v39 = vsel %vm3470_vm15, %v3459_v11, %v3463_v49  ;;  %v4482_v51 = vld [vmem:[%s11780_s7 + $0xb48] sm:$0xff] }
 0x6df   :  { %v3489_v60 = vmul.f32 %v4474_v41, %v3473_v39  ;;  %v4486_v39 = vld [vmem:[%s11780_s7 + $0xb68] sm:$0xff] }
 0x6e0   :  { %v11361_v15 = vadd.f32 %v3492_v9, %v11231_v5  ;;  %v3465_v30 = vpop.permute.xlu1 %3464 }
 0x6e1   :  { %v11370_v25 = vadd.f32 %v3489_v60, %v11240_v52  ;;  %v3474_v12 = vsel %vm3470_vm15, %v3461_v18, %v3465_v30  ;;  %v3467_v55 = vpop.permute.xlu0 %3466  ;;  %v4480_v52 = vld [vmem:[%s11780_s7 + $0xb38] sm:$0xff]  ;;  %v4485_v18 = vld [vmem:[%s11780_s7 + $0xb60] sm:$0xff] }
 0x6e2   :  { %v3493_v33 = vmul.f32 %v4478_v23, %v3474_v12  ;;  %v3471_v5 = vsel %vm3470_vm15, %v3463_v49, %v3467_v55  ;;  %v3477_v0 = vsel %vm3470_vm15, %v3467_v55, %v3455_v53 }
 0x6e3   :  { %v3490_v3 = vmul.f32 %v4475_v13, %v3471_v5  ;;  %v3491_v10 = vmul.f32 %v4476_v17, %v3477_v0  ;;  %v4484_v13 = vld [vmem:[%s11780_s7 + $0xb58] sm:$0xff]  ;;  %v4487_v5 = vld [vmem:[%s11780_s7 + $0xb70] sm:$0xff] }
 0x6e4   :  { %v11385_v36 = vadd.f32 %v3493_v33, %v11255_v7  ;;  %v3469_v8 = vpop.permute.xlu1 %3468  ;;  %v4488_v0 = vld [vmem:[%s11780_s7 + $0xb78] sm:$0xff] }
 0x6e5   :  { %v11388_v22 = vadd.f32 %v3490_v3, %v11258_v47  ;;  %v11391_v4 = vadd.f32 %v3491_v10, %v11261_v32  ;;  %v3472_v63 = vsel %vm3470_vm15, %v3465_v30, %v3469_v8  ;;  %v3478_v61 = vsel %vm3470_vm15, %v3469_v8, %v3457_v27  ;;  %v3505_v48 = vpop.permute.xlu0 %3504  ;;  %v4483_v30 = vld [vmem:[%s11780_s7 + $0xb50] sm:$0xff]  ;;  %v4489_v8 = vld [vmem:[%s11780_s7 + $0xb80] sm:$0xff] }
 0x6e6   :  { %v3494_v43 = vmul.f32 %v4479_v45, %v3472_v63  ;;  %v3495_v40 = vmul.f32 %v4480_v52, %v3478_v61 }
 0x6e8   :  { %v11398_v56 = vadd.f32 %v3494_v43, %v11269_v26  ;;  %v11401_v7 = vadd.f32 %v3495_v40, %v11272_v57  ;;  %v3507_v47 = vpop.permute.xlu1 %3506  ;;  %v4493_v40 = vld [vmem:[%s11780_s7 + $0xba0] sm:$0xff] }
 0x6e9   :  { %v3509_v46 = vpop.permute.xlu0 %3508 }
 0x6ea   :  { %v3525_v62 = vsel %vm3520_vm7, %v3505_v48, %v3509_v46 }
 0x6eb   :  { %v3538_v23 = vmul.f32 %v4481_v50, %v3525_v62 }
 0x6ec   :  { %v3511_v19 = vpop.permute.xlu1 %3510 }
 0x6ed   :  { %v3513_v32 = vpop.permute.xlu0 %3512  ;;  %v3526_v41 = vsel %vm3520_vm7, %v3507_v47, %v3511_v19 }
 0x6ee   :  { %v3523_v49 = vsel %vm3520_vm7, %v3509_v46, %v3513_v32  ;;  %v3542_v55 = vmul.f32 %v4485_v18, %v3526_v41  ;;  %v4490_v46 = vld [vmem:[%s11780_s7 + $0xb88] sm:$0xff] }
 0x6ef   :  { %v3539_v33 = vmul.f32 %v4482_v51, %v3523_v49 }
 0x6f0   :  { %v3515_v20 = vpop.permute.xlu1 %3514  ;;  %v11491_v62 = vadd.f32 %v3542_v55, %v11296_v24  ;;  %v4492_v24 = vld [vmem:[%s11780_s7 + $0xb98] sm:$0xff]  ;;  %v4495_v55 = vld [vmem:[%s11780_s7 + $0xbb0] sm:$0xff] }
 0x6f1   :  { %v3517_v6 = vpop.permute.xlu0 %3516  ;;  %v3524_v60 = vsel %vm3520_vm7, %v3511_v19, %v3515_v20  ;;  %v11494_v18 = vadd.f32 %v3539_v33, %v11305_v1  ;;  %v4498_v33 = vld [vmem:[%s11780_s7 + $0xbc8] sm:$0xff] }
 0x6f2   :  { %v3521_v17 = vsel %vm3520_vm7, %v3513_v32, %v3517_v6  ;;  %v3527_v12 = vsel %vm3520_vm7, %v3517_v6, %v3505_v48  ;;  %v3543_v52 = vmul.f32 %v4486_v39, %v3524_v60  ;;  %v3546_v32 = vadd.f32 %v3538_v23, %v11286_v14  ;;  %v4491_v14 = vld [vmem:[%s11780_s7 + $0xb90] sm:$0xff] }
 0x6f3   :  { %v3540_v48 = vmul.f32 %v4483_v30, %v3521_v17  ;;  %v3541_v43 = vmul.f32 %v4484_v13, %v3527_v12 }
 0x6f4   :  { %v3519_v44 = vpop.permute.xlu1 %3518  ;;  %v3551_v23 = vadd.f32 %v3543_v52, %v11320_v42 }
 0x6f5   :  { %v3522_v3 = vsel %vm3520_vm7, %v3515_v20, %v3519_v44  ;;  %v3528_v10 = vsel %vm3520_vm7, %v3519_v44, %v3507_v47  ;;  %v4494_v44 = vld [vmem:[%s11780_s7 + $0xba8] sm:$0xff]  ;;  %v3548_v30 = vadd.f32 %v3540_v48, %v11323_v38  ;;  %v11520_v13 = vadd.f32 %v3541_v43, %v11326_v28 }
 0x6f6   :  { %v3555_v21 = vpop.permute.xlu0 %3554  ;;  %v3544_v20 = vmul.f32 %v4487_v5, %v3522_v3  ;;  %v3545_v6 = vmul.f32 %v4488_v0, %v3528_v10  ;;  %v4505_v0 = vld [vmem:[%s11780_s7 + $0xc00] sm:$0xff] }
 0x6f8   :  { %v11403_v37 = vpop.permute.xlu1 %3556 }
 0x6fa   :  { %v3559_v54 = vpop.permute.xlu0 %3558 }
 0x6fb   :  { %v3575_v63 = vsel %vm3570_vm8, %v3555_v21, %v3559_v54 }
 0x6fc   :  { %v3561_v53 = vpop.permute.xlu1 %3560  ;;  %v3588_v41 = vmul.f32 %v4489_v8, %v3575_v63  ;;  %v4502_v8 = vld [vmem:[%s11780_s7 + $0xbe8] sm:$0xff] }
 0x6fd   :  { %v3576_v47 = vsel %vm3570_vm8, %v11403_v37, %v3561_v53 }
 0x6fe   :  { %v3563_v35 = vpop.permute.xlu0 %3562  ;;  %v3592_v49 = vmul.f32 %v4493_v40, %v3576_v47  ;;  %v3596_v3 = vadd.f32 %v3588_v41, %v11351_v59  ;;  %v4499_v59 = vld [vmem:[%s11780_s7 + $0xbd0] sm:$0xff]  ;;  %v4506_v41 = vld [vmem:[%s11780_s7 + $0xc08] sm:$0xff] }
 0x6ff   :  { %v3573_v19 = vsel %vm3570_vm8, %v3559_v54, %v3563_v35 }
 0x700   :  { %v11405_v34 = vpop.permute.xlu1 %3564  ;;  %v3589_v39 = vmul.f32 %v4490_v46, %v3573_v19  ;;  %v3600_v10 = vadd.f32 %v3592_v49, %v11361_v15 }
 0x701   :  { %v3574_v50 = vsel %vm3570_vm8, %v3561_v53, %v11405_v34  ;;  %v4497_v53 = vld [vmem:[%s11780_s7 + $0xbc0] sm:$0xff] }
 0x702   :  { %v3567_v26 = vpop.permute.xlu0 %3566  ;;  %v3593_v17 = vmul.f32 %v4494_v44, %v3574_v50  ;;  %v3597_v52 = vadd.f32 %v3589_v39, %v11370_v25 }
 0x703   :  { %v3571_v54 = vsel %vm3570_vm8, %v3563_v35, %v3567_v26  ;;  %v3577_v1 = vsel %vm3570_vm8, %v3567_v26, %v3555_v21  ;;  %v11523_v21 = vadd.f32 %v3544_v20, %v11334_v2  ;;  %v11526_v26 = vadd.f32 %v3545_v6, %v11337_v58  ;;  %v4501_v2 = vld [vmem:[%s11780_s7 + $0xbe0] sm:$0xff] }
 0x704   :  { %v11407_v27 = vpop.permute.xlu1 %3568  ;;  %v3590_v12 = vmul.f32 %v4491_v14, %v3571_v54  ;;  %v3591_v38 = vmul.f32 %v4492_v24, %v3577_v1  ;;  %v3601_v48 = vadd.f32 %v3593_v17, %v11385_v36 }
 0x705   :  { %v3572_v42 = vsel %vm3570_vm8, %v11405_v34, %v11407_v27  ;;  %v3578_v36 = vsel %vm3570_vm8, %v11407_v27, %v11403_v37  ;;  %v4500_v37 = vld [vmem:[%s11780_s7 + $0xbd8] sm:$0xff] }
 0x706   :  { %v11409_v57 = vpop.permute.xlu0 %3604  ;;  %v3594_v43 = vmul.f32 %v4495_v55, %v3572_v42  ;;  %v3598_v19 = vadd.f32 %v3590_v12, %v11388_v22  ;;  %v3599_v20 = vadd.f32 %v3591_v38, %v11391_v4 }
 0x708   :  { %v11411_v31 = vpop.permute.xlu1 %3606  ;;  %v3602_v49 = vadd.f32 %v3594_v43, %v11398_v56  ;;  %v4503_v56 = vld [vmem:[%s11780_s7 + $0xbf0] sm:$0xff] }
 0x70a   :  { %v11414_v11 = vpop.permute.xlu0 %3608 }
 0x70b   :  { %v3625_v35 = vsel %vm3620_vm2, %v11409_v57, %v11414_v11 }
 0x70c   :  { %v11421_v16 = vpop.permute.xlu1 %3610  ;;  %v3638_v28 = vmul.f32 %v4497_v53, %v3625_v35 }
 0x70d   :  { %v3626_v58 = vsel %vm3620_vm2, %v11411_v31, %v11421_v16 }
 0x70e   :  { %v11433_v9 = vpop.permute.xlu0 %3612  ;;  %v3642_v40 = vmul.f32 %v4501_v2, %v3626_v58  ;;  %v3646_v6 = vadd.f32 %v3638_v28, %v3546_v32  ;;  %v4504_v28 = vld [vmem:[%s11780_s7 + $0xbf8] sm:$0xff] }
 0x70f   :  { %v3623_v34 = vsel %vm3620_vm2, %v11414_v11, %v11433_v9 }
 0x710   :  { %v11461_v45 = vpop.permute.xlu1 %3614  ;;  %v3639_v47 = vmul.f32 %v4498_v33, %v3623_v34  ;;  %v3650_v1 = vadd.f32 %v3642_v40, %v11491_v62 }
 0x711   :  { %v3624_v11 = vsel %vm3620_vm2, %v11421_v16, %v11461_v45  ;;  %v4496_v16 = vld [vmem:[%s11780_s7 + $0xbb8] sm:$0xff] }
 0x712   :  { %v11469_v61 = vpop.permute.xlu0 %3616  ;;  %v3643_v44 = vmul.f32 %v4502_v8, %v3624_v11  ;;  %v3595_v54 = vmul.f32 %v4496_v16, %v3578_v36  ;;  %v3647_v53 = vadd.f32 %v3639_v47, %v11494_v18  ;;  %v4507_v18 = vld [vmem:[%s11780_s7 + $0xc10] sm:$0xff] }
 0x713   :  { %v3621_v15 = vsel %vm3620_vm2, %v11433_v9, %v11469_v61  ;;  %v4509_v9 = vld [vmem:[%s11780_s7 + $0xc20] sm:$0xff]  ;;  %v3627_v27 = vsel %vm3620_vm2, %v11469_v61, %v11409_v57  ;;  %v4510_v61 = vld [vmem:[%s11780_s7 + $0xc28] sm:$0xff] }
 0x714   :  { %v11501_v51 = vpop.permute.xlu1 %3618  ;;  %v3640_v14 = vmul.f32 %v4499_v59, %v3621_v15  ;;  %v3651_v17 = vadd.f32 %v3643_v44, %v3551_v23  ;;  %v3641_v12 = vmul.f32 %v4500_v37, %v3627_v27  ;;  %v4508_v23 = vld [vmem:[%s11780_s7 + $0xc18] sm:$0xff]  ;;  %v3603_v47 = vadd.f32 %v3595_v54, %v11401_v7 }
 0x715   :  { %v3622_v55 = vsel %vm3620_vm2, %v11461_v45, %v11501_v51  ;;  %v3628_v45 = vsel %vm3620_vm2, %v11501_v51, %v11411_v31  ;;  %v4511_v31 = vld [vmem:[%s11780_s7 + $0xc30] sm:$0xff]  ;;  %v4512_v51 = vld [vmem:[%s11780_s7 + $0xc38] sm:$0xff] }
 0x716   :  { %v11515_v60 = vpop.permute.xlu0 %3654  ;;  %v3648_v38 = vadd.f32 %v3640_v14, %v3548_v30  ;;  %v3645_v43 = vmul.f32 %v4504_v28, %v3628_v45  ;;  %v3714_v14 = vld [vmem:[%s11782_s8 + $0x10] sm:$0xff] }
 0x718   :  { %v11549_v5 = vpop.permute.xlu1 %3656 }
 0x71a   :  { %v3659_v63 = vpop.permute.xlu0 %3658 }
 0x71b   :  { %v3675_v25 = vsel %vm3670_vm3, %v11515_v60, %v3659_v63 }
 0x71c   :  { %v3688_v46 = vmul.f32 %v4505_v0, %v3675_v25  ;;  %v3661_v50 = vpop.permute.xlu1 %3660 }
 0x71d   :  { %v3676_v4 = vsel %vm3670_vm3, %v11549_v5, %v3661_v50 }
 0x71e   :  { %v3696_v22 = vadd.f32 %v3688_v46, %v3596_v3  ;;  %v3663_v32 = vpop.permute.xlu0 %3662  ;;  %v3692_v39 = vmul.f32 %v4509_v9, %v3676_v4 }
 0x71f   :  { %v3673_v24 = vsel %vm3670_vm3, %v3659_v63, %v3663_v32  ;;  %v3649_v63 = vadd.f32 %v3641_v12, %v11520_v13 }
 0x720   :  { %v3704_v35 = vadd.f32 %v3696_v22, %v3646_v6  ;;  %v3689_v57 = vmul.f32 %v4506_v41, %v3673_v24  ;;  %v3700_v62 = vadd.f32 %v3692_v39, %v3600_v10  ;;  %v3665_v42 = vpop.permute.xlu1 %3664  ;;  %v3644_v10 = vmul.f32 %v4503_v56, %v3622_v55  ;;  %v3715_v22 = vld [vmem:[%s11782_s8 + $0x18] sm:$0xff] }
 0x721   :  { %v3674_v58 = vsel %vm3670_vm3, %v3661_v50, %v3665_v42  ;;  %v3653_v50 = vadd.f32 %v3645_v43, %v11526_v26  ;;  %v3713_v26 = vld [vmem:[%s11782_s8 + $0x8] sm:$0xff] }
 0x722   :  { %v3697_v2 = vadd.f32 %v3689_v57, %v3597_v52  ;;  %v3667_v33 = vpop.permute.xlu0 %3666  ;;  %v3708_v34 = vadd.f32 %v3700_v62, %v3650_v1  ;;  %v3693_v0 = vmul.f32 %v4510_v61, %v3674_v58  ;;  %v3652_v13 = vadd.f32 %v3644_v10, %v11523_v21 }
 0x723   :  { %v3671_v3 = vsel %vm3670_vm3, %v3663_v32, %v3667_v33  ;;  %v3677_v30 = vsel %vm3670_vm3, %v3667_v33, %v11515_v60  ;;  %v12811_v21 = vmov 0.0  }
 0x724   :  { %v3690_v8 = vmul.f32 %v4507_v18, %v3671_v3  ;;  %v3691_v11 = vmul.f32 %v4508_v23, %v3677_v30  ;;  %v3705_v52 = vadd.f32 %v3697_v2, %v3647_v53  ;;  %v3701_v59 = vadd.f32 %v3693_v0, %v3601_v48  ;;  %v3669_v15 = vpop.permute.xlu1 %3668 }
 0x725   :  { %v4523_v25 = vpack.c.bf16 %v3708_v34, %v3704_v35  ;;  %v3672_v36 = vsel %vm3670_vm3, %v3665_v42, %v3669_v15  ;;  %v3678_v40 = vsel %vm3670_vm3, %v3669_v15, %v11549_v5 }
 0x726   :  { %v3698_v16 = vadd.f32 %v3690_v8, %v3598_v19  ;;  %v3699_v60 = vadd.f32 %v3691_v11, %v3599_v20  ;;  %v3694_v46 = vmul.f32 %v4511_v31, %v3672_v36  ;;  %v3695_v9 = vmul.f32 %v4512_v51, %v3678_v40 }
 0x727   :  { %v3709_v6 = vadd.f32 %v3701_v59, %v3651_v17 }
 0x728   :  { %v3706_v44 = vadd.f32 %v3698_v16, %v3648_v38  ;;  %v3707_v48 = vadd.f32 %v3699_v60, %v3649_v63  ;;  %v3702_v19 = vadd.f32 %v3694_v46, %v3602_v49  ;;  %v3703_v20 = vadd.f32 %v3695_v9, %v3603_v47 }
 0x729   :  { %v4521_v41 = vpack.c.bf16 %v3709_v6, %v3705_v52 }
 0x72a   :  { %v3710_v37 = vadd.f32 %v3702_v19, %v3652_v13  ;;  %v3711_v27 = vadd.f32 %v3703_v20, %v3653_v50 }
 0x72b   :  { %4522 = vmatprep.subr.bf16.mxu0 %v4521_v41 }
 0x72c   :  { %4524 = vmatpush1.bf16.msra.mxu0 %v4523_v25  ;;  %v4525_v7 = vpack.c.bf16 %v3711_v27, %v3707_v48  ;;  %v4527_v5 = vpack.c.bf16 %v3710_v37, %v3706_v44 }
 0x72e   :  { %4526 = vmatprep.subr.bf16.mxu1 %v4525_v7 }
 0x72f   :  { %4513 = vmatmul.mubr.msk.f32.vlgmr.msra.gmra.mrb[6].mxu0 %vm3740_vm4, %v3712_v29  ;;  %4528 = vmatpush1.bf16.msra.mxu1 %v4527_v5 }
 0x730   :  { %3823 = vmatprep.mubr.f32.mxu0 %v12811_v21 }
 0x732   :  { %4517 = vmatmul.mubr.msk.f32.vlgmr.msra.gmra.mrb[6].mxu1 %vm3740_vm4, %v3712_v29 }
 0x733   :  { %4514 = vmatmul.mubr.msk.f32.gmra.mrb[8].mxu0 %vm3740_vm4, %v3713_v26  ;;  %3912 = vmatprep.mubr.f32.mxu1 %v12811_v21  ;;  %v3723_v4 = vpop.permute.xlu0 %3722 }
 0x734   :  { %3829 = vmatprep.mubr.f32.mxu0 %v12811_v21 }
 0x735   :  { %v3728_v24 = vpop.permute.xlu1 %3727 }
 0x736   :  { %4518 = vmatmul.mubr.msk.f32.gmra.mrb[8].mxu1 %vm3740_vm4, %v3713_v26 }
 0x737   :  { %4515 = vmatmul.mubr.msk.f32.gmra.mrb[10].mxu0 %vm3740_vm4, %v3714_v14  ;;  %3918 = vmatprep.mubr.f32.mxu1 %v12811_v21  ;;  %v3733_v42 = vpop.permute.xlu0 %3732 }
 0x738   :  { %3835 = vmatprep.mubr.f32.mxu0 %v12811_v21 }
 0x739   :  { %v3738_v10 = vpop.permute.xlu1 %3737 }
 0x73a   :  { %4519 = vmatmul.mubr.msk.f32.gmra.mrb[10].mxu1 %vm3740_vm4, %v3714_v14 }
 0x73b   :  { %4516 = vmatmul.mubr.msk.f32.gmra.mrb[12].mxu0 %vm3740_vm4, %v3715_v22  ;;  %3924 = vmatprep.mubr.f32.mxu1 %v12811_v21 }
 0x73e   :  { %4520 = vmatmul.mubr.msk.f32.gmra.mrb[12].mxu1 %vm3740_vm4, %v3715_v22 }
 0x802   :  { %v3819_v32 = vpop.f32.mrb[6].mxu0 }
 0x803   :  { %v3820_v54 = vadd.f32 %v3819_v32, %v3723_v4  ;;  %v3821_v49 = vpop.f32.mrb[7].mxu0 }
 0x804   :  { %v3822_v39 = vadd.f32 %v3821_v49, %v3723_v4 }
 0x805   :  { %v3931_v1 = vmax.f32 %v3820_v54, 0.0  ;;  %v3908_v57 = vpop.f32.mrb[6].mxu1 }
 0x806   :  { %v3932_v53 = vmax.f32 %v3822_v39, 0.0  ;;  %v3825_v35 = vpop.f32.mrb[8].mxu0  ;;  %v3909_v17 = vadd.f32 %v3908_v57, %v3723_v4  ;;  %v3910_v56 = vpop.f32.mrb[7].mxu1 }
 0x807   :  { %3959 = vst [vmem:[%s11777_s10 + $0x60] sm:$0xff] %v3931_v1  ;;  %3987 = vst [vmem:[%s11777_s10 + $0x140] sm:$0xff] %v3931_v1  ;;  %v3826_v61 = vadd.f32 %v3825_v35, %v3728_v24  ;;  %v3827_v12 = vpop.f32.mrb[9].mxu0  ;;  %v3911_v62 = vadd.f32 %v3910_v56, %v3723_v4 }
 0x808   :  { %3960 = vst [vmem:[%s11777_s10 + $0x68] sm:$0xff] %v3932_v53  ;;  %3988 = vst [vmem:[%s11777_s10 + $0x148] sm:$0xff] %v3932_v53  ;;  %v3828_v55 = vadd.f32 %v3827_v12, %v3728_v24  ;;  %v3933_v23 = vmax.f32 %v3909_v17, 0.0 }
 0x809   :  { %v3935_v18 = vmax.f32 %v3826_v61, 0.0  ;;  %v3934_v28 = vmax.f32 %v3911_v62, 0.0  ;;  %v3914_v2 = vpop.f32.mrb[8].mxu1 }
 0x80a   :  { %v3936_v38 = vmax.f32 %v3828_v55, 0.0  ;;  %v3831_v45 = vpop.f32.mrb[10].mxu0  ;;  %3961 = vst [vmem:[%s11777_s10 + $0x70] sm:$0xff] %v3933_v23  ;;  %3989 = vst [vmem:[%s11777_s10 + $0x150] sm:$0xff] %v3933_v23  ;;  %v3915_v33 = vadd.f32 %v3914_v2, %v3728_v24  ;;  %v3916_v0 = vpop.f32.mrb[9].mxu1 }
 0x80b   :  { %3963 = vst [vmem:[%s11777_s10 + $0x80] sm:$0xff] %v3935_v18  ;;  %3991 = vst [vmem:[%s11777_s10 + $0x160] sm:$0xff] %v3935_v18  ;;  %v3832_v58 = vadd.f32 %v3831_v45, %v3733_v42  ;;  %v3833_v34 = vpop.f32.mrb[11].mxu0  ;;  %v3917_v30 = vadd.f32 %v3916_v0, %v3728_v24 }
 0x80c   :  { %3964 = vst [vmem:[%s11777_s10 + $0x88] sm:$0xff] %v3936_v38  ;;  %3992 = vst [vmem:[%s11777_s10 + $0x168] sm:$0xff] %v3936_v38  ;;  %v3834_v3 = vadd.f32 %v3833_v34, %v3733_v42  ;;  %v3937_v11 = vmax.f32 %v3915_v33, 0.0 }
 0x80d   :  { %3962 = vst [vmem:[%s11777_s10 + $0x78] sm:$0xff] %v3934_v28  ;;  %3990 = vst [vmem:[%s11777_s10 + $0x158] sm:$0xff] %v3934_v28  ;;  %v3939_v8 = vmax.f32 %v3832_v58, 0.0  ;;  %v3938_v51 = vmax.f32 %v3917_v30, 0.0  ;;  %v3920_v63 = vpop.f32.mrb[10].mxu1 }
 0x80e   :  { %v3940_v31 = vmax.f32 %v3834_v3, 0.0  ;;  %v3837_v52 = vpop.f32.mrb[12].mxu0  ;;  %3965 = vst [vmem:[%s11777_s10 + $0x90] sm:$0xff] %v3937_v11  ;;  %3993 = vst [vmem:[%s11777_s10 + $0x170] sm:$0xff] %v3937_v11  ;;  %v3921_v59 = vadd.f32 %v3920_v63, %v3733_v42  ;;  %v3922_v25 = vpop.f32.mrb[11].mxu1 }
 0x80f   :  { %3967 = vst [vmem:[%s11777_s10 + $0xa0] sm:$0xff] %v3939_v8  ;;  %3995 = vst [vmem:[%s11777_s10 + $0x180] sm:$0xff] %v3939_v8  ;;  %v3838_v43 = vadd.f32 %v3837_v52, %v3738_v10  ;;  %v3839_v15 = vpop.f32.mrb[13].mxu0  ;;  %v3923_v60 = vadd.f32 %v3922_v25, %v3733_v42 }
 0x810   :  { %3968 = vst [vmem:[%s11777_s10 + $0xa8] sm:$0xff] %v3940_v31  ;;  %3996 = vst [vmem:[%s11777_s10 + $0x188] sm:$0xff] %v3940_v31  ;;  %v3840_v16 = vadd.f32 %v3839_v15, %v3738_v10  ;;  %v3941_v40 = vmax.f32 %v3921_v59, 0.0 }
 0x811   :  { %3966 = vst [vmem:[%s11777_s10 + $0x98] sm:$0xff] %v3938_v51  ;;  %3994 = vst [vmem:[%s11777_s10 + $0x178] sm:$0xff] %v3938_v51  ;;  %v3943_v36 = vmax.f32 %v3838_v43, 0.0  ;;  %v3942_v46 = vmax.f32 %v3923_v60, 0.0  ;;  %v3926_v9 = vpop.f32.mrb[12].mxu1 }
 0x812   :  { %v3944_v47 = vmax.f32 %v3840_v16, 0.0  ;;  %3969 = vst [vmem:[%s11777_s10 + $0xb0] sm:$0xff] %v3941_v40  ;;  %3997 = vst [vmem:[%s11777_s10 + $0x190] sm:$0xff] %v3941_v40  ;;  %v3927_v6 = vadd.f32 %v3926_v9, %v3738_v10  ;;  %v3928_v13 = vpop.f32.mrb[13].mxu1 }
 0x813   :  { %3971 = vst [vmem:[%s11777_s10 + $0xc0] sm:$0xff] %v3943_v36  ;;  %3999 = vst [vmem:[%s11777_s10 + $0x1a0] sm:$0xff] %v3943_v36  ;;  %v3929_v44 = vadd.f32 %v3928_v13, %v3738_v10 }
 0x814   :  { %3972 = vst [vmem:[%s11777_s10 + $0xc8] sm:$0xff] %v3944_v47  ;;  %4000 = vst [vmem:[%s11777_s10 + $0x1a8] sm:$0xff] %v3944_v47  ;;  %v3945_v48 = vmax.f32 %v3927_v6, 0.0 }
 0x815   :  { %3970 = vst [vmem:[%s11777_s10 + $0xb8] sm:$0xff] %v3942_v46  ;;  %3998 = vst [vmem:[%s11777_s10 + $0x198] sm:$0xff] %v3942_v46  ;;  %v3946_v50 = vmax.f32 %v3929_v44, 0.0 }
 0x816   :  { %3973 = vst [vmem:[%s11777_s10 + $0xd0] sm:$0xff] %v3945_v48  ;;  %4001 = vst [vmem:[%s11777_s10 + $0x1b0] sm:$0xff] %v3945_v48 }
 0x817   :  { %3974 = vst [vmem:[%s11777_s10 + $0xd8] sm:$0xff] %v3946_v50  ;;  %4002 = vst [vmem:[%s11777_s10 + $0x1b8] sm:$0xff] %v3946_v50 }

</bundles_post_ra>
